<compile_context>
chip_gen: v6e
topology: v6e:2x2x1
jax: 0.10.0
libtpu: 0.0.40
codegen_flags: <defaults>
</compile_context>

<pallas_src>
import math

import jax
import jax.numpy as jnp
from jax import lax
from jax.experimental import pallas as pl
from jax.experimental.pallas import tpu as pltpu

STRESS_MAGNITUDE = 72000000.0
H = 0.01
C = 3.5e-12
N_LAMBDA = 371

NCOEF = 56        # Chebyshev coefficients per channel (degree 55; decay is ~1e-10 by 48)
NFIT = 256        # Chebyshev nodes used for the wrapper-side projection
LANE = 512        # lane-dense tile width (multiple of 128 -> unmasked vst)
SUB_ROWS = 16     # rows per in-kernel Clenshaw sub-chunk (multiple of 8 sublanes)
MAX_UNITS = 4     # up to 4 * (16*512) = 32768 pixels per grid step


def _round_up(x, m):
    return ((x + m - 1) // m) * m


def _fit_channel_chebyshev(interaction):
    """Fit f_c(s) = sum_k interaction[k,c]/2 * (1 - cos(coef_k * s)) on s in [0,1]
    as a degree-(NCOEF-1) Chebyshev series per channel (DCT projection at NFIT
    first-kind Chebyshev nodes).  Returns flattened (3*NCOEF,) float32."""
    lam = jnp.linspace(390.0, 760.0, N_LAMBDA)                              # nm
    coef = (2.0 * math.pi * H * C * STRESS_MAGNITUDE) / (1e-9 * lam)        # (371,) rad at s=1
    w = interaction.astype(jnp.float32) / 2.0                               # (371, 3)

    j = jnp.arange(NFIT, dtype=jnp.float32)
    theta = (j + 0.5) * (math.pi / NFIT)                                    # (NFIT,)
    s_nodes = 0.5 * (jnp.cos(theta) + 1.0)                                  # nodes mapped to [0,1]
    term = 1.0 - jnp.cos(coef[:, None] * s_nodes[None, :])                  # (371, NFIT)
    fvals = jnp.einsum("kc,kn->cn", w, term,
                       precision=jax.lax.Precision.HIGHEST)                 # (3, NFIT)

    n = jnp.arange(NCOEF, dtype=jnp.float32)
    dct = jnp.cos(n[:, None] * theta[None, :])                              # (NCOEF, NFIT)
    cheb = (2.0 / NFIT) * jnp.einsum("cn,mn->cm", fvals, dct,
                                     precision=jax.lax.Precision.HIGHEST)   # (3, NCOEF)
    cheb = cheb.at[:, 0].multiply(0.5)                                      # standard c0 convention
    return cheb.reshape(-1).astype(jnp.float32)                             # (3*NCOEF,)


def _s2f_kernel(smin_ref, invr_ref, cheb_ref, stress_ref, iso_ref):
    # smin_ref / invr_ref : (bs,)        f32, SMEM scalar prefetch
    # cheb_ref            : (3*NCOEF,)   f32, SMEM scalar prefetch
    # stress_ref          : (1, R_TILE, LANE)       VMEM
    # iso_ref             : (1, 3, R_TILE, LANE)    VMEM, unnormalized isochromatics
    b = pl.program_id(1)
    smin = smin_ref[b]
    invr = invr_ref[b]
    r_tile = stress_ref.shape[1]
    n_sub = r_tile // SUB_ROWS

    def body(j, carry):
        r0 = pl.multiple_of(j * SUB_ROWS, SUB_ROWS)
        s = stress_ref[0, pl.ds(r0, SUB_ROWS), :]            # (SUB_ROWS, LANE)
        s_n = (s - smin) * invr                              # normalized stress in [0, 1]
        y = 2.0 * s_n - 1.0                                  # Chebyshev variable in [-1, 1]
        y2 = y + y
        for c in range(3):                                   # three RGB polynomials (Clenshaw)
            base = c * NCOEF
            b1 = jnp.full_like(y, cheb_ref[base + NCOEF - 1])
            b2 = jnp.zeros_like(y)
            for k in range(NCOEF - 2, 0, -1):
                b0 = cheb_ref[base + k] + y2 * b1 - b2
                b2 = b1
                b1 = b0
            f = cheb_ref[base] + y * b1 - b2                 # Clenshaw tail
            iso_ref[0, c, pl.ds(r0, SUB_ROWS), :] = f
        return carry

    lax.fori_loop(0, n_sub, body, 0)


def stress2fringe(stressmap, interaction):
    """JAX/Pallas equivalent of Stress2Fringe.forward.

    stressmap  : (bs, 1, rows, cols) float32 (NCHW, single channel)
    interaction: (371, 3) float32
    returns (fringes (bs, 3, rows, cols), stress_in (bs, rows, cols))
    """
    bs, one, rows, cols = stressmap.shape
    assert one == 1
    P = rows * cols

    stress_in = stressmap[:, 0, :, :]                                   # (bs, rows, cols)
    stress_flat = stress_in.reshape(bs, P).astype(jnp.float32)          # (bs, P)

    # Per-image min / 1/(max-min): cheap wrapper-side reductions fed via SMEM.
    s_min = jnp.min(stress_flat, axis=1)                                # (bs,)
    s_max = jnp.max(stress_flat, axis=1)                                # (bs,)
    inv_range = 1.0 / (s_max - s_min)   # inf/NaN on constant images, same as the torch reference

    cheb = _fit_channel_chebyshev(interaction)                          # (3*NCOEF,)

    # Pixel tiling: flat pixels reshaped to (n_rows, LANE); each grid step handles
    # R_TILE rows = units_per_tile sub-chunks of (SUB_ROWS, LANE).  Pick the unit
    # count that minimizes padded work (prefer the larger tile on ties).
    p_unit = SUB_ROWS * LANE                                            # 8192 pixels
    n_units = pl.cdiv(P, p_unit)
    best_u, best_total = 1, n_units
    for u in range(1, MAX_UNITS + 1):
        total = _round_up(n_units, u)
        if total < best_total or (total == best_total and u > best_u):
            best_u, best_total = u, total
    units_per_tile, n_units_pad = best_u, best_total
    p_pad = n_units_pad * p_unit
    r_tile = units_per_tile * SUB_ROWS
    n_rows = p_pad // LANE
    n_tiles = n_rows // r_tile

    if p_pad != P:
        # Edge padding keeps padded pixels inside the fitted [0,1] range; they are
        # sliced off before the final per-image max-normalization.
        stress_flat = jnp.pad(stress_flat, ((0, 0), (0, p_pad - P)), mode="edge")
    stress_2d = stress_flat.reshape(bs, n_rows, LANE)                   # (bs, n_rows, LANE)

    cost = pl.CostEstimate(
        flops=bs * p_pad * 3 * (2 * NCOEF + 6),       # Clenshaw mul+add per coefficient, 3 channels
        transcendentals=0,                            # all cosines folded into the fit
        bytes_accessed=4 * (bs * p_pad * 4 + 3 * NCOEF + 2 * bs),
    )

    iso = pl.pallas_call(
        _s2f_kernel,
        out_shape=jax.ShapeDtypeStruct((bs, 3, n_rows, LANE), jnp.float32),
        grid_spec=pltpu.PrefetchScalarGridSpec(
            num_scalar_prefetch=3,
            grid=(n_tiles, bs),                       # tile axis leading -> megacore split at bs=1
            in_specs=[
                pl.BlockSpec((1, r_tile, LANE),
                             lambda t, b, smin, invr, cheb: (b, t, 0)),
            ],
            out_specs=pl.BlockSpec((1, 3, r_tile, LANE),
                                   lambda t, b, smin, invr, cheb: (b, 0, t, 0)),
        ),
        compiler_params=pltpu.CompilerParams(
            dimension_semantics=("parallel", "parallel"),
            vmem_limit_bytes=32 * 1024 * 1024),
        cost_estimate=cost,
    )(s_min, inv_range, cheb, stress_2d)

    # Drop pixel padding, then the per-image max-normalization wrapper-side.
    iso = iso.reshape(bs, 3, p_pad)[:, :, :P].reshape(bs, 3, rows, cols)
    iso_max = jnp.max(iso, axis=(1, 2, 3), keepdims=True)
    fringes = iso / iso_max
    return fringes, stress_in


def _reference(stressmap, interaction):
    """Pure-JAX reference mirroring the PyTorch loops (vectorized)."""
    stress_in = stressmap[:, 0]                                          # (bs, rows, cols)
    s_min = stress_in.min(axis=(1, 2), keepdims=True)
    s_max = stress_in.max(axis=(1, 2), keepdims=True)
    stress_real = (stress_in - s_min) / (s_max - s_min) * STRESS_MAGNITUDE
    lam = jnp.linspace(390.0, 760.0, N_LAMBDA)
    phase = (2.0 * math.pi * H * C) * stress_real[:, None, :, :] \
        / (1e-9 * lam)[None, :, None, None]                              # (bs, 371, h, w)
    term = 1.0 - jnp.cos(phase)
    iso = jnp.einsum('kc,bkhw->bchw', interaction / 2.0, term,
                     precision=jax.lax.Precision.HIGHEST)
    iso_max = iso.max(axis=(1, 2, 3), keepdims=True)
    return iso / iso_max, stress_in


if __name__ == "__main__":
    key = jax.random.PRNGKey(0)
    k1, k2, k3 = jax.random.split(key, 3)

    # Deterministic synthetic light-source/sensor spectral interaction (371 x 3).
    interaction = jax.random.uniform(k2, (N_LAMBDA, 3), dtype=jnp.float32)

    # Case 1: 16x16 image.
    bs, rows, cols = 2, 16, 16
    stressmap = jax.random.normal(k1, (bs, 1, rows, cols), dtype=jnp.float32)
    fringes, stress = stress2fringe(stressmap, interaction)
    jax.block_until_ready((fringes, stress))
    ref_f, ref_s = _reference(stressmap, interaction)
    assert fringes.shape == (bs, 3, rows, cols)
    assert stress.shape == (bs, rows, cols)
    assert jnp.allclose(stress, ref_s)
    assert jnp.allclose(fringes, ref_f, atol=2e-3, rtol=2e-3)

    # Case 2: ragged pixel count (12*10 = 120) exercising the edge-padded tail.
    bs2, rows2, cols2 = 2, 12, 10
    stressmap2 = jax.random.normal(k3, (bs2, 1, rows2, cols2), dtype=jnp.float32)
    fringes2, stress2 = stress2fringe(stressmap2, interaction)
    jax.block_until_ready((fringes2, stress2))
    ref_f2, ref_s2 = _reference(stressmap2, interaction)
    assert jnp.allclose(stress2, ref_s2)
    assert jnp.allclose(fringes2, ref_f2, atol=2e-3, rtol=2e-3)

    print("KERNEL_OK")
</pallas_src>

<mosaic_0001>
module attributes {stable_mosaic.version = 11 : i64} {
  func.func @_s2f_kernel(%arg0: i32, %arg1: i32, %arg2: memref<2xf32, #tpu.memory_space<smem>>, %arg3: memref<2xf32, #tpu.memory_space<smem>>, %arg4: memref<168xf32, #tpu.memory_space<smem>>, %arg5: memref<1x16x512xf32, #tpu.memory_space<vmem>>, %arg6: memref<1x3x16x512xf32, #tpu.memory_space<vmem>>) attributes {dimension_semantics = [#tpu.dimension_semantics<parallel>, #tpu.dimension_semantics<parallel>], iteration_bounds = array<i64: 1, 2>, scalar_prefetch = 3 : i64, scratch_operands = 0 : i64, tpu.core_type = #tpu.core_type<tc>, window_params = [{transform_indices = @transform_0, window_bounds = array<i64: 1, 16, 512>}, {transform_indices = @transform_1, window_bounds = array<i64: 1, 3, 16, 512>}]} {
    %0 = arith.index_cast %arg1 : i32 to index
    %1 = memref.load %arg2[%0] : memref<2xf32, #tpu.memory_space<smem>>
    %2 = arith.index_cast %arg1 : i32 to index
    %3 = memref.load %arg3[%2] : memref<2xf32, #tpu.memory_space<smem>>
    %c0_i32 = arith.constant 0 : i32
    %c16_i32 = arith.constant 16 : i32
    %4 = arith.muli %c0_i32, %c16_i32 : i32
    %5 = tpu.assume_multiple %4, 16 : i32
    %c0 = arith.constant 0 : index
    %6 = arith.index_cast %5 : i32 to index
    %c0_0 = arith.constant 0 : index
    %7 = vector.load %arg5[%c0, %6, %c0_0] : memref<1x16x512xf32, #tpu.memory_space<vmem>>, vector<1x16x512xf32>
    %8 = vector.shape_cast %7 : vector<1x16x512xf32> to vector<16x512xf32>
    %9 = vector.broadcast %1 : f32 to vector<16x512xf32>
    %10 = arith.subf %8, %9 : vector<16x512xf32>
    %11 = vector.broadcast %3 : f32 to vector<16x512xf32>
    %12 = arith.mulf %10, %11 : vector<16x512xf32>
    %cst = arith.constant 2.000000e+00 : f32
    %13 = vector.broadcast %cst : f32 to vector<16x512xf32>
    %14 = arith.mulf %13, %12 : vector<16x512xf32>
    %cst_1 = arith.constant 1.000000e+00 : f32
    %15 = vector.broadcast %cst_1 : f32 to vector<16x512xf32>
    %16 = arith.subf %14, %15 : vector<16x512xf32>
    %17 = arith.addf %16, %16 : vector<16x512xf32>
    %c55 = arith.constant 55 : index
    %18 = memref.load %arg4[%c55] : memref<168xf32, #tpu.memory_space<smem>>
    %19 = vector.broadcast %18 : f32 to vector<16x512xf32>
    %cst_2 = arith.constant 0.000000e+00 : f32
    %20 = vector.broadcast %cst_2 : f32 to vector<16x512xf32>
    %c54 = arith.constant 54 : index
    %21 = memref.load %arg4[%c54] : memref<168xf32, #tpu.memory_space<smem>>
    %22 = arith.mulf %17, %19 : vector<16x512xf32>
    %23 = vector.broadcast %21 : f32 to vector<16x512xf32>
    %24 = arith.addf %23, %22 : vector<16x512xf32>
    %25 = arith.subf %24, %20 : vector<16x512xf32>
    %c53 = arith.constant 53 : index
    %26 = memref.load %arg4[%c53] : memref<168xf32, #tpu.memory_space<smem>>
    %27 = arith.mulf %17, %25 : vector<16x512xf32>
    %28 = vector.broadcast %26 : f32 to vector<16x512xf32>
    %29 = arith.addf %28, %27 : vector<16x512xf32>
    %30 = arith.subf %29, %19 : vector<16x512xf32>
    %c52 = arith.constant 52 : index
    %31 = memref.load %arg4[%c52] : memref<168xf32, #tpu.memory_space<smem>>
    %32 = arith.mulf %17, %30 : vector<16x512xf32>
    %33 = vector.broadcast %31 : f32 to vector<16x512xf32>
    %34 = arith.addf %33, %32 : vector<16x512xf32>
    %35 = arith.subf %34, %25 : vector<16x512xf32>
    %c51 = arith.constant 51 : index
    %36 = memref.load %arg4[%c51] : memref<168xf32, #tpu.memory_space<smem>>
    %37 = arith.mulf %17, %35 : vector<16x512xf32>
    %38 = vector.broadcast %36 : f32 to vector<16x512xf32>
    %39 = arith.addf %38, %37 : vector<16x512xf32>
    %40 = arith.subf %39, %30 : vector<16x512xf32>
    %c50 = arith.constant 50 : index
    %41 = memref.load %arg4[%c50] : memref<168xf32, #tpu.memory_space<smem>>
    %42 = arith.mulf %17, %40 : vector<16x512xf32>
    %43 = vector.broadcast %41 : f32 to vector<16x512xf32>
    %44 = arith.addf %43, %42 : vector<16x512xf32>
    %45 = arith.subf %44, %35 : vector<16x512xf32>
    %c49 = arith.constant 49 : index
    %46 = memref.load %arg4[%c49] : memref<168xf32, #tpu.memory_space<smem>>
    %47 = arith.mulf %17, %45 : vector<16x512xf32>
    %48 = vector.broadcast %46 : f32 to vector<16x512xf32>
    %49 = arith.addf %48, %47 : vector<16x512xf32>
    %50 = arith.subf %49, %40 : vector<16x512xf32>
    %c48 = arith.constant 48 : index
    %51 = memref.load %arg4[%c48] : memref<168xf32, #tpu.memory_space<smem>>
    %52 = arith.mulf %17, %50 : vector<16x512xf32>
    %53 = vector.broadcast %51 : f32 to vector<16x512xf32>
    %54 = arith.addf %53, %52 : vector<16x512xf32>
    %55 = arith.subf %54, %45 : vector<16x512xf32>
    %c47 = arith.constant 47 : index
    %56 = memref.load %arg4[%c47] : memref<168xf32, #tpu.memory_space<smem>>
    %57 = arith.mulf %17, %55 : vector<16x512xf32>
    %58 = vector.broadcast %56 : f32 to vector<16x512xf32>
    %59 = arith.addf %58, %57 : vector<16x512xf32>
    %60 = arith.subf %59, %50 : vector<16x512xf32>
    %c46 = arith.constant 46 : index
    %61 = memref.load %arg4[%c46] : memref<168xf32, #tpu.memory_space<smem>>
    %62 = arith.mulf %17, %60 : vector<16x512xf32>
    %63 = vector.broadcast %61 : f32 to vector<16x512xf32>
    %64 = arith.addf %63, %62 : vector<16x512xf32>
    %65 = arith.subf %64, %55 : vector<16x512xf32>
    %c45 = arith.constant 45 : index
    %66 = memref.load %arg4[%c45] : memref<168xf32, #tpu.memory_space<smem>>
    %67 = arith.mulf %17, %65 : vector<16x512xf32>
    %68 = vector.broadcast %66 : f32 to vector<16x512xf32>
    %69 = arith.addf %68, %67 : vector<16x512xf32>
    %70 = arith.subf %69, %60 : vector<16x512xf32>
    %c44 = arith.constant 44 : index
    %71 = memref.load %arg4[%c44] : memref<168xf32, #tpu.memory_space<smem>>
    %72 = arith.mulf %17, %70 : vector<16x512xf32>
    %73 = vector.broadcast %71 : f32 to vector<16x512xf32>
    %74 = arith.addf %73, %72 : vector<16x512xf32>
    %75 = arith.subf %74, %65 : vector<16x512xf32>
    %c43 = arith.constant 43 : index
    %76 = memref.load %arg4[%c43] : memref<168xf32, #tpu.memory_space<smem>>
    %77 = arith.mulf %17, %75 : vector<16x512xf32>
    %78 = vector.broadcast %76 : f32 to vector<16x512xf32>
    %79 = arith.addf %78, %77 : vector<16x512xf32>
    %80 = arith.subf %79, %70 : vector<16x512xf32>
    %c42 = arith.constant 42 : index
    %81 = memref.load %arg4[%c42] : memref<168xf32, #tpu.memory_space<smem>>
    %82 = arith.mulf %17, %80 : vector<16x512xf32>
    %83 = vector.broadcast %81 : f32 to vector<16x512xf32>
    %84 = arith.addf %83, %82 : vector<16x512xf32>
    %85 = arith.subf %84, %75 : vector<16x512xf32>
    %c41 = arith.constant 41 : index
    %86 = memref.load %arg4[%c41] : memref<168xf32, #tpu.memory_space<smem>>
    %87 = arith.mulf %17, %85 : vector<16x512xf32>
    %88 = vector.broadcast %86 : f32 to vector<16x512xf32>
    %89 = arith.addf %88, %87 : vector<16x512xf32>
    %90 = arith.subf %89, %80 : vector<16x512xf32>
    %c40 = arith.constant 40 : index
    %91 = memref.load %arg4[%c40] : memref<168xf32, #tpu.memory_space<smem>>
    %92 = arith.mulf %17, %90 : vector<16x512xf32>
    %93 = vector.broadcast %91 : f32 to vector<16x512xf32>
    %94 = arith.addf %93, %92 : vector<16x512xf32>
    %95 = arith.subf %94, %85 : vector<16x512xf32>
    %c39 = arith.constant 39 : index
    %96 = memref.load %arg4[%c39] : memref<168xf32, #tpu.memory_space<smem>>
    %97 = arith.mulf %17, %95 : vector<16x512xf32>
    %98 = vector.broadcast %96 : f32 to vector<16x512xf32>
    %99 = arith.addf %98, %97 : vector<16x512xf32>
    %100 = arith.subf %99, %90 : vector<16x512xf32>
    %c38 = arith.constant 38 : index
    %101 = memref.load %arg4[%c38] : memref<168xf32, #tpu.memory_space<smem>>
    %102 = arith.mulf %17, %100 : vector<16x512xf32>
    %103 = vector.broadcast %101 : f32 to vector<16x512xf32>
    %104 = arith.addf %103, %102 : vector<16x512xf32>
    %105 = arith.subf %104, %95 : vector<16x512xf32>
    %c37 = arith.constant 37 : index
    %106 = memref.load %arg4[%c37] : memref<168xf32, #tpu.memory_space<smem>>
    %107 = arith.mulf %17, %105 : vector<16x512xf32>
    %108 = vector.broadcast %106 : f32 to vector<16x512xf32>
    %109 = arith.addf %108, %107 : vector<16x512xf32>
    %110 = arith.subf %109, %100 : vector<16x512xf32>
    %c36 = arith.constant 36 : index
    %111 = memref.load %arg4[%c36] : memref<168xf32, #tpu.memory_space<smem>>
    %112 = arith.mulf %17, %110 : vector<16x512xf32>
    %113 = vector.broadcast %111 : f32 to vector<16x512xf32>
    %114 = arith.addf %113, %112 : vector<16x512xf32>
    %115 = arith.subf %114, %105 : vector<16x512xf32>
    %c35 = arith.constant 35 : index
    %116 = memref.load %arg4[%c35] : memref<168xf32, #tpu.memory_space<smem>>
    %117 = arith.mulf %17, %115 : vector<16x512xf32>
    %118 = vector.broadcast %116 : f32 to vector<16x512xf32>
    %119 = arith.addf %118, %117 : vector<16x512xf32>
    %120 = arith.subf %119, %110 : vector<16x512xf32>
    %c34 = arith.constant 34 : index
    %121 = memref.load %arg4[%c34] : memref<168xf32, #tpu.memory_space<smem>>
    %122 = arith.mulf %17, %120 : vector<16x512xf32>
    %123 = vector.broadcast %121 : f32 to vector<16x512xf32>
    %124 = arith.addf %123, %122 : vector<16x512xf32>
    %125 = arith.subf %124, %115 : vector<16x512xf32>
    %c33 = arith.constant 33 : index
    %126 = memref.load %arg4[%c33] : memref<168xf32, #tpu.memory_space<smem>>
    %127 = arith.mulf %17, %125 : vector<16x512xf32>
    %128 = vector.broadcast %126 : f32 to vector<16x512xf32>
    %129 = arith.addf %128, %127 : vector<16x512xf32>
    %130 = arith.subf %129, %120 : vector<16x512xf32>
    %c32 = arith.constant 32 : index
    %131 = memref.load %arg4[%c32] : memref<168xf32, #tpu.memory_space<smem>>
    %132 = arith.mulf %17, %130 : vector<16x512xf32>
    %133 = vector.broadcast %131 : f32 to vector<16x512xf32>
    %134 = arith.addf %133, %132 : vector<16x512xf32>
    %135 = arith.subf %134, %125 : vector<16x512xf32>
    %c31 = arith.constant 31 : index
    %136 = memref.load %arg4[%c31] : memref<168xf32, #tpu.memory_space<smem>>
    %137 = arith.mulf %17, %135 : vector<16x512xf32>
    %138 = vector.broadcast %136 : f32 to vector<16x512xf32>
    %139 = arith.addf %138, %137 : vector<16x512xf32>
    %140 = arith.subf %139, %130 : vector<16x512xf32>
    %c30 = arith.constant 30 : index
    %141 = memref.load %arg4[%c30] : memref<168xf32, #tpu.memory_space<smem>>
    %142 = arith.mulf %17, %140 : vector<16x512xf32>
    %143 = vector.broadcast %141 : f32 to vector<16x512xf32>
    %144 = arith.addf %143, %142 : vector<16x512xf32>
    %145 = arith.subf %144, %135 : vector<16x512xf32>
    %c29 = arith.constant 29 : index
    %146 = memref.load %arg4[%c29] : memref<168xf32, #tpu.memory_space<smem>>
    %147 = arith.mulf %17, %145 : vector<16x512xf32>
    %148 = vector.broadcast %146 : f32 to vector<16x512xf32>
    %149 = arith.addf %148, %147 : vector<16x512xf32>
    %150 = arith.subf %149, %140 : vector<16x512xf32>
    %c28 = arith.constant 28 : index
    %151 = memref.load %arg4[%c28] : memref<168xf32, #tpu.memory_space<smem>>
    %152 = arith.mulf %17, %150 : vector<16x512xf32>
    %153 = vector.broadcast %151 : f32 to vector<16x512xf32>
    %154 = arith.addf %153, %152 : vector<16x512xf32>
    %155 = arith.subf %154, %145 : vector<16x512xf32>
    %c27 = arith.constant 27 : index
    %156 = memref.load %arg4[%c27] : memref<168xf32, #tpu.memory_space<smem>>
    %157 = arith.mulf %17, %155 : vector<16x512xf32>
    %158 = vector.broadcast %156 : f32 to vector<16x512xf32>
    %159 = arith.addf %158, %157 : vector<16x512xf32>
    %160 = arith.subf %159, %150 : vector<16x512xf32>
    %c26 = arith.constant 26 : index
    %161 = memref.load %arg4[%c26] : memref<168xf32, #tpu.memory_space<smem>>
    %162 = arith.mulf %17, %160 : vector<16x512xf32>
    %163 = vector.broadcast %161 : f32 to vector<16x512xf32>
    %164 = arith.addf %163, %162 : vector<16x512xf32>
    %165 = arith.subf %164, %155 : vector<16x512xf32>
    %c25 = arith.constant 25 : index
    %166 = memref.load %arg4[%c25] : memref<168xf32, #tpu.memory_space<smem>>
    %167 = arith.mulf %17, %165 : vector<16x512xf32>
    %168 = vector.broadcast %166 : f32 to vector<16x512xf32>
    %169 = arith.addf %168, %167 : vector<16x512xf32>
    %170 = arith.subf %169, %160 : vector<16x512xf32>
    %c24 = arith.constant 24 : index
    %171 = memref.load %arg4[%c24] : memref<168xf32, #tpu.memory_space<smem>>
    %172 = arith.mulf %17, %170 : vector<16x512xf32>
    %173 = vector.broadcast %171 : f32 to vector<16x512xf32>
    %174 = arith.addf %173, %172 : vector<16x512xf32>
    %175 = arith.subf %174, %165 : vector<16x512xf32>
    %c23 = arith.constant 23 : index
    %176 = memref.load %arg4[%c23] : memref<168xf32, #tpu.memory_space<smem>>
    %177 = arith.mulf %17, %175 : vector<16x512xf32>
    %178 = vector.broadcast %176 : f32 to vector<16x512xf32>
    %179 = arith.addf %178, %177 : vector<16x512xf32>
    %180 = arith.subf %179, %170 : vector<16x512xf32>
    %c22 = arith.constant 22 : index
    %181 = memref.load %arg4[%c22] : memref<168xf32, #tpu.memory_space<smem>>
    %182 = arith.mulf %17, %180 : vector<16x512xf32>
    %183 = vector.broadcast %181 : f32 to vector<16x512xf32>
    %184 = arith.addf %183, %182 : vector<16x512xf32>
    %185 = arith.subf %184, %175 : vector<16x512xf32>
    %c21 = arith.constant 21 : index
    %186 = memref.load %arg4[%c21] : memref<168xf32, #tpu.memory_space<smem>>
    %187 = arith.mulf %17, %185 : vector<16x512xf32>
    %188 = vector.broadcast %186 : f32 to vector<16x512xf32>
    %189 = arith.addf %188, %187 : vector<16x512xf32>
    %190 = arith.subf %189, %180 : vector<16x512xf32>
    %c20 = arith.constant 20 : index
    %191 = memref.load %arg4[%c20] : memref<168xf32, #tpu.memory_space<smem>>
    %192 = arith.mulf %17, %190 : vector<16x512xf32>
    %193 = vector.broadcast %191 : f32 to vector<16x512xf32>
    %194 = arith.addf %193, %192 : vector<16x512xf32>
    %195 = arith.subf %194, %185 : vector<16x512xf32>
    %c19 = arith.constant 19 : index
    %196 = memref.load %arg4[%c19] : memref<168xf32, #tpu.memory_space<smem>>
    %197 = arith.mulf %17, %195 : vector<16x512xf32>
    %198 = vector.broadcast %196 : f32 to vector<16x512xf32>
    %199 = arith.addf %198, %197 : vector<16x512xf32>
    %200 = arith.subf %199, %190 : vector<16x512xf32>
    %c18 = arith.constant 18 : index
    %201 = memref.load %arg4[%c18] : memref<168xf32, #tpu.memory_space<smem>>
    %202 = arith.mulf %17, %200 : vector<16x512xf32>
    %203 = vector.broadcast %201 : f32 to vector<16x512xf32>
    %204 = arith.addf %203, %202 : vector<16x512xf32>
    %205 = arith.subf %204, %195 : vector<16x512xf32>
    %c17 = arith.constant 17 : index
    %206 = memref.load %arg4[%c17] : memref<168xf32, #tpu.memory_space<smem>>
    %207 = arith.mulf %17, %205 : vector<16x512xf32>
    %208 = vector.broadcast %206 : f32 to vector<16x512xf32>
    %209 = arith.addf %208, %207 : vector<16x512xf32>
    %210 = arith.subf %209, %200 : vector<16x512xf32>
    %c16 = arith.constant 16 : index
    %211 = memref.load %arg4[%c16] : memref<168xf32, #tpu.memory_space<smem>>
    %212 = arith.mulf %17, %210 : vector<16x512xf32>
    %213 = vector.broadcast %211 : f32 to vector<16x512xf32>
    %214 = arith.addf %213, %212 : vector<16x512xf32>
    %215 = arith.subf %214, %205 : vector<16x512xf32>
    %c15 = arith.constant 15 : index
    %216 = memref.load %arg4[%c15] : memref<168xf32, #tpu.memory_space<smem>>
    %217 = arith.mulf %17, %215 : vector<16x512xf32>
    %218 = vector.broadcast %216 : f32 to vector<16x512xf32>
    %219 = arith.addf %218, %217 : vector<16x512xf32>
    %220 = arith.subf %219, %210 : vector<16x512xf32>
    %c14 = arith.constant 14 : index
    %221 = memref.load %arg4[%c14] : memref<168xf32, #tpu.memory_space<smem>>
    %222 = arith.mulf %17, %220 : vector<16x512xf32>
    %223 = vector.broadcast %221 : f32 to vector<16x512xf32>
    %224 = arith.addf %223, %222 : vector<16x512xf32>
    %225 = arith.subf %224, %215 : vector<16x512xf32>
    %c13 = arith.constant 13 : index
    %226 = memref.load %arg4[%c13] : memref<168xf32, #tpu.memory_space<smem>>
    %227 = arith.mulf %17, %225 : vector<16x512xf32>
    %228 = vector.broadcast %226 : f32 to vector<16x512xf32>
    %229 = arith.addf %228, %227 : vector<16x512xf32>
    %230 = arith.subf %229, %220 : vector<16x512xf32>
    %c12 = arith.constant 12 : index
    %231 = memref.load %arg4[%c12] : memref<168xf32, #tpu.memory_space<smem>>
    %232 = arith.mulf %17, %230 : vector<16x512xf32>
    %233 = vector.broadcast %231 : f32 to vector<16x512xf32>
    %234 = arith.addf %233, %232 : vector<16x512xf32>
    %235 = arith.subf %234, %225 : vector<16x512xf32>
    %c11 = arith.constant 11 : index
    %236 = memref.load %arg4[%c11] : memref<168xf32, #tpu.memory_space<smem>>
    %237 = arith.mulf %17, %235 : vector<16x512xf32>
    %238 = vector.broadcast %236 : f32 to vector<16x512xf32>
    %239 = arith.addf %238, %237 : vector<16x512xf32>
    %240 = arith.subf %239, %230 : vector<16x512xf32>
    %c10 = arith.constant 10 : index
    %241 = memref.load %arg4[%c10] : memref<168xf32, #tpu.memory_space<smem>>
    %242 = arith.mulf %17, %240 : vector<16x512xf32>
    %243 = vector.broadcast %241 : f32 to vector<16x512xf32>
    %244 = arith.addf %243, %242 : vector<16x512xf32>
    %245 = arith.subf %244, %235 : vector<16x512xf32>
    %c9 = arith.constant 9 : index
    %246 = memref.load %arg4[%c9] : memref<168xf32, #tpu.memory_space<smem>>
    %247 = arith.mulf %17, %245 : vector<16x512xf32>
    %248 = vector.broadcast %246 : f32 to vector<16x512xf32>
    %249 = arith.addf %248, %247 : vector<16x512xf32>
    %250 = arith.subf %249, %240 : vector<16x512xf32>
    %c8 = arith.constant 8 : index
    %251 = memref.load %arg4[%c8] : memref<168xf32, #tpu.memory_space<smem>>
    %252 = arith.mulf %17, %250 : vector<16x512xf32>
    %253 = vector.broadcast %251 : f32 to vector<16x512xf32>
    %254 = arith.addf %253, %252 : vector<16x512xf32>
    %255 = arith.subf %254, %245 : vector<16x512xf32>
    %c7 = arith.constant 7 : index
    %256 = memref.load %arg4[%c7] : memref<168xf32, #tpu.memory_space<smem>>
    %257 = arith.mulf %17, %255 : vector<16x512xf32>
    %258 = vector.broadcast %256 : f32 to vector<16x512xf32>
    %259 = arith.addf %258, %257 : vector<16x512xf32>
    %260 = arith.subf %259, %250 : vector<16x512xf32>
    %c6 = arith.constant 6 : index
    %261 = memref.load %arg4[%c6] : memref<168xf32, #tpu.memory_space<smem>>
    %262 = arith.mulf %17, %260 : vector<16x512xf32>
    %263 = vector.broadcast %261 : f32 to vector<16x512xf32>
    %264 = arith.addf %263, %262 : vector<16x512xf32>
    %265 = arith.subf %264, %255 : vector<16x512xf32>
    %c5 = arith.constant 5 : index
    %266 = memref.load %arg4[%c5] : memref<168xf32, #tpu.memory_space<smem>>
    %267 = arith.mulf %17, %265 : vector<16x512xf32>
    %268 = vector.broadcast %266 : f32 to vector<16x512xf32>
    %269 = arith.addf %268, %267 : vector<16x512xf32>
    %270 = arith.subf %269, %260 : vector<16x512xf32>
    %c4 = arith.constant 4 : index
    %271 = memref.load %arg4[%c4] : memref<168xf32, #tpu.memory_space<smem>>
    %272 = arith.mulf %17, %270 : vector<16x512xf32>
    %273 = vector.broadcast %271 : f32 to vector<16x512xf32>
    %274 = arith.addf %273, %272 : vector<16x512xf32>
    %275 = arith.subf %274, %265 : vector<16x512xf32>
    %c3 = arith.constant 3 : index
    %276 = memref.load %arg4[%c3] : memref<168xf32, #tpu.memory_space<smem>>
    %277 = arith.mulf %17, %275 : vector<16x512xf32>
    %278 = vector.broadcast %276 : f32 to vector<16x512xf32>
    %279 = arith.addf %278, %277 : vector<16x512xf32>
    %280 = arith.subf %279, %270 : vector<16x512xf32>
    %c2 = arith.constant 2 : index
    %281 = memref.load %arg4[%c2] : memref<168xf32, #tpu.memory_space<smem>>
    %282 = arith.mulf %17, %280 : vector<16x512xf32>
    %283 = vector.broadcast %281 : f32 to vector<16x512xf32>
    %284 = arith.addf %283, %282 : vector<16x512xf32>
    %285 = arith.subf %284, %275 : vector<16x512xf32>
    %c1 = arith.constant 1 : index
    %286 = memref.load %arg4[%c1] : memref<168xf32, #tpu.memory_space<smem>>
    %287 = arith.mulf %17, %285 : vector<16x512xf32>
    %288 = vector.broadcast %286 : f32 to vector<16x512xf32>
    %289 = arith.addf %288, %287 : vector<16x512xf32>
    %290 = arith.subf %289, %280 : vector<16x512xf32>
    %c0_3 = arith.constant 0 : index
    %291 = memref.load %arg4[%c0_3] : memref<168xf32, #tpu.memory_space<smem>>
    %292 = arith.mulf %16, %290 : vector<16x512xf32>
    %293 = vector.broadcast %291 : f32 to vector<16x512xf32>
    %294 = arith.addf %293, %292 : vector<16x512xf32>
    %295 = arith.subf %294, %285 : vector<16x512xf32>
    %c0_4 = arith.constant 0 : index
    %c0_5 = arith.constant 0 : index
    %296 = arith.index_cast %5 : i32 to index
    %c0_6 = arith.constant 0 : index
    %297 = vector.load %arg6[%c0_4, %c0_5, %296, %c0_6] : memref<1x3x16x512xf32, #tpu.memory_space<vmem>>, vector<1x1x16x512xf32>
    %298 = vector.shape_cast %297 : vector<1x1x16x512xf32> to vector<16x512xf32>
    %299 = vector.shape_cast %295 : vector<16x512xf32> to vector<1x1x16x512xf32>
    tpu.vector_store %arg6[%c0_4, %c0_5, %296, %c0_6], %299 {strides = array<i32>} : memref<1x3x16x512xf32, #tpu.memory_space<vmem>>, vector<1x1x16x512xf32>,
    %c111 = arith.constant 111 : index
    %300 = memref.load %arg4[%c111] : memref<168xf32, #tpu.memory_space<smem>>
    %301 = vector.broadcast %300 : f32 to vector<16x512xf32>
    %cst_7 = arith.constant 0.000000e+00 : f32
    %302 = vector.broadcast %cst_7 : f32 to vector<16x512xf32>
    %c110 = arith.constant 110 : index
    %303 = memref.load %arg4[%c110] : memref<168xf32, #tpu.memory_space<smem>>
    %304 = arith.mulf %17, %301 : vector<16x512xf32>
    %305 = vector.broadcast %303 : f32 to vector<16x512xf32>
    %306 = arith.addf %305, %304 : vector<16x512xf32>
    %307 = arith.subf %306, %302 : vector<16x512xf32>
    %c109 = arith.constant 109 : index
    %308 = memref.load %arg4[%c109] : memref<168xf32, #tpu.memory_space<smem>>
    %309 = arith.mulf %17, %307 : vector<16x512xf32>
    %310 = vector.broadcast %308 : f32 to vector<16x512xf32>
    %311 = arith.addf %310, %309 : vector<16x512xf32>
    %312 = arith.subf %311, %301 : vector<16x512xf32>
    %c108 = arith.constant 108 : index
    %313 = memref.load %arg4[%c108] : memref<168xf32, #tpu.memory_space<smem>>
    %314 = arith.mulf %17, %312 : vector<16x512xf32>
    %315 = vector.broadcast %313 : f32 to vector<16x512xf32>
    %316 = arith.addf %315, %314 : vector<16x512xf32>
    %317 = arith.subf %316, %307 : vector<16x512xf32>
    %c107 = arith.constant 107 : index
    %318 = memref.load %arg4[%c107] : memref<168xf32, #tpu.memory_space<smem>>
    %319 = arith.mulf %17, %317 : vector<16x512xf32>
    %320 = vector.broadcast %318 : f32 to vector<16x512xf32>
    %321 = arith.addf %320, %319 : vector<16x512xf32>
    %322 = arith.subf %321, %312 : vector<16x512xf32>
    %c106 = arith.constant 106 : index
    %323 = memref.load %arg4[%c106] : memref<168xf32, #tpu.memory_space<smem>>
    %324 = arith.mulf %17, %322 : vector<16x512xf32>
    %325 = vector.broadcast %323 : f32 to vector<16x512xf32>
    %326 = arith.addf %325, %324 : vector<16x512xf32>
    %327 = arith.subf %326, %317 : vector<16x512xf32>
    %c105 = arith.constant 105 : index
    %328 = memref.load %arg4[%c105] : memref<168xf32, #tpu.memory_space<smem>>
    %329 = arith.mulf %17, %327 : vector<16x512xf32>
    %330 = vector.broadcast %328 : f32 to vector<16x512xf32>
    %331 = arith.addf %330, %329 : vector<16x512xf32>
    %332 = arith.subf %331, %322 : vector<16x512xf32>
    %c104 = arith.constant 104 : index
    %333 = memref.load %arg4[%c104] : memref<168xf32, #tpu.memory_space<smem>>
    %334 = arith.mulf %17, %332 : vector<16x512xf32>
    %335 = vector.broadcast %333 : f32 to vector<16x512xf32>
    %336 = arith.addf %335, %334 : vector<16x512xf32>
    %337 = arith.subf %336, %327 : vector<16x512xf32>
    %c103 = arith.constant 103 : index
    %338 = memref.load %arg4[%c103] : memref<168xf32, #tpu.memory_space<smem>>
    %339 = arith.mulf %17, %337 : vector<16x512xf32>
    %340 = vector.broadcast %338 : f32 to vector<16x512xf32>
    %341 = arith.addf %340, %339 : vector<16x512xf32>
    %342 = arith.subf %341, %332 : vector<16x512xf32>
    %c102 = arith.constant 102 : index
    %343 = memref.load %arg4[%c102] : memref<168xf32, #tpu.memory_space<smem>>
    %344 = arith.mulf %17, %342 : vector<16x512xf32>
    %345 = vector.broadcast %343 : f32 to vector<16x512xf32>
    %346 = arith.addf %345, %344 : vector<16x512xf32>
    %347 = arith.subf %346, %337 : vector<16x512xf32>
    %c101 = arith.constant 101 : index
    %348 = memref.load %arg4[%c101] : memref<168xf32, #tpu.memory_space<smem>>
    %349 = arith.mulf %17, %347 : vector<16x512xf32>
    %350 = vector.broadcast %348 : f32 to vector<16x512xf32>
    %351 = arith.addf %350, %349 : vector<16x512xf32>
    %352 = arith.subf %351, %342 : vector<16x512xf32>
    %c100 = arith.constant 100 : index
    %353 = memref.load %arg4[%c100] : memref<168xf32, #tpu.memory_space<smem>>
    %354 = arith.mulf %17, %352 : vector<16x512xf32>
    %355 = vector.broadcast %353 : f32 to vector<16x512xf32>
    %356 = arith.addf %355, %354 : vector<16x512xf32>
    %357 = arith.subf %356, %347 : vector<16x512xf32>
    %c99 = arith.constant 99 : index
    %358 = memref.load %arg4[%c99] : memref<168xf32, #tpu.memory_space<smem>>
    %359 = arith.mulf %17, %357 : vector<16x512xf32>
    %360 = vector.broadcast %358 : f32 to vector<16x512xf32>
    %361 = arith.addf %360, %359 : vector<16x512xf32>
    %362 = arith.subf %361, %352 : vector<16x512xf32>
    %c98 = arith.constant 98 : index
    %363 = memref.load %arg4[%c98] : memref<168xf32, #tpu.memory_space<smem>>
    %364 = arith.mulf %17, %362 : vector<16x512xf32>
    %365 = vector.broadcast %363 : f32 to vector<16x512xf32>
    %366 = arith.addf %365, %364 : vector<16x512xf32>
    %367 = arith.subf %366, %357 : vector<16x512xf32>
    %c97 = arith.constant 97 : index
    %368 = memref.load %arg4[%c97] : memref<168xf32, #tpu.memory_space<smem>>
    %369 = arith.mulf %17, %367 : vector<16x512xf32>
    %370 = vector.broadcast %368 : f32 to vector<16x512xf32>
    %371 = arith.addf %370, %369 : vector<16x512xf32>
    %372 = arith.subf %371, %362 : vector<16x512xf32>
    %c96 = arith.constant 96 : index
    %373 = memref.load %arg4[%c96] : memref<168xf32, #tpu.memory_space<smem>>
    %374 = arith.mulf %17, %372 : vector<16x512xf32>
    %375 = vector.broadcast %373 : f32 to vector<16x512xf32>
    %376 = arith.addf %375, %374 : vector<16x512xf32>
    %377 = arith.subf %376, %367 : vector<16x512xf32>
    %c95 = arith.constant 95 : index
    %378 = memref.load %arg4[%c95] : memref<168xf32, #tpu.memory_space<smem>>
    %379 = arith.mulf %17, %377 : vector<16x512xf32>
    %380 = vector.broadcast %378 : f32 to vector<16x512xf32>
    %381 = arith.addf %380, %379 : vector<16x512xf32>
    %382 = arith.subf %381, %372 : vector<16x512xf32>
    %c94 = arith.constant 94 : index
    %383 = memref.load %arg4[%c94] : memref<168xf32, #tpu.memory_space<smem>>
    %384 = arith.mulf %17, %382 : vector<16x512xf32>
    %385 = vector.broadcast %383 : f32 to vector<16x512xf32>
    %386 = arith.addf %385, %384 : vector<16x512xf32>
    %387 = arith.subf %386, %377 : vector<16x512xf32>
    %c93 = arith.constant 93 : index
    %388 = memref.load %arg4[%c93] : memref<168xf32, #tpu.memory_space<smem>>
    %389 = arith.mulf %17, %387 : vector<16x512xf32>
    %390 = vector.broadcast %388 : f32 to vector<16x512xf32>
    %391 = arith.addf %390, %389 : vector<16x512xf32>
    %392 = arith.subf %391, %382 : vector<16x512xf32>
    %c92 = arith.constant 92 : index
    %393 = memref.load %arg4[%c92] : memref<168xf32, #tpu.memory_space<smem>>
    %394 = arith.mulf %17, %392 : vector<16x512xf32>
    %395 = vector.broadcast %393 : f32 to vector<16x512xf32>
    %396 = arith.addf %395, %394 : vector<16x512xf32>
    %397 = arith.subf %396, %387 : vector<16x512xf32>
    %c91 = arith.constant 91 : index
    %398 = memref.load %arg4[%c91] : memref<168xf32, #tpu.memory_space<smem>>
    %399 = arith.mulf %17, %397 : vector<16x512xf32>
    %400 = vector.broadcast %398 : f32 to vector<16x512xf32>
    %401 = arith.addf %400, %399 : vector<16x512xf32>
    %402 = arith.subf %401, %392 : vector<16x512xf32>
    %c90 = arith.constant 90 : index
    %403 = memref.load %arg4[%c90] : memref<168xf32, #tpu.memory_space<smem>>
    %404 = arith.mulf %17, %402 : vector<16x512xf32>
    %405 = vector.broadcast %403 : f32 to vector<16x512xf32>
    %406 = arith.addf %405, %404 : vector<16x512xf32>
    %407 = arith.subf %406, %397 : vector<16x512xf32>
    %c89 = arith.constant 89 : index
    %408 = memref.load %arg4[%c89] : memref<168xf32, #tpu.memory_space<smem>>
    %409 = arith.mulf %17, %407 : vector<16x512xf32>
    %410 = vector.broadcast %408 : f32 to vector<16x512xf32>
    %411 = arith.addf %410, %409 : vector<16x512xf32>
    %412 = arith.subf %411, %402 : vector<16x512xf32>
    %c88 = arith.constant 88 : index
    %413 = memref.load %arg4[%c88] : memref<168xf32, #tpu.memory_space<smem>>
    %414 = arith.mulf %17, %412 : vector<16x512xf32>
    %415 = vector.broadcast %413 : f32 to vector<16x512xf32>
    %416 = arith.addf %415, %414 : vector<16x512xf32>
    %417 = arith.subf %416, %407 : vector<16x512xf32>
    %c87 = arith.constant 87 : index
    %418 = memref.load %arg4[%c87] : memref<168xf32, #tpu.memory_space<smem>>
    %419 = arith.mulf %17, %417 : vector<16x512xf32>
    %420 = vector.broadcast %418 : f32 to vector<16x512xf32>
    %421 = arith.addf %420, %419 : vector<16x512xf32>
    %422 = arith.subf %421, %412 : vector<16x512xf32>
    %c86 = arith.constant 86 : index
    %423 = memref.load %arg4[%c86] : memref<168xf32, #tpu.memory_space<smem>>
    %424 = arith.mulf %17, %422 : vector<16x512xf32>
    %425 = vector.broadcast %423 : f32 to vector<16x512xf32>
    %426 = arith.addf %425, %424 : vector<16x512xf32>
    %427 = arith.subf %426, %417 : vector<16x512xf32>
    %c85 = arith.constant 85 : index
    %428 = memref.load %arg4[%c85] : memref<168xf32, #tpu.memory_space<smem>>
    %429 = arith.mulf %17, %427 : vector<16x512xf32>
    %430 = vector.broadcast %428 : f32 to vector<16x512xf32>
    %431 = arith.addf %430, %429 : vector<16x512xf32>
    %432 = arith.subf %431, %422 : vector<16x512xf32>
    %c84 = arith.constant 84 : index
    %433 = memref.load %arg4[%c84] : memref<168xf32, #tpu.memory_space<smem>>
    %434 = arith.mulf %17, %432 : vector<16x512xf32>
    %435 = vector.broadcast %433 : f32 to vector<16x512xf32>
    %436 = arith.addf %435, %434 : vector<16x512xf32>
    %437 = arith.subf %436, %427 : vector<16x512xf32>
    %c83 = arith.constant 83 : index
    %438 = memref.load %arg4[%c83] : memref<168xf32, #tpu.memory_space<smem>>
    %439 = arith.mulf %17, %437 : vector<16x512xf32>
    %440 = vector.broadcast %438 : f32 to vector<16x512xf32>
    %441 = arith.addf %440, %439 : vector<16x512xf32>
    %442 = arith.subf %441, %432 : vector<16x512xf32>
    %c82 = arith.constant 82 : index
    %443 = memref.load %arg4[%c82] : memref<168xf32, #tpu.memory_space<smem>>
    %444 = arith.mulf %17, %442 : vector<16x512xf32>
    %445 = vector.broadcast %443 : f32 to vector<16x512xf32>
    %446 = arith.addf %445, %444 : vector<16x512xf32>
    %447 = arith.subf %446, %437 : vector<16x512xf32>
    %c81 = arith.constant 81 : index
    %448 = memref.load %arg4[%c81] : memref<168xf32, #tpu.memory_space<smem>>
    %449 = arith.mulf %17, %447 : vector<16x512xf32>
    %450 = vector.broadcast %448 : f32 to vector<16x512xf32>
    %451 = arith.addf %450, %449 : vector<16x512xf32>
    %452 = arith.subf %451, %442 : vector<16x512xf32>
    %c80 = arith.constant 80 : index
    %453 = memref.load %arg4[%c80] : memref<168xf32, #tpu.memory_space<smem>>
    %454 = arith.mulf %17, %452 : vector<16x512xf32>
    %455 = vector.broadcast %453 : f32 to vector<16x512xf32>
    %456 = arith.addf %455, %454 : vector<16x512xf32>
    %457 = arith.subf %456, %447 : vector<16x512xf32>
    %c79 = arith.constant 79 : index
    %458 = memref.load %arg4[%c79] : memref<168xf32, #tpu.memory_space<smem>>
    %459 = arith.mulf %17, %457 : vector<16x512xf32>
    %460 = vector.broadcast %458 : f32 to vector<16x512xf32>
    %461 = arith.addf %460, %459 : vector<16x512xf32>
    %462 = arith.subf %461, %452 : vector<16x512xf32>
    %c78 = arith.constant 78 : index
    %463 = memref.load %arg4[%c78] : memref<168xf32, #tpu.memory_space<smem>>
    %464 = arith.mulf %17, %462 : vector<16x512xf32>
    %465 = vector.broadcast %463 : f32 to vector<16x512xf32>
    %466 = arith.addf %465, %464 : vector<16x512xf32>
    %467 = arith.subf %466, %457 : vector<16x512xf32>
    %c77 = arith.constant 77 : index
    %468 = memref.load %arg4[%c77] : memref<168xf32, #tpu.memory_space<smem>>
    %469 = arith.mulf %17, %467 : vector<16x512xf32>
    %470 = vector.broadcast %468 : f32 to vector<16x512xf32>
    %471 = arith.addf %470, %469 : vector<16x512xf32>
    %472 = arith.subf %471, %462 : vector<16x512xf32>
    %c76 = arith.constant 76 : index
    %473 = memref.load %arg4[%c76] : memref<168xf32, #tpu.memory_space<smem>>
    %474 = arith.mulf %17, %472 : vector<16x512xf32>
    %475 = vector.broadcast %473 : f32 to vector<16x512xf32>
    %476 = arith.addf %475, %474 : vector<16x512xf32>
    %477 = arith.subf %476, %467 : vector<16x512xf32>
    %c75 = arith.constant 75 : index
    %478 = memref.load %arg4[%c75] : memref<168xf32, #tpu.memory_space<smem>>
    %479 = arith.mulf %17, %477 : vector<16x512xf32>
    %480 = vector.broadcast %478 : f32 to vector<16x512xf32>
    %481 = arith.addf %480, %479 : vector<16x512xf32>
    %482 = arith.subf %481, %472 : vector<16x512xf32>
    %c74 = arith.constant 74 : index
    %483 = memref.load %arg4[%c74] : memref<168xf32, #tpu.memory_space<smem>>
    %484 = arith.mulf %17, %482 : vector<16x512xf32>
    %485 = vector.broadcast %483 : f32 to vector<16x512xf32>
    %486 = arith.addf %485, %484 : vector<16x512xf32>
    %487 = arith.subf %486, %477 : vector<16x512xf32>
    %c73 = arith.constant 73 : index
    %488 = memref.load %arg4[%c73] : memref<168xf32, #tpu.memory_space<smem>>
    %489 = arith.mulf %17, %487 : vector<16x512xf32>
    %490 = vector.broadcast %488 : f32 to vector<16x512xf32>
    %491 = arith.addf %490, %489 : vector<16x512xf32>
    %492 = arith.subf %491, %482 : vector<16x512xf32>
    %c72 = arith.constant 72 : index
    %493 = memref.load %arg4[%c72] : memref<168xf32, #tpu.memory_space<smem>>
    %494 = arith.mulf %17, %492 : vector<16x512xf32>
    %495 = vector.broadcast %493 : f32 to vector<16x512xf32>
    %496 = arith.addf %495, %494 : vector<16x512xf32>
    %497 = arith.subf %496, %487 : vector<16x512xf32>
    %c71 = arith.constant 71 : index
    %498 = memref.load %arg4[%c71] : memref<168xf32, #tpu.memory_space<smem>>
    %499 = arith.mulf %17, %497 : vector<16x512xf32>
    %500 = vector.broadcast %498 : f32 to vector<16x512xf32>
    %501 = arith.addf %500, %499 : vector<16x512xf32>
    %502 = arith.subf %501, %492 : vector<16x512xf32>
    %c70 = arith.constant 70 : index
    %503 = memref.load %arg4[%c70] : memref<168xf32, #tpu.memory_space<smem>>
    %504 = arith.mulf %17, %502 : vector<16x512xf32>
    %505 = vector.broadcast %503 : f32 to vector<16x512xf32>
    %506 = arith.addf %505, %504 : vector<16x512xf32>
    %507 = arith.subf %506, %497 : vector<16x512xf32>
    %c69 = arith.constant 69 : index
    %508 = memref.load %arg4[%c69] : memref<168xf32, #tpu.memory_space<smem>>
    %509 = arith.mulf %17, %507 : vector<16x512xf32>
    %510 = vector.broadcast %508 : f32 to vector<16x512xf32>
    %511 = arith.addf %510, %509 : vector<16x512xf32>
    %512 = arith.subf %511, %502 : vector<16x512xf32>
    %c68 = arith.constant 68 : index
    %513 = memref.load %arg4[%c68] : memref<168xf32, #tpu.memory_space<smem>>
    %514 = arith.mulf %17, %512 : vector<16x512xf32>
    %515 = vector.broadcast %513 : f32 to vector<16x512xf32>
    %516 = arith.addf %515, %514 : vector<16x512xf32>
    %517 = arith.subf %516, %507 : vector<16x512xf32>
    %c67 = arith.constant 67 : index
    %518 = memref.load %arg4[%c67] : memref<168xf32, #tpu.memory_space<smem>>
    %519 = arith.mulf %17, %517 : vector<16x512xf32>
    %520 = vector.broadcast %518 : f32 to vector<16x512xf32>
    %521 = arith.addf %520, %519 : vector<16x512xf32>
    %522 = arith.subf %521, %512 : vector<16x512xf32>
    %c66 = arith.constant 66 : index
    %523 = memref.load %arg4[%c66] : memref<168xf32, #tpu.memory_space<smem>>
    %524 = arith.mulf %17, %522 : vector<16x512xf32>
    %525 = vector.broadcast %523 : f32 to vector<16x512xf32>
    %526 = arith.addf %525, %524 : vector<16x512xf32>
    %527 = arith.subf %526, %517 : vector<16x512xf32>
    %c65 = arith.constant 65 : index
    %528 = memref.load %arg4[%c65] : memref<168xf32, #tpu.memory_space<smem>>
    %529 = arith.mulf %17, %527 : vector<16x512xf32>
    %530 = vector.broadcast %528 : f32 to vector<16x512xf32>
    %531 = arith.addf %530, %529 : vector<16x512xf32>
    %532 = arith.subf %531, %522 : vector<16x512xf32>
    %c64 = arith.constant 64 : index
    %533 = memref.load %arg4[%c64] : memref<168xf32, #tpu.memory_space<smem>>
    %534 = arith.mulf %17, %532 : vector<16x512xf32>
    %535 = vector.broadcast %533 : f32 to vector<16x512xf32>
    %536 = arith.addf %535, %534 : vector<16x512xf32>
    %537 = arith.subf %536, %527 : vector<16x512xf32>
    %c63 = arith.constant 63 : index
    %538 = memref.load %arg4[%c63] : memref<168xf32, #tpu.memory_space<smem>>
    %539 = arith.mulf %17, %537 : vector<16x512xf32>
    %540 = vector.broadcast %538 : f32 to vector<16x512xf32>
    %541 = arith.addf %540, %539 : vector<16x512xf32>
    %542 = arith.subf %541, %532 : vector<16x512xf32>
    %c62 = arith.constant 62 : index
    %543 = memref.load %arg4[%c62] : memref<168xf32, #tpu.memory_space<smem>>
    %544 = arith.mulf %17, %542 : vector<16x512xf32>
    %545 = vector.broadcast %543 : f32 to vector<16x512xf32>
    %546 = arith.addf %545, %544 : vector<16x512xf32>
    %547 = arith.subf %546, %537 : vector<16x512xf32>
    %c61 = arith.constant 61 : index
    %548 = memref.load %arg4[%c61] : memref<168xf32, #tpu.memory_space<smem>>
    %549 = arith.mulf %17, %547 : vector<16x512xf32>
    %550 = vector.broadcast %548 : f32 to vector<16x512xf32>
    %551 = arith.addf %550, %549 : vector<16x512xf32>
    %552 = arith.subf %551, %542 : vector<16x512xf32>
    %c60 = arith.constant 60 : index
    %553 = memref.load %arg4[%c60] : memref<168xf32, #tpu.memory_space<smem>>
    %554 = arith.mulf %17, %552 : vector<16x512xf32>
    %555 = vector.broadcast %553 : f32 to vector<16x512xf32>
    %556 = arith.addf %555, %554 : vector<16x512xf32>
    %557 = arith.subf %556, %547 : vector<16x512xf32>
    %c59 = arith.constant 59 : index
    %558 = memref.load %arg4[%c59] : memref<168xf32, #tpu.memory_space<smem>>
    %559 = arith.mulf %17, %557 : vector<16x512xf32>
    %560 = vector.broadcast %558 : f32 to vector<16x512xf32>
    %561 = arith.addf %560, %559 : vector<16x512xf32>
    %562 = arith.subf %561, %552 : vector<16x512xf32>
    %c58 = arith.constant 58 : index
    %563 = memref.load %arg4[%c58] : memref<168xf32, #tpu.memory_space<smem>>
    %564 = arith.mulf %17, %562 : vector<16x512xf32>
    %565 = vector.broadcast %563 : f32 to vector<16x512xf32>
    %566 = arith.addf %565, %564 : vector<16x512xf32>
    %567 = arith.subf %566, %557 : vector<16x512xf32>
    %c57 = arith.constant 57 : index
    %568 = memref.load %arg4[%c57] : memref<168xf32, #tpu.memory_space<smem>>
    %569 = arith.mulf %17, %567 : vector<16x512xf32>
    %570 = vector.broadcast %568 : f32 to vector<16x512xf32>
    %571 = arith.addf %570, %569 : vector<16x512xf32>
    %572 = arith.subf %571, %562 : vector<16x512xf32>
    %c56 = arith.constant 56 : index
    %573 = memref.load %arg4[%c56] : memref<168xf32, #tpu.memory_space<smem>>
    %574 = arith.mulf %16, %572 : vector<16x512xf32>
    %575 = vector.broadcast %573 : f32 to vector<16x512xf32>
    %576 = arith.addf %575, %574 : vector<16x512xf32>
    %577 = arith.subf %576, %567 : vector<16x512xf32>
    %c0_8 = arith.constant 0 : index
    %c1_9 = arith.constant 1 : index
    %578 = arith.index_cast %5 : i32 to index
    %c0_10 = arith.constant 0 : index
    %579 = vector.load %arg6[%c0_8, %c1_9, %578, %c0_10] : memref<1x3x16x512xf32, #tpu.memory_space<vmem>>, vector<1x1x16x512xf32>
    %580 = vector.shape_cast %579 : vector<1x1x16x512xf32> to vector<16x512xf32>
    %581 = vector.shape_cast %577 : vector<16x512xf32> to vector<1x1x16x512xf32>
    tpu.vector_store %arg6[%c0_8, %c1_9, %578, %c0_10], %581 {strides = array<i32>} : memref<1x3x16x512xf32, #tpu.memory_space<vmem>>, vector<1x1x16x512xf32>,
    %c167 = arith.constant 167 : index
    %582 = memref.load %arg4[%c167] : memref<168xf32, #tpu.memory_space<smem>>
    %583 = vector.broadcast %582 : f32 to vector<16x512xf32>
    %cst_11 = arith.constant 0.000000e+00 : f32
    %584 = vector.broadcast %cst_11 : f32 to vector<16x512xf32>
    %c166 = arith.constant 166 : index
    %585 = memref.load %arg4[%c166] : memref<168xf32, #tpu.memory_space<smem>>
    %586 = arith.mulf %17, %583 : vector<16x512xf32>
    %587 = vector.broadcast %585 : f32 to vector<16x512xf32>
    %588 = arith.addf %587, %586 : vector<16x512xf32>
    %589 = arith.subf %588, %584 : vector<16x512xf32>
    %c165 = arith.constant 165 : index
    %590 = memref.load %arg4[%c165] : memref<168xf32, #tpu.memory_space<smem>>
    %591 = arith.mulf %17, %589 : vector<16x512xf32>
    %592 = vector.broadcast %590 : f32 to vector<16x512xf32>
    %593 = arith.addf %592, %591 : vector<16x512xf32>
    %594 = arith.subf %593, %583 : vector<16x512xf32>
    %c164 = arith.constant 164 : index
    %595 = memref.load %arg4[%c164] : memref<168xf32, #tpu.memory_space<smem>>
    %596 = arith.mulf %17, %594 : vector<16x512xf32>
    %597 = vector.broadcast %595 : f32 to vector<16x512xf32>
    %598 = arith.addf %597, %596 : vector<16x512xf32>
    %599 = arith.subf %598, %589 : vector<16x512xf32>
    %c163 = arith.constant 163 : index
    %600 = memref.load %arg4[%c163] : memref<168xf32, #tpu.memory_space<smem>>
    %601 = arith.mulf %17, %599 : vector<16x512xf32>
    %602 = vector.broadcast %600 : f32 to vector<16x512xf32>
    %603 = arith.addf %602, %601 : vector<16x512xf32>
    %604 = arith.subf %603, %594 : vector<16x512xf32>
    %c162 = arith.constant 162 : index
    %605 = memref.load %arg4[%c162] : memref<168xf32, #tpu.memory_space<smem>>
    %606 = arith.mulf %17, %604 : vector<16x512xf32>
    %607 = vector.broadcast %605 : f32 to vector<16x512xf32>
    %608 = arith.addf %607, %606 : vector<16x512xf32>
    %609 = arith.subf %608, %599 : vector<16x512xf32>
    %c161 = arith.constant 161 : index
    %610 = memref.load %arg4[%c161] : memref<168xf32, #tpu.memory_space<smem>>
    %611 = arith.mulf %17, %609 : vector<16x512xf32>
    %612 = vector.broadcast %610 : f32 to vector<16x512xf32>
    %613 = arith.addf %612, %611 : vector<16x512xf32>
    %614 = arith.subf %613, %604 : vector<16x512xf32>
    %c160 = arith.constant 160 : index
    %615 = memref.load %arg4[%c160] : memref<168xf32, #tpu.memory_space<smem>>
    %616 = arith.mulf %17, %614 : vector<16x512xf32>
    %617 = vector.broadcast %615 : f32 to vector<16x512xf32>
    %618 = arith.addf %617, %616 : vector<16x512xf32>
    %619 = arith.subf %618, %609 : vector<16x512xf32>
    %c159 = arith.constant 159 : index
    %620 = memref.load %arg4[%c159] : memref<168xf32, #tpu.memory_space<smem>>
    %621 = arith.mulf %17, %619 : vector<16x512xf32>
    %622 = vector.broadcast %620 : f32 to vector<16x512xf32>
    %623 = arith.addf %622, %621 : vector<16x512xf32>
    %624 = arith.subf %623, %614 : vector<16x512xf32>
    %c158 = arith.constant 158 : index
    %625 = memref.load %arg4[%c158] : memref<168xf32, #tpu.memory_space<smem>>
    %626 = arith.mulf %17, %624 : vector<16x512xf32>
    %627 = vector.broadcast %625 : f32 to vector<16x512xf32>
    %628 = arith.addf %627, %626 : vector<16x512xf32>
    %629 = arith.subf %628, %619 : vector<16x512xf32>
    %c157 = arith.constant 157 : index
    %630 = memref.load %arg4[%c157] : memref<168xf32, #tpu.memory_space<smem>>
    %631 = arith.mulf %17, %629 : vector<16x512xf32>
    %632 = vector.broadcast %630 : f32 to vector<16x512xf32>
    %633 = arith.addf %632, %631 : vector<16x512xf32>
    %634 = arith.subf %633, %624 : vector<16x512xf32>
    %c156 = arith.constant 156 : index
    %635 = memref.load %arg4[%c156] : memref<168xf32, #tpu.memory_space<smem>>
    %636 = arith.mulf %17, %634 : vector<16x512xf32>
    %637 = vector.broadcast %635 : f32 to vector<16x512xf32>
    %638 = arith.addf %637, %636 : vector<16x512xf32>
    %639 = arith.subf %638, %629 : vector<16x512xf32>
    %c155 = arith.constant 155 : index
    %640 = memref.load %arg4[%c155] : memref<168xf32, #tpu.memory_space<smem>>
    %641 = arith.mulf %17, %639 : vector<16x512xf32>
    %642 = vector.broadcast %640 : f32 to vector<16x512xf32>
    %643 = arith.addf %642, %641 : vector<16x512xf32>
    %644 = arith.subf %643, %634 : vector<16x512xf32>
    %c154 = arith.constant 154 : index
    %645 = memref.load %arg4[%c154] : memref<168xf32, #tpu.memory_space<smem>>
    %646 = arith.mulf %17, %644 : vector<16x512xf32>
    %647 = vector.broadcast %645 : f32 to vector<16x512xf32>
    %648 = arith.addf %647, %646 : vector<16x512xf32>
    %649 = arith.subf %648, %639 : vector<16x512xf32>
    %c153 = arith.constant 153 : index
    %650 = memref.load %arg4[%c153] : memref<168xf32, #tpu.memory_space<smem>>
    %651 = arith.mulf %17, %649 : vector<16x512xf32>
    %652 = vector.broadcast %650 : f32 to vector<16x512xf32>
    %653 = arith.addf %652, %651 : vector<16x512xf32>
    %654 = arith.subf %653, %644 : vector<16x512xf32>
    %c152 = arith.constant 152 : index
    %655 = memref.load %arg4[%c152] : memref<168xf32, #tpu.memory_space<smem>>
    %656 = arith.mulf %17, %654 : vector<16x512xf32>
    %657 = vector.broadcast %655 : f32 to vector<16x512xf32>
    %658 = arith.addf %657, %656 : vector<16x512xf32>
    %659 = arith.subf %658, %649 : vector<16x512xf32>
    %c151 = arith.constant 151 : index
    %660 = memref.load %arg4[%c151] : memref<168xf32, #tpu.memory_space<smem>>
    %661 = arith.mulf %17, %659 : vector<16x512xf32>
    %662 = vector.broadcast %660 : f32 to vector<16x512xf32>
    %663 = arith.addf %662, %661 : vector<16x512xf32>
    %664 = arith.subf %663, %654 : vector<16x512xf32>
    %c150 = arith.constant 150 : index
    %665 = memref.load %arg4[%c150] : memref<168xf32, #tpu.memory_space<smem>>
    %666 = arith.mulf %17, %664 : vector<16x512xf32>
    %667 = vector.broadcast %665 : f32 to vector<16x512xf32>
    %668 = arith.addf %667, %666 : vector<16x512xf32>
    %669 = arith.subf %668, %659 : vector<16x512xf32>
    %c149 = arith.constant 149 : index
    %670 = memref.load %arg4[%c149] : memref<168xf32, #tpu.memory_space<smem>>
    %671 = arith.mulf %17, %669 : vector<16x512xf32>
    %672 = vector.broadcast %670 : f32 to vector<16x512xf32>
    %673 = arith.addf %672, %671 : vector<16x512xf32>
    %674 = arith.subf %673, %664 : vector<16x512xf32>
    %c148 = arith.constant 148 : index
    %675 = memref.load %arg4[%c148] : memref<168xf32, #tpu.memory_space<smem>>
    %676 = arith.mulf %17, %674 : vector<16x512xf32>
    %677 = vector.broadcast %675 : f32 to vector<16x512xf32>
    %678 = arith.addf %677, %676 : vector<16x512xf32>
    %679 = arith.subf %678, %669 : vector<16x512xf32>
    %c147 = arith.constant 147 : index
    %680 = memref.load %arg4[%c147] : memref<168xf32, #tpu.memory_space<smem>>
    %681 = arith.mulf %17, %679 : vector<16x512xf32>
    %682 = vector.broadcast %680 : f32 to vector<16x512xf32>
    %683 = arith.addf %682, %681 : vector<16x512xf32>
    %684 = arith.subf %683, %674 : vector<16x512xf32>
    %c146 = arith.constant 146 : index
    %685 = memref.load %arg4[%c146] : memref<168xf32, #tpu.memory_space<smem>>
    %686 = arith.mulf %17, %684 : vector<16x512xf32>
    %687 = vector.broadcast %685 : f32 to vector<16x512xf32>
    %688 = arith.addf %687, %686 : vector<16x512xf32>
    %689 = arith.subf %688, %679 : vector<16x512xf32>
    %c145 = arith.constant 145 : index
    %690 = memref.load %arg4[%c145] : memref<168xf32, #tpu.memory_space<smem>>
    %691 = arith.mulf %17, %689 : vector<16x512xf32>
    %692 = vector.broadcast %690 : f32 to vector<16x512xf32>
    %693 = arith.addf %692, %691 : vector<16x512xf32>
    %694 = arith.subf %693, %684 : vector<16x512xf32>
    %c144 = arith.constant 144 : index
    %695 = memref.load %arg4[%c144] : memref<168xf32, #tpu.memory_space<smem>>
    %696 = arith.mulf %17, %694 : vector<16x512xf32>
    %697 = vector.broadcast %695 : f32 to vector<16x512xf32>
    %698 = arith.addf %697, %696 : vector<16x512xf32>
    %699 = arith.subf %698, %689 : vector<16x512xf32>
    %c143 = arith.constant 143 : index
    %700 = memref.load %arg4[%c143] : memref<168xf32, #tpu.memory_space<smem>>
    %701 = arith.mulf %17, %699 : vector<16x512xf32>
    %702 = vector.broadcast %700 : f32 to vector<16x512xf32>
    %703 = arith.addf %702, %701 : vector<16x512xf32>
    %704 = arith.subf %703, %694 : vector<16x512xf32>
    %c142 = arith.constant 142 : index
    %705 = memref.load %arg4[%c142] : memref<168xf32, #tpu.memory_space<smem>>
    %706 = arith.mulf %17, %704 : vector<16x512xf32>
    %707 = vector.broadcast %705 : f32 to vector<16x512xf32>
    %708 = arith.addf %707, %706 : vector<16x512xf32>
    %709 = arith.subf %708, %699 : vector<16x512xf32>
    %c141 = arith.constant 141 : index
    %710 = memref.load %arg4[%c141] : memref<168xf32, #tpu.memory_space<smem>>
    %711 = arith.mulf %17, %709 : vector<16x512xf32>
    %712 = vector.broadcast %710 : f32 to vector<16x512xf32>
    %713 = arith.addf %712, %711 : vector<16x512xf32>
    %714 = arith.subf %713, %704 : vector<16x512xf32>
    %c140 = arith.constant 140 : index
    %715 = memref.load %arg4[%c140] : memref<168xf32, #tpu.memory_space<smem>>
    %716 = arith.mulf %17, %714 : vector<16x512xf32>
    %717 = vector.broadcast %715 : f32 to vector<16x512xf32>
    %718 = arith.addf %717, %716 : vector<16x512xf32>
    %719 = arith.subf %718, %709 : vector<16x512xf32>
    %c139 = arith.constant 139 : index
    %720 = memref.load %arg4[%c139] : memref<168xf32, #tpu.memory_space<smem>>
    %721 = arith.mulf %17, %719 : vector<16x512xf32>
    %722 = vector.broadcast %720 : f32 to vector<16x512xf32>
    %723 = arith.addf %722, %721 : vector<16x512xf32>
    %724 = arith.subf %723, %714 : vector<16x512xf32>
    %c138 = arith.constant 138 : index
    %725 = memref.load %arg4[%c138] : memref<168xf32, #tpu.memory_space<smem>>
    %726 = arith.mulf %17, %724 : vector<16x512xf32>
    %727 = vector.broadcast %725 : f32 to vector<16x512xf32>
    %728 = arith.addf %727, %726 : vector<16x512xf32>
    %729 = arith.subf %728, %719 : vector<16x512xf32>
    %c137 = arith.constant 137 : index
    %730 = memref.load %arg4[%c137] : memref<168xf32, #tpu.memory_space<smem>>
    %731 = arith.mulf %17, %729 : vector<16x512xf32>
    %732 = vector.broadcast %730 : f32 to vector<16x512xf32>
    %733 = arith.addf %732, %731 : vector<16x512xf32>
    %734 = arith.subf %733, %724 : vector<16x512xf32>
    %c136 = arith.constant 136 : index
    %735 = memref.load %arg4[%c136] : memref<168xf32, #tpu.memory_space<smem>>
    %736 = arith.mulf %17, %734 : vector<16x512xf32>
    %737 = vector.broadcast %735 : f32 to vector<16x512xf32>
    %738 = arith.addf %737, %736 : vector<16x512xf32>
    %739 = arith.subf %738, %729 : vector<16x512xf32>
    %c135 = arith.constant 135 : index
    %740 = memref.load %arg4[%c135] : memref<168xf32, #tpu.memory_space<smem>>
    %741 = arith.mulf %17, %739 : vector<16x512xf32>
    %742 = vector.broadcast %740 : f32 to vector<16x512xf32>
    %743 = arith.addf %742, %741 : vector<16x512xf32>
    %744 = arith.subf %743, %734 : vector<16x512xf32>
    %c134 = arith.constant 134 : index
    %745 = memref.load %arg4[%c134] : memref<168xf32, #tpu.memory_space<smem>>
    %746 = arith.mulf %17, %744 : vector<16x512xf32>
    %747 = vector.broadcast %745 : f32 to vector<16x512xf32>
    %748 = arith.addf %747, %746 : vector<16x512xf32>
    %749 = arith.subf %748, %739 : vector<16x512xf32>
    %c133 = arith.constant 133 : index
    %750 = memref.load %arg4[%c133] : memref<168xf32, #tpu.memory_space<smem>>
    %751 = arith.mulf %17, %749 : vector<16x512xf32>
    %752 = vector.broadcast %750 : f32 to vector<16x512xf32>
    %753 = arith.addf %752, %751 : vector<16x512xf32>
    %754 = arith.subf %753, %744 : vector<16x512xf32>
    %c132 = arith.constant 132 : index
    %755 = memref.load %arg4[%c132] : memref<168xf32, #tpu.memory_space<smem>>
    %756 = arith.mulf %17, %754 : vector<16x512xf32>
    %757 = vector.broadcast %755 : f32 to vector<16x512xf32>
    %758 = arith.addf %757, %756 : vector<16x512xf32>
    %759 = arith.subf %758, %749 : vector<16x512xf32>
    %c131 = arith.constant 131 : index
    %760 = memref.load %arg4[%c131] : memref<168xf32, #tpu.memory_space<smem>>
    %761 = arith.mulf %17, %759 : vector<16x512xf32>
    %762 = vector.broadcast %760 : f32 to vector<16x512xf32>
    %763 = arith.addf %762, %761 : vector<16x512xf32>
    %764 = arith.subf %763, %754 : vector<16x512xf32>
    %c130 = arith.constant 130 : index
    %765 = memref.load %arg4[%c130] : memref<168xf32, #tpu.memory_space<smem>>
    %766 = arith.mulf %17, %764 : vector<16x512xf32>
    %767 = vector.broadcast %765 : f32 to vector<16x512xf32>
    %768 = arith.addf %767, %766 : vector<16x512xf32>
    %769 = arith.subf %768, %759 : vector<16x512xf32>
    %c129 = arith.constant 129 : index
    %770 = memref.load %arg4[%c129] : memref<168xf32, #tpu.memory_space<smem>>
    %771 = arith.mulf %17, %769 : vector<16x512xf32>
    %772 = vector.broadcast %770 : f32 to vector<16x512xf32>
    %773 = arith.addf %772, %771 : vector<16x512xf32>
    %774 = arith.subf %773, %764 : vector<16x512xf32>
    %c128 = arith.constant 128 : index
    %775 = memref.load %arg4[%c128] : memref<168xf32, #tpu.memory_space<smem>>
    %776 = arith.mulf %17, %774 : vector<16x512xf32>
    %777 = vector.broadcast %775 : f32 to vector<16x512xf32>
    %778 = arith.addf %777, %776 : vector<16x512xf32>
    %779 = arith.subf %778, %769 : vector<16x512xf32>
    %c127 = arith.constant 127 : index
    %780 = memref.load %arg4[%c127] : memref<168xf32, #tpu.memory_space<smem>>
    %781 = arith.mulf %17, %779 : vector<16x512xf32>
    %782 = vector.broadcast %780 : f32 to vector<16x512xf32>
    %783 = arith.addf %782, %781 : vector<16x512xf32>
    %784 = arith.subf %783, %774 : vector<16x512xf32>
    %c126 = arith.constant 126 : index
    %785 = memref.load %arg4[%c126] : memref<168xf32, #tpu.memory_space<smem>>
    %786 = arith.mulf %17, %784 : vector<16x512xf32>
    %787 = vector.broadcast %785 : f32 to vector<16x512xf32>
    %788 = arith.addf %787, %786 : vector<16x512xf32>
    %789 = arith.subf %788, %779 : vector<16x512xf32>
    %c125 = arith.constant 125 : index
    %790 = memref.load %arg4[%c125] : memref<168xf32, #tpu.memory_space<smem>>
    %791 = arith.mulf %17, %789 : vector<16x512xf32>
    %792 = vector.broadcast %790 : f32 to vector<16x512xf32>
    %793 = arith.addf %792, %791 : vector<16x512xf32>
    %794 = arith.subf %793, %784 : vector<16x512xf32>
    %c124 = arith.constant 124 : index
    %795 = memref.load %arg4[%c124] : memref<168xf32, #tpu.memory_space<smem>>
    %796 = arith.mulf %17, %794 : vector<16x512xf32>
    %797 = vector.broadcast %795 : f32 to vector<16x512xf32>
    %798 = arith.addf %797, %796 : vector<16x512xf32>
    %799 = arith.subf %798, %789 : vector<16x512xf32>
    %c123 = arith.constant 123 : index
    %800 = memref.load %arg4[%c123] : memref<168xf32, #tpu.memory_space<smem>>
    %801 = arith.mulf %17, %799 : vector<16x512xf32>
    %802 = vector.broadcast %800 : f32 to vector<16x512xf32>
    %803 = arith.addf %802, %801 : vector<16x512xf32>
    %804 = arith.subf %803, %794 : vector<16x512xf32>
    %c122 = arith.constant 122 : index
    %805 = memref.load %arg4[%c122] : memref<168xf32, #tpu.memory_space<smem>>
    %806 = arith.mulf %17, %804 : vector<16x512xf32>
    %807 = vector.broadcast %805 : f32 to vector<16x512xf32>
    %808 = arith.addf %807, %806 : vector<16x512xf32>
    %809 = arith.subf %808, %799 : vector<16x512xf32>
    %c121 = arith.constant 121 : index
    %810 = memref.load %arg4[%c121] : memref<168xf32, #tpu.memory_space<smem>>
    %811 = arith.mulf %17, %809 : vector<16x512xf32>
    %812 = vector.broadcast %810 : f32 to vector<16x512xf32>
    %813 = arith.addf %812, %811 : vector<16x512xf32>
    %814 = arith.subf %813, %804 : vector<16x512xf32>
    %c120 = arith.constant 120 : index
    %815 = memref.load %arg4[%c120] : memref<168xf32, #tpu.memory_space<smem>>
    %816 = arith.mulf %17, %814 : vector<16x512xf32>
    %817 = vector.broadcast %815 : f32 to vector<16x512xf32>
    %818 = arith.addf %817, %816 : vector<16x512xf32>
    %819 = arith.subf %818, %809 : vector<16x512xf32>
    %c119 = arith.constant 119 : index
    %820 = memref.load %arg4[%c119] : memref<168xf32, #tpu.memory_space<smem>>
    %821 = arith.mulf %17, %819 : vector<16x512xf32>
    %822 = vector.broadcast %820 : f32 to vector<16x512xf32>
    %823 = arith.addf %822, %821 : vector<16x512xf32>
    %824 = arith.subf %823, %814 : vector<16x512xf32>
    %c118 = arith.constant 118 : index
    %825 = memref.load %arg4[%c118] : memref<168xf32, #tpu.memory_space<smem>>
    %826 = arith.mulf %17, %824 : vector<16x512xf32>
    %827 = vector.broadcast %825 : f32 to vector<16x512xf32>
    %828 = arith.addf %827, %826 : vector<16x512xf32>
    %829 = arith.subf %828, %819 : vector<16x512xf32>
    %c117 = arith.constant 117 : index
    %830 = memref.load %arg4[%c117] : memref<168xf32, #tpu.memory_space<smem>>
    %831 = arith.mulf %17, %829 : vector<16x512xf32>
    %832 = vector.broadcast %830 : f32 to vector<16x512xf32>
    %833 = arith.addf %832, %831 : vector<16x512xf32>
    %834 = arith.subf %833, %824 : vector<16x512xf32>
    %c116 = arith.constant 116 : index
    %835 = memref.load %arg4[%c116] : memref<168xf32, #tpu.memory_space<smem>>
    %836 = arith.mulf %17, %834 : vector<16x512xf32>
    %837 = vector.broadcast %835 : f32 to vector<16x512xf32>
    %838 = arith.addf %837, %836 : vector<16x512xf32>
    %839 = arith.subf %838, %829 : vector<16x512xf32>
    %c115 = arith.constant 115 : index
    %840 = memref.load %arg4[%c115] : memref<168xf32, #tpu.memory_space<smem>>
    %841 = arith.mulf %17, %839 : vector<16x512xf32>
    %842 = vector.broadcast %840 : f32 to vector<16x512xf32>
    %843 = arith.addf %842, %841 : vector<16x512xf32>
    %844 = arith.subf %843, %834 : vector<16x512xf32>
    %c114 = arith.constant 114 : index
    %845 = memref.load %arg4[%c114] : memref<168xf32, #tpu.memory_space<smem>>
    %846 = arith.mulf %17, %844 : vector<16x512xf32>
    %847 = vector.broadcast %845 : f32 to vector<16x512xf32>
    %848 = arith.addf %847, %846 : vector<16x512xf32>
    %849 = arith.subf %848, %839 : vector<16x512xf32>
    %c113 = arith.constant 113 : index
    %850 = memref.load %arg4[%c113] : memref<168xf32, #tpu.memory_space<smem>>
    %851 = arith.mulf %17, %849 : vector<16x512xf32>
    %852 = vector.broadcast %850 : f32 to vector<16x512xf32>
    %853 = arith.addf %852, %851 : vector<16x512xf32>
    %854 = arith.subf %853, %844 : vector<16x512xf32>
    %c112 = arith.constant 112 : index
    %855 = memref.load %arg4[%c112] : memref<168xf32, #tpu.memory_space<smem>>
    %856 = arith.mulf %16, %854 : vector<16x512xf32>
    %857 = vector.broadcast %855 : f32 to vector<16x512xf32>
    %858 = arith.addf %857, %856 : vector<16x512xf32>
    %859 = arith.subf %858, %849 : vector<16x512xf32>
    %c0_12 = arith.constant 0 : index
    %c2_13 = arith.constant 2 : index
    %860 = arith.index_cast %5 : i32 to index
    %c0_14 = arith.constant 0 : index
    %861 = vector.load %arg6[%c0_12, %c2_13, %860, %c0_14] : memref<1x3x16x512xf32, #tpu.memory_space<vmem>>, vector<1x1x16x512xf32>
    %862 = vector.shape_cast %861 : vector<1x1x16x512xf32> to vector<16x512xf32>
    %863 = vector.shape_cast %859 : vector<16x512xf32> to vector<1x1x16x512xf32>
    tpu.vector_store %arg6[%c0_12, %c2_13, %860, %c0_14], %863 {strides = array<i32>} : memref<1x3x16x512xf32, #tpu.memory_space<vmem>>, vector<1x1x16x512xf32>,
    %c1_i32 = arith.constant 1 : i32
    return
  }
  func.func @transform_0(%arg0: i32, %arg1: i32, %arg2: memref<2xf32, #tpu.memory_space<smem>>, %arg3: memref<2xf32, #tpu.memory_space<smem>>, %arg4: memref<168xf32, #tpu.memory_space<smem>>) -> (i32, i32, i32) {
    %c0_i32 = arith.constant 0 : i32
    %c0_i32_0 = arith.constant 0 : i32
    return %arg1, %arg0, %c0_i32 : i32, i32, i32
  }
  func.func @transform_1(%arg0: i32, %arg1: i32, %arg2: memref<2xf32, #tpu.memory_space<smem>>, %arg3: memref<2xf32, #tpu.memory_space<smem>>, %arg4: memref<168xf32, #tpu.memory_space<smem>>) -> (i32, i32, i32, i32) {
    %c0_i32 = arith.constant 0 : i32
    %c0_i32_0 = arith.constant 0 : i32
    %c0_i32_1 = arith.constant 0 : i32
    return %arg1, %c0_i32, %arg0, %c0_i32_0 : i32, i32, i32, i32
  }
}

</mosaic_0001>

<bundles_post_ra>
// kernel: tpu_custom_call.1
= control target key start
LH: loop header
LB: loop body
LE: loop exit
PB: predicated region body
PF: predicated region fallthrough
CT: control target
= control target key end

     0   :  { %s5055_s15 = smov [#allocation3]   ;;  %s7651_s0 = inlined_call_operand.hbm [shape: f32[2], index: 0, kind: input, shape index: {}]   ;;  %s7652_s3 = inlined_call_operand.hbm [shape: f32[2,16,512], index: 3, kind: input, shape index: {}]   ;;  %s7653_s4 = inlined_call_operand.hbm [shape: f32[2,3,16,512], index: 4, kind: output, shape index: {}]   ;;  %s7654_s1 = inlined_call_operand.vmem [shape: f32[2], index: 1, kind: input, shape index: {}]   ;;  %s7655_s2 = inlined_call_operand.vmem [shape: f32[168], index: 2, kind: input, shape index: {}]  }
   0x1   :  { %10 = dma.hbm_to_smem %s7651_s0, 16, %s5055_s15, [#allocation2] }
   0x2   :  { %s11_s20 = sshll.u32 %s7654_s1, 4  ;;  %s15_s23 = sshll.u32 %s7655_s2, 4  ;;  %s12_s20 = int_to_ptr.vmem [resolvable:$true] %s11_s20  ;;  %s16_s23 = int_to_ptr.vmem [resolvable:$true] %s15_s23 }
   0x3   :  { %s4919_s24 = scalar_lea.vmem %s12_s20, 16  ;;  %p4924_p1 = scmp.lt.s32.totalorder %s12_s20, %s12_s20 }
   0x4   :  { %p4920_p0 = scmp.ne.s32.totalorder %s12_s20, %s4919_s24  ;;  %p4925_p2 = scmp.lt.s32.totalorder %s4919_s24, %s4919_s24 }
   0x6   :  { %p4926_p3 = por %p4925_p2, %p4924_p1 }
   0x8   :  { %p4927_p4 = pnand %p4926_p3, %p4920_p0 }
   0xa   :  { %4930 = shalt.err (!%p4927_p4)  }
   0xb   :  { %s5056_s25 = smov [#allocation4]   ;;  %s4931_s0 = scalar_lea.vmem %s16_s23, 32 }
   0xc   :  { %14 = dma.vmem_to_smem %s12_s20, 16, %s5056_s25, [#allocation2] }
   0xd   :  { %p4932_p5 = scmp.ne.s32.totalorder %s16_s23, %s4931_s0  ;;  %p4936_p6 = scmp.lt.s32.totalorder %s16_s23, %s16_s23 }
   0xe   :  { %p4937_p7 = scmp.lt.s32.totalorder %s4931_s0, %s4931_s0 }
  0x10   :  { %p4938_p8 = por %p4937_p7, %p4936_p6 }
  0x12   :  { %p4939_p9 = pnand %p4938_p8, %p4932_p5 }
  0x14   :  { %4942 = shalt.err (!%p4939_p9)  }
  0x15   :  { %s5057_s1 = smov [#allocation5]  }
  0x16   :  { %18 = dma.vmem_to_smem %s16_s23, 32, %s5057_s1, [#allocation2] }
  0x17   :  { %5021 = dma.done.wait [#allocation2], 64 }
  0x18   :  { %5022 = vsyncadd [#allocation2], 4294967232 }
  0x19   :  { %20 = sfence }
  0x1a   :  { %21 = vsyncpa [#allocation7], 0 }
  0x1b   :  { %23 = vsyncpa [#allocation7 + $0x1], 0 }
  0x1c   :  { %24 = vsyncpa [#allocation8], 0 }
  0x1d   :  { %26 = vsyncpa [#allocation8 + $0x1], 0  ;;  %s5098_s2 = smov 0   ;;  %s5100_s26 = smov 0  }
  0x1e   :  { %s5102_s27 = smov 0   ;;  %s5104_s28 = smov 0  }
  0x1f   :  { %s5106_s29 = smov 0   ;;  %s5108_s30 = smov 0  }
  0x20 LB: > { %s4636_s5 = sadd.s32 4294967295, %s5053_s30   ;;  %s4637_s6 = sadd.s32 4294967294, %s5053_s30   ;;  %s5053_s30 = sphi %s5108_s30, %s32_s30   ;;  %s5049_s29 = sphi %s5106_s29, %s7666_s29   ;;  %s5045_s28 = sphi %s5104_s28, %s7665_s28   ;;  %s5041_s27 = sphi %s5102_s27, %s7664_s27   ;;  %s5037_s26 = sphi %s5100_s26, %s7663_s26   ;;  %s5033_s2 = sphi %s5098_s2, %s7662_s2  }
  0x21   : > { %s41_s7 = sadd.s32 1, %s5049_s29  ;;  %s53_s8 = sadd.s32 1, %s5041_s27 }
  0x22   : > { %p42_p10 = scmp.ge.s32.totalorder %s41_s7, 2  ;;  %p60_p11 = scmp.ne.s32.totalorder %s5041_s27, %s5037_s26 }
  0x23   : > { %p61_p12 = scmp.eq.s32.totalorder %s5053_s30, 0  ;;  %p66_p13 = scmp.ne.s32.totalorder %s5037_s26, %s5033_s2 }
  0x24   : > { %s7668_s7 = smov (%p42_p10, %s41_s7), 0  ;;  %p67_p1 = scmp.eq.s32.totalorder %s4636_s5, 0 }
  0x25   : > { %p5139_p0 = por %p61_p12, %p60_p11  ;;  %s48_s10 = ssub.s32 %s5049_s29, %s7668_s7 }
  0x26   : > { %p92_p2 = scmp.eq.s32.totalorder %s4636_s5, 1  ;;  %p51_p3 = scmp.eq.s32.totalorder %s48_s10, 0 }
  0x27   : > { %p5145_p4 = por %p67_p1, %p66_p13  ;;  %p98_p6 = scmp.eq.s32.totalorder %s4637_s6, 1 }
  0x28   : > { %p5149_p5 = por %p92_p2, %p60_p11  ;;  %p4854_p9 = scmp.lt.s32.totalorder %s5053_s30, 2 }
  0x29   : > { %s5154_s13 = scalar_select %p51_p3, %s5041_s27, %s53_s8  }
  0x2a   : > { %p5156_p7 = por %p98_p6, %p66_p13  ;;  %s118_s15 = sand.u32 1, %s5041_s27  }
  0x2b   : > { %s4640_s16 = sshll.u32 %s118_s15, 6  ;;  %s4839_s17 = sshll.u32 %s5049_s29, 10 }
  0x2c   : > { %s131_s20 = scalar_lea.hbm %s7652_s3, %s4839_s17  ;;  %s122_s21 = scalar_lea.vmem [#allocation6], %s4640_s16 }
  0x2d   : > { %s132_s22 = sshll.u32 %s122_s21, 4  ;;  %p5169_p10 = pnand %p4854_p9, %p5139_p0  ;;  %s133_s22 = int_to_ptr.vmem [resolvable:$true] %s132_s22 }
  0x2e   : > { %p4643_p11 = scmp.ge.s32.totalorder %s5053_s30, 1  ;;  %s119_s24 = scalar_lea.sflag [#allocation7], %s118_s15 }
  0x2f   : > { %p4945_p12 = pneg %p5169_p10  ;;  %s4956_s25 = scalar_lea.vmem %s133_s22, 1024 }
  0x30   : > { %p4957_p13 = scmp.ne.s32.totalorder %s133_s22, %s4956_s25  ;;  %s5058_s0 = smov [#allocation6]  }
  0x31   : > { %s4961_s1 = sshll.u32 %s5058_s0, 4  ;;  %s4962_s1 = int_to_ptr.vmem [resolvable:$false] %s4961_s1 }
  0x32   : > { %p4959_p1 = pnand %p4957_p13, %p4945_p12  ;;  %s4963_s5 = scalar_lea.vmem %s4962_s1, 2048 }
  0x33   : > { %p4964_p3 = scmp.lt.s32.totalorder %s133_s22, %s4962_s1  ;;  %p4965_p6 = scmp.lt.s32.totalorder %s4963_s5, %s4956_s25 }
  0x34   : > { %p4960_p2 = pneg %p4959_p1 }
  0x35   : > { %p4966_p8 = por %p4965_p6, %p4964_p3 }
  0x37   : > { %p4967_p0 = pnand %p4966_p8, %p4960_p2 }
  0x39   : > { %4970 = shalt.err (!%p4967_p0)
}
  0x3a   : > { %s5059_s6 = smov 512   ;;  %s5060_s8 = smov 32  }
  0x3b   : > { %4849 = dma.hbm_to_vmem [thread:$0]  (!%p5169_p10), %s131_s20, 1024, %s133_s22, %s119_s24, %s5059_s6, %s5059_s6, %s5060_s8  }
  0x3c   : > { %p140_p9 = scmp.lt.s32.totalorder %s5053_s30, 3 }
  0x3e   : > { %p141_p12 = pnand %p4643_p11, %p140_p9 }
  0x3f   : > { %s5182_s9 = sand.u32 (!%p141_p12), 1, %s5037_s26  }
  0x40   : > { %144 = sbr.rel (%p141_p12) target bundleno = 1132 (0x46c), region = 24  ;;  %s4644_s10 = sshll.u32 (!%p141_p12), %s5182_s9, 6 }
  0x41   : > { %s147_s15 = scalar_lea.sflag (!%p141_p12), [#allocation7], %s5182_s9  ;;  %s150_s16 = scalar_lea.vmem (!%p141_p12), [#allocation6], %s4644_s10 }
  0x45   : > { %5024 = dma.done.wait (%p5145_p4), %s147_s15, 1024  }
  0x46   : > { %5026 = vsyncadd (%p5145_p4), %s147_s15, 4294966272  ;;  %s171_s17 = sld [smem:[#allocation3 + %s5045_s28]]  ;;  %v176_v0 = vld [vmem:[%s150_s16] sm:$0xff]  ;;  %v177_v1 = vld [vmem:[%s150_s16 + $0x8] sm:$0xff] }
  0x47   : > { %s172_s18 = sld [smem:[#allocation4 + %s5045_s28]]  ;;  %v178_v2 = vld [vmem:[%s150_s16 + $0x10] sm:$0xff]  ;;  %v179_v4 = vld [vmem:[%s150_s16 + $0x18] sm:$0xff]  ;;  %v180_v5 = vld [vmem:[%s150_s16 + $0x20] sm:$0xff] }
  0x48   : > { %s4653_s19 = sld [smem:[#allocation5 + $0x37]]  ;;  %v181_v6 = vld [vmem:[%s150_s16 + $0x28] sm:$0xff]  ;;  %v182_v11 = vld [vmem:[%s150_s16 + $0x30] sm:$0xff]  ;;  %v183_v12 = vld [vmem:[%s150_s16 + $0x38] sm:$0xff] }
  0x49   : > { %s5194_s11 = sld [smem:[#allocation5 + $0x36]] }
  0x4a   : > { %s5196_s20 = sld [smem:[#allocation5 + $0x35]] }
  0x4b   : > { %s5264_s21 = sld [smem:[#allocation5 + $0x34]] }
  0x4c   : > { %v184_v3 = vstv %s171_s17  ;;  %s5266_s22 = sld [smem:[#allocation5 + $0x33]] }
  0x4d   : > { %v185_v7 = vsub.f32 %v176_v0, %v184_v3  ;;  %v186_v8 = vsub.f32 %v177_v1, %v184_v3  ;;  %v187_v9 = vsub.f32 %v178_v2, %v184_v3  ;;  %v193_v10 = vstv %s172_s18  ;;  %s5268_s23 = sld [smem:[#allocation5 + $0x32]] }
  0x4e   : > { %v188_v13 = vsub.f32 %v179_v4, %v184_v3  ;;  %v189_v14 = vsub.f32 %v180_v5, %v184_v3  ;;  %v190_v15 = vsub.f32 %v181_v6, %v184_v3  ;;  %v5192_v16 = vstv %s4653_s19  ;;  %s5274_s24 = sld [smem:[#allocation5 + $0x31]] }
  0x4f   : > { %v191_v17 = vsub.f32 %v182_v11, %v184_v3  ;;  %v192_v18 = vsub.f32 %v183_v12, %v184_v3  ;;  %v194_v19 = vmul.f32 %v193_v10, %v185_v7  ;;  %v195_v20 = vmul.f32 %v193_v10, %v186_v8  ;;  %s5318_s25 = sld [smem:[#allocation5 + $0x30]] }
  0x50   : > { %v196_v21 = vmul.f32 %v193_v10, %v187_v9  ;;  %v197_v22 = vmul.f32 %v193_v10, %v188_v13  ;;  %v198_v23 = vmul.f32 %v193_v10, %v189_v14  ;;  %v199_v24 = vmul.f32 %v193_v10, %v190_v15  ;;  %s5320_s0 = sld [smem:[#allocation5 + $0x2f]] }
  0x51   : > { %v200_v25 = vmul.f32 %v193_v10, %v191_v17  ;;  %v201_v26 = vmul.f32 %v193_v10, %v192_v18  ;;  %v202_v27 = vmul.f32 2.0, %v194_v19  ;;  %v203_v28 = vmul.f32 2.0, %v195_v20  ;;  %s5322_s1 = sld [smem:[#allocation5 + $0x2e]] }
  0x52   : > { %v204_v29 = vmul.f32 2.0, %v196_v21  ;;  %v205_v30 = vmul.f32 2.0, %v197_v22  ;;  %v206_v31 = vmul.f32 2.0, %v198_v23  ;;  %v207_v32 = vmul.f32 2.0, %v199_v24  ;;  %s5328_s5 = sld [smem:[#allocation5 + $0x2d]] }
  0x53   : > { %v208_v33 = vmul.f32 2.0, %v200_v25  ;;  %v209_v34 = vmul.f32 2.0, %v201_v26  ;;  %v5198_v35 = vadd.f32 -1.0, %v202_v27  ;;  %v5200_v36 = vadd.f32 -1.0, %v203_v28  ;;  %s5372_s6 = sld [smem:[#allocation5 + $0x2c]] }
  0x54   : > { %v5202_v37 = vadd.f32 -1.0, %v204_v29  ;;  %v5204_v38 = vadd.f32 -1.0, %v205_v30  ;;  %v5206_v39 = vadd.f32 -1.0, %v206_v31  ;;  %v5208_v40 = vadd.f32 -1.0, %v207_v32  ;;  %s5374_s8 = sld [smem:[#allocation5 + $0x2b]] }
  0x55   : > { %v5210_v41 = vadd.f32 -1.0, %v208_v33  ;;  %v5212_v42 = vadd.f32 -1.0, %v209_v34  ;;  %v5216_v43 = vadd.f32 %v5198_v35, %v5198_v35  ;;  %v5220_v44 = vadd.f32 %v5200_v36, %v5200_v36  ;;  %s5376_s10 = sld [smem:[#allocation5 + $0x2a]] }
  0x56   : > { %v5224_v45 = vadd.f32 %v5202_v37, %v5202_v37  ;;  %v5228_v46 = vadd.f32 %v5204_v38, %v5204_v38  ;;  %v5232_v47 = vadd.f32 %v5206_v39, %v5206_v39  ;;  %v5236_v48 = vadd.f32 %v5208_v40, %v5208_v40  ;;  %s5382_s15 = sld [smem:[#allocation5 + $0x29]] }
  0x57   : > { %v5240_v49 = vadd.f32 %v5210_v41, %v5210_v41  ;;  %v5244_v50 = vadd.f32 %v5212_v42, %v5212_v42  ;;  %v229_v51 = vmul.f32 %v5192_v16, %v5216_v43  ;;  %v230_v52 = vmul.f32 %v5192_v16, %v5220_v44  ;;  %s5426_s16 = sld [smem:[#allocation5 + $0x28]] }
  0x58   : > { %v231_v53 = vmul.f32 %v5192_v16, %v5224_v45  ;;  %v232_v54 = vmul.f32 %v5192_v16, %v5228_v46  ;;  %v233_v55 = vmul.f32 %v5192_v16, %v5232_v47  ;;  %v234_v56 = vmul.f32 %v5192_v16, %v5236_v48  ;;  %s5428_s17 = sld [smem:[#allocation5 + $0x27]] }
  0x59   : > { %v235_v57 = vmul.f32 %v5192_v16, %v5240_v49  ;;  %v236_v58 = vmul.f32 %v5192_v16, %v5244_v50  ;;  %v237_v59 = vstv %s5194_s11  ;;  %v255_v60 = vstv %s5196_s20  ;;  %s5430_s18 = sld [smem:[#allocation5 + $0x26]] }
  0x5a   : > { %v238_v61 = vadd.f32 %v237_v59, %v229_v51  ;;  %v239_v62 = vadd.f32 %v237_v59, %v230_v52  ;;  %v240_v63 = vadd.f32 %v237_v59, %v231_v53  ;;  %v241_v0 = vadd.f32 %v237_v59, %v232_v54  ;;  %s5436_s19 = sld [smem:[#allocation5 + $0x25]] }
  0x5b   : > { %v242_v1 = vadd.f32 %v237_v59, %v233_v55  ;;  %v243_v2 = vadd.f32 %v237_v59, %v234_v56  ;;  %v244_v3 = vadd.f32 %v237_v59, %v235_v57  ;;  %v245_v4 = vadd.f32 %v237_v59, %v236_v58  ;;  %s5480_s11 = sld [smem:[#allocation5 + $0x24]] }
  0x5c   : > { %v247_v5 = vmul.f32 %v238_v61, %v5216_v43  ;;  %v248_v6 = vmul.f32 %v239_v62, %v5220_v44  ;;  %v249_v7 = vmul.f32 %v240_v63, %v5224_v45  ;;  %v250_v8 = vmul.f32 %v241_v0, %v5228_v46  ;;  %s5482_s20 = sld [smem:[#allocation5 + $0x23]] }
  0x5d   : > { %v251_v9 = vmul.f32 %v242_v1, %v5232_v47  ;;  %v252_v10 = vmul.f32 %v243_v2, %v5236_v48  ;;  %v253_v11 = vmul.f32 %v244_v3, %v5240_v49  ;;  %v254_v12 = vmul.f32 %v245_v4, %v5244_v50 }
  0x5e   : > { %v256_v13 = vadd.f32 %v255_v60, %v247_v5  ;;  %v257_v14 = vadd.f32 %v255_v60, %v248_v6  ;;  %v258_v15 = vadd.f32 %v255_v60, %v249_v7  ;;  %v259_v17 = vadd.f32 %v255_v60, %v250_v8 }
  0x5f   : > { %v260_v18 = vadd.f32 %v255_v60, %v251_v9  ;;  %v261_v19 = vadd.f32 %v255_v60, %v252_v10  ;;  %v262_v20 = vadd.f32 %v255_v60, %v253_v11  ;;  %v263_v21 = vadd.f32 %v255_v60, %v254_v12 }
  0x60   : > { %v264_v22 = vsub.f32 %v256_v13, %v5192_v16  ;;  %v265_v23 = vsub.f32 %v257_v14, %v5192_v16  ;;  %v266_v24 = vsub.f32 %v258_v15, %v5192_v16  ;;  %v267_v25 = vsub.f32 %v259_v17, %v5192_v16 }
  0x61   : > { %v268_v26 = vsub.f32 %v260_v18, %v5192_v16  ;;  %v269_v27 = vsub.f32 %v261_v19, %v5192_v16  ;;  %v270_v28 = vsub.f32 %v262_v20, %v5192_v16  ;;  %v271_v29 = vsub.f32 %v263_v21, %v5192_v16 }
  0x62   : > { %v273_v30 = vmul.f32 %v264_v22, %v5216_v43  ;;  %v274_v31 = vmul.f32 %v265_v23, %v5220_v44  ;;  %v275_v32 = vmul.f32 %v266_v24, %v5224_v45  ;;  %v276_v33 = vmul.f32 %v267_v25, %v5228_v46 }
  0x63   : > { %v277_v34 = vmul.f32 %v268_v26, %v5232_v47  ;;  %v278_v51 = vmul.f32 %v269_v27, %v5236_v48  ;;  %v279_v52 = vmul.f32 %v270_v28, %v5240_v49  ;;  %v280_v53 = vmul.f32 %v271_v29, %v5244_v50 }
  0x64   : > { %v281_v54 = vstv %s5264_s21  ;;  %v307_v55 = vstv %s5266_s22  ;;  %v333_v56 = vstv %s5268_s23  ;;  %v5300_v16 = vstv %s5274_s24  ;;  %s5484_s21 = sld [smem:[#allocation5 + $0x22]] }
  0x65   : > { %v282_v57 = vadd.f32 %v281_v54, %v273_v30  ;;  %v283_v58 = vadd.f32 %v281_v54, %v274_v31  ;;  %v284_v59 = vadd.f32 %v281_v54, %v275_v32  ;;  %v285_v60 = vadd.f32 %v281_v54, %v276_v33  ;;  %s5490_s22 = sld [smem:[#allocation5 + $0x21]] }
  0x66   : > { %v286_v5 = vadd.f32 %v281_v54, %v277_v34  ;;  %v287_v6 = vadd.f32 %v281_v54, %v278_v51  ;;  %v288_v7 = vadd.f32 %v281_v54, %v279_v52  ;;  %v289_v8 = vadd.f32 %v281_v54, %v280_v53  ;;  %s5534_s23 = sld [smem:[#allocation5 + $0x20]] }
  0x67   : > { %v290_v9 = vsub.f32 %v282_v57, %v238_v61  ;;  %v291_v10 = vsub.f32 %v283_v58, %v239_v62  ;;  %v292_v11 = vsub.f32 %v284_v59, %v240_v63  ;;  %v293_v12 = vsub.f32 %v285_v60, %v241_v0  ;;  %s5536_s24 = sld [smem:[#allocation5 + $0x1f]] }
  0x68   : > { %v294_v13 = vsub.f32 %v286_v5, %v242_v1  ;;  %v295_v14 = vsub.f32 %v287_v6, %v243_v2  ;;  %v296_v15 = vsub.f32 %v288_v7, %v244_v3  ;;  %v297_v17 = vsub.f32 %v289_v8, %v245_v4 }
  0x69   : > { %v299_v18 = vmul.f32 %v290_v9, %v5216_v43  ;;  %v300_v19 = vmul.f32 %v291_v10, %v5220_v44  ;;  %v301_v20 = vmul.f32 %v292_v11, %v5224_v45  ;;  %v302_v21 = vmul.f32 %v293_v12, %v5228_v46 }
  0x6a   : > { %v303_v30 = vmul.f32 %v294_v13, %v5232_v47  ;;  %v304_v31 = vmul.f32 %v295_v14, %v5236_v48  ;;  %v305_v61 = vmul.f32 %v296_v15, %v5240_v49  ;;  %v306_v62 = vmul.f32 %v297_v17, %v5244_v50 }
  0x6b   : > { %v308_v63 = vadd.f32 %v307_v55, %v299_v18  ;;  %v309_v0 = vadd.f32 %v307_v55, %v300_v19  ;;  %v310_v1 = vadd.f32 %v307_v55, %v301_v20  ;;  %v311_v2 = vadd.f32 %v307_v55, %v302_v21 }
  0x6c   : > { %v312_v3 = vadd.f32 %v307_v55, %v303_v30  ;;  %v313_v4 = vadd.f32 %v307_v55, %v304_v31  ;;  %v314_v32 = vadd.f32 %v307_v55, %v305_v61  ;;  %v315_v33 = vadd.f32 %v307_v55, %v306_v62 }
  0x6d   : > { %v316_v34 = vsub.f32 %v308_v63, %v264_v22  ;;  %v317_v51 = vsub.f32 %v309_v0, %v265_v23  ;;  %v318_v52 = vsub.f32 %v310_v1, %v266_v24  ;;  %v319_v53 = vsub.f32 %v311_v2, %v267_v25 }
  0x6e   : > { %v320_v54 = vsub.f32 %v312_v3, %v268_v26  ;;  %v321_v57 = vsub.f32 %v313_v4, %v269_v27  ;;  %v322_v58 = vsub.f32 %v314_v32, %v270_v28  ;;  %v323_v59 = vsub.f32 %v315_v33, %v271_v29 }
  0x6f   : > { %v325_v60 = vmul.f32 %v316_v34, %v5216_v43  ;;  %v326_v5 = vmul.f32 %v317_v51, %v5220_v44  ;;  %v327_v6 = vmul.f32 %v318_v52, %v5224_v45  ;;  %v328_v7 = vmul.f32 %v319_v53, %v5228_v46 }
  0x70   : > { %v329_v8 = vmul.f32 %v320_v54, %v5232_v47  ;;  %v330_v55 = vmul.f32 %v321_v57, %v5236_v48  ;;  %v331_v22 = vmul.f32 %v322_v58, %v5240_v49  ;;  %v332_v23 = vmul.f32 %v323_v59, %v5244_v50 }
  0x71   : > { %v334_v24 = vadd.f32 %v333_v56, %v325_v60  ;;  %v335_v25 = vadd.f32 %v333_v56, %v326_v5  ;;  %v336_v26 = vadd.f32 %v333_v56, %v327_v6  ;;  %v337_v27 = vadd.f32 %v333_v56, %v328_v7 }
  0x72   : > { %v338_v28 = vadd.f32 %v333_v56, %v329_v8  ;;  %v339_v29 = vadd.f32 %v333_v56, %v330_v55  ;;  %v340_v18 = vadd.f32 %v333_v56, %v331_v22  ;;  %v341_v19 = vadd.f32 %v333_v56, %v332_v23 }
  0x73   : > { %v342_v20 = vsub.f32 %v334_v24, %v290_v9  ;;  %v343_v21 = vsub.f32 %v335_v25, %v291_v10  ;;  %v344_v30 = vsub.f32 %v336_v26, %v292_v11  ;;  %v345_v31 = vsub.f32 %v337_v27, %v293_v12 }
  0x74   : > { %v346_v61 = vsub.f32 %v338_v28, %v294_v13  ;;  %v347_v62 = vsub.f32 %v339_v29, %v295_v14  ;;  %v348_v63 = vsub.f32 %v340_v18, %v296_v15  ;;  %v349_v0 = vsub.f32 %v341_v19, %v297_v17 }
  0x75   : > { %v351_v1 = vmul.f32 %v342_v20, %v5216_v43  ;;  %v352_v2 = vmul.f32 %v343_v21, %v5220_v44  ;;  %v353_v56 = vmul.f32 %v344_v30, %v5224_v45  ;;  %v354_v3 = vmul.f32 %v345_v31, %v5228_v46 }
  0x76   : > { %v355_v9 = vmul.f32 %v346_v61, %v5232_v47  ;;  %v356_v10 = vmul.f32 %v347_v62, %v5236_v48  ;;  %v357_v11 = vmul.f32 %v348_v63, %v5240_v49  ;;  %v358_v12 = vmul.f32 %v349_v0, %v5244_v50 }
  0x77   : > { %v360_v13 = vadd.f32 %v5300_v16, %v351_v1  ;;  %v361_v14 = vadd.f32 %v5300_v16, %v352_v2  ;;  %v362_v15 = vadd.f32 %v5300_v16, %v353_v56  ;;  %v363_v17 = vadd.f32 %v5300_v16, %v354_v3 }
  0x78   : > { %v364_v4 = vadd.f32 %v5300_v16, %v355_v9  ;;  %v365_v32 = vadd.f32 %v5300_v16, %v356_v10  ;;  %v366_v33 = vadd.f32 %v5300_v16, %v357_v11  ;;  %v367_v60 = vadd.f32 %v5300_v16, %v358_v12 }
  0x79   : > { %v368_v5 = vsub.f32 %v360_v13, %v316_v34  ;;  %v369_v6 = vsub.f32 %v361_v14, %v317_v51  ;;  %v370_v7 = vsub.f32 %v362_v15, %v318_v52  ;;  %v371_v8 = vsub.f32 %v363_v17, %v319_v53 }
  0x7a   : > { %v372_v55 = vsub.f32 %v364_v4, %v320_v54  ;;  %v373_v22 = vsub.f32 %v365_v32, %v321_v57  ;;  %v374_v23 = vsub.f32 %v366_v33, %v322_v58  ;;  %v375_v24 = vsub.f32 %v367_v60, %v323_v59 }
  0x7b   : > { %v377_v25 = vmul.f32 %v368_v5, %v5216_v43  ;;  %v378_v26 = vmul.f32 %v369_v6, %v5220_v44  ;;  %v379_v27 = vmul.f32 %v370_v7, %v5224_v45  ;;  %v380_v16 = vmul.f32 %v371_v8, %v5228_v46 }
  0x7c   : > { %v381_v34 = vmul.f32 %v372_v55, %v5232_v47  ;;  %v382_v51 = vmul.f32 %v373_v22, %v5236_v48  ;;  %v383_v52 = vmul.f32 %v374_v23, %v5240_v49  ;;  %v384_v53 = vmul.f32 %v375_v24, %v5244_v50 }
  0x7d   : > { %v385_v54 = vstv %s5318_s25  ;;  %v411_v57 = vstv %s5320_s0  ;;  %v437_v58 = vstv %s5322_s1  ;;  %v5354_v59 = vstv %s5328_s5  ;;  %s5538_s25 = sld [smem:[#allocation5 + $0x1e]] }
  0x7e   : > { %v386_v28 = vadd.f32 %v385_v54, %v377_v25  ;;  %v387_v29 = vadd.f32 %v385_v54, %v378_v26  ;;  %v388_v18 = vadd.f32 %v385_v54, %v379_v27  ;;  %v389_v19 = vadd.f32 %v385_v54, %v380_v16  ;;  %s5544_s0 = sld [smem:[#allocation5 + $0x1d]] }
  0x7f   : > { %v390_v1 = vadd.f32 %v385_v54, %v381_v34  ;;  %v391_v2 = vadd.f32 %v385_v54, %v382_v51  ;;  %v392_v56 = vadd.f32 %v385_v54, %v383_v52  ;;  %v393_v3 = vadd.f32 %v385_v54, %v384_v53  ;;  %s5588_s1 = sld [smem:[#allocation5 + $0x1c]] }
  0x80   : > { %v394_v9 = vsub.f32 %v386_v28, %v342_v20  ;;  %v395_v10 = vsub.f32 %v387_v29, %v343_v21  ;;  %v396_v11 = vsub.f32 %v388_v18, %v344_v30  ;;  %v397_v12 = vsub.f32 %v389_v19, %v345_v31  ;;  %s5590_s5 = sld [smem:[#allocation5 + $0x1b]] }
  0x81   : > { %v398_v13 = vsub.f32 %v390_v1, %v346_v61  ;;  %v399_v14 = vsub.f32 %v391_v2, %v347_v62  ;;  %v400_v15 = vsub.f32 %v392_v56, %v348_v63  ;;  %v401_v17 = vsub.f32 %v393_v3, %v349_v0 }
  0x82   : > { %v403_v4 = vmul.f32 %v394_v9, %v5216_v43  ;;  %v404_v32 = vmul.f32 %v395_v10, %v5220_v44  ;;  %v405_v33 = vmul.f32 %v396_v11, %v5224_v45  ;;  %v406_v60 = vmul.f32 %v397_v12, %v5228_v46 }
  0x83   : > { %v407_v25 = vmul.f32 %v398_v13, %v5232_v47  ;;  %v408_v26 = vmul.f32 %v399_v14, %v5236_v48  ;;  %v409_v20 = vmul.f32 %v400_v15, %v5240_v49  ;;  %v410_v21 = vmul.f32 %v401_v17, %v5244_v50 }
  0x84   : > { %v412_v30 = vadd.f32 %v411_v57, %v403_v4  ;;  %v413_v31 = vadd.f32 %v411_v57, %v404_v32  ;;  %v414_v61 = vadd.f32 %v411_v57, %v405_v33  ;;  %v415_v62 = vadd.f32 %v411_v57, %v406_v60 }
  0x85   : > { %v416_v63 = vadd.f32 %v411_v57, %v407_v25  ;;  %v417_v0 = vadd.f32 %v411_v57, %v408_v26  ;;  %v418_v27 = vadd.f32 %v411_v57, %v409_v20  ;;  %v419_v16 = vadd.f32 %v411_v57, %v410_v21 }
  0x86   : > { %v420_v34 = vsub.f32 %v412_v30, %v368_v5  ;;  %v421_v51 = vsub.f32 %v413_v31, %v369_v6  ;;  %v422_v52 = vsub.f32 %v414_v61, %v370_v7  ;;  %v423_v53 = vsub.f32 %v415_v62, %v371_v8 }
  0x87   : > { %v424_v54 = vsub.f32 %v416_v63, %v372_v55  ;;  %v425_v28 = vsub.f32 %v417_v0, %v373_v22  ;;  %v426_v29 = vsub.f32 %v418_v27, %v374_v23  ;;  %v427_v18 = vsub.f32 %v419_v16, %v375_v24 }
  0x88   : > { %v429_v19 = vmul.f32 %v420_v34, %v5216_v43  ;;  %v430_v1 = vmul.f32 %v421_v51, %v5220_v44  ;;  %v431_v2 = vmul.f32 %v422_v52, %v5224_v45  ;;  %v432_v56 = vmul.f32 %v423_v53, %v5228_v46 }
  0x89   : > { %v433_v3 = vmul.f32 %v424_v54, %v5232_v47  ;;  %v434_v57 = vmul.f32 %v425_v28, %v5236_v48  ;;  %v435_v5 = vmul.f32 %v426_v29, %v5240_v49  ;;  %v436_v6 = vmul.f32 %v427_v18, %v5244_v50 }
  0x8a   : > { %v438_v7 = vadd.f32 %v437_v58, %v429_v19  ;;  %v439_v8 = vadd.f32 %v437_v58, %v430_v1  ;;  %v440_v55 = vadd.f32 %v437_v58, %v431_v2  ;;  %v441_v22 = vadd.f32 %v437_v58, %v432_v56 }
  0x8b   : > { %v442_v23 = vadd.f32 %v437_v58, %v433_v3  ;;  %v443_v24 = vadd.f32 %v437_v58, %v434_v57  ;;  %v444_v4 = vadd.f32 %v437_v58, %v435_v5  ;;  %v445_v32 = vadd.f32 %v437_v58, %v436_v6 }
  0x8c   : > { %v446_v33 = vsub.f32 %v438_v7, %v394_v9  ;;  %v447_v60 = vsub.f32 %v439_v8, %v395_v10  ;;  %v448_v25 = vsub.f32 %v440_v55, %v396_v11  ;;  %v449_v26 = vsub.f32 %v441_v22, %v397_v12 }
  0x8d   : > { %v450_v20 = vsub.f32 %v442_v23, %v398_v13  ;;  %v451_v21 = vsub.f32 %v443_v24, %v399_v14  ;;  %v452_v30 = vsub.f32 %v444_v4, %v400_v15  ;;  %v453_v31 = vsub.f32 %v445_v32, %v401_v17 }
  0x8e   : > { %v455_v61 = vmul.f32 %v446_v33, %v5216_v43  ;;  %v456_v62 = vmul.f32 %v447_v60, %v5220_v44  ;;  %v457_v58 = vmul.f32 %v448_v25, %v5224_v45  ;;  %v458_v63 = vmul.f32 %v449_v26, %v5228_v46 }
  0x8f   : > { %v459_v9 = vmul.f32 %v450_v20, %v5232_v47  ;;  %v460_v10 = vmul.f32 %v451_v21, %v5236_v48  ;;  %v461_v11 = vmul.f32 %v452_v30, %v5240_v49  ;;  %v462_v12 = vmul.f32 %v453_v31, %v5244_v50 }
  0x90   : > { %v464_v13 = vadd.f32 %v5354_v59, %v455_v61  ;;  %v465_v14 = vadd.f32 %v5354_v59, %v456_v62  ;;  %v466_v15 = vadd.f32 %v5354_v59, %v457_v58  ;;  %v467_v17 = vadd.f32 %v5354_v59, %v458_v63 }
  0x91   : > { %v468_v0 = vadd.f32 %v5354_v59, %v459_v9  ;;  %v469_v27 = vadd.f32 %v5354_v59, %v460_v10  ;;  %v470_v16 = vadd.f32 %v5354_v59, %v461_v11  ;;  %v471_v19 = vadd.f32 %v5354_v59, %v462_v12 }
  0x92   : > { %v472_v1 = vsub.f32 %v464_v13, %v420_v34  ;;  %v473_v2 = vsub.f32 %v465_v14, %v421_v51  ;;  %v474_v56 = vsub.f32 %v466_v15, %v422_v52  ;;  %v475_v3 = vsub.f32 %v467_v17, %v423_v53 }
  0x93   : > { %v476_v57 = vsub.f32 %v468_v0, %v424_v54  ;;  %v477_v5 = vsub.f32 %v469_v27, %v425_v28  ;;  %v478_v6 = vsub.f32 %v470_v16, %v426_v29  ;;  %v479_v7 = vsub.f32 %v471_v19, %v427_v18 }
  0x94   : > { %v481_v8 = vmul.f32 %v472_v1, %v5216_v43  ;;  %v482_v55 = vmul.f32 %v473_v2, %v5220_v44  ;;  %v483_v22 = vmul.f32 %v474_v56, %v5224_v45  ;;  %v484_v59 = vmul.f32 %v475_v3, %v5228_v46 }
  0x95   : > { %v485_v34 = vmul.f32 %v476_v57, %v5232_v47  ;;  %v486_v51 = vmul.f32 %v477_v5, %v5236_v48  ;;  %v487_v52 = vmul.f32 %v478_v6, %v5240_v49  ;;  %v488_v53 = vmul.f32 %v479_v7, %v5244_v50 }
  0x96   : > { %v489_v54 = vstv %s5372_s6  ;;  %v515_v28 = vstv %s5374_s8  ;;  %v541_v29 = vstv %s5376_s10  ;;  %v5408_v18 = vstv %s5382_s15  ;;  %s5592_s6 = sld [smem:[#allocation5 + $0x1a]] }
  0x97   : > { %v490_v23 = vadd.f32 %v489_v54, %v481_v8  ;;  %v491_v24 = vadd.f32 %v489_v54, %v482_v55  ;;  %v492_v4 = vadd.f32 %v489_v54, %v483_v22  ;;  %v493_v32 = vadd.f32 %v489_v54, %v484_v59  ;;  %s5598_s8 = sld [smem:[#allocation5 + $0x19]] }
  0x98   : > { %v494_v61 = vadd.f32 %v489_v54, %v485_v34  ;;  %v495_v62 = vadd.f32 %v489_v54, %v486_v51  ;;  %v496_v58 = vadd.f32 %v489_v54, %v487_v52  ;;  %v497_v63 = vadd.f32 %v489_v54, %v488_v53  ;;  %s5642_s10 = sld [smem:[#allocation5 + $0x18]] }
  0x99   : > { %v498_v9 = vsub.f32 %v490_v23, %v446_v33  ;;  %v499_v10 = vsub.f32 %v491_v24, %v447_v60  ;;  %v500_v11 = vsub.f32 %v492_v4, %v448_v25  ;;  %v501_v12 = vsub.f32 %v493_v32, %v449_v26  ;;  %s5644_s15 = sld [smem:[#allocation5 + $0x17]] }
  0x9a   : > { %v502_v13 = vsub.f32 %v494_v61, %v450_v20  ;;  %v503_v14 = vsub.f32 %v495_v62, %v451_v21  ;;  %v504_v15 = vsub.f32 %v496_v58, %v452_v30  ;;  %v505_v17 = vsub.f32 %v497_v63, %v453_v31 }
  0x9b   : > { %v507_v0 = vmul.f32 %v498_v9, %v5216_v43  ;;  %v508_v27 = vmul.f32 %v499_v10, %v5220_v44  ;;  %v509_v16 = vmul.f32 %v500_v11, %v5224_v45  ;;  %v510_v19 = vmul.f32 %v501_v12, %v5228_v46 }
  0x9c   : > { %v511_v8 = vmul.f32 %v502_v13, %v5232_v47  ;;  %v512_v55 = vmul.f32 %v503_v14, %v5236_v48  ;;  %v513_v33 = vmul.f32 %v504_v15, %v5240_v49  ;;  %v514_v60 = vmul.f32 %v505_v17, %v5244_v50 }
  0x9d   : > { %v516_v25 = vadd.f32 %v515_v28, %v507_v0  ;;  %v517_v26 = vadd.f32 %v515_v28, %v508_v27  ;;  %v518_v20 = vadd.f32 %v515_v28, %v509_v16  ;;  %v519_v21 = vadd.f32 %v515_v28, %v510_v19 }
  0x9e   : > { %v520_v30 = vadd.f32 %v515_v28, %v511_v8  ;;  %v521_v31 = vadd.f32 %v515_v28, %v512_v55  ;;  %v522_v22 = vadd.f32 %v515_v28, %v513_v33  ;;  %v523_v59 = vadd.f32 %v515_v28, %v514_v60 }
  0x9f   : > { %v524_v34 = vsub.f32 %v516_v25, %v472_v1  ;;  %v525_v51 = vsub.f32 %v517_v26, %v473_v2  ;;  %v526_v52 = vsub.f32 %v518_v20, %v474_v56  ;;  %v527_v53 = vsub.f32 %v519_v21, %v475_v3 }
  0xa0   : > { %v528_v54 = vsub.f32 %v520_v30, %v476_v57  ;;  %v529_v23 = vsub.f32 %v521_v31, %v477_v5  ;;  %v530_v24 = vsub.f32 %v522_v22, %v478_v6  ;;  %v531_v4 = vsub.f32 %v523_v59, %v479_v7 }
  0xa1   : > { %v533_v32 = vmul.f32 %v524_v34, %v5216_v43  ;;  %v534_v61 = vmul.f32 %v525_v51, %v5220_v44  ;;  %v535_v62 = vmul.f32 %v526_v52, %v5224_v45  ;;  %v536_v58 = vmul.f32 %v527_v53, %v5228_v46 }
  0xa2   : > { %v537_v63 = vmul.f32 %v528_v54, %v5232_v47  ;;  %v538_v28 = vmul.f32 %v529_v23, %v5236_v48  ;;  %v539_v1 = vmul.f32 %v530_v24, %v5240_v49  ;;  %v540_v2 = vmul.f32 %v531_v4, %v5244_v50 }
  0xa3   : > { %v542_v56 = vadd.f32 %v541_v29, %v533_v32  ;;  %v543_v3 = vadd.f32 %v541_v29, %v534_v61  ;;  %v544_v57 = vadd.f32 %v541_v29, %v535_v62  ;;  %v545_v5 = vadd.f32 %v541_v29, %v536_v58 }
  0xa4   : > { %v546_v6 = vadd.f32 %v541_v29, %v537_v63  ;;  %v547_v7 = vadd.f32 %v541_v29, %v538_v28  ;;  %v548_v0 = vadd.f32 %v541_v29, %v539_v1  ;;  %v549_v27 = vadd.f32 %v541_v29, %v540_v2 }
  0xa5   : > { %v550_v16 = vsub.f32 %v542_v56, %v498_v9  ;;  %v551_v19 = vsub.f32 %v543_v3, %v499_v10  ;;  %v552_v8 = vsub.f32 %v544_v57, %v500_v11  ;;  %v553_v55 = vsub.f32 %v545_v5, %v501_v12 }
  0xa6   : > { %v554_v33 = vsub.f32 %v546_v6, %v502_v13  ;;  %v555_v60 = vsub.f32 %v547_v7, %v503_v14  ;;  %v556_v25 = vsub.f32 %v548_v0, %v504_v15  ;;  %v557_v26 = vsub.f32 %v549_v27, %v505_v17 }
  0xa7   : > { %v559_v20 = vmul.f32 %v550_v16, %v5216_v43  ;;  %v560_v21 = vmul.f32 %v551_v19, %v5220_v44  ;;  %v561_v29 = vmul.f32 %v552_v8, %v5224_v45  ;;  %v562_v30 = vmul.f32 %v553_v55, %v5228_v46 }
  0xa8   : > { %v563_v9 = vmul.f32 %v554_v33, %v5232_v47  ;;  %v564_v10 = vmul.f32 %v555_v60, %v5236_v48  ;;  %v565_v11 = vmul.f32 %v556_v25, %v5240_v49  ;;  %v566_v12 = vmul.f32 %v557_v26, %v5244_v50 }
  0xa9   : > { %v568_v13 = vadd.f32 %v5408_v18, %v559_v20  ;;  %v569_v14 = vadd.f32 %v5408_v18, %v560_v21  ;;  %v570_v15 = vadd.f32 %v5408_v18, %v561_v29  ;;  %v571_v17 = vadd.f32 %v5408_v18, %v562_v30 }
  0xaa   : > { %v572_v31 = vadd.f32 %v5408_v18, %v563_v9  ;;  %v573_v22 = vadd.f32 %v5408_v18, %v564_v10  ;;  %v574_v59 = vadd.f32 %v5408_v18, %v565_v11  ;;  %v575_v32 = vadd.f32 %v5408_v18, %v566_v12 }
  0xab   : > { %v576_v61 = vsub.f32 %v568_v13, %v524_v34  ;;  %v577_v62 = vsub.f32 %v569_v14, %v525_v51  ;;  %v578_v58 = vsub.f32 %v570_v15, %v526_v52  ;;  %v579_v63 = vsub.f32 %v571_v17, %v527_v53 }
  0xac   : > { %v580_v28 = vsub.f32 %v572_v31, %v528_v54  ;;  %v581_v1 = vsub.f32 %v573_v22, %v529_v23  ;;  %v582_v2 = vsub.f32 %v574_v59, %v530_v24  ;;  %v583_v56 = vsub.f32 %v575_v32, %v531_v4 }
  0xad   : > { %v585_v3 = vmul.f32 %v576_v61, %v5216_v43  ;;  %v586_v57 = vmul.f32 %v577_v62, %v5220_v44  ;;  %v587_v5 = vmul.f32 %v578_v58, %v5224_v45  ;;  %v588_v18 = vmul.f32 %v579_v63, %v5228_v46 }
  0xae   : > { %v589_v34 = vmul.f32 %v580_v28, %v5232_v47  ;;  %v590_v51 = vmul.f32 %v581_v1, %v5236_v48  ;;  %v591_v52 = vmul.f32 %v582_v2, %v5240_v49  ;;  %v592_v53 = vmul.f32 %v583_v56, %v5244_v50 }
  0xaf   : > { %v593_v54 = vstv %s5426_s16  ;;  %v619_v23 = vstv %s5428_s17  ;;  %v645_v24 = vstv %s5430_s18  ;;  %v5462_v4 = vstv %s5436_s19  ;;  %s5646_s16 = sld [smem:[#allocation5 + $0x16]] }
  0xb0   : > { %v594_v6 = vadd.f32 %v593_v54, %v585_v3  ;;  %v595_v7 = vadd.f32 %v593_v54, %v586_v57  ;;  %v596_v0 = vadd.f32 %v593_v54, %v587_v5  ;;  %v597_v27 = vadd.f32 %v593_v54, %v588_v18  ;;  %s5652_s17 = sld [smem:[#allocation5 + $0x15]] }
  0xb1   : > { %v598_v20 = vadd.f32 %v593_v54, %v589_v34  ;;  %v599_v21 = vadd.f32 %v593_v54, %v590_v51  ;;  %v600_v29 = vadd.f32 %v593_v54, %v591_v52  ;;  %v601_v30 = vadd.f32 %v593_v54, %v592_v53  ;;  %s5696_s18 = sld [smem:[#allocation5 + $0x14]] }
  0xb2   : > { %v602_v9 = vsub.f32 %v594_v6, %v550_v16  ;;  %v603_v10 = vsub.f32 %v595_v7, %v551_v19  ;;  %v604_v11 = vsub.f32 %v596_v0, %v552_v8  ;;  %v605_v12 = vsub.f32 %v597_v27, %v553_v55  ;;  %s5698_s19 = sld [smem:[#allocation5 + $0x13]] }
  0xb3   : > { %v606_v13 = vsub.f32 %v598_v20, %v554_v33  ;;  %v607_v14 = vsub.f32 %v599_v21, %v555_v60  ;;  %v608_v15 = vsub.f32 %v600_v29, %v556_v25  ;;  %v609_v17 = vsub.f32 %v601_v30, %v557_v26 }
  0xb4   : > { %v611_v31 = vmul.f32 %v602_v9, %v5216_v43  ;;  %v612_v22 = vmul.f32 %v603_v10, %v5220_v44  ;;  %v613_v59 = vmul.f32 %v604_v11, %v5224_v45  ;;  %v614_v32 = vmul.f32 %v605_v12, %v5228_v46 }
  0xb5   : > { %v615_v3 = vmul.f32 %v606_v13, %v5232_v47  ;;  %v616_v57 = vmul.f32 %v607_v14, %v5236_v48  ;;  %v617_v16 = vmul.f32 %v608_v15, %v5240_v49  ;;  %v618_v19 = vmul.f32 %v609_v17, %v5244_v50 }
  0xb6   : > { %v620_v8 = vadd.f32 %v619_v23, %v611_v31  ;;  %v621_v55 = vadd.f32 %v619_v23, %v612_v22  ;;  %v622_v33 = vadd.f32 %v619_v23, %v613_v59  ;;  %v623_v60 = vadd.f32 %v619_v23, %v614_v32 }
  0xb7   : > { %v624_v25 = vadd.f32 %v619_v23, %v615_v3  ;;  %v625_v26 = vadd.f32 %v619_v23, %v616_v57  ;;  %v626_v5 = vadd.f32 %v619_v23, %v617_v16  ;;  %v627_v18 = vadd.f32 %v619_v23, %v618_v19 }
  0xb8   : > { %v628_v34 = vsub.f32 %v620_v8, %v576_v61  ;;  %v629_v51 = vsub.f32 %v621_v55, %v577_v62  ;;  %v630_v52 = vsub.f32 %v622_v33, %v578_v58  ;;  %v631_v53 = vsub.f32 %v623_v60, %v579_v63 }
  0xb9   : > { %v632_v54 = vsub.f32 %v624_v25, %v580_v28  ;;  %v633_v6 = vsub.f32 %v625_v26, %v581_v1  ;;  %v634_v7 = vsub.f32 %v626_v5, %v582_v2  ;;  %v635_v0 = vsub.f32 %v627_v18, %v583_v56 }
  0xba   : > { %v637_v27 = vmul.f32 %v628_v34, %v5216_v43  ;;  %v638_v20 = vmul.f32 %v629_v51, %v5220_v44  ;;  %v639_v21 = vmul.f32 %v630_v52, %v5224_v45  ;;  %v640_v29 = vmul.f32 %v631_v53, %v5228_v46 }
  0xbb   : > { %v641_v30 = vmul.f32 %v632_v54, %v5232_v47  ;;  %v642_v23 = vmul.f32 %v633_v6, %v5236_v48  ;;  %v643_v61 = vmul.f32 %v634_v7, %v5240_v49  ;;  %v644_v62 = vmul.f32 %v635_v0, %v5244_v50 }
  0xbc   : > { %v646_v58 = vadd.f32 %v645_v24, %v637_v27  ;;  %v647_v63 = vadd.f32 %v645_v24, %v638_v20  ;;  %v648_v28 = vadd.f32 %v645_v24, %v639_v21  ;;  %v649_v1 = vadd.f32 %v645_v24, %v640_v29 }
  0xbd   : > { %v650_v2 = vadd.f32 %v645_v24, %v641_v30  ;;  %v651_v56 = vadd.f32 %v645_v24, %v642_v23  ;;  %v652_v31 = vadd.f32 %v645_v24, %v643_v61  ;;  %v653_v22 = vadd.f32 %v645_v24, %v644_v62 }
  0xbe   : > { %v654_v59 = vsub.f32 %v646_v58, %v602_v9  ;;  %v655_v32 = vsub.f32 %v647_v63, %v603_v10  ;;  %v656_v3 = vsub.f32 %v648_v28, %v604_v11  ;;  %v657_v57 = vsub.f32 %v649_v1, %v605_v12 }
  0xbf   : > { %v658_v16 = vsub.f32 %v650_v2, %v606_v13  ;;  %v659_v19 = vsub.f32 %v651_v56, %v607_v14  ;;  %v660_v8 = vsub.f32 %v652_v31, %v608_v15  ;;  %v661_v55 = vsub.f32 %v653_v22, %v609_v17 }
  0xc0   : > { %v663_v33 = vmul.f32 %v654_v59, %v5216_v43  ;;  %v664_v60 = vmul.f32 %v655_v32, %v5220_v44  ;;  %v665_v24 = vmul.f32 %v656_v3, %v5224_v45  ;;  %v666_v25 = vmul.f32 %v657_v57, %v5228_v46 }
  0xc1   : > { %v667_v9 = vmul.f32 %v658_v16, %v5232_v47  ;;  %v668_v10 = vmul.f32 %v659_v19, %v5236_v48  ;;  %v669_v11 = vmul.f32 %v660_v8, %v5240_v49  ;;  %v670_v12 = vmul.f32 %v661_v55, %v5244_v50 }
  0xc2   : > { %v672_v13 = vadd.f32 %v5462_v4, %v663_v33  ;;  %v673_v14 = vadd.f32 %v5462_v4, %v664_v60  ;;  %v674_v15 = vadd.f32 %v5462_v4, %v665_v24  ;;  %v675_v17 = vadd.f32 %v5462_v4, %v666_v25 }
  0xc3   : > { %v676_v26 = vadd.f32 %v5462_v4, %v667_v9  ;;  %v677_v5 = vadd.f32 %v5462_v4, %v668_v10  ;;  %v678_v18 = vadd.f32 %v5462_v4, %v669_v11  ;;  %v679_v27 = vadd.f32 %v5462_v4, %v670_v12 }
  0xc4   : > { %v680_v20 = vsub.f32 %v672_v13, %v628_v34  ;;  %v681_v21 = vsub.f32 %v673_v14, %v629_v51  ;;  %v682_v29 = vsub.f32 %v674_v15, %v630_v52  ;;  %v683_v30 = vsub.f32 %v675_v17, %v631_v53 }
  0xc5   : > { %v684_v23 = vsub.f32 %v676_v26, %v632_v54  ;;  %v685_v61 = vsub.f32 %v677_v5, %v633_v6  ;;  %v686_v62 = vsub.f32 %v678_v18, %v634_v7  ;;  %v687_v58 = vsub.f32 %v679_v27, %v635_v0 }
  0xc6   : > { %v689_v63 = vmul.f32 %v680_v20, %v5216_v43  ;;  %v690_v28 = vmul.f32 %v681_v21, %v5220_v44  ;;  %v691_v1 = vmul.f32 %v682_v29, %v5224_v45  ;;  %v692_v4 = vmul.f32 %v683_v30, %v5228_v46 }
  0xc7   : > { %v693_v34 = vmul.f32 %v684_v23, %v5232_v47  ;;  %v694_v51 = vmul.f32 %v685_v61, %v5236_v48  ;;  %v695_v52 = vmul.f32 %v686_v62, %v5240_v49  ;;  %v696_v53 = vmul.f32 %v687_v58, %v5244_v50 }
  0xc8   : > { %v697_v54 = vstv %s5480_s11  ;;  %v723_v6 = vstv %s5482_s20  ;;  %v749_v7 = vstv %s5484_s21  ;;  %v5516_v0 = vstv %s5490_s22  ;;  %s5700_s11 = sld [smem:[#allocation5 + $0x12]] }
  0xc9   : > { %v698_v2 = vadd.f32 %v697_v54, %v689_v63  ;;  %v699_v56 = vadd.f32 %v697_v54, %v690_v28  ;;  %v700_v31 = vadd.f32 %v697_v54, %v691_v1  ;;  %v701_v22 = vadd.f32 %v697_v54, %v692_v4  ;;  %s5706_s20 = sld [smem:[#allocation5 + $0x11]] }
  0xca   : > { %v702_v33 = vadd.f32 %v697_v54, %v693_v34  ;;  %v703_v60 = vadd.f32 %v697_v54, %v694_v51  ;;  %v704_v24 = vadd.f32 %v697_v54, %v695_v52  ;;  %v705_v25 = vadd.f32 %v697_v54, %v696_v53  ;;  %s5750_s21 = sld [smem:[#allocation5 + $0x10]] }
  0xcb   : > { %v706_v9 = vsub.f32 %v698_v2, %v654_v59  ;;  %v707_v10 = vsub.f32 %v699_v56, %v655_v32  ;;  %v708_v11 = vsub.f32 %v700_v31, %v656_v3  ;;  %v709_v12 = vsub.f32 %v701_v22, %v657_v57  ;;  %s5752_s22 = sld [smem:[#allocation5 + $0xf]] }
  0xcc   : > { %v710_v13 = vsub.f32 %v702_v33, %v658_v16  ;;  %v711_v14 = vsub.f32 %v703_v60, %v659_v19  ;;  %v712_v15 = vsub.f32 %v704_v24, %v660_v8  ;;  %v713_v17 = vsub.f32 %v705_v25, %v661_v55 }
  0xcd   : > { %v715_v26 = vmul.f32 %v706_v9, %v5216_v43  ;;  %v716_v5 = vmul.f32 %v707_v10, %v5220_v44  ;;  %v717_v18 = vmul.f32 %v708_v11, %v5224_v45  ;;  %v718_v27 = vmul.f32 %v709_v12, %v5228_v46 }
  0xce   : > { %v719_v63 = vmul.f32 %v710_v13, %v5232_v47  ;;  %v720_v28 = vmul.f32 %v711_v14, %v5236_v48  ;;  %v721_v59 = vmul.f32 %v712_v15, %v5240_v49  ;;  %v722_v32 = vmul.f32 %v713_v17, %v5244_v50 }
  0xcf   : > { %v724_v3 = vadd.f32 %v723_v6, %v715_v26  ;;  %v725_v57 = vadd.f32 %v723_v6, %v716_v5  ;;  %v726_v16 = vadd.f32 %v723_v6, %v717_v18  ;;  %v727_v19 = vadd.f32 %v723_v6, %v718_v27 }
  0xd0   : > { %v728_v8 = vadd.f32 %v723_v6, %v719_v63  ;;  %v729_v55 = vadd.f32 %v723_v6, %v720_v28  ;;  %v730_v1 = vadd.f32 %v723_v6, %v721_v59  ;;  %v731_v4 = vadd.f32 %v723_v6, %v722_v32 }
  0xd1   : > { %v732_v34 = vsub.f32 %v724_v3, %v680_v20  ;;  %v733_v51 = vsub.f32 %v725_v57, %v681_v21  ;;  %v734_v52 = vsub.f32 %v726_v16, %v682_v29  ;;  %v735_v53 = vsub.f32 %v727_v19, %v683_v30 }
  0xd2   : > { %v736_v54 = vsub.f32 %v728_v8, %v684_v23  ;;  %v737_v2 = vsub.f32 %v729_v55, %v685_v61  ;;  %v738_v56 = vsub.f32 %v730_v1, %v686_v62  ;;  %v739_v31 = vsub.f32 %v731_v4, %v687_v58 }
  0xd3   : > { %v741_v22 = vmul.f32 %v732_v34, %v5216_v43  ;;  %v742_v33 = vmul.f32 %v733_v51, %v5220_v44  ;;  %v743_v60 = vmul.f32 %v734_v52, %v5224_v45  ;;  %v744_v24 = vmul.f32 %v735_v53, %v5228_v46 }
  0xd4   : > { %v745_v25 = vmul.f32 %v736_v54, %v5232_v47  ;;  %v746_v6 = vmul.f32 %v737_v2, %v5236_v48  ;;  %v747_v20 = vmul.f32 %v738_v56, %v5240_v49  ;;  %v748_v21 = vmul.f32 %v739_v31, %v5244_v50 }
  0xd5   : > { %v750_v29 = vadd.f32 %v749_v7, %v741_v22  ;;  %v751_v30 = vadd.f32 %v749_v7, %v742_v33  ;;  %v752_v23 = vadd.f32 %v749_v7, %v743_v60  ;;  %v753_v61 = vadd.f32 %v749_v7, %v744_v24 }
  0xd6   : > { %v754_v62 = vadd.f32 %v749_v7, %v745_v25  ;;  %v755_v58 = vadd.f32 %v749_v7, %v746_v6  ;;  %v756_v26 = vadd.f32 %v749_v7, %v747_v20  ;;  %v757_v5 = vadd.f32 %v749_v7, %v748_v21 }
  0xd7   : > { %v758_v18 = vsub.f32 %v750_v29, %v706_v9  ;;  %v759_v27 = vsub.f32 %v751_v30, %v707_v10  ;;  %v760_v63 = vsub.f32 %v752_v23, %v708_v11  ;;  %v761_v28 = vsub.f32 %v753_v61, %v709_v12 }
  0xd8   : > { %v762_v59 = vsub.f32 %v754_v62, %v710_v13  ;;  %v763_v32 = vsub.f32 %v755_v58, %v711_v14  ;;  %v764_v3 = vsub.f32 %v756_v26, %v712_v15  ;;  %v765_v57 = vsub.f32 %v757_v5, %v713_v17 }
  0xd9   : > { %v767_v16 = vmul.f32 %v758_v18, %v5216_v43  ;;  %v768_v19 = vmul.f32 %v759_v27, %v5220_v44  ;;  %v769_v7 = vmul.f32 %v760_v63, %v5224_v45  ;;  %v770_v8 = vmul.f32 %v761_v28, %v5228_v46 }
  0xda   : > { %v771_v9 = vmul.f32 %v762_v59, %v5232_v47  ;;  %v772_v10 = vmul.f32 %v763_v32, %v5236_v48  ;;  %v773_v11 = vmul.f32 %v764_v3, %v5240_v49  ;;  %v774_v12 = vmul.f32 %v765_v57, %v5244_v50 }
  0xdb   : > { %v776_v13 = vadd.f32 %v5516_v0, %v767_v16  ;;  %v777_v14 = vadd.f32 %v5516_v0, %v768_v19  ;;  %v778_v15 = vadd.f32 %v5516_v0, %v769_v7  ;;  %v779_v17 = vadd.f32 %v5516_v0, %v770_v8 }
  0xdc   : > { %v780_v55 = vadd.f32 %v5516_v0, %v771_v9  ;;  %v781_v1 = vadd.f32 %v5516_v0, %v772_v10  ;;  %v782_v4 = vadd.f32 %v5516_v0, %v773_v11  ;;  %v783_v22 = vadd.f32 %v5516_v0, %v774_v12 }
  0xdd   : > { %v784_v33 = vsub.f32 %v776_v13, %v732_v34  ;;  %v785_v60 = vsub.f32 %v777_v14, %v733_v51  ;;  %v786_v24 = vsub.f32 %v778_v15, %v734_v52  ;;  %v787_v25 = vsub.f32 %v779_v17, %v735_v53 }
  0xde   : > { %v788_v6 = vsub.f32 %v780_v55, %v736_v54  ;;  %v789_v20 = vsub.f32 %v781_v1, %v737_v2  ;;  %v790_v21 = vsub.f32 %v782_v4, %v738_v56  ;;  %v791_v29 = vsub.f32 %v783_v22, %v739_v31 }
  0xdf   : > { %v793_v30 = vmul.f32 %v784_v33, %v5216_v43  ;;  %v794_v23 = vmul.f32 %v785_v60, %v5220_v44  ;;  %v795_v61 = vmul.f32 %v786_v24, %v5224_v45  ;;  %v796_v0 = vmul.f32 %v787_v25, %v5228_v46 }
  0xe0   : > { %v797_v34 = vmul.f32 %v788_v6, %v5232_v47  ;;  %v798_v51 = vmul.f32 %v789_v20, %v5236_v48  ;;  %v799_v52 = vmul.f32 %v790_v21, %v5240_v49  ;;  %v800_v53 = vmul.f32 %v791_v29, %v5244_v50 }
  0xe1   : > { %v801_v54 = vstv %s5534_s23  ;;  %v827_v2 = vstv %s5536_s24  ;;  %v853_v56 = vstv %s5538_s25  ;;  %v5570_v31 = vstv %s5544_s0  ;;  %s5754_s23 = sld [smem:[#allocation5 + $0xe]] }
  0xe2   : > { %v802_v62 = vadd.f32 %v801_v54, %v793_v30  ;;  %v803_v58 = vadd.f32 %v801_v54, %v794_v23  ;;  %v804_v26 = vadd.f32 %v801_v54, %v795_v61  ;;  %v805_v5 = vadd.f32 %v801_v54, %v796_v0  ;;  %s5760_s24 = sld [smem:[#allocation5 + $0xd]] }
  0xe3   : > { %v806_v16 = vadd.f32 %v801_v54, %v797_v34  ;;  %v807_v19 = vadd.f32 %v801_v54, %v798_v51  ;;  %v808_v7 = vadd.f32 %v801_v54, %v799_v52  ;;  %v809_v8 = vadd.f32 %v801_v54, %v800_v53  ;;  %s5804_s25 = sld [smem:[#allocation5 + $0xc]] }
  0xe4   : > { %v810_v9 = vsub.f32 %v802_v62, %v758_v18  ;;  %v811_v10 = vsub.f32 %v803_v58, %v759_v27  ;;  %v812_v11 = vsub.f32 %v804_v26, %v760_v63  ;;  %v813_v12 = vsub.f32 %v805_v5, %v761_v28  ;;  %s5806_s0 = sld [smem:[#allocation5 + $0xb]] }
  0xe5   : > { %v814_v13 = vsub.f32 %v806_v16, %v762_v59  ;;  %v815_v14 = vsub.f32 %v807_v19, %v763_v32  ;;  %v816_v15 = vsub.f32 %v808_v7, %v764_v3  ;;  %v817_v17 = vsub.f32 %v809_v8, %v765_v57 }
  0xe6   : > { %v819_v55 = vmul.f32 %v810_v9, %v5216_v43  ;;  %v820_v1 = vmul.f32 %v811_v10, %v5220_v44  ;;  %v821_v4 = vmul.f32 %v812_v11, %v5224_v45  ;;  %v822_v22 = vmul.f32 %v813_v12, %v5228_v46 }
  0xe7   : > { %v823_v30 = vmul.f32 %v814_v13, %v5232_v47  ;;  %v824_v23 = vmul.f32 %v815_v14, %v5236_v48  ;;  %v825_v18 = vmul.f32 %v816_v15, %v5240_v49  ;;  %v826_v27 = vmul.f32 %v817_v17, %v5244_v50 }
  0xe8   : > { %v828_v63 = vadd.f32 %v827_v2, %v819_v55  ;;  %v829_v28 = vadd.f32 %v827_v2, %v820_v1  ;;  %v830_v59 = vadd.f32 %v827_v2, %v821_v4  ;;  %v831_v32 = vadd.f32 %v827_v2, %v822_v22 }
  0xe9   : > { %v832_v3 = vadd.f32 %v827_v2, %v823_v30  ;;  %v833_v57 = vadd.f32 %v827_v2, %v824_v23  ;;  %v834_v61 = vadd.f32 %v827_v2, %v825_v18  ;;  %v835_v0 = vadd.f32 %v827_v2, %v826_v27 }
  0xea   : > { %v836_v34 = vsub.f32 %v828_v63, %v784_v33  ;;  %v837_v51 = vsub.f32 %v829_v28, %v785_v60  ;;  %v838_v52 = vsub.f32 %v830_v59, %v786_v24  ;;  %v839_v53 = vsub.f32 %v831_v32, %v787_v25 }
  0xeb   : > { %v840_v54 = vsub.f32 %v832_v3, %v788_v6  ;;  %v841_v62 = vsub.f32 %v833_v57, %v789_v20  ;;  %v842_v58 = vsub.f32 %v834_v61, %v790_v21  ;;  %v843_v26 = vsub.f32 %v835_v0, %v791_v29 }
  0xec   : > { %v845_v5 = vmul.f32 %v836_v34, %v5216_v43  ;;  %v846_v16 = vmul.f32 %v837_v51, %v5220_v44  ;;  %v847_v19 = vmul.f32 %v838_v52, %v5224_v45  ;;  %v848_v7 = vmul.f32 %v839_v53, %v5228_v46 }
  0xed   : > { %v849_v8 = vmul.f32 %v840_v54, %v5232_v47  ;;  %v850_v2 = vmul.f32 %v841_v62, %v5236_v48  ;;  %v851_v33 = vmul.f32 %v842_v58, %v5240_v49  ;;  %v852_v60 = vmul.f32 %v843_v26, %v5244_v50 }
  0xee   : > { %v854_v24 = vadd.f32 %v853_v56, %v845_v5  ;;  %v855_v25 = vadd.f32 %v853_v56, %v846_v16  ;;  %v856_v6 = vadd.f32 %v853_v56, %v847_v19  ;;  %v857_v20 = vadd.f32 %v853_v56, %v848_v7 }
  0xef   : > { %v858_v21 = vadd.f32 %v853_v56, %v849_v8  ;;  %v859_v29 = vadd.f32 %v853_v56, %v850_v2  ;;  %v860_v55 = vadd.f32 %v853_v56, %v851_v33  ;;  %v861_v1 = vadd.f32 %v853_v56, %v852_v60 }
  0xf0   : > { %v862_v4 = vsub.f32 %v854_v24, %v810_v9  ;;  %v863_v22 = vsub.f32 %v855_v25, %v811_v10  ;;  %v864_v30 = vsub.f32 %v856_v6, %v812_v11  ;;  %v865_v23 = vsub.f32 %v857_v20, %v813_v12 }
  0xf1   : > { %v866_v18 = vsub.f32 %v858_v21, %v814_v13  ;;  %v867_v27 = vsub.f32 %v859_v29, %v815_v14  ;;  %v868_v63 = vsub.f32 %v860_v55, %v816_v15  ;;  %v869_v28 = vsub.f32 %v861_v1, %v817_v17 }
  0xf2   : > { %v871_v59 = vmul.f32 %v862_v4, %v5216_v43  ;;  %v872_v32 = vmul.f32 %v863_v22, %v5220_v44  ;;  %v873_v56 = vmul.f32 %v864_v30, %v5224_v45  ;;  %v874_v3 = vmul.f32 %v865_v23, %v5228_v46 }
  0xf3   : > { %v875_v9 = vmul.f32 %v866_v18, %v5232_v47  ;;  %v876_v10 = vmul.f32 %v867_v27, %v5236_v48  ;;  %v877_v11 = vmul.f32 %v868_v63, %v5240_v49  ;;  %v878_v12 = vmul.f32 %v869_v28, %v5244_v50 }
  0xf4   : > { %v880_v13 = vadd.f32 %v5570_v31, %v871_v59  ;;  %v881_v14 = vadd.f32 %v5570_v31, %v872_v32  ;;  %v882_v15 = vadd.f32 %v5570_v31, %v873_v56  ;;  %v883_v17 = vadd.f32 %v5570_v31, %v874_v3 }
  0xf5   : > { %v884_v57 = vadd.f32 %v5570_v31, %v875_v9  ;;  %v885_v61 = vadd.f32 %v5570_v31, %v876_v10  ;;  %v886_v0 = vadd.f32 %v5570_v31, %v877_v11  ;;  %v887_v5 = vadd.f32 %v5570_v31, %v878_v12 }
  0xf6   : > { %v888_v16 = vsub.f32 %v880_v13, %v836_v34  ;;  %v889_v19 = vsub.f32 %v881_v14, %v837_v51  ;;  %v890_v7 = vsub.f32 %v882_v15, %v838_v52  ;;  %v891_v8 = vsub.f32 %v883_v17, %v839_v53 }
  0xf7   : > { %v892_v2 = vsub.f32 %v884_v57, %v840_v54  ;;  %v893_v33 = vsub.f32 %v885_v61, %v841_v62  ;;  %v894_v60 = vsub.f32 %v886_v0, %v842_v58  ;;  %v895_v24 = vsub.f32 %v887_v5, %v843_v26 }
  0xf8   : > { %v897_v25 = vmul.f32 %v888_v16, %v5216_v43  ;;  %v898_v6 = vmul.f32 %v889_v19, %v5220_v44  ;;  %v899_v20 = vmul.f32 %v890_v7, %v5224_v45  ;;  %v900_v31 = vmul.f32 %v891_v8, %v5228_v46 }
  0xf9   : > { %v901_v34 = vmul.f32 %v892_v2, %v5232_v47  ;;  %v902_v51 = vmul.f32 %v893_v33, %v5236_v48  ;;  %v903_v52 = vmul.f32 %v894_v60, %v5240_v49  ;;  %v904_v53 = vmul.f32 %v895_v24, %v5244_v50 }
  0xfa   : > { %v905_v54 = vstv %s5588_s1  ;;  %v931_v62 = vstv %s5590_s5  ;;  %v957_v58 = vstv %s5592_s6  ;;  %v5624_v26 = vstv %s5598_s8  ;;  %s5808_s1 = sld [smem:[#allocation5 + $0xa]] }
  0xfb   : > { %v906_v21 = vadd.f32 %v905_v54, %v897_v25  ;;  %v907_v29 = vadd.f32 %v905_v54, %v898_v6  ;;  %v908_v55 = vadd.f32 %v905_v54, %v899_v20  ;;  %v909_v1 = vadd.f32 %v905_v54, %v900_v31  ;;  %s5814_s5 = sld [smem:[#allocation5 + $0x9]] }
  0xfc   : > { %v910_v59 = vadd.f32 %v905_v54, %v901_v34  ;;  %v911_v32 = vadd.f32 %v905_v54, %v902_v51  ;;  %v912_v56 = vadd.f32 %v905_v54, %v903_v52  ;;  %v913_v3 = vadd.f32 %v905_v54, %v904_v53  ;;  %s5858_s6 = sld [smem:[#allocation5 + $0x8]] }
  0xfd   : > { %v914_v9 = vsub.f32 %v906_v21, %v862_v4  ;;  %v915_v10 = vsub.f32 %v907_v29, %v863_v22  ;;  %v916_v11 = vsub.f32 %v908_v55, %v864_v30  ;;  %v917_v12 = vsub.f32 %v909_v1, %v865_v23  ;;  %s5860_s8 = sld [smem:[#allocation5 + $0x7]] }
  0xfe   : > { %v918_v13 = vsub.f32 %v910_v59, %v866_v18  ;;  %v919_v14 = vsub.f32 %v911_v32, %v867_v27  ;;  %v920_v15 = vsub.f32 %v912_v56, %v868_v63  ;;  %v921_v17 = vsub.f32 %v913_v3, %v869_v28 }
  0xff   : > { %v923_v57 = vmul.f32 %v914_v9, %v5216_v43  ;;  %v924_v61 = vmul.f32 %v915_v10, %v5220_v44  ;;  %v925_v0 = vmul.f32 %v916_v11, %v5224_v45  ;;  %v926_v5 = vmul.f32 %v917_v12, %v5228_v46 }
 0x100   : > { %v927_v25 = vmul.f32 %v918_v13, %v5232_v47  ;;  %v928_v6 = vmul.f32 %v919_v14, %v5236_v48  ;;  %v929_v4 = vmul.f32 %v920_v15, %v5240_v49  ;;  %v930_v22 = vmul.f32 %v921_v17, %v5244_v50 }
 0x101   : > { %v932_v30 = vadd.f32 %v931_v62, %v923_v57  ;;  %v933_v23 = vadd.f32 %v931_v62, %v924_v61  ;;  %v934_v18 = vadd.f32 %v931_v62, %v925_v0  ;;  %v935_v27 = vadd.f32 %v931_v62, %v926_v5 }
 0x102   : > { %v936_v63 = vadd.f32 %v931_v62, %v927_v25  ;;  %v937_v28 = vadd.f32 %v931_v62, %v928_v6  ;;  %v938_v20 = vadd.f32 %v931_v62, %v929_v4  ;;  %v939_v31 = vadd.f32 %v931_v62, %v930_v22 }
 0x103   : > { %v940_v34 = vsub.f32 %v932_v30, %v888_v16  ;;  %v941_v51 = vsub.f32 %v933_v23, %v889_v19  ;;  %v942_v52 = vsub.f32 %v934_v18, %v890_v7  ;;  %v943_v53 = vsub.f32 %v935_v27, %v891_v8 }
 0x104   : > { %v944_v54 = vsub.f32 %v936_v63, %v892_v2  ;;  %v945_v21 = vsub.f32 %v937_v28, %v893_v33  ;;  %v946_v29 = vsub.f32 %v938_v20, %v894_v60  ;;  %v947_v55 = vsub.f32 %v939_v31, %v895_v24 }
 0x105   : > { %v949_v1 = vmul.f32 %v940_v34, %v5216_v43  ;;  %v950_v59 = vmul.f32 %v941_v51, %v5220_v44  ;;  %v951_v32 = vmul.f32 %v942_v52, %v5224_v45  ;;  %v952_v56 = vmul.f32 %v943_v53, %v5228_v46 }
 0x106   : > { %v953_v3 = vmul.f32 %v944_v54, %v5232_v47  ;;  %v954_v62 = vmul.f32 %v945_v21, %v5236_v48  ;;  %v955_v16 = vmul.f32 %v946_v29, %v5240_v49  ;;  %v956_v19 = vmul.f32 %v947_v55, %v5244_v50 }
 0x107   : > { %v958_v7 = vadd.f32 %v957_v58, %v949_v1  ;;  %v959_v8 = vadd.f32 %v957_v58, %v950_v59  ;;  %v960_v2 = vadd.f32 %v957_v58, %v951_v32  ;;  %v961_v33 = vadd.f32 %v957_v58, %v952_v56 }
 0x108   : > { %v962_v60 = vadd.f32 %v957_v58, %v953_v3  ;;  %v963_v24 = vadd.f32 %v957_v58, %v954_v62  ;;  %v964_v57 = vadd.f32 %v957_v58, %v955_v16  ;;  %v965_v61 = vadd.f32 %v957_v58, %v956_v19 }
 0x109   : > { %v966_v0 = vsub.f32 %v958_v7, %v914_v9  ;;  %v967_v5 = vsub.f32 %v959_v8, %v915_v10  ;;  %v968_v25 = vsub.f32 %v960_v2, %v916_v11  ;;  %v969_v6 = vsub.f32 %v961_v33, %v917_v12 }
 0x10a   : > { %v970_v4 = vsub.f32 %v962_v60, %v918_v13  ;;  %v971_v22 = vsub.f32 %v963_v24, %v919_v14  ;;  %v972_v30 = vsub.f32 %v964_v57, %v920_v15  ;;  %v973_v23 = vsub.f32 %v965_v61, %v921_v17 }
 0x10b   : > { %v975_v18 = vmul.f32 %v966_v0, %v5216_v43  ;;  %v976_v27 = vmul.f32 %v967_v5, %v5220_v44  ;;  %v977_v58 = vmul.f32 %v968_v25, %v5224_v45  ;;  %v978_v63 = vmul.f32 %v969_v6, %v5228_v46 }
 0x10c   : > { %v979_v9 = vmul.f32 %v970_v4, %v5232_v47  ;;  %v980_v10 = vmul.f32 %v971_v22, %v5236_v48  ;;  %v981_v11 = vmul.f32 %v972_v30, %v5240_v49  ;;  %v982_v12 = vmul.f32 %v973_v23, %v5244_v50 }
 0x10d   : > { %v984_v13 = vadd.f32 %v5624_v26, %v975_v18  ;;  %v985_v14 = vadd.f32 %v5624_v26, %v976_v27  ;;  %v986_v15 = vadd.f32 %v5624_v26, %v977_v58  ;;  %v987_v17 = vadd.f32 %v5624_v26, %v978_v63 }
 0x10e   : > { %v988_v28 = vadd.f32 %v5624_v26, %v979_v9  ;;  %v989_v20 = vadd.f32 %v5624_v26, %v980_v10  ;;  %v990_v31 = vadd.f32 %v5624_v26, %v981_v11  ;;  %v991_v1 = vadd.f32 %v5624_v26, %v982_v12 }
 0x10f   : > { %v992_v59 = vsub.f32 %v984_v13, %v940_v34  ;;  %v993_v32 = vsub.f32 %v985_v14, %v941_v51  ;;  %v994_v56 = vsub.f32 %v986_v15, %v942_v52  ;;  %v995_v3 = vsub.f32 %v987_v17, %v943_v53 }
 0x110   : > { %v996_v62 = vsub.f32 %v988_v28, %v944_v54  ;;  %v997_v16 = vsub.f32 %v989_v20, %v945_v21  ;;  %v998_v19 = vsub.f32 %v990_v31, %v946_v29  ;;  %v999_v7 = vsub.f32 %v991_v1, %v947_v55 }
 0x111   : > { %v1001_v8 = vmul.f32 %v992_v59, %v5216_v43  ;;  %v1002_v2 = vmul.f32 %v993_v32, %v5220_v44  ;;  %v1003_v33 = vmul.f32 %v994_v56, %v5224_v45  ;;  %v1004_v26 = vmul.f32 %v995_v3, %v5228_v46 }
 0x112   : > { %v1005_v34 = vmul.f32 %v996_v62, %v5232_v47  ;;  %v1006_v51 = vmul.f32 %v997_v16, %v5236_v48  ;;  %v1007_v52 = vmul.f32 %v998_v19, %v5240_v49  ;;  %v1008_v53 = vmul.f32 %v999_v7, %v5244_v50 }
 0x113   : > { %v1009_v54 = vstv %s5642_s10  ;;  %v1035_v21 = vstv %s5644_s15  ;;  %v1061_v29 = vstv %s5646_s16  ;;  %v5678_v55 = vstv %s5652_s17  ;;  %s5862_s10 = sld [smem:[#allocation5 + $0x6]] }
 0x114   : > { %v1010_v60 = vadd.f32 %v1009_v54, %v1001_v8  ;;  %v1011_v24 = vadd.f32 %v1009_v54, %v1002_v2  ;;  %v1012_v57 = vadd.f32 %v1009_v54, %v1003_v33  ;;  %v1013_v61 = vadd.f32 %v1009_v54, %v1004_v26  ;;  %s5868_s15 = sld [smem:[#allocation5 + $0x5]] }
 0x115   : > { %v1014_v18 = vadd.f32 %v1009_v54, %v1005_v34  ;;  %v1015_v27 = vadd.f32 %v1009_v54, %v1006_v51  ;;  %v1016_v58 = vadd.f32 %v1009_v54, %v1007_v52  ;;  %v1017_v63 = vadd.f32 %v1009_v54, %v1008_v53  ;;  %s5912_s16 = sld [smem:[#allocation5 + $0x4]] }
 0x116   : > { %v1018_v9 = vsub.f32 %v1010_v60, %v966_v0  ;;  %v1019_v10 = vsub.f32 %v1011_v24, %v967_v5  ;;  %v1020_v11 = vsub.f32 %v1012_v57, %v968_v25  ;;  %v1021_v12 = vsub.f32 %v1013_v61, %v969_v6  ;;  %s5914_s17 = sld [smem:[#allocation5 + $0x3]] }
 0x117   : > { %v1022_v13 = vsub.f32 %v1014_v18, %v970_v4  ;;  %v1023_v14 = vsub.f32 %v1015_v27, %v971_v22  ;;  %v1024_v15 = vsub.f32 %v1016_v58, %v972_v30  ;;  %v1025_v17 = vsub.f32 %v1017_v63, %v973_v23 }
 0x118   : > { %v1027_v28 = vmul.f32 %v1018_v9, %v5216_v43  ;;  %v1028_v20 = vmul.f32 %v1019_v10, %v5220_v44  ;;  %v1029_v31 = vmul.f32 %v1020_v11, %v5224_v45  ;;  %v1030_v1 = vmul.f32 %v1021_v12, %v5228_v46 }
 0x119   : > { %v1031_v8 = vmul.f32 %v1022_v13, %v5232_v47  ;;  %v1032_v2 = vmul.f32 %v1023_v14, %v5236_v48  ;;  %v1033_v0 = vmul.f32 %v1024_v15, %v5240_v49  ;;  %v1034_v5 = vmul.f32 %v1025_v17, %v5244_v50 }
 0x11a   : > { %v1036_v25 = vadd.f32 %v1035_v21, %v1027_v28  ;;  %v1037_v6 = vadd.f32 %v1035_v21, %v1028_v20  ;;  %v1038_v4 = vadd.f32 %v1035_v21, %v1029_v31  ;;  %v1039_v22 = vadd.f32 %v1035_v21, %v1030_v1 }
 0x11b   : > { %v1040_v30 = vadd.f32 %v1035_v21, %v1031_v8  ;;  %v1041_v23 = vadd.f32 %v1035_v21, %v1032_v2  ;;  %v1042_v33 = vadd.f32 %v1035_v21, %v1033_v0  ;;  %v1043_v26 = vadd.f32 %v1035_v21, %v1034_v5 }
 0x11c   : > { %v1044_v34 = vsub.f32 %v1036_v25, %v992_v59  ;;  %v1045_v51 = vsub.f32 %v1037_v6, %v993_v32  ;;  %v1046_v52 = vsub.f32 %v1038_v4, %v994_v56  ;;  %v1047_v53 = vsub.f32 %v1039_v22, %v995_v3 }
 0x11d   : > { %v1048_v54 = vsub.f32 %v1040_v30, %v996_v62  ;;  %v1049_v60 = vsub.f32 %v1041_v23, %v997_v16  ;;  %v1050_v24 = vsub.f32 %v1042_v33, %v998_v19  ;;  %v1051_v57 = vsub.f32 %v1043_v26, %v999_v7 }
 0x11e   : > { %v1053_v61 = vmul.f32 %v1044_v34, %v5216_v43  ;;  %v1054_v18 = vmul.f32 %v1045_v51, %v5220_v44  ;;  %v1055_v27 = vmul.f32 %v1046_v52, %v5224_v45  ;;  %v1056_v58 = vmul.f32 %v1047_v53, %v5228_v46 }
 0x11f   : > { %v1057_v63 = vmul.f32 %v1048_v54, %v5232_v47  ;;  %v1058_v21 = vmul.f32 %v1049_v60, %v5236_v48  ;;  %v1059_v59 = vmul.f32 %v1050_v24, %v5240_v49  ;;  %v1060_v32 = vmul.f32 %v1051_v57, %v5244_v50 }
 0x120   : > { %v1062_v56 = vadd.f32 %v1061_v29, %v1053_v61  ;;  %v1063_v3 = vadd.f32 %v1061_v29, %v1054_v18  ;;  %v1064_v62 = vadd.f32 %v1061_v29, %v1055_v27  ;;  %v1065_v16 = vadd.f32 %v1061_v29, %v1056_v58 }
 0x121   : > { %v1066_v19 = vadd.f32 %v1061_v29, %v1057_v63  ;;  %v1067_v7 = vadd.f32 %v1061_v29, %v1058_v21  ;;  %v1068_v28 = vadd.f32 %v1061_v29, %v1059_v59  ;;  %v1069_v20 = vadd.f32 %v1061_v29, %v1060_v32 }
 0x122   : > { %v1070_v31 = vsub.f32 %v1062_v56, %v1018_v9  ;;  %v1071_v1 = vsub.f32 %v1063_v3, %v1019_v10  ;;  %v1072_v8 = vsub.f32 %v1064_v62, %v1020_v11  ;;  %v1073_v2 = vsub.f32 %v1065_v16, %v1021_v12 }
 0x123   : > { %v1074_v0 = vsub.f32 %v1066_v19, %v1022_v13  ;;  %v1075_v5 = vsub.f32 %v1067_v7, %v1023_v14  ;;  %v1076_v25 = vsub.f32 %v1068_v28, %v1024_v15  ;;  %v1077_v6 = vsub.f32 %v1069_v20, %v1025_v17 }
 0x124   : > { %v1079_v4 = vmul.f32 %v1070_v31, %v5216_v43  ;;  %v1080_v22 = vmul.f32 %v1071_v1, %v5220_v44  ;;  %v1081_v29 = vmul.f32 %v1072_v8, %v5224_v45  ;;  %v1082_v30 = vmul.f32 %v1073_v2, %v5228_v46 }
 0x125   : > { %v1083_v9 = vmul.f32 %v1074_v0, %v5232_v47  ;;  %v1084_v10 = vmul.f32 %v1075_v5, %v5236_v48  ;;  %v1085_v11 = vmul.f32 %v1076_v25, %v5240_v49  ;;  %v1086_v12 = vmul.f32 %v1077_v6, %v5244_v50 }
 0x126   : > { %v1088_v13 = vadd.f32 %v5678_v55, %v1079_v4  ;;  %v1089_v14 = vadd.f32 %v5678_v55, %v1080_v22  ;;  %v1090_v15 = vadd.f32 %v5678_v55, %v1081_v29  ;;  %v1091_v17 = vadd.f32 %v5678_v55, %v1082_v30 }
 0x127   : > { %v1092_v23 = vadd.f32 %v5678_v55, %v1083_v9  ;;  %v1093_v33 = vadd.f32 %v5678_v55, %v1084_v10  ;;  %v1094_v26 = vadd.f32 %v5678_v55, %v1085_v11  ;;  %v1095_v61 = vadd.f32 %v5678_v55, %v1086_v12 }
 0x128   : > { %v1096_v18 = vsub.f32 %v1088_v13, %v1044_v34  ;;  %v1097_v27 = vsub.f32 %v1089_v14, %v1045_v51  ;;  %v1098_v58 = vsub.f32 %v1090_v15, %v1046_v52  ;;  %v1099_v63 = vsub.f32 %v1091_v17, %v1047_v53 }
 0x129   : > { %v1100_v21 = vsub.f32 %v1092_v23, %v1048_v54  ;;  %v1101_v59 = vsub.f32 %v1093_v33, %v1049_v60  ;;  %v1102_v32 = vsub.f32 %v1094_v26, %v1050_v24  ;;  %v1103_v56 = vsub.f32 %v1095_v61, %v1051_v57 }
 0x12a   : > { %v1105_v3 = vmul.f32 %v1096_v18, %v5216_v43  ;;  %v1106_v62 = vmul.f32 %v1097_v27, %v5220_v44  ;;  %v1107_v16 = vmul.f32 %v1098_v58, %v5224_v45  ;;  %v1108_v55 = vmul.f32 %v1099_v63, %v5228_v46 }
 0x12b   : > { %v1109_v34 = vmul.f32 %v1100_v21, %v5232_v47  ;;  %v1110_v51 = vmul.f32 %v1101_v59, %v5236_v48  ;;  %v1111_v52 = vmul.f32 %v1102_v32, %v5240_v49  ;;  %v1112_v53 = vmul.f32 %v1103_v56, %v5244_v50 }
 0x12c   : > { %v1113_v54 = vstv %s5696_s18  ;;  %v1139_v60 = vstv %s5698_s19  ;;  %v1165_v24 = vstv %s5700_s11  ;;  %v5732_v57 = vstv %s5706_s20  ;;  %s5916_s18 = sld [smem:[#allocation5 + $0x2]] }
 0x12d   : > { %v1114_v19 = vadd.f32 %v1113_v54, %v1105_v3  ;;  %v1115_v7 = vadd.f32 %v1113_v54, %v1106_v62  ;;  %v1116_v28 = vadd.f32 %v1113_v54, %v1107_v16  ;;  %v1117_v20 = vadd.f32 %v1113_v54, %v1108_v55  ;;  %s5922_s19 = sld [smem:[#allocation5 + $0x1]] }
 0x12e   : > { %v1118_v4 = vadd.f32 %v1113_v54, %v1109_v34  ;;  %v1119_v22 = vadd.f32 %v1113_v54, %v1110_v51  ;;  %v1120_v29 = vadd.f32 %v1113_v54, %v1111_v52  ;;  %v1121_v30 = vadd.f32 %v1113_v54, %v1112_v53  ;;  %s5966_s11 = sld [smem:[#allocation5 + $0x6f]] }
 0x12f   : > { %v1122_v9 = vsub.f32 %v1114_v19, %v1070_v31  ;;  %v1123_v10 = vsub.f32 %v1115_v7, %v1071_v1  ;;  %v1124_v11 = vsub.f32 %v1116_v28, %v1072_v8  ;;  %v1125_v12 = vsub.f32 %v1117_v20, %v1073_v2  ;;  %s5976_s20 = sld [smem:[#allocation5]] }
 0x130   : > { %v1126_v13 = vsub.f32 %v1118_v4, %v1074_v0  ;;  %v1127_v14 = vsub.f32 %v1119_v22, %v1075_v5  ;;  %v1128_v15 = vsub.f32 %v1120_v29, %v1076_v25  ;;  %v1129_v17 = vsub.f32 %v1121_v30, %v1077_v6 }
 0x131   : > { %v1131_v23 = vmul.f32 %v1122_v9, %v5216_v43  ;;  %v1132_v33 = vmul.f32 %v1123_v10, %v5220_v44  ;;  %v1133_v26 = vmul.f32 %v1124_v11, %v5224_v45  ;;  %v1134_v61 = vmul.f32 %v1125_v12, %v5228_v46 }
 0x132   : > { %v1135_v3 = vmul.f32 %v1126_v13, %v5232_v47  ;;  %v1136_v62 = vmul.f32 %v1127_v14, %v5236_v48  ;;  %v1137_v31 = vmul.f32 %v1128_v15, %v5240_v49  ;;  %v1138_v1 = vmul.f32 %v1129_v17, %v5244_v50 }
 0x133   : > { %v1140_v8 = vadd.f32 %v1139_v60, %v1131_v23  ;;  %v1141_v2 = vadd.f32 %v1139_v60, %v1132_v33  ;;  %v1142_v0 = vadd.f32 %v1139_v60, %v1133_v26  ;;  %v1143_v5 = vadd.f32 %v1139_v60, %v1134_v61 }
 0x134   : > { %v1144_v25 = vadd.f32 %v1139_v60, %v1135_v3  ;;  %v1145_v6 = vadd.f32 %v1139_v60, %v1136_v62  ;;  %v1146_v16 = vadd.f32 %v1139_v60, %v1137_v31  ;;  %v1147_v55 = vadd.f32 %v1139_v60, %v1138_v1 }
 0x135   : > { %v1148_v34 = vsub.f32 %v1140_v8, %v1096_v18  ;;  %v1149_v51 = vsub.f32 %v1141_v2, %v1097_v27  ;;  %v1150_v52 = vsub.f32 %v1142_v0, %v1098_v58  ;;  %v1151_v53 = vsub.f32 %v1143_v5, %v1099_v63 }
 0x136   : > { %v1152_v54 = vsub.f32 %v1144_v25, %v1100_v21  ;;  %v1153_v19 = vsub.f32 %v1145_v6, %v1101_v59  ;;  %v1154_v7 = vsub.f32 %v1146_v16, %v1102_v32  ;;  %v1155_v28 = vsub.f32 %v1147_v55, %v1103_v56 }
 0x137   : > { %v1157_v20 = vmul.f32 %v1148_v34, %v5216_v43  ;;  %v1158_v4 = vmul.f32 %v1149_v51, %v5220_v44  ;;  %v1159_v22 = vmul.f32 %v1150_v52, %v5224_v45  ;;  %v1160_v29 = vmul.f32 %v1151_v53, %v5228_v46 }
 0x138   : > { %v1161_v30 = vmul.f32 %v1152_v54, %v5232_v47  ;;  %v1162_v60 = vmul.f32 %v1153_v19, %v5236_v48  ;;  %v1163_v18 = vmul.f32 %v1154_v7, %v5240_v49  ;;  %v1164_v27 = vmul.f32 %v1155_v28, %v5244_v50 }
 0x139   : > { %v1166_v58 = vadd.f32 %v1165_v24, %v1157_v20  ;;  %v1167_v63 = vadd.f32 %v1165_v24, %v1158_v4  ;;  %v1168_v21 = vadd.f32 %v1165_v24, %v1159_v22  ;;  %v1169_v59 = vadd.f32 %v1165_v24, %v1160_v29 }
 0x13a   : > { %v1170_v32 = vadd.f32 %v1165_v24, %v1161_v30  ;;  %v1171_v56 = vadd.f32 %v1165_v24, %v1162_v60  ;;  %v1172_v23 = vadd.f32 %v1165_v24, %v1163_v18  ;;  %v1173_v33 = vadd.f32 %v1165_v24, %v1164_v27 }
 0x13b   : > { %v1174_v26 = vsub.f32 %v1166_v58, %v1122_v9  ;;  %v1175_v61 = vsub.f32 %v1167_v63, %v1123_v10  ;;  %v1176_v3 = vsub.f32 %v1168_v21, %v1124_v11  ;;  %v1177_v62 = vsub.f32 %v1169_v59, %v1125_v12 }
 0x13c   : > { %v1178_v31 = vsub.f32 %v1170_v32, %v1126_v13  ;;  %v1179_v1 = vsub.f32 %v1171_v56, %v1127_v14  ;;  %v1180_v8 = vsub.f32 %v1172_v23, %v1128_v15  ;;  %v1181_v2 = vsub.f32 %v1173_v33, %v1129_v17 }
 0x13d   : > { %v1183_v0 = vmul.f32 %v1174_v26, %v5216_v43  ;;  %v1184_v5 = vmul.f32 %v1175_v61, %v5220_v44  ;;  %v1185_v24 = vmul.f32 %v1176_v3, %v5224_v45  ;;  %v1186_v25 = vmul.f32 %v1177_v62, %v5228_v46 }
 0x13e   : > { %v1187_v9 = vmul.f32 %v1178_v31, %v5232_v47  ;;  %v1188_v10 = vmul.f32 %v1179_v1, %v5236_v48  ;;  %v1189_v11 = vmul.f32 %v1180_v8, %v5240_v49  ;;  %v1190_v12 = vmul.f32 %v1181_v2, %v5244_v50 }
 0x13f   : > { %v1192_v13 = vadd.f32 %v5732_v57, %v1183_v0  ;;  %v1193_v14 = vadd.f32 %v5732_v57, %v1184_v5  ;;  %v1194_v15 = vadd.f32 %v5732_v57, %v1185_v24  ;;  %v1195_v17 = vadd.f32 %v5732_v57, %v1186_v25 }
 0x140   : > { %v1196_v6 = vadd.f32 %v5732_v57, %v1187_v9  ;;  %v1197_v16 = vadd.f32 %v5732_v57, %v1188_v10  ;;  %v1198_v55 = vadd.f32 %v5732_v57, %v1189_v11  ;;  %v1199_v20 = vadd.f32 %v5732_v57, %v1190_v12 }
 0x141   : > { %v1200_v4 = vsub.f32 %v1192_v13, %v1148_v34  ;;  %v1201_v22 = vsub.f32 %v1193_v14, %v1149_v51  ;;  %v1202_v29 = vsub.f32 %v1194_v15, %v1150_v52  ;;  %v1203_v30 = vsub.f32 %v1195_v17, %v1151_v53 }
 0x142   : > { %v1204_v60 = vsub.f32 %v1196_v6, %v1152_v54  ;;  %v1205_v18 = vsub.f32 %v1197_v16, %v1153_v19  ;;  %v1206_v27 = vsub.f32 %v1198_v55, %v1154_v7  ;;  %v1207_v58 = vsub.f32 %v1199_v20, %v1155_v28 }
 0x143   : > { %v1209_v63 = vmul.f32 %v1200_v4, %v5216_v43  ;;  %v1210_v21 = vmul.f32 %v1201_v22, %v5220_v44  ;;  %v1211_v59 = vmul.f32 %v1202_v29, %v5224_v45  ;;  %v1212_v57 = vmul.f32 %v1203_v30, %v5228_v46 }
 0x144   : > { %v1213_v34 = vmul.f32 %v1204_v60, %v5232_v47  ;;  %v1214_v51 = vmul.f32 %v1205_v18, %v5236_v48  ;;  %v1215_v52 = vmul.f32 %v1206_v27, %v5240_v49  ;;  %v1216_v53 = vmul.f32 %v1207_v58, %v5244_v50 }
 0x145   : > { %v1217_v54 = vstv %s5750_s21  ;;  %v1243_v19 = vstv %s5752_s22  ;;  %v1269_v7 = vstv %s5754_s23  ;;  %v5786_v28 = vstv %s5760_s24  ;;  %s5986_s21 = sld [smem:[#allocation5 + $0x6e]]  ;;  %s4840_s23 = smul.u32 192, %s5182_s9 }
 0x146   : > { %v1218_v32 = vadd.f32 %v1217_v54, %v1209_v63  ;;  %v1219_v56 = vadd.f32 %v1217_v54, %v1210_v21  ;;  %v1220_v23 = vadd.f32 %v1217_v54, %v1211_v59  ;;  %v1221_v33 = vadd.f32 %v1217_v54, %v1212_v57  ;;  %s5996_s22 = sld [smem:[#allocation5 + $0x6d]] }
 0x147   : > { %v1222_v0 = vadd.f32 %v1217_v54, %v1213_v34  ;;  %v1223_v5 = vadd.f32 %v1217_v54, %v1214_v51  ;;  %v1224_v24 = vadd.f32 %v1217_v54, %v1215_v52  ;;  %v1225_v25 = vadd.f32 %v1217_v54, %v1216_v53  ;;  %s6037_s24 = scalar_lea.vmem [#allocation9], %s4840_s23  ;;  %s6279_s23 = sld [smem:[#allocation5 + $0x5c]] }
 0x148   : > { %v1226_v9 = vsub.f32 %v1218_v32, %v1174_v26  ;;  %v1227_v10 = vsub.f32 %v1219_v56, %v1175_v61  ;;  %v1228_v11 = vsub.f32 %v1220_v23, %v1176_v3  ;;  %v1229_v12 = vsub.f32 %v1221_v33, %v1177_v62 }
 0x149   : > { %v1230_v13 = vsub.f32 %v1222_v0, %v1178_v31  ;;  %v1231_v14 = vsub.f32 %v1223_v5, %v1179_v1  ;;  %v1232_v15 = vsub.f32 %v1224_v24, %v1180_v8  ;;  %v1233_v17 = vsub.f32 %v1225_v25, %v1181_v2 }
 0x14a   : > { %v1235_v6 = vmul.f32 %v1226_v9, %v5216_v43  ;;  %v1236_v16 = vmul.f32 %v1227_v10, %v5220_v44  ;;  %v1237_v55 = vmul.f32 %v1228_v11, %v5224_v45  ;;  %v1238_v20 = vmul.f32 %v1229_v12, %v5228_v46 }
 0x14b   : > { %v1239_v63 = vmul.f32 %v1230_v13, %v5232_v47  ;;  %v1240_v21 = vmul.f32 %v1231_v14, %v5236_v48  ;;  %v1241_v26 = vmul.f32 %v1232_v15, %v5240_v49  ;;  %v1242_v61 = vmul.f32 %v1233_v17, %v5244_v50 }
 0x14c   : > { %v1244_v3 = vadd.f32 %v1243_v19, %v1235_v6  ;;  %v1245_v62 = vadd.f32 %v1243_v19, %v1236_v16  ;;  %v1246_v31 = vadd.f32 %v1243_v19, %v1237_v55  ;;  %v1247_v1 = vadd.f32 %v1243_v19, %v1238_v20 }
 0x14d   : > { %v1248_v8 = vadd.f32 %v1243_v19, %v1239_v63  ;;  %v1249_v2 = vadd.f32 %v1243_v19, %v1240_v21  ;;  %v1250_v59 = vadd.f32 %v1243_v19, %v1241_v26  ;;  %v1251_v57 = vadd.f32 %v1243_v19, %v1242_v61 }
 0x14e   : > { %v1252_v34 = vsub.f32 %v1244_v3, %v1200_v4  ;;  %v1253_v51 = vsub.f32 %v1245_v62, %v1201_v22  ;;  %v1254_v52 = vsub.f32 %v1246_v31, %v1202_v29  ;;  %v1255_v53 = vsub.f32 %v1247_v1, %v1203_v30 }
 0x14f   : > { %v1256_v54 = vsub.f32 %v1248_v8, %v1204_v60  ;;  %v1257_v32 = vsub.f32 %v1249_v2, %v1205_v18  ;;  %v1258_v56 = vsub.f32 %v1250_v59, %v1206_v27  ;;  %v1259_v23 = vsub.f32 %v1251_v57, %v1207_v58 }
 0x150   : > { %v1261_v33 = vmul.f32 %v1252_v34, %v5216_v43  ;;  %v1262_v0 = vmul.f32 %v1253_v51, %v5220_v44  ;;  %v1263_v5 = vmul.f32 %v1254_v52, %v5224_v45  ;;  %v1264_v24 = vmul.f32 %v1255_v53, %v5228_v46 }
 0x151   : > { %v1265_v25 = vmul.f32 %v1256_v54, %v5232_v47  ;;  %v1266_v19 = vmul.f32 %v1257_v32, %v5236_v48  ;;  %v1267_v4 = vmul.f32 %v1258_v56, %v5240_v49  ;;  %v1268_v22 = vmul.f32 %v1259_v23, %v5244_v50 }
 0x152   : > { %v1270_v29 = vadd.f32 %v1269_v7, %v1261_v33  ;;  %v1271_v30 = vadd.f32 %v1269_v7, %v1262_v0  ;;  %v1272_v60 = vadd.f32 %v1269_v7, %v1263_v5  ;;  %v1273_v18 = vadd.f32 %v1269_v7, %v1264_v24 }
 0x153   : > { %v1274_v27 = vadd.f32 %v1269_v7, %v1265_v25  ;;  %v1275_v58 = vadd.f32 %v1269_v7, %v1266_v19  ;;  %v1276_v6 = vadd.f32 %v1269_v7, %v1267_v4  ;;  %v1277_v16 = vadd.f32 %v1269_v7, %v1268_v22 }
 0x154   : > { %v1278_v55 = vsub.f32 %v1270_v29, %v1226_v9  ;;  %v1279_v20 = vsub.f32 %v1271_v30, %v1227_v10  ;;  %v1280_v63 = vsub.f32 %v1272_v60, %v1228_v11  ;;  %v1281_v21 = vsub.f32 %v1273_v18, %v1229_v12 }
 0x155   : > { %v1282_v26 = vsub.f32 %v1274_v27, %v1230_v13  ;;  %v1283_v61 = vsub.f32 %v1275_v58, %v1231_v14  ;;  %v1284_v3 = vsub.f32 %v1276_v6, %v1232_v15  ;;  %v1285_v62 = vsub.f32 %v1277_v16, %v1233_v17 }
 0x156   : > { %v1287_v31 = vmul.f32 %v1278_v55, %v5216_v43  ;;  %v1288_v1 = vmul.f32 %v1279_v20, %v5220_v44  ;;  %v1289_v7 = vmul.f32 %v1280_v63, %v5224_v45  ;;  %v1290_v8 = vmul.f32 %v1281_v21, %v5228_v46 }
 0x157   : > { %v1291_v9 = vmul.f32 %v1282_v26, %v5232_v47  ;;  %v1292_v10 = vmul.f32 %v1283_v61, %v5236_v48  ;;  %v1293_v11 = vmul.f32 %v1284_v3, %v5240_v49  ;;  %v1294_v12 = vmul.f32 %v1285_v62, %v5244_v50 }
 0x158   : > { %v1296_v13 = vadd.f32 %v5786_v28, %v1287_v31  ;;  %v1297_v14 = vadd.f32 %v5786_v28, %v1288_v1  ;;  %v1298_v15 = vadd.f32 %v5786_v28, %v1289_v7  ;;  %v1299_v17 = vadd.f32 %v5786_v28, %v1290_v8 }
 0x159   : > { %v1300_v2 = vadd.f32 %v5786_v28, %v1291_v9  ;;  %v1301_v59 = vadd.f32 %v5786_v28, %v1292_v10  ;;  %v1302_v57 = vadd.f32 %v5786_v28, %v1293_v11  ;;  %v1303_v33 = vadd.f32 %v5786_v28, %v1294_v12 }
 0x15a   : > { %v1304_v0 = vsub.f32 %v1296_v13, %v1252_v34  ;;  %v1305_v5 = vsub.f32 %v1297_v14, %v1253_v51  ;;  %v1306_v24 = vsub.f32 %v1298_v15, %v1254_v52  ;;  %v1307_v25 = vsub.f32 %v1299_v17, %v1255_v53 }
 0x15b   : > { %v1308_v19 = vsub.f32 %v1300_v2, %v1256_v54  ;;  %v1309_v4 = vsub.f32 %v1301_v59, %v1257_v32  ;;  %v1310_v22 = vsub.f32 %v1302_v57, %v1258_v56  ;;  %v1311_v29 = vsub.f32 %v1303_v33, %v1259_v23 }
 0x15c   : > { %v1313_v30 = vmul.f32 %v1304_v0, %v5216_v43  ;;  %v1314_v60 = vmul.f32 %v1305_v5, %v5220_v44  ;;  %v1315_v18 = vmul.f32 %v1306_v24, %v5224_v45  ;;  %v1316_v28 = vmul.f32 %v1307_v25, %v5228_v46 }
 0x15d   : > { %v1317_v34 = vmul.f32 %v1308_v19, %v5232_v47  ;;  %v1318_v51 = vmul.f32 %v1309_v4, %v5236_v48  ;;  %v1319_v52 = vmul.f32 %v1310_v22, %v5240_v49  ;;  %v1320_v53 = vmul.f32 %v1311_v29, %v5244_v50 }
 0x15e   : > { %v1321_v54 = vstv %s5804_s25  ;;  %v1347_v32 = vstv %s5806_s0  ;;  %v1373_v56 = vstv %s5808_s1  ;;  %v5840_v23 = vstv %s5814_s5  ;;  %s6063_s25 = sld [smem:[#allocation5 + $0x6c]] }
 0x15f   : > { %v1322_v27 = vadd.f32 %v1321_v54, %v1313_v30  ;;  %v1323_v58 = vadd.f32 %v1321_v54, %v1314_v60  ;;  %v1324_v6 = vadd.f32 %v1321_v54, %v1315_v18  ;;  %v1325_v16 = vadd.f32 %v1321_v54, %v1316_v28  ;;  %s6065_s0 = sld [smem:[#allocation5 + $0x6b]] }
 0x160   : > { %v1326_v31 = vadd.f32 %v1321_v54, %v1317_v34  ;;  %v1327_v1 = vadd.f32 %v1321_v54, %v1318_v51  ;;  %v1328_v7 = vadd.f32 %v1321_v54, %v1319_v52  ;;  %v1329_v8 = vadd.f32 %v1321_v54, %v1320_v53  ;;  %s6067_s1 = sld [smem:[#allocation5 + $0x6a]] }
 0x161   : > { %v1330_v9 = vsub.f32 %v1322_v27, %v1278_v55  ;;  %v1331_v10 = vsub.f32 %v1323_v58, %v1279_v20  ;;  %v1332_v11 = vsub.f32 %v1324_v6, %v1280_v63  ;;  %v1333_v12 = vsub.f32 %v1325_v16, %v1281_v21  ;;  %s6073_s5 = sld [smem:[#allocation5 + $0x69]] }
 0x162   : > { %v1334_v13 = vsub.f32 %v1326_v31, %v1282_v26  ;;  %v1335_v14 = vsub.f32 %v1327_v1, %v1283_v61  ;;  %v1336_v15 = vsub.f32 %v1328_v7, %v1284_v3  ;;  %v1337_v17 = vsub.f32 %v1329_v8, %v1285_v62 }
 0x163   : > { %v1339_v2 = vmul.f32 %v1330_v9, %v5216_v43  ;;  %v1340_v59 = vmul.f32 %v1331_v10, %v5220_v44  ;;  %v1341_v57 = vmul.f32 %v1332_v11, %v5224_v45  ;;  %v1342_v33 = vmul.f32 %v1333_v12, %v5228_v46 }
 0x164   : > { %v1343_v30 = vmul.f32 %v1334_v13, %v5232_v47  ;;  %v1344_v60 = vmul.f32 %v1335_v14, %v5236_v48  ;;  %v1345_v55 = vmul.f32 %v1336_v15, %v5240_v49  ;;  %v1346_v20 = vmul.f32 %v1337_v17, %v5244_v50 }
 0x165   : > { %v1348_v63 = vadd.f32 %v1347_v32, %v1339_v2  ;;  %v1349_v21 = vadd.f32 %v1347_v32, %v1340_v59  ;;  %v1350_v26 = vadd.f32 %v1347_v32, %v1341_v57  ;;  %v1351_v61 = vadd.f32 %v1347_v32, %v1342_v33 }
 0x166   : > { %v1352_v3 = vadd.f32 %v1347_v32, %v1343_v30  ;;  %v1353_v62 = vadd.f32 %v1347_v32, %v1344_v60  ;;  %v1354_v18 = vadd.f32 %v1347_v32, %v1345_v55  ;;  %v1355_v28 = vadd.f32 %v1347_v32, %v1346_v20 }
 0x167   : > { %v1356_v34 = vsub.f32 %v1348_v63, %v1304_v0  ;;  %v1357_v51 = vsub.f32 %v1349_v21, %v1305_v5  ;;  %v1358_v52 = vsub.f32 %v1350_v26, %v1306_v24  ;;  %v1359_v53 = vsub.f32 %v1351_v61, %v1307_v25 }
 0x168   : > { %v1360_v54 = vsub.f32 %v1352_v3, %v1308_v19  ;;  %v1361_v27 = vsub.f32 %v1353_v62, %v1309_v4  ;;  %v1362_v58 = vsub.f32 %v1354_v18, %v1310_v22  ;;  %v1363_v6 = vsub.f32 %v1355_v28, %v1311_v29 }
 0x169   : > { %v1365_v16 = vmul.f32 %v1356_v34, %v5216_v43  ;;  %v1366_v31 = vmul.f32 %v1357_v51, %v5220_v44  ;;  %v1367_v1 = vmul.f32 %v1358_v52, %v5224_v45  ;;  %v1368_v7 = vmul.f32 %v1359_v53, %v5228_v46 }
 0x16a   : > { %v1369_v8 = vmul.f32 %v1360_v54, %v5232_v47  ;;  %v1370_v32 = vmul.f32 %v1361_v27, %v5236_v48  ;;  %v1371_v0 = vmul.f32 %v1362_v58, %v5240_v49  ;;  %v1372_v5 = vmul.f32 %v1363_v6, %v5244_v50 }
 0x16b   : > { %v1374_v24 = vadd.f32 %v1373_v56, %v1365_v16  ;;  %v1375_v25 = vadd.f32 %v1373_v56, %v1366_v31  ;;  %v1376_v19 = vadd.f32 %v1373_v56, %v1367_v1  ;;  %v1377_v4 = vadd.f32 %v1373_v56, %v1368_v7 }
 0x16c   : > { %v1378_v22 = vadd.f32 %v1373_v56, %v1369_v8  ;;  %v1379_v29 = vadd.f32 %v1373_v56, %v1370_v32  ;;  %v1380_v2 = vadd.f32 %v1373_v56, %v1371_v0  ;;  %v1381_v59 = vadd.f32 %v1373_v56, %v1372_v5 }
 0x16d   : > { %v1382_v57 = vsub.f32 %v1374_v24, %v1330_v9  ;;  %v1383_v33 = vsub.f32 %v1375_v25, %v1331_v10  ;;  %v1384_v30 = vsub.f32 %v1376_v19, %v1332_v11  ;;  %v1385_v60 = vsub.f32 %v1377_v4, %v1333_v12 }
 0x16e   : > { %v1386_v55 = vsub.f32 %v1378_v22, %v1334_v13  ;;  %v1387_v20 = vsub.f32 %v1379_v29, %v1335_v14  ;;  %v1388_v63 = vsub.f32 %v1380_v2, %v1336_v15  ;;  %v1389_v21 = vsub.f32 %v1381_v59, %v1337_v17 }
 0x16f   : > { %v1391_v26 = vmul.f32 %v1382_v57, %v5216_v43  ;;  %v1392_v61 = vmul.f32 %v1383_v33, %v5220_v44  ;;  %v1393_v56 = vmul.f32 %v1384_v30, %v5224_v45  ;;  %v1394_v3 = vmul.f32 %v1385_v60, %v5228_v46 }
 0x170   : > { %v1395_v9 = vmul.f32 %v1386_v55, %v5232_v47  ;;  %v1396_v10 = vmul.f32 %v1387_v20, %v5236_v48  ;;  %v1397_v11 = vmul.f32 %v1388_v63, %v5240_v49  ;;  %v1398_v12 = vmul.f32 %v1389_v21, %v5244_v50 }
 0x171   : > { %v1400_v13 = vadd.f32 %v5840_v23, %v1391_v26  ;;  %v1401_v14 = vadd.f32 %v5840_v23, %v1392_v61  ;;  %v1402_v15 = vadd.f32 %v5840_v23, %v1393_v56  ;;  %v1403_v17 = vadd.f32 %v5840_v23, %v1394_v3 }
 0x172   : > { %v1404_v62 = vadd.f32 %v5840_v23, %v1395_v9  ;;  %v1405_v18 = vadd.f32 %v5840_v23, %v1396_v10  ;;  %v1406_v28 = vadd.f32 %v5840_v23, %v1397_v11  ;;  %v1407_v16 = vadd.f32 %v5840_v23, %v1398_v12 }
 0x173   : > { %v1408_v31 = vsub.f32 %v1400_v13, %v1356_v34  ;;  %v1409_v1 = vsub.f32 %v1401_v14, %v1357_v51  ;;  %v1410_v7 = vsub.f32 %v1402_v15, %v1358_v52  ;;  %v1411_v8 = vsub.f32 %v1403_v17, %v1359_v53 }
 0x174   : > { %v1412_v32 = vsub.f32 %v1404_v62, %v1360_v54  ;;  %v1413_v0 = vsub.f32 %v1405_v18, %v1361_v27  ;;  %v1414_v5 = vsub.f32 %v1406_v28, %v1362_v58  ;;  %v1415_v24 = vsub.f32 %v1407_v16, %v1363_v6 }
 0x175   : > { %v1417_v25 = vmul.f32 %v1408_v31, %v5216_v43  ;;  %v1418_v19 = vmul.f32 %v1409_v1, %v5220_v44  ;;  %v1419_v4 = vmul.f32 %v1410_v7, %v5224_v45  ;;  %v1420_v23 = vmul.f32 %v1411_v8, %v5228_v46 }
 0x176   : > { %v1421_v34 = vmul.f32 %v1412_v32, %v5232_v47  ;;  %v1422_v51 = vmul.f32 %v1413_v0, %v5236_v48  ;;  %v1423_v52 = vmul.f32 %v1414_v5, %v5240_v49  ;;  %v1424_v53 = vmul.f32 %v1415_v24, %v5244_v50 }
 0x177   : > { %v1425_v54 = vstv %s5858_s6  ;;  %v1451_v27 = vstv %s5860_s8  ;;  %v1477_v58 = vstv %s5862_s10  ;;  %v5894_v6 = vstv %s5868_s15  ;;  %s6117_s6 = sld [smem:[#allocation5 + $0x68]] }
 0x178   : > { %v1426_v22 = vadd.f32 %v1425_v54, %v1417_v25  ;;  %v1427_v29 = vadd.f32 %v1425_v54, %v1418_v19  ;;  %v1428_v2 = vadd.f32 %v1425_v54, %v1419_v4  ;;  %v1429_v59 = vadd.f32 %v1425_v54, %v1420_v23  ;;  %s6119_s8 = sld [smem:[#allocation5 + $0x67]] }
 0x179   : > { %v1430_v26 = vadd.f32 %v1425_v54, %v1421_v34  ;;  %v1431_v61 = vadd.f32 %v1425_v54, %v1422_v51  ;;  %v1432_v56 = vadd.f32 %v1425_v54, %v1423_v52  ;;  %v1433_v3 = vadd.f32 %v1425_v54, %v1424_v53  ;;  %s6121_s10 = sld [smem:[#allocation5 + $0x66]] }
 0x17a   : > { %v1434_v9 = vsub.f32 %v1426_v22, %v1382_v57  ;;  %v1435_v10 = vsub.f32 %v1427_v29, %v1383_v33  ;;  %v1436_v11 = vsub.f32 %v1428_v2, %v1384_v30  ;;  %v1437_v12 = vsub.f32 %v1429_v59, %v1385_v60  ;;  %s6127_s15 = sld [smem:[#allocation5 + $0x65]] }
 0x17b   : > { %v1438_v13 = vsub.f32 %v1430_v26, %v1386_v55  ;;  %v1439_v14 = vsub.f32 %v1431_v61, %v1387_v20  ;;  %v1440_v15 = vsub.f32 %v1432_v56, %v1388_v63  ;;  %v1441_v17 = vsub.f32 %v1433_v3, %v1389_v21 }
 0x17c   : > { %v1443_v62 = vmul.f32 %v1434_v9, %v5216_v43  ;;  %v1444_v18 = vmul.f32 %v1435_v10, %v5220_v44  ;;  %v1445_v28 = vmul.f32 %v1436_v11, %v5224_v45  ;;  %v1446_v16 = vmul.f32 %v1437_v12, %v5228_v46 }
 0x17d   : > { %v1447_v25 = vmul.f32 %v1438_v13, %v5232_v47  ;;  %v1448_v19 = vmul.f32 %v1439_v14, %v5236_v48  ;;  %v1449_v57 = vmul.f32 %v1440_v15, %v5240_v49  ;;  %v1450_v33 = vmul.f32 %v1441_v17, %v5244_v50 }
 0x17e   : > { %v1452_v30 = vadd.f32 %v1451_v27, %v1443_v62  ;;  %v1453_v60 = vadd.f32 %v1451_v27, %v1444_v18  ;;  %v1454_v55 = vadd.f32 %v1451_v27, %v1445_v28  ;;  %v1455_v20 = vadd.f32 %v1451_v27, %v1446_v16 }
 0x17f   : > { %v1456_v63 = vadd.f32 %v1451_v27, %v1447_v25  ;;  %v1457_v21 = vadd.f32 %v1451_v27, %v1448_v19  ;;  %v1458_v4 = vadd.f32 %v1451_v27, %v1449_v57  ;;  %v1459_v23 = vadd.f32 %v1451_v27, %v1450_v33 }
 0x180   : > { %v1460_v34 = vsub.f32 %v1452_v30, %v1408_v31  ;;  %v1461_v51 = vsub.f32 %v1453_v60, %v1409_v1  ;;  %v1462_v52 = vsub.f32 %v1454_v55, %v1410_v7  ;;  %v1463_v53 = vsub.f32 %v1455_v20, %v1411_v8 }
 0x181   : > { %v1464_v54 = vsub.f32 %v1456_v63, %v1412_v32  ;;  %v1465_v22 = vsub.f32 %v1457_v21, %v1413_v0  ;;  %v1466_v29 = vsub.f32 %v1458_v4, %v1414_v5  ;;  %v1467_v2 = vsub.f32 %v1459_v23, %v1415_v24 }
 0x182   : > { %v1469_v59 = vmul.f32 %v1460_v34, %v5216_v43  ;;  %v1470_v26 = vmul.f32 %v1461_v51, %v5220_v44  ;;  %v1471_v61 = vmul.f32 %v1462_v52, %v5224_v45  ;;  %v1472_v56 = vmul.f32 %v1463_v53, %v5228_v46 }
 0x183   : > { %v1473_v3 = vmul.f32 %v1464_v54, %v5232_v47  ;;  %v1474_v27 = vmul.f32 %v1465_v22, %v5236_v48  ;;  %v1475_v31 = vmul.f32 %v1466_v29, %v5240_v49  ;;  %v1476_v1 = vmul.f32 %v1467_v2, %v5244_v50 }
 0x184   : > { %v1478_v7 = vadd.f32 %v1477_v58, %v1469_v59  ;;  %v1479_v8 = vadd.f32 %v1477_v58, %v1470_v26  ;;  %v1480_v32 = vadd.f32 %v1477_v58, %v1471_v61  ;;  %v1481_v0 = vadd.f32 %v1477_v58, %v1472_v56 }
 0x185   : > { %v1482_v5 = vadd.f32 %v1477_v58, %v1473_v3  ;;  %v1483_v24 = vadd.f32 %v1477_v58, %v1474_v27  ;;  %v1484_v62 = vadd.f32 %v1477_v58, %v1475_v31  ;;  %v1485_v18 = vadd.f32 %v1477_v58, %v1476_v1 }
 0x186   : > { %v1486_v28 = vsub.f32 %v1478_v7, %v1434_v9  ;;  %v1487_v16 = vsub.f32 %v1479_v8, %v1435_v10  ;;  %v1488_v25 = vsub.f32 %v1480_v32, %v1436_v11  ;;  %v1489_v19 = vsub.f32 %v1481_v0, %v1437_v12 }
 0x187   : > { %v1490_v57 = vsub.f32 %v1482_v5, %v1438_v13  ;;  %v1491_v33 = vsub.f32 %v1483_v24, %v1439_v14  ;;  %v1492_v30 = vsub.f32 %v1484_v62, %v1440_v15  ;;  %v1493_v60 = vsub.f32 %v1485_v18, %v1441_v17 }
 0x188   : > { %v1495_v55 = vmul.f32 %v1486_v28, %v5216_v43  ;;  %v1496_v20 = vmul.f32 %v1487_v16, %v5220_v44  ;;  %v1497_v58 = vmul.f32 %v1488_v25, %v5224_v45  ;;  %v1498_v63 = vmul.f32 %v1489_v19, %v5228_v46 }
 0x189   : > { %v1499_v9 = vmul.f32 %v1490_v57, %v5232_v47  ;;  %v1500_v10 = vmul.f32 %v1491_v33, %v5236_v48  ;;  %v1501_v11 = vmul.f32 %v1492_v30, %v5240_v49  ;;  %v1502_v12 = vmul.f32 %v1493_v60, %v5244_v50 }
 0x18a   : > { %v1504_v13 = vadd.f32 %v5894_v6, %v1495_v55  ;;  %v1505_v14 = vadd.f32 %v5894_v6, %v1496_v20  ;;  %v1506_v15 = vadd.f32 %v5894_v6, %v1497_v58  ;;  %v1507_v17 = vadd.f32 %v5894_v6, %v1498_v63 }
 0x18b   : > { %v1508_v21 = vadd.f32 %v5894_v6, %v1499_v9  ;;  %v1509_v4 = vadd.f32 %v5894_v6, %v1500_v10  ;;  %v1510_v23 = vadd.f32 %v5894_v6, %v1501_v11  ;;  %v1511_v59 = vadd.f32 %v5894_v6, %v1502_v12 }
 0x18c   : > { %v1512_v26 = vsub.f32 %v1504_v13, %v1460_v34  ;;  %v1513_v61 = vsub.f32 %v1505_v14, %v1461_v51  ;;  %v1514_v56 = vsub.f32 %v1506_v15, %v1462_v52  ;;  %v1515_v3 = vsub.f32 %v1507_v17, %v1463_v53 }
 0x18d   : > { %v1516_v27 = vsub.f32 %v1508_v21, %v1464_v54  ;;  %v1517_v31 = vsub.f32 %v1509_v4, %v1465_v22  ;;  %v1518_v1 = vsub.f32 %v1510_v23, %v1466_v29  ;;  %v1519_v7 = vsub.f32 %v1511_v59, %v1467_v2 }
 0x18e   : > { %v1521_v8 = vmul.f32 %v1512_v26, %v5216_v43  ;;  %v1522_v32 = vmul.f32 %v1513_v61, %v5220_v44  ;;  %v1523_v0 = vmul.f32 %v1514_v56, %v5224_v45  ;;  %v1524_v6 = vmul.f32 %v1515_v3, %v5228_v46 }
 0x18f   : > { %v1525_v34 = vmul.f32 %v1516_v27, %v5232_v47  ;;  %v1526_v51 = vmul.f32 %v1517_v31, %v5236_v48  ;;  %v1527_v52 = vmul.f32 %v1518_v1, %v5240_v49  ;;  %v1528_v53 = vmul.f32 %v1519_v7, %v5244_v50 }
 0x190   : > { %v1529_v54 = vstv %s5912_s16  ;;  %v1555_v22 = vstv %s5914_s17  ;;  %v1581_v29 = vstv %s5916_s18  ;;  %v5948_v2 = vstv %s5922_s19  ;;  %s6171_s16 = sld [smem:[#allocation5 + $0x64]] }
 0x191   : > { %v1530_v5 = vadd.f32 %v1529_v54, %v1521_v8  ;;  %v1531_v24 = vadd.f32 %v1529_v54, %v1522_v32  ;;  %v1532_v62 = vadd.f32 %v1529_v54, %v1523_v0  ;;  %v1533_v18 = vadd.f32 %v1529_v54, %v1524_v6  ;;  %s6173_s17 = sld [smem:[#allocation5 + $0x63]] }
 0x192   : > { %v1534_v55 = vadd.f32 %v1529_v54, %v1525_v34  ;;  %v1535_v20 = vadd.f32 %v1529_v54, %v1526_v51  ;;  %v1536_v58 = vadd.f32 %v1529_v54, %v1527_v52  ;;  %v1537_v63 = vadd.f32 %v1529_v54, %v1528_v53  ;;  %s6175_s18 = sld [smem:[#allocation5 + $0x62]] }
 0x193   : > { %v1538_v9 = vsub.f32 %v1530_v5, %v1486_v28  ;;  %v1539_v10 = vsub.f32 %v1531_v24, %v1487_v16  ;;  %v1540_v11 = vsub.f32 %v1532_v62, %v1488_v25  ;;  %v1541_v12 = vsub.f32 %v1533_v18, %v1489_v19  ;;  %s6181_s19 = sld [smem:[#allocation5 + $0x61]] }
 0x194   : > { %v1542_v13 = vsub.f32 %v1534_v55, %v1490_v57  ;;  %v1543_v14 = vsub.f32 %v1535_v20, %v1491_v33  ;;  %v1544_v15 = vsub.f32 %v1536_v58, %v1492_v30  ;;  %v1545_v17 = vsub.f32 %v1537_v63, %v1493_v60 }
 0x195   : > { %v1547_v21 = vmul.f32 %v1538_v9, %v5216_v43  ;;  %v1548_v4 = vmul.f32 %v1539_v10, %v5220_v44  ;;  %v1549_v23 = vmul.f32 %v1540_v11, %v5224_v45  ;;  %v1550_v59 = vmul.f32 %v1541_v12, %v5228_v46 }
 0x196   : > { %v1551_v8 = vmul.f32 %v1542_v13, %v5232_v47  ;;  %v1552_v32 = vmul.f32 %v1543_v14, %v5236_v48  ;;  %v1553_v28 = vmul.f32 %v1544_v15, %v5240_v49  ;;  %v1554_v16 = vmul.f32 %v1545_v17, %v5244_v50 }
 0x197   : > { %v1556_v25 = vadd.f32 %v1555_v22, %v1547_v21  ;;  %v1557_v19 = vadd.f32 %v1555_v22, %v1548_v4  ;;  %v1558_v57 = vadd.f32 %v1555_v22, %v1549_v23  ;;  %v1559_v33 = vadd.f32 %v1555_v22, %v1550_v59 }
 0x198   : > { %v1560_v30 = vadd.f32 %v1555_v22, %v1551_v8  ;;  %v1561_v60 = vadd.f32 %v1555_v22, %v1552_v32  ;;  %v1562_v0 = vadd.f32 %v1555_v22, %v1553_v28  ;;  %v1563_v6 = vadd.f32 %v1555_v22, %v1554_v16 }
 0x199   : > { %v1564_v34 = vsub.f32 %v1556_v25, %v1512_v26  ;;  %v1565_v51 = vsub.f32 %v1557_v19, %v1513_v61  ;;  %v1566_v52 = vsub.f32 %v1558_v57, %v1514_v56  ;;  %v1567_v53 = vsub.f32 %v1559_v33, %v1515_v3 }
 0x19a   : > { %v1568_v54 = vsub.f32 %v1560_v30, %v1516_v27  ;;  %v1569_v5 = vsub.f32 %v1561_v60, %v1517_v31  ;;  %v1570_v24 = vsub.f32 %v1562_v0, %v1518_v1  ;;  %v1571_v62 = vsub.f32 %v1563_v6, %v1519_v7 }
 0x19b   : > { %v1573_v18 = vmul.f32 %v1564_v34, %v5216_v43  ;;  %v1574_v55 = vmul.f32 %v1565_v51, %v5220_v44  ;;  %v1575_v20 = vmul.f32 %v1566_v52, %v5224_v45  ;;  %v1576_v58 = vmul.f32 %v1567_v53, %v5228_v46 }
 0x19c   : > { %v1577_v63 = vmul.f32 %v1568_v54, %v5232_v47  ;;  %v1578_v22 = vmul.f32 %v1569_v5, %v5236_v48  ;;  %v1579_v26 = vmul.f32 %v1570_v24, %v5240_v49  ;;  %v1580_v61 = vmul.f32 %v1571_v62, %v5244_v50 }
 0x19d   : > { %v1582_v56 = vadd.f32 %v1581_v29, %v1573_v18  ;;  %v1583_v3 = vadd.f32 %v1581_v29, %v1574_v55  ;;  %v1584_v27 = vadd.f32 %v1581_v29, %v1575_v20  ;;  %v1585_v31 = vadd.f32 %v1581_v29, %v1576_v58 }
 0x19e   : > { %v1586_v1 = vadd.f32 %v1581_v29, %v1577_v63  ;;  %v1587_v7 = vadd.f32 %v1581_v29, %v1578_v22  ;;  %v1588_v21 = vadd.f32 %v1581_v29, %v1579_v26  ;;  %v1589_v4 = vadd.f32 %v1581_v29, %v1580_v61 }
 0x19f   : > { %v5968_v23 = vsub.f32 %v1582_v56, %v1538_v9  ;;  %v5970_v59 = vsub.f32 %v1583_v3, %v1539_v10  ;;  %v5972_v8 = vsub.f32 %v1584_v27, %v1540_v11  ;;  %v5974_v32 = vsub.f32 %v1585_v31, %v1541_v12 }
 0x1a0   : > { %v5978_v28 = vsub.f32 %v1586_v1, %v1542_v13  ;;  %v5980_v16 = vsub.f32 %v1587_v7, %v1543_v14  ;;  %v5982_v25 = vsub.f32 %v1588_v21, %v1544_v15  ;;  %v5984_v19 = vsub.f32 %v1589_v4, %v1545_v17 }
 0x1a1   : > { %v1599_v29 = vmul.f32 %v5968_v23, %v5216_v43  ;;  %v1600_v9 = vmul.f32 %v5970_v59, %v5220_v44  ;;  %v1601_v10 = vmul.f32 %v5972_v8, %v5224_v45  ;;  %v1602_v11 = vmul.f32 %v5974_v32, %v5228_v46 }
 0x1a2   : > { %v1603_v12 = vmul.f32 %v5978_v28, %v5232_v47  ;;  %v1604_v13 = vmul.f32 %v5980_v16, %v5236_v48  ;;  %v1605_v14 = vmul.f32 %v5982_v25, %v5240_v49  ;;  %v1606_v15 = vmul.f32 %v5984_v19, %v5244_v50 }
 0x1a3   : > { %v1608_v17 = vadd.f32 %v5948_v2, %v1599_v29  ;;  %v1609_v57 = vadd.f32 %v5948_v2, %v1600_v9  ;;  %v1610_v33 = vadd.f32 %v5948_v2, %v1601_v10  ;;  %v1611_v30 = vadd.f32 %v5948_v2, %v1602_v11 }
 0x1a4   : > { %v1612_v60 = vadd.f32 %v5948_v2, %v1603_v12  ;;  %v1613_v0 = vadd.f32 %v5948_v2, %v1604_v13  ;;  %v1614_v6 = vadd.f32 %v5948_v2, %v1605_v14  ;;  %v1615_v18 = vadd.f32 %v5948_v2, %v1606_v15 }
 0x1a5   : > { %v1616_v55 = vsub.f32 %v1608_v17, %v1564_v34  ;;  %v1617_v20 = vsub.f32 %v1609_v57, %v1565_v51  ;;  %v1618_v58 = vsub.f32 %v1610_v33, %v1566_v52  ;;  %v1619_v63 = vsub.f32 %v1611_v30, %v1567_v53 }
 0x1a6   : > { %v1620_v22 = vsub.f32 %v1612_v60, %v1568_v54  ;;  %v1621_v26 = vsub.f32 %v1613_v0, %v1569_v5  ;;  %v1622_v61 = vsub.f32 %v1614_v6, %v1570_v24  ;;  %v1623_v56 = vsub.f32 %v1615_v18, %v1571_v62 }
 0x1a7   : > { %v1625_v3 = vmul.f32 %v5198_v35, %v1616_v55  ;;  %v1626_v27 = vmul.f32 %v5200_v36, %v1617_v20  ;;  %v1627_v31 = vmul.f32 %v5202_v37, %v1618_v58  ;;  %v1628_v2 = vmul.f32 %v5204_v38, %v1619_v63 }
 0x1a8   : > { %v1629_v34 = vmul.f32 %v5206_v39, %v1620_v22  ;;  %v1630_v51 = vmul.f32 %v5208_v40, %v1621_v26  ;;  %v1631_v52 = vmul.f32 %v5210_v41, %v1622_v61  ;;  %v1632_v53 = vmul.f32 %v5212_v42, %v1623_v56 }
 0x1a9   : > { %v1633_v54 = vstv %s5976_s20  ;;  %v6025_v5 = vstv %s5966_s11  ;;  %v1671_v24 = vstv %s5986_s21  ;;  %v1689_v62 = vstv %s5996_s22  ;;  %s6225_s11 = sld [smem:[#allocation5 + $0x60]] }
 0x1aa   : > { %v1634_v1 = vadd.f32 %v1633_v54, %v1625_v3  ;;  %v1635_v7 = vadd.f32 %v1633_v54, %v1626_v27  ;;  %v1636_v21 = vadd.f32 %v1633_v54, %v1627_v31  ;;  %v1637_v4 = vadd.f32 %v1633_v54, %v1628_v2  ;;  %s6227_s20 = sld [smem:[#allocation5 + $0x5f]] }
 0x1ab   : > { %v1638_v29 = vadd.f32 %v1633_v54, %v1629_v34  ;;  %v1639_v9 = vadd.f32 %v1633_v54, %v1630_v51  ;;  %v1640_v10 = vadd.f32 %v1633_v54, %v1631_v52  ;;  %v1641_v11 = vadd.f32 %v1633_v54, %v1632_v53  ;;  %s6229_s21 = sld [smem:[#allocation5 + $0x5e]] }
 0x1ac   : > { %v1642_v12 = vsub.f32 %v1634_v1, %v5968_v23  ;;  %v1643_v13 = vsub.f32 %v1635_v7, %v5970_v59  ;;  %v1644_v14 = vsub.f32 %v1636_v21, %v5972_v8  ;;  %v1645_v15 = vsub.f32 %v1637_v4, %v5974_v32  ;;  %s6235_s22 = sld [smem:[#allocation5 + $0x5d]] }
 0x1ad   : > { %v1646_v17 = vsub.f32 %v1638_v29, %v5978_v28  ;;  %v1647_v57 = vsub.f32 %v1639_v9, %v5980_v16  ;;  %v1648_v33 = vsub.f32 %v1640_v10, %v5982_v25  ;;  %v1649_v30 = vsub.f32 %v1641_v11, %v5984_v19 }
 0x1ae   : > { %1652 = vst [vmem:[%s6037_s24] sm:$0xff] %v1642_v12  ;;  %1653 = vst [vmem:[%s6037_s24 + $0x8] sm:$0xff] %v1643_v13  ;;  %v1663_v23 = vmul.f32 %v6025_v5, %v5216_v43  ;;  %v1664_v59 = vmul.f32 %v6025_v5, %v5220_v44  ;;  %v1665_v8 = vmul.f32 %v6025_v5, %v5224_v45 }
 0x1af   : > { %1654 = vst [vmem:[%s6037_s24 + $0x10] sm:$0xff] %v1644_v14  ;;  %1655 = vst [vmem:[%s6037_s24 + $0x18] sm:$0xff] %v1645_v15  ;;  %v1666_v32 = vmul.f32 %v6025_v5, %v5228_v46  ;;  %v1667_v28 = vmul.f32 %v6025_v5, %v5232_v47  ;;  %v1668_v16 = vmul.f32 %v6025_v5, %v5236_v48 }
 0x1b0   : > { %1656 = vst [vmem:[%s6037_s24 + $0x20] sm:$0xff] %v1646_v17  ;;  %1657 = vst [vmem:[%s6037_s24 + $0x28] sm:$0xff] %v1647_v57  ;;  %v1669_v25 = vmul.f32 %v6025_v5, %v5240_v49  ;;  %v1670_v19 = vmul.f32 %v6025_v5, %v5244_v50  ;;  %v1672_v60 = vadd.f32 %v1671_v24, %v1663_v23 }
 0x1b1   : > { %1658 = vst [vmem:[%s6037_s24 + $0x30] sm:$0xff] %v1648_v33  ;;  %1659 = vst [vmem:[%s6037_s24 + $0x38] sm:$0xff] %v1649_v30  ;;  %v1673_v0 = vadd.f32 %v1671_v24, %v1664_v59  ;;  %v1674_v6 = vadd.f32 %v1671_v24, %v1665_v8  ;;  %v1675_v18 = vadd.f32 %v1671_v24, %v1666_v32  ;;  %v1715_v59 = vstv %s6063_s25  ;;  %s6281_s25 = sld [smem:[#allocation5 + $0x5b]] }
 0x1b2   : > { %v1676_v55 = vadd.f32 %v1671_v24, %v1667_v28  ;;  %v1677_v20 = vadd.f32 %v1671_v24, %v1668_v16  ;;  %v1678_v58 = vadd.f32 %v1671_v24, %v1669_v25  ;;  %v1679_v63 = vadd.f32 %v1671_v24, %v1670_v19 }
 0x1b3   : > { %v1681_v22 = vmul.f32 %v1672_v60, %v5216_v43  ;;  %v1682_v26 = vmul.f32 %v1673_v0, %v5220_v44  ;;  %v1683_v61 = vmul.f32 %v1674_v6, %v5224_v45  ;;  %v1684_v56 = vmul.f32 %v1675_v18, %v5228_v46 }
 0x1b4   : > { %v1685_v3 = vmul.f32 %v1676_v55, %v5232_v47  ;;  %v1686_v27 = vmul.f32 %v1677_v20, %v5236_v48  ;;  %v1687_v31 = vmul.f32 %v1678_v58, %v5240_v49  ;;  %v1688_v2 = vmul.f32 %v1679_v63, %v5244_v50 }
 0x1b5   : > { %v1690_v34 = vadd.f32 %v1689_v62, %v1681_v22  ;;  %v1691_v51 = vadd.f32 %v1689_v62, %v1682_v26  ;;  %v1692_v52 = vadd.f32 %v1689_v62, %v1683_v61  ;;  %v1693_v53 = vadd.f32 %v1689_v62, %v1684_v56 }
 0x1b6   : > { %v1694_v54 = vadd.f32 %v1689_v62, %v1685_v3  ;;  %v1695_v24 = vadd.f32 %v1689_v62, %v1686_v27  ;;  %v1696_v1 = vadd.f32 %v1689_v62, %v1687_v31  ;;  %v1697_v7 = vadd.f32 %v1689_v62, %v1688_v2 }
 0x1b7   : > { %v1698_v21 = vsub.f32 %v1690_v34, %v6025_v5  ;;  %v1699_v4 = vsub.f32 %v1691_v51, %v6025_v5  ;;  %v1700_v29 = vsub.f32 %v1692_v52, %v6025_v5  ;;  %v1701_v9 = vsub.f32 %v1693_v53, %v6025_v5 }
 0x1b8   : > { %v1702_v10 = vsub.f32 %v1694_v54, %v6025_v5  ;;  %v1703_v11 = vsub.f32 %v1695_v24, %v6025_v5  ;;  %v1704_v12 = vsub.f32 %v1696_v1, %v6025_v5  ;;  %v1705_v62 = vsub.f32 %v1697_v7, %v6025_v5 }
 0x1b9   : > { %v1707_v13 = vmul.f32 %v1698_v21, %v5216_v43  ;;  %v1708_v14 = vmul.f32 %v1699_v4, %v5220_v44  ;;  %v1709_v15 = vmul.f32 %v1700_v29, %v5224_v45  ;;  %v1710_v17 = vmul.f32 %v1701_v9, %v5228_v46 }
 0x1ba   : > { %v1711_v57 = vmul.f32 %v1702_v10, %v5232_v47  ;;  %v1712_v33 = vmul.f32 %v1703_v11, %v5236_v48  ;;  %v1713_v30 = vmul.f32 %v1704_v12, %v5240_v49  ;;  %v1714_v23 = vmul.f32 %v1705_v62, %v5244_v50 }
 0x1bb   : > { %v1741_v8 = vstv %s6065_s0  ;;  %v1767_v32 = vstv %s6067_s1  ;;  %v6099_v5 = vstv %s6073_s5  ;;  %v1716_v28 = vadd.f32 %v1715_v59, %v1707_v13  ;;  %s6283_s0 = sld [smem:[#allocation5 + $0x5a]] }
 0x1bc   : > { %v1717_v16 = vadd.f32 %v1715_v59, %v1708_v14  ;;  %v1718_v25 = vadd.f32 %v1715_v59, %v1709_v15  ;;  %v1719_v19 = vadd.f32 %v1715_v59, %v1710_v17  ;;  %v1720_v22 = vadd.f32 %v1715_v59, %v1711_v57  ;;  %s6289_s1 = sld [smem:[#allocation5 + $0x59]] }
 0x1bd   : > { %v1721_v26 = vadd.f32 %v1715_v59, %v1712_v33  ;;  %v1722_v61 = vadd.f32 %v1715_v59, %v1713_v30  ;;  %v1723_v56 = vadd.f32 %v1715_v59, %v1714_v23  ;;  %v1724_v3 = vsub.f32 %v1716_v28, %v1672_v60  ;;  %s6333_s5 = sld [smem:[#allocation5 + $0x58]] }
 0x1be   : > { %v1725_v27 = vsub.f32 %v1717_v16, %v1673_v0  ;;  %v1726_v31 = vsub.f32 %v1718_v25, %v1674_v6  ;;  %v1727_v2 = vsub.f32 %v1719_v19, %v1675_v18  ;;  %v1728_v34 = vsub.f32 %v1720_v22, %v1676_v55 }
 0x1bf   : > { %v1729_v51 = vsub.f32 %v1721_v26, %v1677_v20  ;;  %v1730_v52 = vsub.f32 %v1722_v61, %v1678_v58  ;;  %v1731_v53 = vsub.f32 %v1723_v56, %v1679_v63  ;;  %v1733_v54 = vmul.f32 %v1724_v3, %v5216_v43 }
 0x1c0   : > { %v1734_v24 = vmul.f32 %v1725_v27, %v5220_v44  ;;  %v1735_v1 = vmul.f32 %v1726_v31, %v5224_v45  ;;  %v1736_v7 = vmul.f32 %v1727_v2, %v5228_v46  ;;  %v1737_v13 = vmul.f32 %v1728_v34, %v5232_v47 }
 0x1c1   : > { %v1738_v14 = vmul.f32 %v1729_v51, %v5236_v48  ;;  %v1739_v60 = vmul.f32 %v1730_v52, %v5240_v49  ;;  %v1740_v0 = vmul.f32 %v1731_v53, %v5244_v50  ;;  %v1742_v6 = vadd.f32 %v1741_v8, %v1733_v54 }
 0x1c2   : > { %v1743_v18 = vadd.f32 %v1741_v8, %v1734_v24  ;;  %v1744_v55 = vadd.f32 %v1741_v8, %v1735_v1  ;;  %v1745_v20 = vadd.f32 %v1741_v8, %v1736_v7  ;;  %v1746_v58 = vadd.f32 %v1741_v8, %v1737_v13 }
 0x1c3   : > { %v1747_v63 = vadd.f32 %v1741_v8, %v1738_v14  ;;  %v1748_v15 = vadd.f32 %v1741_v8, %v1739_v60  ;;  %v1749_v17 = vadd.f32 %v1741_v8, %v1740_v0  ;;  %v1750_v57 = vsub.f32 %v1742_v6, %v1698_v21 }
 0x1c4   : > { %v1751_v33 = vsub.f32 %v1743_v18, %v1699_v4  ;;  %v1752_v30 = vsub.f32 %v1744_v55, %v1700_v29  ;;  %v1753_v23 = vsub.f32 %v1745_v20, %v1701_v9  ;;  %v1754_v59 = vsub.f32 %v1746_v58, %v1702_v10 }
 0x1c5   : > { %v1755_v28 = vsub.f32 %v1747_v63, %v1703_v11  ;;  %v1756_v16 = vsub.f32 %v1748_v15, %v1704_v12  ;;  %v1757_v25 = vsub.f32 %v1749_v17, %v1705_v62  ;;  %v1759_v19 = vmul.f32 %v1750_v57, %v5216_v43 }
 0x1c6   : > { %v1760_v22 = vmul.f32 %v1751_v33, %v5220_v44  ;;  %v1761_v26 = vmul.f32 %v1752_v30, %v5224_v45  ;;  %v1762_v61 = vmul.f32 %v1753_v23, %v5228_v46  ;;  %v1763_v56 = vmul.f32 %v1754_v59, %v5232_v47 }
 0x1c7   : > { %v1764_v8 = vmul.f32 %v1755_v28, %v5236_v48  ;;  %v1765_v21 = vmul.f32 %v1756_v16, %v5240_v49  ;;  %v1766_v4 = vmul.f32 %v1757_v25, %v5244_v50  ;;  %v1768_v29 = vadd.f32 %v1767_v32, %v1759_v19 }
 0x1c8   : > { %v1769_v9 = vadd.f32 %v1767_v32, %v1760_v22  ;;  %v1770_v10 = vadd.f32 %v1767_v32, %v1761_v26  ;;  %v1771_v11 = vadd.f32 %v1767_v32, %v1762_v61  ;;  %v1772_v12 = vadd.f32 %v1767_v32, %v1763_v56 }
 0x1c9   : > { %v1773_v62 = vadd.f32 %v1767_v32, %v1764_v8  ;;  %v1774_v54 = vadd.f32 %v1767_v32, %v1765_v21  ;;  %v1775_v24 = vadd.f32 %v1767_v32, %v1766_v4  ;;  %v1776_v1 = vsub.f32 %v1768_v29, %v1724_v3 }
 0x1ca   : > { %v1777_v7 = vsub.f32 %v1769_v9, %v1725_v27  ;;  %v1778_v13 = vsub.f32 %v1770_v10, %v1726_v31  ;;  %v1779_v14 = vsub.f32 %v1771_v11, %v1727_v2  ;;  %v1780_v60 = vsub.f32 %v1772_v12, %v1728_v34 }
 0x1cb   : > { %v1781_v0 = vsub.f32 %v1773_v62, %v1729_v51  ;;  %v1782_v6 = vsub.f32 %v1774_v54, %v1730_v52  ;;  %v1783_v18 = vsub.f32 %v1775_v24, %v1731_v53  ;;  %v1785_v55 = vmul.f32 %v1776_v1, %v5216_v43 }
 0x1cc   : > { %v1786_v20 = vmul.f32 %v1777_v7, %v5220_v44  ;;  %v1787_v32 = vmul.f32 %v1778_v13, %v5224_v45  ;;  %v1788_v58 = vmul.f32 %v1779_v14, %v5228_v46  ;;  %v1789_v3 = vmul.f32 %v1780_v60, %v5232_v47 }
 0x1cd   : > { %v1790_v27 = vmul.f32 %v1781_v0, %v5236_v48  ;;  %v1791_v31 = vmul.f32 %v1782_v6, %v5240_v49  ;;  %v1792_v2 = vmul.f32 %v1783_v18, %v5244_v50  ;;  %v1794_v34 = vadd.f32 %v6099_v5, %v1785_v55 }
 0x1ce   : > { %v1795_v51 = vadd.f32 %v6099_v5, %v1786_v20  ;;  %v1796_v52 = vadd.f32 %v6099_v5, %v1787_v32  ;;  %v1797_v53 = vadd.f32 %v6099_v5, %v1788_v58  ;;  %v1798_v63 = vadd.f32 %v6099_v5, %v1789_v3 }
 0x1cf   : > { %v1799_v15 = vadd.f32 %v6099_v5, %v1790_v27  ;;  %v1800_v17 = vadd.f32 %v6099_v5, %v1791_v31  ;;  %v1801_v19 = vadd.f32 %v6099_v5, %v1792_v2  ;;  %v1802_v22 = vsub.f32 %v1794_v34, %v1750_v57 }
 0x1d0   : > { %v1803_v26 = vsub.f32 %v1795_v51, %v1751_v33  ;;  %v1804_v61 = vsub.f32 %v1796_v52, %v1752_v30  ;;  %v1805_v56 = vsub.f32 %v1797_v53, %v1753_v23  ;;  %v1806_v8 = vsub.f32 %v1798_v63, %v1754_v59 }
 0x1d1   : > { %v1807_v21 = vsub.f32 %v1799_v15, %v1755_v28  ;;  %v1808_v4 = vsub.f32 %v1800_v17, %v1756_v16  ;;  %v1809_v29 = vsub.f32 %v1801_v19, %v1757_v25  ;;  %v1811_v9 = vmul.f32 %v1802_v22, %v5216_v43 }
 0x1d2   : > { %v1812_v10 = vmul.f32 %v1803_v26, %v5220_v44  ;;  %v1813_v11 = vmul.f32 %v1804_v61, %v5224_v45  ;;  %v1814_v5 = vmul.f32 %v1805_v56, %v5228_v46  ;;  %v1815_v57 = vmul.f32 %v1806_v8, %v5232_v47 }
 0x1d3   : > { %v1816_v33 = vmul.f32 %v1807_v21, %v5236_v48  ;;  %v1817_v30 = vmul.f32 %v1808_v4, %v5240_v49  ;;  %v1818_v23 = vmul.f32 %v1809_v29, %v5244_v50  ;;  %v1819_v59 = vstv %s6117_s6  ;;  %s6335_s6 = sld [smem:[#allocation5 + $0x57]] }
 0x1d4   : > { %v1845_v28 = vstv %s6119_s8  ;;  %v1871_v16 = vstv %s6121_s10  ;;  %v6153_v25 = vstv %s6127_s15  ;;  %v1820_v12 = vadd.f32 %v1819_v59, %v1811_v9  ;;  %s6337_s8 = sld [smem:[#allocation5 + $0x56]] }
 0x1d5   : > { %v1821_v62 = vadd.f32 %v1819_v59, %v1812_v10  ;;  %v1822_v54 = vadd.f32 %v1819_v59, %v1813_v11  ;;  %v1823_v24 = vadd.f32 %v1819_v59, %v1814_v5  ;;  %v1824_v55 = vadd.f32 %v1819_v59, %v1815_v57  ;;  %s6343_s10 = sld [smem:[#allocation5 + $0x55]] }
 0x1d6   : > { %v1825_v20 = vadd.f32 %v1819_v59, %v1816_v33  ;;  %v1826_v32 = vadd.f32 %v1819_v59, %v1817_v30  ;;  %v1827_v58 = vadd.f32 %v1819_v59, %v1818_v23  ;;  %v1828_v3 = vsub.f32 %v1820_v12, %v1776_v1  ;;  %s6387_s15 = sld [smem:[#allocation5 + $0x54]] }
 0x1d7   : > { %v1829_v27 = vsub.f32 %v1821_v62, %v1777_v7  ;;  %v1830_v31 = vsub.f32 %v1822_v54, %v1778_v13  ;;  %v1831_v2 = vsub.f32 %v1823_v24, %v1779_v14  ;;  %v1832_v34 = vsub.f32 %v1824_v55, %v1780_v60 }
 0x1d8   : > { %v1833_v51 = vsub.f32 %v1825_v20, %v1781_v0  ;;  %v1834_v52 = vsub.f32 %v1826_v32, %v1782_v6  ;;  %v1835_v53 = vsub.f32 %v1827_v58, %v1783_v18  ;;  %v1837_v63 = vmul.f32 %v1828_v3, %v5216_v43 }
 0x1d9   : > { %v1838_v15 = vmul.f32 %v1829_v27, %v5220_v44  ;;  %v1839_v17 = vmul.f32 %v1830_v31, %v5224_v45  ;;  %v1840_v19 = vmul.f32 %v1831_v2, %v5228_v46  ;;  %v1841_v9 = vmul.f32 %v1832_v34, %v5232_v47 }
 0x1da   : > { %v1842_v10 = vmul.f32 %v1833_v51, %v5236_v48  ;;  %v1843_v1 = vmul.f32 %v1834_v52, %v5240_v49  ;;  %v1844_v7 = vmul.f32 %v1835_v53, %v5244_v50  ;;  %v1846_v13 = vadd.f32 %v1845_v28, %v1837_v63 }
 0x1db   : > { %v1847_v14 = vadd.f32 %v1845_v28, %v1838_v15  ;;  %v1848_v60 = vadd.f32 %v1845_v28, %v1839_v17  ;;  %v1849_v0 = vadd.f32 %v1845_v28, %v1840_v19  ;;  %v1850_v6 = vadd.f32 %v1845_v28, %v1841_v9 }
 0x1dc   : > { %v1851_v18 = vadd.f32 %v1845_v28, %v1842_v10  ;;  %v1852_v11 = vadd.f32 %v1845_v28, %v1843_v1  ;;  %v1853_v5 = vadd.f32 %v1845_v28, %v1844_v7  ;;  %v1854_v57 = vsub.f32 %v1846_v13, %v1802_v22 }
 0x1dd   : > { %v1855_v33 = vsub.f32 %v1847_v14, %v1803_v26  ;;  %v1856_v30 = vsub.f32 %v1848_v60, %v1804_v61  ;;  %v1857_v23 = vsub.f32 %v1849_v0, %v1805_v56  ;;  %v1858_v59 = vsub.f32 %v1850_v6, %v1806_v8 }
 0x1de   : > { %v1859_v12 = vsub.f32 %v1851_v18, %v1807_v21  ;;  %v1860_v62 = vsub.f32 %v1852_v11, %v1808_v4  ;;  %v1861_v54 = vsub.f32 %v1853_v5, %v1809_v29  ;;  %v1863_v24 = vmul.f32 %v1854_v57, %v5216_v43 }
 0x1df   : > { %v1864_v55 = vmul.f32 %v1855_v33, %v5220_v44  ;;  %v1865_v20 = vmul.f32 %v1856_v30, %v5224_v45  ;;  %v1866_v32 = vmul.f32 %v1857_v23, %v5228_v46  ;;  %v1867_v58 = vmul.f32 %v1858_v59, %v5232_v47 }
 0x1e0   : > { %v1868_v28 = vmul.f32 %v1859_v12, %v5236_v48  ;;  %v1869_v22 = vmul.f32 %v1860_v62, %v5240_v49  ;;  %v1870_v26 = vmul.f32 %v1861_v54, %v5244_v50  ;;  %v1872_v61 = vadd.f32 %v1871_v16, %v1863_v24 }
 0x1e1   : > { %v1873_v56 = vadd.f32 %v1871_v16, %v1864_v55  ;;  %v1874_v8 = vadd.f32 %v1871_v16, %v1865_v20  ;;  %v1875_v21 = vadd.f32 %v1871_v16, %v1866_v32  ;;  %v1876_v4 = vadd.f32 %v1871_v16, %v1867_v58 }
 0x1e2   : > { %v1877_v29 = vadd.f32 %v1871_v16, %v1868_v28  ;;  %v1878_v63 = vadd.f32 %v1871_v16, %v1869_v22  ;;  %v1879_v15 = vadd.f32 %v1871_v16, %v1870_v26  ;;  %v1880_v17 = vsub.f32 %v1872_v61, %v1828_v3 }
 0x1e3   : > { %v1881_v19 = vsub.f32 %v1873_v56, %v1829_v27  ;;  %v1882_v9 = vsub.f32 %v1874_v8, %v1830_v31  ;;  %v1883_v10 = vsub.f32 %v1875_v21, %v1831_v2  ;;  %v1884_v1 = vsub.f32 %v1876_v4, %v1832_v34 }
 0x1e4   : > { %v1885_v7 = vsub.f32 %v1877_v29, %v1833_v51  ;;  %v1886_v13 = vsub.f32 %v1878_v63, %v1834_v52  ;;  %v1887_v14 = vsub.f32 %v1879_v15, %v1835_v53  ;;  %v1889_v60 = vmul.f32 %v1880_v17, %v5216_v43 }
 0x1e5   : > { %v1890_v0 = vmul.f32 %v1881_v19, %v5220_v44  ;;  %v1891_v16 = vmul.f32 %v1882_v9, %v5224_v45  ;;  %v1892_v6 = vmul.f32 %v1883_v10, %v5228_v46  ;;  %v1893_v3 = vmul.f32 %v1884_v1, %v5232_v47 }
 0x1e6   : > { %v1894_v27 = vmul.f32 %v1885_v7, %v5236_v48  ;;  %v1895_v31 = vmul.f32 %v1886_v13, %v5240_v49  ;;  %v1896_v2 = vmul.f32 %v1887_v14, %v5244_v50  ;;  %v1898_v34 = vadd.f32 %v6153_v25, %v1889_v60 }
 0x1e7   : > { %v1899_v51 = vadd.f32 %v6153_v25, %v1890_v0  ;;  %v1900_v52 = vadd.f32 %v6153_v25, %v1891_v16  ;;  %v1901_v53 = vadd.f32 %v6153_v25, %v1892_v6  ;;  %v1902_v18 = vadd.f32 %v6153_v25, %v1893_v3 }
 0x1e8   : > { %v1903_v11 = vadd.f32 %v6153_v25, %v1894_v27  ;;  %v1904_v5 = vadd.f32 %v6153_v25, %v1895_v31  ;;  %v1905_v24 = vadd.f32 %v6153_v25, %v1896_v2  ;;  %v1906_v55 = vsub.f32 %v1898_v34, %v1854_v57 }
 0x1e9   : > { %v1907_v20 = vsub.f32 %v1899_v51, %v1855_v33  ;;  %v1908_v32 = vsub.f32 %v1900_v52, %v1856_v30  ;;  %v1909_v58 = vsub.f32 %v1901_v53, %v1857_v23  ;;  %v1910_v28 = vsub.f32 %v1902_v18, %v1858_v59 }
 0x1ea   : > { %v1911_v22 = vsub.f32 %v1903_v11, %v1859_v12  ;;  %v1912_v26 = vsub.f32 %v1904_v5, %v1860_v62  ;;  %v1913_v61 = vsub.f32 %v1905_v24, %v1861_v54  ;;  %v1915_v56 = vmul.f32 %v1906_v55, %v5216_v43 }
 0x1eb   : > { %v1916_v8 = vmul.f32 %v1907_v20, %v5220_v44  ;;  %v1917_v21 = vmul.f32 %v1908_v32, %v5224_v45  ;;  %v1918_v25 = vmul.f32 %v1909_v58, %v5228_v46  ;;  %v1919_v57 = vmul.f32 %v1910_v28, %v5232_v47 }
 0x1ec   : > { %v1920_v33 = vmul.f32 %v1911_v22, %v5236_v48  ;;  %v1921_v30 = vmul.f32 %v1912_v26, %v5240_v49  ;;  %v1922_v23 = vmul.f32 %v1913_v61, %v5244_v50  ;;  %v1923_v59 = vstv %s6171_s16  ;;  %s6389_s16 = sld [smem:[#allocation5 + $0x53]] }
 0x1ed   : > { %v1949_v12 = vstv %s6173_s17  ;;  %v1975_v62 = vstv %s6175_s18  ;;  %v6207_v54 = vstv %s6181_s19  ;;  %v1924_v4 = vadd.f32 %v1923_v59, %v1915_v56  ;;  %s6391_s17 = sld [smem:[#allocation5 + $0x52]] }
 0x1ee   : > { %v1925_v29 = vadd.f32 %v1923_v59, %v1916_v8  ;;  %v1926_v63 = vadd.f32 %v1923_v59, %v1917_v21  ;;  %v1927_v15 = vadd.f32 %v1923_v59, %v1918_v25  ;;  %v1928_v60 = vadd.f32 %v1923_v59, %v1919_v57  ;;  %s6397_s18 = sld [smem:[#allocation5 + $0x51]] }
 0x1ef   : > { %v1929_v0 = vadd.f32 %v1923_v59, %v1920_v33  ;;  %v1930_v16 = vadd.f32 %v1923_v59, %v1921_v30  ;;  %v1931_v6 = vadd.f32 %v1923_v59, %v1922_v23  ;;  %v1932_v3 = vsub.f32 %v1924_v4, %v1880_v17  ;;  %s6441_s19 = sld [smem:[#allocation5 + $0x50]] }
 0x1f0   : > { %v1933_v27 = vsub.f32 %v1925_v29, %v1881_v19  ;;  %v1934_v31 = vsub.f32 %v1926_v63, %v1882_v9  ;;  %v1935_v2 = vsub.f32 %v1927_v15, %v1883_v10  ;;  %v1936_v34 = vsub.f32 %v1928_v60, %v1884_v1 }
 0x1f1   : > { %v1937_v51 = vsub.f32 %v1929_v0, %v1885_v7  ;;  %v1938_v52 = vsub.f32 %v1930_v16, %v1886_v13  ;;  %v1939_v53 = vsub.f32 %v1931_v6, %v1887_v14  ;;  %v1941_v18 = vmul.f32 %v1932_v3, %v5216_v43 }
 0x1f2   : > { %v1942_v11 = vmul.f32 %v1933_v27, %v5220_v44  ;;  %v1943_v5 = vmul.f32 %v1934_v31, %v5224_v45  ;;  %v1944_v24 = vmul.f32 %v1935_v2, %v5228_v46  ;;  %v1945_v56 = vmul.f32 %v1936_v34, %v5232_v47 }
 0x1f3   : > { %v1946_v8 = vmul.f32 %v1937_v51, %v5236_v48  ;;  %v1947_v17 = vmul.f32 %v1938_v52, %v5240_v49  ;;  %v1948_v19 = vmul.f32 %v1939_v53, %v5244_v50  ;;  %v1950_v9 = vadd.f32 %v1949_v12, %v1941_v18 }
 0x1f4   : > { %v1951_v10 = vadd.f32 %v1949_v12, %v1942_v11  ;;  %v1952_v1 = vadd.f32 %v1949_v12, %v1943_v5  ;;  %v1953_v7 = vadd.f32 %v1949_v12, %v1944_v24  ;;  %v1954_v13 = vadd.f32 %v1949_v12, %v1945_v56 }
 0x1f5   : > { %v1955_v14 = vadd.f32 %v1949_v12, %v1946_v8  ;;  %v1956_v21 = vadd.f32 %v1949_v12, %v1947_v17  ;;  %v1957_v25 = vadd.f32 %v1949_v12, %v1948_v19  ;;  %v1958_v57 = vsub.f32 %v1950_v9, %v1906_v55 }
 0x1f6   : > { %v1959_v33 = vsub.f32 %v1951_v10, %v1907_v20  ;;  %v1960_v30 = vsub.f32 %v1952_v1, %v1908_v32  ;;  %v1961_v23 = vsub.f32 %v1953_v7, %v1909_v58  ;;  %v1962_v59 = vsub.f32 %v1954_v13, %v1910_v28 }
 0x1f7   : > { %v1963_v4 = vsub.f32 %v1955_v14, %v1911_v22  ;;  %v1964_v29 = vsub.f32 %v1956_v21, %v1912_v26  ;;  %v1965_v63 = vsub.f32 %v1957_v25, %v1913_v61  ;;  %v1967_v15 = vmul.f32 %v1958_v57, %v5216_v43 }
 0x1f8   : > { %v1968_v60 = vmul.f32 %v1959_v33, %v5220_v44  ;;  %v1969_v0 = vmul.f32 %v1960_v30, %v5224_v45  ;;  %v1970_v16 = vmul.f32 %v1961_v23, %v5228_v46  ;;  %v1971_v6 = vmul.f32 %v1962_v59, %v5232_v47 }
 0x1f9   : > { %v1972_v12 = vmul.f32 %v1963_v4, %v5236_v48  ;;  %v1973_v55 = vmul.f32 %v1964_v29, %v5240_v49  ;;  %v1974_v20 = vmul.f32 %v1965_v63, %v5244_v50  ;;  %v1976_v32 = vadd.f32 %v1975_v62, %v1967_v15 }
 0x1fa   : > { %v1977_v58 = vadd.f32 %v1975_v62, %v1968_v60  ;;  %v1978_v28 = vadd.f32 %v1975_v62, %v1969_v0  ;;  %v1979_v22 = vadd.f32 %v1975_v62, %v1970_v16  ;;  %v1980_v26 = vadd.f32 %v1975_v62, %v1971_v6 }
 0x1fb   : > { %v1981_v61 = vadd.f32 %v1975_v62, %v1972_v12  ;;  %v1982_v18 = vadd.f32 %v1975_v62, %v1973_v55  ;;  %v1983_v11 = vadd.f32 %v1975_v62, %v1974_v20  ;;  %v1984_v5 = vsub.f32 %v1976_v32, %v1932_v3 }
 0x1fc   : > { %v1985_v24 = vsub.f32 %v1977_v58, %v1933_v27  ;;  %v1986_v56 = vsub.f32 %v1978_v28, %v1934_v31  ;;  %v1987_v8 = vsub.f32 %v1979_v22, %v1935_v2  ;;  %v1988_v17 = vsub.f32 %v1980_v26, %v1936_v34 }
 0x1fd   : > { %v1989_v19 = vsub.f32 %v1981_v61, %v1937_v51  ;;  %v1990_v9 = vsub.f32 %v1982_v18, %v1938_v52  ;;  %v1991_v10 = vsub.f32 %v1983_v11, %v1939_v53  ;;  %v1993_v1 = vmul.f32 %v1984_v5, %v5216_v43 }
 0x1fe   : > { %v1994_v7 = vmul.f32 %v1985_v24, %v5220_v44  ;;  %v1995_v62 = vmul.f32 %v1986_v56, %v5224_v45  ;;  %v1996_v13 = vmul.f32 %v1987_v8, %v5228_v46  ;;  %v1997_v3 = vmul.f32 %v1988_v17, %v5232_v47 }
 0x1ff   : > { %v1998_v27 = vmul.f32 %v1989_v19, %v5236_v48  ;;  %v1999_v31 = vmul.f32 %v1990_v9, %v5240_v49  ;;  %v2000_v2 = vmul.f32 %v1991_v10, %v5244_v50  ;;  %v2002_v34 = vadd.f32 %v6207_v54, %v1993_v1 }
 0x200   : > { %v2003_v51 = vadd.f32 %v6207_v54, %v1994_v7  ;;  %v2004_v52 = vadd.f32 %v6207_v54, %v1995_v62  ;;  %v2005_v53 = vadd.f32 %v6207_v54, %v1996_v13  ;;  %v2006_v14 = vadd.f32 %v6207_v54, %v1997_v3 }
 0x201   : > { %v2007_v21 = vadd.f32 %v6207_v54, %v1998_v27  ;;  %v2008_v25 = vadd.f32 %v6207_v54, %v1999_v31  ;;  %v2009_v15 = vadd.f32 %v6207_v54, %v2000_v2  ;;  %v2010_v60 = vsub.f32 %v2002_v34, %v1958_v57 }
 0x202   : > { %v2011_v0 = vsub.f32 %v2003_v51, %v1959_v33  ;;  %v2012_v16 = vsub.f32 %v2004_v52, %v1960_v30  ;;  %v2013_v6 = vsub.f32 %v2005_v53, %v1961_v23  ;;  %v2014_v12 = vsub.f32 %v2006_v14, %v1962_v59 }
 0x203   : > { %v2015_v55 = vsub.f32 %v2007_v21, %v1963_v4  ;;  %v2016_v20 = vsub.f32 %v2008_v25, %v1964_v29  ;;  %v2017_v32 = vsub.f32 %v2009_v15, %v1965_v63  ;;  %v2019_v58 = vmul.f32 %v2010_v60, %v5216_v43 }
 0x204   : > { %v2020_v28 = vmul.f32 %v2011_v0, %v5220_v44  ;;  %v2021_v22 = vmul.f32 %v2012_v16, %v5224_v45  ;;  %v2022_v54 = vmul.f32 %v2013_v6, %v5228_v46  ;;  %v2023_v57 = vmul.f32 %v2014_v12, %v5232_v47 }
 0x205   : > { %v2024_v33 = vmul.f32 %v2015_v55, %v5236_v48  ;;  %v2025_v30 = vmul.f32 %v2016_v20, %v5240_v49  ;;  %v2026_v23 = vmul.f32 %v2017_v32, %v5244_v50  ;;  %v2027_v59 = vstv %s6225_s11  ;;  %s6443_s11 = sld [smem:[#allocation5 + $0x4f]] }
 0x206   : > { %v2053_v4 = vstv %s6227_s20  ;;  %v2079_v29 = vstv %s6229_s21  ;;  %v6261_v63 = vstv %s6235_s22  ;;  %v2028_v26 = vadd.f32 %v2027_v59, %v2019_v58  ;;  %s6445_s20 = sld [smem:[#allocation5 + $0x4e]] }
 0x207   : > { %v2029_v61 = vadd.f32 %v2027_v59, %v2020_v28  ;;  %v2030_v18 = vadd.f32 %v2027_v59, %v2021_v22  ;;  %v2031_v11 = vadd.f32 %v2027_v59, %v2022_v54  ;;  %v2032_v1 = vadd.f32 %v2027_v59, %v2023_v57  ;;  %s6451_s21 = sld [smem:[#allocation5 + $0x4d]] }
 0x208   : > { %v2033_v7 = vadd.f32 %v2027_v59, %v2024_v33  ;;  %v2034_v62 = vadd.f32 %v2027_v59, %v2025_v30  ;;  %v2035_v13 = vadd.f32 %v2027_v59, %v2026_v23  ;;  %v2036_v3 = vsub.f32 %v2028_v26, %v1984_v5  ;;  %s6495_s22 = sld [smem:[#allocation5 + $0x4c]] }
 0x209   : > { %v2037_v27 = vsub.f32 %v2029_v61, %v1985_v24  ;;  %v2038_v31 = vsub.f32 %v2030_v18, %v1986_v56  ;;  %v2039_v2 = vsub.f32 %v2031_v11, %v1987_v8  ;;  %v2040_v34 = vsub.f32 %v2032_v1, %v1988_v17 }
 0x20a   : > { %v2041_v51 = vsub.f32 %v2033_v7, %v1989_v19  ;;  %v2042_v52 = vsub.f32 %v2034_v62, %v1990_v9  ;;  %v2043_v53 = vsub.f32 %v2035_v13, %v1991_v10  ;;  %v2045_v14 = vmul.f32 %v2036_v3, %v5216_v43 }
 0x20b   : > { %v2046_v21 = vmul.f32 %v2037_v27, %v5220_v44  ;;  %v2047_v25 = vmul.f32 %v2038_v31, %v5224_v45  ;;  %v2048_v15 = vmul.f32 %v2039_v2, %v5228_v46  ;;  %v2049_v58 = vmul.f32 %v2040_v34, %v5232_v47 }
 0x20c   : > { %v2050_v28 = vmul.f32 %v2041_v51, %v5236_v48  ;;  %v2051_v5 = vmul.f32 %v2042_v52, %v5240_v49  ;;  %v2052_v24 = vmul.f32 %v2043_v53, %v5244_v50  ;;  %v2054_v56 = vadd.f32 %v2053_v4, %v2045_v14 }
 0x20d   : > { %v2055_v8 = vadd.f32 %v2053_v4, %v2046_v21  ;;  %v2056_v17 = vadd.f32 %v2053_v4, %v2047_v25  ;;  %v2057_v19 = vadd.f32 %v2053_v4, %v2048_v15  ;;  %v2058_v9 = vadd.f32 %v2053_v4, %v2049_v58 }
 0x20e   : > { %v2059_v10 = vadd.f32 %v2053_v4, %v2050_v28  ;;  %v2060_v22 = vadd.f32 %v2053_v4, %v2051_v5  ;;  %v2061_v54 = vadd.f32 %v2053_v4, %v2052_v24  ;;  %v2062_v57 = vsub.f32 %v2054_v56, %v2010_v60 }
 0x20f   : > { %v2063_v33 = vsub.f32 %v2055_v8, %v2011_v0  ;;  %v2064_v30 = vsub.f32 %v2056_v17, %v2012_v16  ;;  %v2065_v23 = vsub.f32 %v2057_v19, %v2013_v6  ;;  %v2066_v59 = vsub.f32 %v2058_v9, %v2014_v12 }
 0x210   : > { %v2067_v26 = vsub.f32 %v2059_v10, %v2015_v55  ;;  %v2068_v61 = vsub.f32 %v2060_v22, %v2016_v20  ;;  %v2069_v18 = vsub.f32 %v2061_v54, %v2017_v32  ;;  %v2071_v11 = vmul.f32 %v2062_v57, %v5216_v43 }
 0x211   : > { %v2072_v1 = vmul.f32 %v2063_v33, %v5220_v44  ;;  %v2073_v7 = vmul.f32 %v2064_v30, %v5224_v45  ;;  %v2074_v62 = vmul.f32 %v2065_v23, %v5228_v46  ;;  %v2075_v13 = vmul.f32 %v2066_v59, %v5232_v47 }
 0x212   : > { %v2076_v4 = vmul.f32 %v2067_v26, %v5236_v48  ;;  %v2077_v60 = vmul.f32 %v2068_v61, %v5240_v49  ;;  %v2078_v0 = vmul.f32 %v2069_v18, %v5244_v50  ;;  %v2080_v16 = vadd.f32 %v2079_v29, %v2071_v11 }
 0x213   : > { %v2081_v6 = vadd.f32 %v2079_v29, %v2072_v1  ;;  %v2082_v12 = vadd.f32 %v2079_v29, %v2073_v7  ;;  %v2083_v55 = vadd.f32 %v2079_v29, %v2074_v62  ;;  %v2084_v20 = vadd.f32 %v2079_v29, %v2075_v13 }
 0x214   : > { %v2085_v32 = vadd.f32 %v2079_v29, %v2076_v4  ;;  %v2086_v14 = vadd.f32 %v2079_v29, %v2077_v60  ;;  %v2087_v21 = vadd.f32 %v2079_v29, %v2078_v0  ;;  %v2088_v25 = vsub.f32 %v2080_v16, %v2036_v3 }
 0x215   : > { %v2089_v15 = vsub.f32 %v2081_v6, %v2037_v27  ;;  %v2090_v58 = vsub.f32 %v2082_v12, %v2038_v31  ;;  %v2091_v28 = vsub.f32 %v2083_v55, %v2039_v2  ;;  %v2092_v5 = vsub.f32 %v2084_v20, %v2040_v34 }
 0x216   : > { %v2093_v24 = vsub.f32 %v2085_v32, %v2041_v51  ;;  %v2094_v56 = vsub.f32 %v2086_v14, %v2042_v52  ;;  %v2095_v8 = vsub.f32 %v2087_v21, %v2043_v53  ;;  %v2097_v17 = vmul.f32 %v2088_v25, %v5216_v43 }
 0x217   : > { %v2098_v19 = vmul.f32 %v2089_v15, %v5220_v44  ;;  %v2099_v29 = vmul.f32 %v2090_v58, %v5224_v45  ;;  %v2100_v9 = vmul.f32 %v2091_v28, %v5228_v46  ;;  %v2101_v3 = vmul.f32 %v2092_v5, %v5232_v47 }
 0x218   : > { %v2102_v27 = vmul.f32 %v2093_v24, %v5236_v48  ;;  %v2103_v31 = vmul.f32 %v2094_v56, %v5240_v49  ;;  %v2104_v2 = vmul.f32 %v2095_v8, %v5244_v50  ;;  %v2106_v34 = vadd.f32 %v6261_v63, %v2097_v17 }
 0x219   : > { %v2107_v51 = vadd.f32 %v6261_v63, %v2098_v19  ;;  %v2108_v52 = vadd.f32 %v6261_v63, %v2099_v29  ;;  %v2109_v53 = vadd.f32 %v6261_v63, %v2100_v9  ;;  %v2110_v10 = vadd.f32 %v6261_v63, %v2101_v3 }
 0x21a   : > { %v2111_v22 = vadd.f32 %v6261_v63, %v2102_v27  ;;  %v2112_v54 = vadd.f32 %v6261_v63, %v2103_v31  ;;  %v2113_v11 = vadd.f32 %v6261_v63, %v2104_v2  ;;  %v2114_v1 = vsub.f32 %v2106_v34, %v2062_v57 }
 0x21b   : > { %v2115_v7 = vsub.f32 %v2107_v51, %v2063_v33  ;;  %v2116_v62 = vsub.f32 %v2108_v52, %v2064_v30  ;;  %v2117_v13 = vsub.f32 %v2109_v53, %v2065_v23  ;;  %v2118_v4 = vsub.f32 %v2110_v10, %v2066_v59 }
 0x21c   : > { %v2119_v60 = vsub.f32 %v2111_v22, %v2067_v26  ;;  %v2120_v0 = vsub.f32 %v2112_v54, %v2068_v61  ;;  %v2121_v16 = vsub.f32 %v2113_v11, %v2069_v18  ;;  %v2123_v6 = vmul.f32 %v2114_v1, %v5216_v43 }
 0x21d   : > { %v2124_v12 = vmul.f32 %v2115_v7, %v5220_v44  ;;  %v2125_v55 = vmul.f32 %v2116_v62, %v5224_v45  ;;  %v2126_v63 = vmul.f32 %v2117_v13, %v5228_v46  ;;  %v2127_v57 = vmul.f32 %v2118_v4, %v5232_v47 }
 0x21e   : > { %v2128_v33 = vmul.f32 %v2119_v60, %v5236_v48  ;;  %v2129_v30 = vmul.f32 %v2120_v0, %v5240_v49  ;;  %v2130_v23 = vmul.f32 %v2121_v16, %v5244_v50  ;;  %v2131_v59 = vstv %s6279_s23  ;;  %s6497_s23 = sld [smem:[#allocation5 + $0x4b]] }
 0x21f   : > { %v2157_v26 = vstv %s6281_s25  ;;  %v2183_v61 = vstv %s6283_s0  ;;  %v6315_v18 = vstv %s6289_s1  ;;  %v2132_v20 = vadd.f32 %v2131_v59, %v2123_v6  ;;  %s6499_s25 = sld [smem:[#allocation5 + $0x4a]] }
 0x220   : > { %v2133_v32 = vadd.f32 %v2131_v59, %v2124_v12  ;;  %v2134_v14 = vadd.f32 %v2131_v59, %v2125_v55  ;;  %v2135_v21 = vadd.f32 %v2131_v59, %v2126_v63  ;;  %v2136_v17 = vadd.f32 %v2131_v59, %v2127_v57  ;;  %s6505_s0 = sld [smem:[#allocation5 + $0x49]] }
 0x221   : > { %v2137_v19 = vadd.f32 %v2131_v59, %v2128_v33  ;;  %v2138_v29 = vadd.f32 %v2131_v59, %v2129_v30  ;;  %v2139_v9 = vadd.f32 %v2131_v59, %v2130_v23  ;;  %v2140_v3 = vsub.f32 %v2132_v20, %v2088_v25  ;;  %s6549_s1 = sld [smem:[#allocation5 + $0x48]] }
 0x222   : > { %v2141_v27 = vsub.f32 %v2133_v32, %v2089_v15  ;;  %v2142_v31 = vsub.f32 %v2134_v14, %v2090_v58  ;;  %v2143_v2 = vsub.f32 %v2135_v21, %v2091_v28  ;;  %v2144_v34 = vsub.f32 %v2136_v17, %v2092_v5 }
 0x223   : > { %v2145_v51 = vsub.f32 %v2137_v19, %v2093_v24  ;;  %v2146_v52 = vsub.f32 %v2138_v29, %v2094_v56  ;;  %v2147_v53 = vsub.f32 %v2139_v9, %v2095_v8  ;;  %v2149_v10 = vmul.f32 %v2140_v3, %v5216_v43 }
 0x224   : > { %v2150_v22 = vmul.f32 %v2141_v27, %v5220_v44  ;;  %v2151_v54 = vmul.f32 %v2142_v31, %v5224_v45  ;;  %v2152_v11 = vmul.f32 %v2143_v2, %v5228_v46  ;;  %v2153_v6 = vmul.f32 %v2144_v34, %v5232_v47 }
 0x225   : > { %v2154_v12 = vmul.f32 %v2145_v51, %v5236_v48  ;;  %v2155_v25 = vmul.f32 %v2146_v52, %v5240_v49  ;;  %v2156_v15 = vmul.f32 %v2147_v53, %v5244_v50  ;;  %v2158_v58 = vadd.f32 %v2157_v26, %v2149_v10 }
 0x226   : > { %v2159_v28 = vadd.f32 %v2157_v26, %v2150_v22  ;;  %v2160_v5 = vadd.f32 %v2157_v26, %v2151_v54  ;;  %v2161_v24 = vadd.f32 %v2157_v26, %v2152_v11  ;;  %v2162_v56 = vadd.f32 %v2157_v26, %v2153_v6 }
 0x227   : > { %v2163_v8 = vadd.f32 %v2157_v26, %v2154_v12  ;;  %v2164_v55 = vadd.f32 %v2157_v26, %v2155_v25  ;;  %v2165_v63 = vadd.f32 %v2157_v26, %v2156_v15  ;;  %v2166_v57 = vsub.f32 %v2158_v58, %v2114_v1 }
 0x228   : > { %v2167_v33 = vsub.f32 %v2159_v28, %v2115_v7  ;;  %v2168_v30 = vsub.f32 %v2160_v5, %v2116_v62  ;;  %v2169_v23 = vsub.f32 %v2161_v24, %v2117_v13  ;;  %v2170_v59 = vsub.f32 %v2162_v56, %v2118_v4 }
 0x229   : > { %v2171_v20 = vsub.f32 %v2163_v8, %v2119_v60  ;;  %v2172_v32 = vsub.f32 %v2164_v55, %v2120_v0  ;;  %v2173_v14 = vsub.f32 %v2165_v63, %v2121_v16  ;;  %v2175_v21 = vmul.f32 %v2166_v57, %v5216_v43 }
 0x22a   : > { %v2176_v17 = vmul.f32 %v2167_v33, %v5220_v44  ;;  %v2177_v19 = vmul.f32 %v2168_v30, %v5224_v45  ;;  %v2178_v29 = vmul.f32 %v2169_v23, %v5228_v46  ;;  %v2179_v9 = vmul.f32 %v2170_v59, %v5232_v47 }
 0x22b   : > { %v2180_v26 = vmul.f32 %v2171_v20, %v5236_v48  ;;  %v2181_v1 = vmul.f32 %v2172_v32, %v5240_v49  ;;  %v2182_v7 = vmul.f32 %v2173_v14, %v5244_v50  ;;  %v2184_v62 = vadd.f32 %v2183_v61, %v2175_v21 }
 0x22c   : > { %v2185_v13 = vadd.f32 %v2183_v61, %v2176_v17  ;;  %v2186_v4 = vadd.f32 %v2183_v61, %v2177_v19  ;;  %v2187_v60 = vadd.f32 %v2183_v61, %v2178_v29  ;;  %v2188_v0 = vadd.f32 %v2183_v61, %v2179_v9 }
 0x22d   : > { %v2189_v16 = vadd.f32 %v2183_v61, %v2180_v26  ;;  %v2190_v10 = vadd.f32 %v2183_v61, %v2181_v1  ;;  %v2191_v22 = vadd.f32 %v2183_v61, %v2182_v7  ;;  %v2192_v54 = vsub.f32 %v2184_v62, %v2140_v3 }
 0x22e   : > { %v2193_v11 = vsub.f32 %v2185_v13, %v2141_v27  ;;  %v2194_v6 = vsub.f32 %v2186_v4, %v2142_v31  ;;  %v2195_v12 = vsub.f32 %v2187_v60, %v2143_v2  ;;  %v2196_v25 = vsub.f32 %v2188_v0, %v2144_v34 }
 0x22f   : > { %v2197_v15 = vsub.f32 %v2189_v16, %v2145_v51  ;;  %v2198_v58 = vsub.f32 %v2190_v10, %v2146_v52  ;;  %v2199_v28 = vsub.f32 %v2191_v22, %v2147_v53  ;;  %v2201_v5 = vmul.f32 %v2192_v54, %v5216_v43 }
 0x230   : > { %v2202_v24 = vmul.f32 %v2193_v11, %v5220_v44  ;;  %v2203_v61 = vmul.f32 %v2194_v6, %v5224_v45  ;;  %v2204_v56 = vmul.f32 %v2195_v12, %v5228_v46  ;;  %v2205_v3 = vmul.f32 %v2196_v25, %v5232_v47 }
 0x231   : > { %v2206_v27 = vmul.f32 %v2197_v15, %v5236_v48  ;;  %v2207_v31 = vmul.f32 %v2198_v58, %v5240_v49  ;;  %v2208_v2 = vmul.f32 %v2199_v28, %v5244_v50  ;;  %v2210_v34 = vadd.f32 %v6315_v18, %v2201_v5 }
 0x232   : > { %v2211_v51 = vadd.f32 %v6315_v18, %v2202_v24  ;;  %v2212_v52 = vadd.f32 %v6315_v18, %v2203_v61  ;;  %v2213_v53 = vadd.f32 %v6315_v18, %v2204_v56  ;;  %v2214_v8 = vadd.f32 %v6315_v18, %v2205_v3 }
 0x233   : > { %v2215_v55 = vadd.f32 %v6315_v18, %v2206_v27  ;;  %v2216_v63 = vadd.f32 %v6315_v18, %v2207_v31  ;;  %v2217_v21 = vadd.f32 %v6315_v18, %v2208_v2  ;;  %v2218_v17 = vsub.f32 %v2210_v34, %v2166_v57 }
 0x234   : > { %v2219_v19 = vsub.f32 %v2211_v51, %v2167_v33  ;;  %v2220_v29 = vsub.f32 %v2212_v52, %v2168_v30  ;;  %v2221_v9 = vsub.f32 %v2213_v53, %v2169_v23  ;;  %v2222_v26 = vsub.f32 %v2214_v8, %v2170_v59 }
 0x235   : > { %v2223_v1 = vsub.f32 %v2215_v55, %v2171_v20  ;;  %v2224_v7 = vsub.f32 %v2216_v63, %v2172_v32  ;;  %v2225_v62 = vsub.f32 %v2217_v21, %v2173_v14  ;;  %v2227_v13 = vmul.f32 %v2218_v17, %v5216_v43 }
 0x236   : > { %v2228_v4 = vmul.f32 %v2219_v19, %v5220_v44  ;;  %v2229_v60 = vmul.f32 %v2220_v29, %v5224_v45  ;;  %v2230_v18 = vmul.f32 %v2221_v9, %v5228_v46  ;;  %v2231_v57 = vmul.f32 %v2222_v26, %v5232_v47 }
 0x237   : > { %v2232_v33 = vmul.f32 %v2223_v1, %v5236_v48  ;;  %v2233_v30 = vmul.f32 %v2224_v7, %v5240_v49  ;;  %v2234_v23 = vmul.f32 %v2225_v62, %v5244_v50  ;;  %v2235_v59 = vstv %s6333_s5  ;;  %s6551_s5 = sld [smem:[#allocation5 + $0x47]] }
 0x238   : > { %v2261_v20 = vstv %s6335_s6  ;;  %v2287_v32 = vstv %s6337_s8  ;;  %v6369_v14 = vstv %s6343_s10  ;;  %v2236_v0 = vadd.f32 %v2235_v59, %v2227_v13  ;;  %s6553_s6 = sld [smem:[#allocation5 + $0x46]] }
 0x239   : > { %v2237_v16 = vadd.f32 %v2235_v59, %v2228_v4  ;;  %v2238_v10 = vadd.f32 %v2235_v59, %v2229_v60  ;;  %v2239_v22 = vadd.f32 %v2235_v59, %v2230_v18  ;;  %v2240_v5 = vadd.f32 %v2235_v59, %v2231_v57  ;;  %s6559_s8 = sld [smem:[#allocation5 + $0x45]] }
 0x23a   : > { %v2241_v24 = vadd.f32 %v2235_v59, %v2232_v33  ;;  %v2242_v61 = vadd.f32 %v2235_v59, %v2233_v30  ;;  %v2243_v56 = vadd.f32 %v2235_v59, %v2234_v23  ;;  %v2244_v3 = vsub.f32 %v2236_v0, %v2192_v54  ;;  %s6603_s10 = sld [smem:[#allocation5 + $0x44]] }
 0x23b   : > { %v2245_v27 = vsub.f32 %v2237_v16, %v2193_v11  ;;  %v2246_v31 = vsub.f32 %v2238_v10, %v2194_v6  ;;  %v2247_v2 = vsub.f32 %v2239_v22, %v2195_v12  ;;  %v2248_v34 = vsub.f32 %v2240_v5, %v2196_v25 }
 0x23c   : > { %v2249_v51 = vsub.f32 %v2241_v24, %v2197_v15  ;;  %v2250_v52 = vsub.f32 %v2242_v61, %v2198_v58  ;;  %v2251_v53 = vsub.f32 %v2243_v56, %v2199_v28  ;;  %v2253_v8 = vmul.f32 %v2244_v3, %v5216_v43 }
 0x23d   : > { %v2254_v55 = vmul.f32 %v2245_v27, %v5220_v44  ;;  %v2255_v63 = vmul.f32 %v2246_v31, %v5224_v45  ;;  %v2256_v21 = vmul.f32 %v2247_v2, %v5228_v46  ;;  %v2257_v13 = vmul.f32 %v2248_v34, %v5232_v47 }
 0x23e   : > { %v2258_v4 = vmul.f32 %v2249_v51, %v5236_v48  ;;  %v2259_v54 = vmul.f32 %v2250_v52, %v5240_v49  ;;  %v2260_v11 = vmul.f32 %v2251_v53, %v5244_v50  ;;  %v2262_v6 = vadd.f32 %v2261_v20, %v2253_v8 }
 0x23f   : > { %v2263_v12 = vadd.f32 %v2261_v20, %v2254_v55  ;;  %v2264_v25 = vadd.f32 %v2261_v20, %v2255_v63  ;;  %v2265_v15 = vadd.f32 %v2261_v20, %v2256_v21  ;;  %v2266_v58 = vadd.f32 %v2261_v20, %v2257_v13 }
 0x240   : > { %v2267_v28 = vadd.f32 %v2261_v20, %v2258_v4  ;;  %v2268_v60 = vadd.f32 %v2261_v20, %v2259_v54  ;;  %v2269_v18 = vadd.f32 %v2261_v20, %v2260_v11  ;;  %v2270_v57 = vsub.f32 %v2262_v6, %v2218_v17 }
 0x241   : > { %v2271_v33 = vsub.f32 %v2263_v12, %v2219_v19  ;;  %v2272_v30 = vsub.f32 %v2264_v25, %v2220_v29  ;;  %v2273_v23 = vsub.f32 %v2265_v15, %v2221_v9  ;;  %v2274_v59 = vsub.f32 %v2266_v58, %v2222_v26 }
 0x242   : > { %v2275_v0 = vsub.f32 %v2267_v28, %v2223_v1  ;;  %v2276_v16 = vsub.f32 %v2268_v60, %v2224_v7  ;;  %v2277_v10 = vsub.f32 %v2269_v18, %v2225_v62  ;;  %v2279_v22 = vmul.f32 %v2270_v57, %v5216_v43 }
 0x243   : > { %v2280_v5 = vmul.f32 %v2271_v33, %v5220_v44  ;;  %v2281_v24 = vmul.f32 %v2272_v30, %v5224_v45  ;;  %v2282_v61 = vmul.f32 %v2273_v23, %v5228_v46  ;;  %v2283_v56 = vmul.f32 %v2274_v59, %v5232_v47 }
 0x244   : > { %v2284_v20 = vmul.f32 %v2275_v0, %v5236_v48  ;;  %v2285_v17 = vmul.f32 %v2276_v16, %v5240_v49  ;;  %v2286_v19 = vmul.f32 %v2277_v10, %v5244_v50  ;;  %v2288_v29 = vadd.f32 %v2287_v32, %v2279_v22 }
 0x245   : > { %v2289_v9 = vadd.f32 %v2287_v32, %v2280_v5  ;;  %v2290_v26 = vadd.f32 %v2287_v32, %v2281_v24  ;;  %v2291_v1 = vadd.f32 %v2287_v32, %v2282_v61  ;;  %v2292_v7 = vadd.f32 %v2287_v32, %v2283_v56 }
 0x246   : > { %v2293_v62 = vadd.f32 %v2287_v32, %v2284_v20  ;;  %v2294_v8 = vadd.f32 %v2287_v32, %v2285_v17  ;;  %v2295_v55 = vadd.f32 %v2287_v32, %v2286_v19  ;;  %v2296_v63 = vsub.f32 %v2288_v29, %v2244_v3 }
 0x247   : > { %v2297_v21 = vsub.f32 %v2289_v9, %v2245_v27  ;;  %v2298_v13 = vsub.f32 %v2290_v26, %v2246_v31  ;;  %v2299_v4 = vsub.f32 %v2291_v1, %v2247_v2  ;;  %v2300_v54 = vsub.f32 %v2292_v7, %v2248_v34 }
 0x248   : > { %v2301_v11 = vsub.f32 %v2293_v62, %v2249_v51  ;;  %v2302_v6 = vsub.f32 %v2294_v8, %v2250_v52  ;;  %v2303_v12 = vsub.f32 %v2295_v55, %v2251_v53  ;;  %v2305_v25 = vmul.f32 %v2296_v63, %v5216_v43 }
 0x249   : > { %v2306_v15 = vmul.f32 %v2297_v21, %v5220_v44  ;;  %v2307_v32 = vmul.f32 %v2298_v13, %v5224_v45  ;;  %v2308_v58 = vmul.f32 %v2299_v4, %v5228_v46  ;;  %v2309_v3 = vmul.f32 %v2300_v54, %v5232_v47 }
 0x24a   : > { %v2310_v27 = vmul.f32 %v2301_v11, %v5236_v48  ;;  %v2311_v31 = vmul.f32 %v2302_v6, %v5240_v49  ;;  %v2312_v2 = vmul.f32 %v2303_v12, %v5244_v50  ;;  %v2314_v34 = vadd.f32 %v6369_v14, %v2305_v25 }
 0x24b   : > { %v2315_v51 = vadd.f32 %v6369_v14, %v2306_v15  ;;  %v2316_v52 = vadd.f32 %v6369_v14, %v2307_v32  ;;  %v2317_v53 = vadd.f32 %v6369_v14, %v2308_v58  ;;  %v2318_v28 = vadd.f32 %v6369_v14, %v2309_v3 }
 0x24c   : > { %v2319_v60 = vadd.f32 %v6369_v14, %v2310_v27  ;;  %v2320_v18 = vadd.f32 %v6369_v14, %v2311_v31  ;;  %v2321_v22 = vadd.f32 %v6369_v14, %v2312_v2  ;;  %v2322_v5 = vsub.f32 %v2314_v34, %v2270_v57 }
 0x24d   : > { %v2323_v24 = vsub.f32 %v2315_v51, %v2271_v33  ;;  %v2324_v61 = vsub.f32 %v2316_v52, %v2272_v30  ;;  %v2325_v56 = vsub.f32 %v2317_v53, %v2273_v23  ;;  %v2326_v20 = vsub.f32 %v2318_v28, %v2274_v59 }
 0x24e   : > { %v2327_v17 = vsub.f32 %v2319_v60, %v2275_v0  ;;  %v2328_v19 = vsub.f32 %v2320_v18, %v2276_v16  ;;  %v2329_v29 = vsub.f32 %v2321_v22, %v2277_v10  ;;  %v2331_v9 = vmul.f32 %v2322_v5, %v5216_v43 }
 0x24f   : > { %v2332_v26 = vmul.f32 %v2323_v24, %v5220_v44  ;;  %v2333_v1 = vmul.f32 %v2324_v61, %v5224_v45  ;;  %v2334_v14 = vmul.f32 %v2325_v56, %v5228_v46  ;;  %v2335_v57 = vmul.f32 %v2326_v20, %v5232_v47 }
 0x250   : > { %v2336_v33 = vmul.f32 %v2327_v17, %v5236_v48  ;;  %v2337_v30 = vmul.f32 %v2328_v19, %v5240_v49  ;;  %v2338_v23 = vmul.f32 %v2329_v29, %v5244_v50  ;;  %v2339_v59 = vstv %s6387_s15  ;;  %s6605_s15 = sld [smem:[#allocation5 + $0x43]] }
 0x251   : > { %v2365_v0 = vstv %s6389_s16  ;;  %v2391_v16 = vstv %s6391_s17  ;;  %v6423_v10 = vstv %s6397_s18  ;;  %v2340_v7 = vadd.f32 %v2339_v59, %v2331_v9  ;;  %s6607_s16 = sld [smem:[#allocation5 + $0x42]] }
 0x252   : > { %v2341_v62 = vadd.f32 %v2339_v59, %v2332_v26  ;;  %v2342_v8 = vadd.f32 %v2339_v59, %v2333_v1  ;;  %v2343_v55 = vadd.f32 %v2339_v59, %v2334_v14  ;;  %v2344_v25 = vadd.f32 %v2339_v59, %v2335_v57  ;;  %s6613_s17 = sld [smem:[#allocation5 + $0x41]] }
 0x253   : > { %v2345_v15 = vadd.f32 %v2339_v59, %v2336_v33  ;;  %v2346_v32 = vadd.f32 %v2339_v59, %v2337_v30  ;;  %v2347_v58 = vadd.f32 %v2339_v59, %v2338_v23  ;;  %v2348_v3 = vsub.f32 %v2340_v7, %v2296_v63  ;;  %s6657_s18 = sld [smem:[#allocation5 + $0x40]] }
 0x254   : > { %v2349_v27 = vsub.f32 %v2341_v62, %v2297_v21  ;;  %v2350_v31 = vsub.f32 %v2342_v8, %v2298_v13  ;;  %v2351_v2 = vsub.f32 %v2343_v55, %v2299_v4  ;;  %v2352_v34 = vsub.f32 %v2344_v25, %v2300_v54 }
 0x255   : > { %v2353_v51 = vsub.f32 %v2345_v15, %v2301_v11  ;;  %v2354_v52 = vsub.f32 %v2346_v32, %v2302_v6  ;;  %v2355_v53 = vsub.f32 %v2347_v58, %v2303_v12  ;;  %v2357_v28 = vmul.f32 %v2348_v3, %v5216_v43 }
 0x256   : > { %v2358_v60 = vmul.f32 %v2349_v27, %v5220_v44  ;;  %v2359_v18 = vmul.f32 %v2350_v31, %v5224_v45  ;;  %v2360_v22 = vmul.f32 %v2351_v2, %v5228_v46  ;;  %v2361_v9 = vmul.f32 %v2352_v34, %v5232_v47 }
 0x257   : > { %v2362_v26 = vmul.f32 %v2353_v51, %v5236_v48  ;;  %v2363_v63 = vmul.f32 %v2354_v52, %v5240_v49  ;;  %v2364_v21 = vmul.f32 %v2355_v53, %v5244_v50  ;;  %v2366_v13 = vadd.f32 %v2365_v0, %v2357_v28 }
 0x258   : > { %v2367_v4 = vadd.f32 %v2365_v0, %v2358_v60  ;;  %v2368_v54 = vadd.f32 %v2365_v0, %v2359_v18  ;;  %v2369_v11 = vadd.f32 %v2365_v0, %v2360_v22  ;;  %v2370_v6 = vadd.f32 %v2365_v0, %v2361_v9 }
 0x259   : > { %v2371_v12 = vadd.f32 %v2365_v0, %v2362_v26  ;;  %v2372_v1 = vadd.f32 %v2365_v0, %v2363_v63  ;;  %v2373_v14 = vadd.f32 %v2365_v0, %v2364_v21  ;;  %v2374_v57 = vsub.f32 %v2366_v13, %v2322_v5 }
 0x25a   : > { %v2375_v33 = vsub.f32 %v2367_v4, %v2323_v24  ;;  %v2376_v30 = vsub.f32 %v2368_v54, %v2324_v61  ;;  %v2377_v23 = vsub.f32 %v2369_v11, %v2325_v56  ;;  %v2378_v59 = vsub.f32 %v2370_v6, %v2326_v20 }
 0x25b   : > { %v2379_v7 = vsub.f32 %v2371_v12, %v2327_v17  ;;  %v2380_v62 = vsub.f32 %v2372_v1, %v2328_v19  ;;  %v2381_v8 = vsub.f32 %v2373_v14, %v2329_v29  ;;  %v2383_v55 = vmul.f32 %v2374_v57, %v5216_v43 }
 0x25c   : > { %v2384_v25 = vmul.f32 %v2375_v33, %v5220_v44  ;;  %v2385_v15 = vmul.f32 %v2376_v30, %v5224_v45  ;;  %v2386_v32 = vmul.f32 %v2377_v23, %v5228_v46  ;;  %v2387_v58 = vmul.f32 %v2378_v59, %v5232_v47 }
 0x25d   : > { %v2388_v0 = vmul.f32 %v2379_v7, %v5236_v48  ;;  %v2389_v5 = vmul.f32 %v2380_v62, %v5240_v49  ;;  %v2390_v24 = vmul.f32 %v2381_v8, %v5244_v50  ;;  %v2392_v61 = vadd.f32 %v2391_v16, %v2383_v55 }
 0x25e   : > { %v2393_v56 = vadd.f32 %v2391_v16, %v2384_v25  ;;  %v2394_v20 = vadd.f32 %v2391_v16, %v2385_v15  ;;  %v2395_v17 = vadd.f32 %v2391_v16, %v2386_v32  ;;  %v2396_v19 = vadd.f32 %v2391_v16, %v2387_v58 }
 0x25f   : > { %v2397_v29 = vadd.f32 %v2391_v16, %v2388_v0  ;;  %v2398_v28 = vadd.f32 %v2391_v16, %v2389_v5  ;;  %v2399_v60 = vadd.f32 %v2391_v16, %v2390_v24  ;;  %v2400_v18 = vsub.f32 %v2392_v61, %v2348_v3 }
 0x260   : > { %v2401_v22 = vsub.f32 %v2393_v56, %v2349_v27  ;;  %v2402_v9 = vsub.f32 %v2394_v20, %v2350_v31  ;;  %v2403_v26 = vsub.f32 %v2395_v17, %v2351_v2  ;;  %v2404_v63 = vsub.f32 %v2396_v19, %v2352_v34 }
 0x261   : > { %v2405_v21 = vsub.f32 %v2397_v29, %v2353_v51  ;;  %v2406_v13 = vsub.f32 %v2398_v28, %v2354_v52  ;;  %v2407_v4 = vsub.f32 %v2399_v60, %v2355_v53  ;;  %v2409_v54 = vmul.f32 %v2400_v18, %v5216_v43 }
 0x262   : > { %v2410_v11 = vmul.f32 %v2401_v22, %v5220_v44  ;;  %v2411_v16 = vmul.f32 %v2402_v9, %v5224_v45  ;;  %v2412_v6 = vmul.f32 %v2403_v26, %v5228_v46  ;;  %v2413_v3 = vmul.f32 %v2404_v63, %v5232_v47 }
 0x263   : > { %v2414_v27 = vmul.f32 %v2405_v21, %v5236_v48  ;;  %v2415_v31 = vmul.f32 %v2406_v13, %v5240_v49  ;;  %v2416_v2 = vmul.f32 %v2407_v4, %v5244_v50  ;;  %v2418_v34 = vadd.f32 %v6423_v10, %v2409_v54 }
 0x264   : > { %v2419_v51 = vadd.f32 %v6423_v10, %v2410_v11  ;;  %v2420_v52 = vadd.f32 %v6423_v10, %v2411_v16  ;;  %v2421_v53 = vadd.f32 %v6423_v10, %v2412_v6  ;;  %v2422_v12 = vadd.f32 %v6423_v10, %v2413_v3 }
 0x265   : > { %v2423_v1 = vadd.f32 %v6423_v10, %v2414_v27  ;;  %v2424_v14 = vadd.f32 %v6423_v10, %v2415_v31  ;;  %v2425_v55 = vadd.f32 %v6423_v10, %v2416_v2  ;;  %v2426_v25 = vsub.f32 %v2418_v34, %v2374_v57 }
 0x266   : > { %v2427_v15 = vsub.f32 %v2419_v51, %v2375_v33  ;;  %v2428_v32 = vsub.f32 %v2420_v52, %v2376_v30  ;;  %v2429_v58 = vsub.f32 %v2421_v53, %v2377_v23  ;;  %v2430_v0 = vsub.f32 %v2422_v12, %v2378_v59 }
 0x267   : > { %v2431_v5 = vsub.f32 %v2423_v1, %v2379_v7  ;;  %v2432_v24 = vsub.f32 %v2424_v14, %v2380_v62  ;;  %v2433_v61 = vsub.f32 %v2425_v55, %v2381_v8  ;;  %v2435_v56 = vmul.f32 %v2426_v25, %v5216_v43 }
 0x268   : > { %v2436_v20 = vmul.f32 %v2427_v15, %v5220_v44  ;;  %v2437_v17 = vmul.f32 %v2428_v32, %v5224_v45  ;;  %v2438_v10 = vmul.f32 %v2429_v58, %v5228_v46  ;;  %v2439_v57 = vmul.f32 %v2430_v0, %v5232_v47 }
 0x269   : > { %v2440_v33 = vmul.f32 %v2431_v5, %v5236_v48  ;;  %v2441_v30 = vmul.f32 %v2432_v24, %v5240_v49  ;;  %v2442_v23 = vmul.f32 %v2433_v61, %v5244_v50  ;;  %v2443_v59 = vstv %s6441_s19  ;;  %s6659_s19 = sld [smem:[#allocation5 + $0x3f]] }
 0x26a   : > { %v2469_v7 = vstv %s6443_s11  ;;  %v2495_v62 = vstv %s6445_s20  ;;  %v6477_v8 = vstv %s6451_s21  ;;  %v2444_v19 = vadd.f32 %v2443_v59, %v2435_v56  ;;  %s6661_s11 = sld [smem:[#allocation5 + $0x3e]] }
 0x26b   : > { %v2445_v29 = vadd.f32 %v2443_v59, %v2436_v20  ;;  %v2446_v28 = vadd.f32 %v2443_v59, %v2437_v17  ;;  %v2447_v60 = vadd.f32 %v2443_v59, %v2438_v10  ;;  %v2448_v54 = vadd.f32 %v2443_v59, %v2439_v57  ;;  %s6667_s20 = sld [smem:[#allocation5 + $0x3d]] }
 0x26c   : > { %v2449_v11 = vadd.f32 %v2443_v59, %v2440_v33  ;;  %v2450_v16 = vadd.f32 %v2443_v59, %v2441_v30  ;;  %v2451_v6 = vadd.f32 %v2443_v59, %v2442_v23  ;;  %v2452_v3 = vsub.f32 %v2444_v19, %v2400_v18  ;;  %s6711_s21 = sld [smem:[#allocation5 + $0x3c]] }
 0x26d   : > { %v2453_v27 = vsub.f32 %v2445_v29, %v2401_v22  ;;  %v2454_v31 = vsub.f32 %v2446_v28, %v2402_v9  ;;  %v2455_v2 = vsub.f32 %v2447_v60, %v2403_v26  ;;  %v2456_v34 = vsub.f32 %v2448_v54, %v2404_v63 }
 0x26e   : > { %v2457_v51 = vsub.f32 %v2449_v11, %v2405_v21  ;;  %v2458_v52 = vsub.f32 %v2450_v16, %v2406_v13  ;;  %v2459_v53 = vsub.f32 %v2451_v6, %v2407_v4  ;;  %v2461_v12 = vmul.f32 %v2452_v3, %v5216_v43 }
 0x26f   : > { %v2462_v1 = vmul.f32 %v2453_v27, %v5220_v44  ;;  %v2463_v14 = vmul.f32 %v2454_v31, %v5224_v45  ;;  %v2464_v55 = vmul.f32 %v2455_v2, %v5228_v46  ;;  %v2465_v56 = vmul.f32 %v2456_v34, %v5232_v47 }
 0x270   : > { %v2466_v20 = vmul.f32 %v2457_v51, %v5236_v48  ;;  %v2467_v18 = vmul.f32 %v2458_v52, %v5240_v49  ;;  %v2468_v22 = vmul.f32 %v2459_v53, %v5244_v50  ;;  %v2470_v9 = vadd.f32 %v2469_v7, %v2461_v12 }
 0x271   : > { %v2471_v26 = vadd.f32 %v2469_v7, %v2462_v1  ;;  %v2472_v63 = vadd.f32 %v2469_v7, %v2463_v14  ;;  %v2473_v21 = vadd.f32 %v2469_v7, %v2464_v55  ;;  %v2474_v13 = vadd.f32 %v2469_v7, %v2465_v56 }
 0x272   : > { %v2475_v4 = vadd.f32 %v2469_v7, %v2466_v20  ;;  %v2476_v17 = vadd.f32 %v2469_v7, %v2467_v18  ;;  %v2477_v10 = vadd.f32 %v2469_v7, %v2468_v22  ;;  %v2478_v57 = vsub.f32 %v2470_v9, %v2426_v25 }
 0x273   : > { %v2479_v33 = vsub.f32 %v2471_v26, %v2427_v15  ;;  %v2480_v30 = vsub.f32 %v2472_v63, %v2428_v32  ;;  %v2481_v23 = vsub.f32 %v2473_v21, %v2429_v58  ;;  %v2482_v59 = vsub.f32 %v2474_v13, %v2430_v0 }
 0x274   : > { %v2483_v19 = vsub.f32 %v2475_v4, %v2431_v5  ;;  %v2484_v29 = vsub.f32 %v2476_v17, %v2432_v24  ;;  %v2485_v28 = vsub.f32 %v2477_v10, %v2433_v61  ;;  %v2487_v60 = vmul.f32 %v2478_v57, %v5216_v43 }
 0x275   : > { %v2488_v54 = vmul.f32 %v2479_v33, %v5220_v44  ;;  %v2489_v11 = vmul.f32 %v2480_v30, %v5224_v45  ;;  %v2490_v16 = vmul.f32 %v2481_v23, %v5228_v46  ;;  %v2491_v6 = vmul.f32 %v2482_v59, %v5232_v47 }
 0x276   : > { %v2492_v7 = vmul.f32 %v2483_v19, %v5236_v48  ;;  %v2493_v25 = vmul.f32 %v2484_v29, %v5240_v49  ;;  %v2494_v15 = vmul.f32 %v2485_v28, %v5244_v50  ;;  %v2496_v32 = vadd.f32 %v2495_v62, %v2487_v60 }
 0x277   : > { %v2497_v58 = vadd.f32 %v2495_v62, %v2488_v54  ;;  %v2498_v0 = vadd.f32 %v2495_v62, %v2489_v11  ;;  %v2499_v5 = vadd.f32 %v2495_v62, %v2490_v16  ;;  %v2500_v24 = vadd.f32 %v2495_v62, %v2491_v6 }
 0x278   : > { %v2501_v61 = vadd.f32 %v2495_v62, %v2492_v7  ;;  %v2502_v12 = vadd.f32 %v2495_v62, %v2493_v25  ;;  %v2503_v1 = vadd.f32 %v2495_v62, %v2494_v15  ;;  %v2504_v14 = vsub.f32 %v2496_v32, %v2452_v3 }
 0x279   : > { %v2505_v55 = vsub.f32 %v2497_v58, %v2453_v27  ;;  %v2506_v56 = vsub.f32 %v2498_v0, %v2454_v31  ;;  %v2507_v20 = vsub.f32 %v2499_v5, %v2455_v2  ;;  %v2508_v18 = vsub.f32 %v2500_v24, %v2456_v34 }
 0x27a   : > { %v2509_v22 = vsub.f32 %v2501_v61, %v2457_v51  ;;  %v2510_v9 = vsub.f32 %v2502_v12, %v2458_v52  ;;  %v2511_v26 = vsub.f32 %v2503_v1, %v2459_v53  ;;  %v2513_v63 = vmul.f32 %v2504_v14, %v5216_v43 }
 0x27b   : > { %v2514_v21 = vmul.f32 %v2505_v55, %v5220_v44  ;;  %v2515_v62 = vmul.f32 %v2506_v56, %v5224_v45  ;;  %v2516_v13 = vmul.f32 %v2507_v20, %v5228_v46  ;;  %v2517_v3 = vmul.f32 %v2508_v18, %v5232_v47 }
 0x27c   : > { %v2518_v27 = vmul.f32 %v2509_v22, %v5236_v48  ;;  %v2519_v31 = vmul.f32 %v2510_v9, %v5240_v49  ;;  %v2520_v2 = vmul.f32 %v2511_v26, %v5244_v50  ;;  %v2522_v34 = vadd.f32 %v6477_v8, %v2513_v63 }
 0x27d   : > { %v2523_v51 = vadd.f32 %v6477_v8, %v2514_v21  ;;  %v2524_v52 = vadd.f32 %v6477_v8, %v2515_v62  ;;  %v2525_v53 = vadd.f32 %v6477_v8, %v2516_v13  ;;  %v2526_v4 = vadd.f32 %v6477_v8, %v2517_v3 }
 0x27e   : > { %v2527_v17 = vadd.f32 %v6477_v8, %v2518_v27  ;;  %v2528_v10 = vadd.f32 %v6477_v8, %v2519_v31  ;;  %v2529_v60 = vadd.f32 %v6477_v8, %v2520_v2  ;;  %v2530_v54 = vsub.f32 %v2522_v34, %v2478_v57 }
 0x27f   : > { %v2531_v11 = vsub.f32 %v2523_v51, %v2479_v33  ;;  %v2532_v16 = vsub.f32 %v2524_v52, %v2480_v30  ;;  %v2533_v6 = vsub.f32 %v2525_v53, %v2481_v23  ;;  %v2534_v7 = vsub.f32 %v2526_v4, %v2482_v59 }
 0x280   : > { %v2535_v25 = vsub.f32 %v2527_v17, %v2483_v19  ;;  %v2536_v15 = vsub.f32 %v2528_v10, %v2484_v29  ;;  %v2537_v32 = vsub.f32 %v2529_v60, %v2485_v28  ;;  %v2539_v58 = vmul.f32 %v2530_v54, %v5216_v43 }
 0x281   : > { %v2540_v0 = vmul.f32 %v2531_v11, %v5220_v44  ;;  %v2541_v5 = vmul.f32 %v2532_v16, %v5224_v45  ;;  %v2542_v8 = vmul.f32 %v2533_v6, %v5228_v46  ;;  %v2543_v57 = vmul.f32 %v2534_v7, %v5232_v47 }
 0x282   : > { %v2544_v33 = vmul.f32 %v2535_v25, %v5236_v48  ;;  %v2545_v30 = vmul.f32 %v2536_v15, %v5240_v49  ;;  %v2546_v23 = vmul.f32 %v2537_v32, %v5244_v50  ;;  %v2547_v59 = vstv %s6495_s22  ;;  %s6713_s22 = sld [smem:[#allocation5 + $0x3b]] }
 0x283   : > { %v2573_v19 = vstv %s6497_s23  ;;  %v2599_v29 = vstv %s6499_s25  ;;  %v6531_v28 = vstv %s6505_s0  ;;  %v2548_v24 = vadd.f32 %v2547_v59, %v2539_v58  ;;  %s6715_s23 = sld [smem:[#allocation5 + $0x3a]] }
 0x284   : > { %v2549_v61 = vadd.f32 %v2547_v59, %v2540_v0  ;;  %v2550_v12 = vadd.f32 %v2547_v59, %v2541_v5  ;;  %v2551_v1 = vadd.f32 %v2547_v59, %v2542_v8  ;;  %v2552_v63 = vadd.f32 %v2547_v59, %v2543_v57  ;;  %s6721_s25 = sld [smem:[#allocation5 + $0x39]] }
 0x285   : > { %v2553_v21 = vadd.f32 %v2547_v59, %v2544_v33  ;;  %v2554_v62 = vadd.f32 %v2547_v59, %v2545_v30  ;;  %v2555_v13 = vadd.f32 %v2547_v59, %v2546_v23  ;;  %v2556_v3 = vsub.f32 %v2548_v24, %v2504_v14  ;;  %s6765_s0 = sld [smem:[#allocation5 + $0xa7]] }
 0x286   : > { %v2557_v27 = vsub.f32 %v2549_v61, %v2505_v55  ;;  %v2558_v31 = vsub.f32 %v2550_v12, %v2506_v56  ;;  %v2559_v2 = vsub.f32 %v2551_v1, %v2507_v20  ;;  %v2560_v34 = vsub.f32 %v2552_v63, %v2508_v18 }
 0x287   : > { %v2561_v51 = vsub.f32 %v2553_v21, %v2509_v22  ;;  %v2562_v52 = vsub.f32 %v2554_v62, %v2510_v9  ;;  %v2563_v53 = vsub.f32 %v2555_v13, %v2511_v26  ;;  %v2565_v4 = vmul.f32 %v2556_v3, %v5216_v43 }
 0x288   : > { %v2566_v17 = vmul.f32 %v2557_v27, %v5220_v44  ;;  %v2567_v10 = vmul.f32 %v2558_v31, %v5224_v45  ;;  %v2568_v60 = vmul.f32 %v2559_v2, %v5228_v46  ;;  %v2569_v58 = vmul.f32 %v2560_v34, %v5232_v47 }
 0x289   : > { %v2570_v0 = vmul.f32 %v2561_v51, %v5236_v48  ;;  %v2571_v14 = vmul.f32 %v2562_v52, %v5240_v49  ;;  %v2572_v55 = vmul.f32 %v2563_v53, %v5244_v50  ;;  %v2574_v56 = vadd.f32 %v2573_v19, %v2565_v4 }
 0x28a   : > { %v2575_v20 = vadd.f32 %v2573_v19, %v2566_v17  ;;  %v2576_v18 = vadd.f32 %v2573_v19, %v2567_v10  ;;  %v2577_v22 = vadd.f32 %v2573_v19, %v2568_v60  ;;  %v2578_v9 = vadd.f32 %v2573_v19, %v2569_v58 }
 0x28b   : > { %v2579_v26 = vadd.f32 %v2573_v19, %v2570_v0  ;;  %v2580_v5 = vadd.f32 %v2573_v19, %v2571_v14  ;;  %v2581_v8 = vadd.f32 %v2573_v19, %v2572_v55  ;;  %v2582_v57 = vsub.f32 %v2574_v56, %v2530_v54 }
 0x28c   : > { %v2583_v33 = vsub.f32 %v2575_v20, %v2531_v11  ;;  %v2584_v30 = vsub.f32 %v2576_v18, %v2532_v16  ;;  %v2585_v23 = vsub.f32 %v2577_v22, %v2533_v6  ;;  %v2586_v59 = vsub.f32 %v2578_v9, %v2534_v7 }
 0x28d   : > { %v2587_v24 = vsub.f32 %v2579_v26, %v2535_v25  ;;  %v2588_v61 = vsub.f32 %v2580_v5, %v2536_v15  ;;  %v2589_v12 = vsub.f32 %v2581_v8, %v2537_v32  ;;  %v2591_v1 = vmul.f32 %v2582_v57, %v5216_v43 }
 0x28e   : > { %v2592_v63 = vmul.f32 %v2583_v33, %v5220_v44  ;;  %v2593_v21 = vmul.f32 %v2584_v30, %v5224_v45  ;;  %v2594_v62 = vmul.f32 %v2585_v23, %v5228_v46  ;;  %v2595_v13 = vmul.f32 %v2586_v59, %v5232_v47 }
 0x28f   : > { %v2596_v19 = vmul.f32 %v2587_v24, %v5236_v48  ;;  %v2597_v54 = vmul.f32 %v2588_v61, %v5240_v49  ;;  %v2598_v11 = vmul.f32 %v2589_v12, %v5244_v50  ;;  %v2600_v16 = vadd.f32 %v2599_v29, %v2591_v1 }
 0x290   : > { %v2601_v6 = vadd.f32 %v2599_v29, %v2592_v63  ;;  %v2602_v7 = vadd.f32 %v2599_v29, %v2593_v21  ;;  %v2603_v25 = vadd.f32 %v2599_v29, %v2594_v62  ;;  %v2604_v15 = vadd.f32 %v2599_v29, %v2595_v13 }
 0x291   : > { %v2605_v32 = vadd.f32 %v2599_v29, %v2596_v19  ;;  %v2606_v4 = vadd.f32 %v2599_v29, %v2597_v54  ;;  %v2607_v17 = vadd.f32 %v2599_v29, %v2598_v11  ;;  %v2608_v10 = vsub.f32 %v2600_v16, %v2556_v3 }
 0x292   : > { %v2609_v60 = vsub.f32 %v2601_v6, %v2557_v27  ;;  %v2610_v58 = vsub.f32 %v2602_v7, %v2558_v31  ;;  %v2611_v0 = vsub.f32 %v2603_v25, %v2559_v2  ;;  %v2612_v14 = vsub.f32 %v2604_v15, %v2560_v34 }
 0x293   : > { %v2613_v55 = vsub.f32 %v2605_v32, %v2561_v51  ;;  %v2614_v56 = vsub.f32 %v2606_v4, %v2562_v52  ;;  %v2615_v20 = vsub.f32 %v2607_v17, %v2563_v53  ;;  %v2617_v18 = vmul.f32 %v2608_v10, %v5216_v43 }
 0x294   : > { %v2618_v22 = vmul.f32 %v2609_v60, %v5220_v44  ;;  %v2619_v29 = vmul.f32 %v2610_v58, %v5224_v45  ;;  %v2620_v9 = vmul.f32 %v2611_v0, %v5228_v46  ;;  %v2621_v3 = vmul.f32 %v2612_v14, %v5232_v47 }
 0x295   : > { %v2622_v27 = vmul.f32 %v2613_v55, %v5236_v48  ;;  %v2623_v31 = vmul.f32 %v2614_v56, %v5240_v49  ;;  %v2624_v2 = vmul.f32 %v2615_v20, %v5244_v50  ;;  %v2626_v34 = vadd.f32 %v6531_v28, %v2617_v18 }
 0x296   : > { %v2627_v51 = vadd.f32 %v6531_v28, %v2618_v22  ;;  %v2628_v52 = vadd.f32 %v6531_v28, %v2619_v29  ;;  %v2629_v53 = vadd.f32 %v6531_v28, %v2620_v9  ;;  %v2630_v26 = vadd.f32 %v6531_v28, %v2621_v3 }
 0x297   : > { %v2631_v5 = vadd.f32 %v6531_v28, %v2622_v27  ;;  %v2632_v8 = vadd.f32 %v6531_v28, %v2623_v31  ;;  %v2633_v1 = vadd.f32 %v6531_v28, %v2624_v2  ;;  %v2634_v63 = vsub.f32 %v2626_v34, %v2582_v57 }
 0x298   : > { %v2635_v21 = vsub.f32 %v2627_v51, %v2583_v33  ;;  %v2636_v62 = vsub.f32 %v2628_v52, %v2584_v30  ;;  %v2637_v13 = vsub.f32 %v2629_v53, %v2585_v23  ;;  %v2638_v19 = vsub.f32 %v2630_v26, %v2586_v59 }
 0x299   : > { %v2639_v54 = vsub.f32 %v2631_v5, %v2587_v24  ;;  %v2640_v11 = vsub.f32 %v2632_v8, %v2588_v61  ;;  %v2641_v16 = vsub.f32 %v2633_v1, %v2589_v12  ;;  %v2643_v6 = vmul.f32 %v2634_v63, %v5216_v43 }
 0x29a   : > { %v2644_v7 = vmul.f32 %v2635_v21, %v5220_v44  ;;  %v2645_v25 = vmul.f32 %v2636_v62, %v5224_v45  ;;  %v2646_v28 = vmul.f32 %v2637_v13, %v5228_v46  ;;  %v2647_v57 = vmul.f32 %v2638_v19, %v5232_v47 }
 0x29b   : > { %v2648_v33 = vmul.f32 %v2639_v54, %v5236_v48  ;;  %v2649_v30 = vmul.f32 %v2640_v11, %v5240_v49  ;;  %v2650_v23 = vmul.f32 %v2641_v16, %v5244_v50  ;;  %v2651_v59 = vstv %s6549_s1  ;;  %s6775_s1 = sld [smem:[#allocation5 + $0x38]] }
 0x29c   : > { %v2677_v24 = vstv %s6551_s5  ;;  %v2703_v61 = vstv %s6553_s6  ;;  %v6585_v12 = vstv %s6559_s8  ;;  %v2652_v15 = vadd.f32 %v2651_v59, %v2643_v6  ;;  %s6785_s5 = sld [smem:[#allocation5 + $0xa6]] }
 0x29d   : > { %v2653_v32 = vadd.f32 %v2651_v59, %v2644_v7  ;;  %v2654_v4 = vadd.f32 %v2651_v59, %v2645_v25  ;;  %v2655_v17 = vadd.f32 %v2651_v59, %v2646_v28  ;;  %v2656_v18 = vadd.f32 %v2651_v59, %v2647_v57  ;;  %s6795_s6 = sld [smem:[#allocation5 + $0xa5]] }
 0x29e   : > { %v2657_v22 = vadd.f32 %v2651_v59, %v2648_v33  ;;  %v2658_v29 = vadd.f32 %v2651_v59, %v2649_v30  ;;  %v2659_v9 = vadd.f32 %v2651_v59, %v2650_v23  ;;  %v2660_v3 = vsub.f32 %v2652_v15, %v2608_v10  ;;  %s6859_s8 = sld [smem:[#allocation5 + $0xa4]] }
 0x29f   : > { %v2661_v27 = vsub.f32 %v2653_v32, %v2609_v60  ;;  %v2662_v31 = vsub.f32 %v2654_v4, %v2610_v58  ;;  %v2663_v2 = vsub.f32 %v2655_v17, %v2611_v0  ;;  %v2664_v34 = vsub.f32 %v2656_v18, %v2612_v14 }
 0x2a0   : > { %v2665_v51 = vsub.f32 %v2657_v22, %v2613_v55  ;;  %v2666_v52 = vsub.f32 %v2658_v29, %v2614_v56  ;;  %v2667_v53 = vsub.f32 %v2659_v9, %v2615_v20  ;;  %v2669_v26 = vmul.f32 %v2660_v3, %v5216_v43 }
 0x2a1   : > { %v2670_v5 = vmul.f32 %v2661_v27, %v5220_v44  ;;  %v2671_v8 = vmul.f32 %v2662_v31, %v5224_v45  ;;  %v2672_v1 = vmul.f32 %v2663_v2, %v5228_v46  ;;  %v2673_v6 = vmul.f32 %v2664_v34, %v5232_v47 }
 0x2a2   : > { %v2674_v7 = vmul.f32 %v2665_v51, %v5236_v48  ;;  %v2675_v10 = vmul.f32 %v2666_v52, %v5240_v49  ;;  %v2676_v60 = vmul.f32 %v2667_v53, %v5244_v50  ;;  %v2678_v58 = vadd.f32 %v2677_v24, %v2669_v26 }
 0x2a3   : > { %v2679_v0 = vadd.f32 %v2677_v24, %v2670_v5  ;;  %v2680_v14 = vadd.f32 %v2677_v24, %v2671_v8  ;;  %v2681_v55 = vadd.f32 %v2677_v24, %v2672_v1  ;;  %v2682_v56 = vadd.f32 %v2677_v24, %v2673_v6 }
 0x2a4   : > { %v2683_v20 = vadd.f32 %v2677_v24, %v2674_v7  ;;  %v2684_v25 = vadd.f32 %v2677_v24, %v2675_v10  ;;  %v2685_v28 = vadd.f32 %v2677_v24, %v2676_v60  ;;  %v2686_v57 = vsub.f32 %v2678_v58, %v2634_v63 }
 0x2a5   : > { %v2687_v33 = vsub.f32 %v2679_v0, %v2635_v21  ;;  %v2688_v30 = vsub.f32 %v2680_v14, %v2636_v62  ;;  %v2689_v23 = vsub.f32 %v2681_v55, %v2637_v13  ;;  %v2690_v59 = vsub.f32 %v2682_v56, %v2638_v19 }
 0x2a6   : > { %v2691_v15 = vsub.f32 %v2683_v20, %v2639_v54  ;;  %v2692_v32 = vsub.f32 %v2684_v25, %v2640_v11  ;;  %v2693_v4 = vsub.f32 %v2685_v28, %v2641_v16  ;;  %v2695_v17 = vmul.f32 %v2686_v57, %v5216_v43 }
 0x2a7   : > { %v2696_v18 = vmul.f32 %v2687_v33, %v5220_v44  ;;  %v2697_v22 = vmul.f32 %v2688_v30, %v5224_v45  ;;  %v2698_v29 = vmul.f32 %v2689_v23, %v5228_v46  ;;  %v2699_v9 = vmul.f32 %v2690_v59, %v5232_v47 }
 0x2a8   : > { %v2700_v24 = vmul.f32 %v2691_v15, %v5236_v48  ;;  %v2701_v63 = vmul.f32 %v2692_v32, %v5240_v49  ;;  %v2702_v21 = vmul.f32 %v2693_v4, %v5244_v50  ;;  %v2704_v62 = vadd.f32 %v2703_v61, %v2695_v17 }
 0x2a9   : > { %v2705_v13 = vadd.f32 %v2703_v61, %v2696_v18  ;;  %v2706_v19 = vadd.f32 %v2703_v61, %v2697_v22  ;;  %v2707_v54 = vadd.f32 %v2703_v61, %v2698_v29  ;;  %v2708_v11 = vadd.f32 %v2703_v61, %v2699_v9 }
 0x2aa   : > { %v2709_v16 = vadd.f32 %v2703_v61, %v2700_v24  ;;  %v2710_v26 = vadd.f32 %v2703_v61, %v2701_v63  ;;  %v2711_v5 = vadd.f32 %v2703_v61, %v2702_v21  ;;  %v2712_v8 = vsub.f32 %v2704_v62, %v2660_v3 }
 0x2ab   : > { %v2713_v1 = vsub.f32 %v2705_v13, %v2661_v27  ;;  %v2714_v6 = vsub.f32 %v2706_v19, %v2662_v31  ;;  %v2715_v7 = vsub.f32 %v2707_v54, %v2663_v2  ;;  %v2716_v10 = vsub.f32 %v2708_v11, %v2664_v34 }
 0x2ac   : > { %v2717_v60 = vsub.f32 %v2709_v16, %v2665_v51  ;;  %v2718_v58 = vsub.f32 %v2710_v26, %v2666_v52  ;;  %v2719_v0 = vsub.f32 %v2711_v5, %v2667_v53  ;;  %v2721_v14 = vmul.f32 %v2712_v8, %v5216_v43 }
 0x2ad   : > { %v2722_v55 = vmul.f32 %v2713_v1, %v5220_v44  ;;  %v2723_v61 = vmul.f32 %v2714_v6, %v5224_v45  ;;  %v2724_v56 = vmul.f32 %v2715_v7, %v5228_v46  ;;  %v2725_v3 = vmul.f32 %v2716_v10, %v5232_v47 }
 0x2ae   : > { %v2726_v27 = vmul.f32 %v2717_v60, %v5236_v48  ;;  %v2727_v31 = vmul.f32 %v2718_v58, %v5240_v49  ;;  %v2728_v2 = vmul.f32 %v2719_v0, %v5244_v50  ;;  %v2730_v34 = vadd.f32 %v6585_v12, %v2721_v14 }
 0x2af   : > { %v2731_v51 = vadd.f32 %v6585_v12, %v2722_v55  ;;  %v2732_v52 = vadd.f32 %v6585_v12, %v2723_v61  ;;  %v2733_v53 = vadd.f32 %v6585_v12, %v2724_v56  ;;  %v2734_v20 = vadd.f32 %v6585_v12, %v2725_v3 }
 0x2b0   : > { %v2735_v25 = vadd.f32 %v6585_v12, %v2726_v27  ;;  %v2736_v28 = vadd.f32 %v6585_v12, %v2727_v31  ;;  %v2737_v17 = vadd.f32 %v6585_v12, %v2728_v2  ;;  %v2738_v18 = vsub.f32 %v2730_v34, %v2686_v57 }
 0x2b1   : > { %v2739_v22 = vsub.f32 %v2731_v51, %v2687_v33  ;;  %v2740_v29 = vsub.f32 %v2732_v52, %v2688_v30  ;;  %v2741_v9 = vsub.f32 %v2733_v53, %v2689_v23  ;;  %v2742_v24 = vsub.f32 %v2734_v20, %v2690_v59 }
 0x2b2   : > { %v2743_v63 = vsub.f32 %v2735_v25, %v2691_v15  ;;  %v2744_v21 = vsub.f32 %v2736_v28, %v2692_v32  ;;  %v2745_v62 = vsub.f32 %v2737_v17, %v2693_v4  ;;  %v2747_v13 = vmul.f32 %v2738_v18, %v5216_v43 }
 0x2b3   : > { %v2748_v19 = vmul.f32 %v2739_v22, %v5220_v44  ;;  %v2749_v54 = vmul.f32 %v2740_v29, %v5224_v45  ;;  %v2750_v12 = vmul.f32 %v2741_v9, %v5228_v46  ;;  %v2751_v57 = vmul.f32 %v2742_v24, %v5232_v47 }
 0x2b4   : > { %v2752_v33 = vmul.f32 %v2743_v63, %v5236_v48  ;;  %v2753_v30 = vmul.f32 %v2744_v21, %v5240_v49  ;;  %v2754_v23 = vmul.f32 %v2745_v62, %v5244_v50  ;;  %v2755_v59 = vstv %s6603_s10  ;;  %s6861_s10 = sld [smem:[#allocation5 + $0xa3]] }
 0x2b5   : > { %v2781_v15 = vstv %s6605_s15  ;;  %v2807_v32 = vstv %s6607_s16  ;;  %v6639_v4 = vstv %s6613_s17  ;;  %v2756_v11 = vadd.f32 %v2755_v59, %v2747_v13  ;;  %s6863_s15 = sld [smem:[#allocation5 + $0xa2]] }
 0x2b6   : > { %v2757_v16 = vadd.f32 %v2755_v59, %v2748_v19  ;;  %v2758_v26 = vadd.f32 %v2755_v59, %v2749_v54  ;;  %v2759_v5 = vadd.f32 %v2755_v59, %v2750_v12  ;;  %v2760_v14 = vadd.f32 %v2755_v59, %v2751_v57  ;;  %s6869_s16 = sld [smem:[#allocation5 + $0xa1]] }
 0x2b7   : > { %v2761_v55 = vadd.f32 %v2755_v59, %v2752_v33  ;;  %v2762_v61 = vadd.f32 %v2755_v59, %v2753_v30  ;;  %v2763_v56 = vadd.f32 %v2755_v59, %v2754_v23  ;;  %v2764_v3 = vsub.f32 %v2756_v11, %v2712_v8  ;;  %s6913_s17 = sld [smem:[#allocation5 + $0xa0]] }
 0x2b8   : > { %v2765_v27 = vsub.f32 %v2757_v16, %v2713_v1  ;;  %v2766_v31 = vsub.f32 %v2758_v26, %v2714_v6  ;;  %v2767_v2 = vsub.f32 %v2759_v5, %v2715_v7  ;;  %v2768_v34 = vsub.f32 %v2760_v14, %v2716_v10 }
 0x2b9   : > { %v2769_v51 = vsub.f32 %v2761_v55, %v2717_v60  ;;  %v2770_v52 = vsub.f32 %v2762_v61, %v2718_v58  ;;  %v2771_v53 = vsub.f32 %v2763_v56, %v2719_v0  ;;  %v2773_v20 = vmul.f32 %v2764_v3, %v5216_v43 }
 0x2ba   : > { %v2774_v25 = vmul.f32 %v2765_v27, %v5220_v44  ;;  %v2775_v28 = vmul.f32 %v2766_v31, %v5224_v45  ;;  %v2776_v17 = vmul.f32 %v2767_v2, %v5228_v46  ;;  %v2777_v13 = vmul.f32 %v2768_v34, %v5232_v47 }
 0x2bb   : > { %v2778_v19 = vmul.f32 %v2769_v51, %v5236_v48  ;;  %v2779_v8 = vmul.f32 %v2770_v52, %v5240_v49  ;;  %v2780_v1 = vmul.f32 %v2771_v53, %v5244_v50  ;;  %v2782_v6 = vadd.f32 %v2781_v15, %v2773_v20 }
 0x2bc   : > { %v2783_v7 = vadd.f32 %v2781_v15, %v2774_v25  ;;  %v2784_v10 = vadd.f32 %v2781_v15, %v2775_v28  ;;  %v2785_v60 = vadd.f32 %v2781_v15, %v2776_v17  ;;  %v2786_v58 = vadd.f32 %v2781_v15, %v2777_v13 }
 0x2bd   : > { %v2787_v0 = vadd.f32 %v2781_v15, %v2778_v19  ;;  %v2788_v54 = vadd.f32 %v2781_v15, %v2779_v8  ;;  %v2789_v12 = vadd.f32 %v2781_v15, %v2780_v1  ;;  %v2790_v57 = vsub.f32 %v2782_v6, %v2738_v18 }
 0x2be   : > { %v2791_v33 = vsub.f32 %v2783_v7, %v2739_v22  ;;  %v2792_v30 = vsub.f32 %v2784_v10, %v2740_v29  ;;  %v2793_v23 = vsub.f32 %v2785_v60, %v2741_v9  ;;  %v2794_v59 = vsub.f32 %v2786_v58, %v2742_v24 }
 0x2bf   : > { %v2795_v11 = vsub.f32 %v2787_v0, %v2743_v63  ;;  %v2796_v16 = vsub.f32 %v2788_v54, %v2744_v21  ;;  %v2797_v26 = vsub.f32 %v2789_v12, %v2745_v62  ;;  %v2799_v5 = vmul.f32 %v2790_v57, %v5216_v43 }
 0x2c0   : > { %v2800_v14 = vmul.f32 %v2791_v33, %v5220_v44  ;;  %v2801_v55 = vmul.f32 %v2792_v30, %v5224_v45  ;;  %v2802_v61 = vmul.f32 %v2793_v23, %v5228_v46  ;;  %v2803_v56 = vmul.f32 %v2794_v59, %v5232_v47 }
 0x2c1   : > { %v2804_v15 = vmul.f32 %v2795_v11, %v5236_v48  ;;  %v2805_v18 = vmul.f32 %v2796_v16, %v5240_v49  ;;  %v2806_v22 = vmul.f32 %v2797_v26, %v5244_v50  ;;  %v2808_v29 = vadd.f32 %v2807_v32, %v2799_v5 }
 0x2c2   : > { %v2809_v9 = vadd.f32 %v2807_v32, %v2800_v14  ;;  %v2810_v24 = vadd.f32 %v2807_v32, %v2801_v55  ;;  %v2811_v63 = vadd.f32 %v2807_v32, %v2802_v61  ;;  %v2812_v21 = vadd.f32 %v2807_v32, %v2803_v56 }
 0x2c3   : > { %v2813_v62 = vadd.f32 %v2807_v32, %v2804_v15  ;;  %v2814_v20 = vadd.f32 %v2807_v32, %v2805_v18  ;;  %v2815_v25 = vadd.f32 %v2807_v32, %v2806_v22  ;;  %v2816_v28 = vsub.f32 %v2808_v29, %v2764_v3 }
 0x2c4   : > { %v2817_v17 = vsub.f32 %v2809_v9, %v2765_v27  ;;  %v2818_v13 = vsub.f32 %v2810_v24, %v2766_v31  ;;  %v2819_v19 = vsub.f32 %v2811_v63, %v2767_v2  ;;  %v2820_v8 = vsub.f32 %v2812_v21, %v2768_v34 }
 0x2c5   : > { %v2821_v1 = vsub.f32 %v2813_v62, %v2769_v51  ;;  %v2822_v6 = vsub.f32 %v2814_v20, %v2770_v52  ;;  %v2823_v7 = vsub.f32 %v2815_v25, %v2771_v53  ;;  %v2825_v10 = vmul.f32 %v2816_v28, %v5216_v43 }
 0x2c6   : > { %v2826_v60 = vmul.f32 %v2817_v17, %v5220_v44  ;;  %v2827_v32 = vmul.f32 %v2818_v13, %v5224_v45  ;;  %v2828_v58 = vmul.f32 %v2819_v19, %v5228_v46  ;;  %v2829_v3 = vmul.f32 %v2820_v8, %v5232_v47 }
 0x2c7   : > { %v2830_v27 = vmul.f32 %v2821_v1, %v5236_v48  ;;  %v2831_v31 = vmul.f32 %v2822_v6, %v5240_v49  ;;  %v2832_v2 = vmul.f32 %v2823_v7, %v5244_v50  ;;  %v2834_v34 = vadd.f32 %v6639_v4, %v2825_v10 }
 0x2c8   : > { %v2835_v51 = vadd.f32 %v6639_v4, %v2826_v60  ;;  %v2836_v52 = vadd.f32 %v6639_v4, %v2827_v32  ;;  %v2837_v53 = vadd.f32 %v6639_v4, %v2828_v58  ;;  %v2838_v0 = vadd.f32 %v6639_v4, %v2829_v3 }
 0x2c9   : > { %v2839_v54 = vadd.f32 %v6639_v4, %v2830_v27  ;;  %v2840_v12 = vadd.f32 %v6639_v4, %v2831_v31  ;;  %v2841_v5 = vadd.f32 %v6639_v4, %v2832_v2  ;;  %v2842_v14 = vsub.f32 %v2834_v34, %v2790_v57 }
 0x2ca   : > { %v2843_v55 = vsub.f32 %v2835_v51, %v2791_v33  ;;  %v2844_v61 = vsub.f32 %v2836_v52, %v2792_v30  ;;  %v2845_v56 = vsub.f32 %v2837_v53, %v2793_v23  ;;  %v2846_v15 = vsub.f32 %v2838_v0, %v2794_v59 }
 0x2cb   : > { %v2847_v18 = vsub.f32 %v2839_v54, %v2795_v11  ;;  %v2848_v22 = vsub.f32 %v2840_v12, %v2796_v16  ;;  %v2849_v29 = vsub.f32 %v2841_v5, %v2797_v26  ;;  %v2851_v9 = vmul.f32 %v2842_v14, %v5216_v43 }
 0x2cc   : > { %v2852_v24 = vmul.f32 %v2843_v55, %v5220_v44  ;;  %v2853_v63 = vmul.f32 %v2844_v61, %v5224_v45  ;;  %v2854_v4 = vmul.f32 %v2845_v56, %v5228_v46  ;;  %v2855_v57 = vmul.f32 %v2846_v15, %v5232_v47 }
 0x2cd   : > { %v2856_v33 = vmul.f32 %v2847_v18, %v5236_v48  ;;  %v2857_v30 = vmul.f32 %v2848_v22, %v5240_v49  ;;  %v2858_v23 = vmul.f32 %v2849_v29, %v5244_v50  ;;  %v2859_v59 = vstv %s6657_s18  ;;  %s6915_s18 = sld [smem:[#allocation5 + $0x9f]] }
 0x2ce   : > { %v2885_v11 = vstv %s6659_s19  ;;  %v2911_v16 = vstv %s6661_s11  ;;  %v6693_v26 = vstv %s6667_s20  ;;  %v2860_v21 = vadd.f32 %v2859_v59, %v2851_v9  ;;  %s6917_s19 = sld [smem:[#allocation5 + $0x9e]] }
 0x2cf   : > { %v2861_v62 = vadd.f32 %v2859_v59, %v2852_v24  ;;  %v2862_v20 = vadd.f32 %v2859_v59, %v2853_v63  ;;  %v2863_v25 = vadd.f32 %v2859_v59, %v2854_v4  ;;  %v2864_v10 = vadd.f32 %v2859_v59, %v2855_v57  ;;  %s6923_s11 = sld [smem:[#allocation5 + $0x9d]] }
 0x2d0   : > { %v2865_v60 = vadd.f32 %v2859_v59, %v2856_v33  ;;  %v2866_v32 = vadd.f32 %v2859_v59, %v2857_v30  ;;  %v2867_v58 = vadd.f32 %v2859_v59, %v2858_v23  ;;  %v2868_v3 = vsub.f32 %v2860_v21, %v2816_v28  ;;  %s6967_s20 = sld [smem:[#allocation5 + $0x9c]] }
 0x2d1   : > { %v2869_v27 = vsub.f32 %v2861_v62, %v2817_v17  ;;  %v2870_v31 = vsub.f32 %v2862_v20, %v2818_v13  ;;  %v2871_v2 = vsub.f32 %v2863_v25, %v2819_v19  ;;  %v2872_v34 = vsub.f32 %v2864_v10, %v2820_v8 }
 0x2d2   : > { %v2873_v51 = vsub.f32 %v2865_v60, %v2821_v1  ;;  %v2874_v52 = vsub.f32 %v2866_v32, %v2822_v6  ;;  %v2875_v53 = vsub.f32 %v2867_v58, %v2823_v7  ;;  %v2877_v0 = vmul.f32 %v2868_v3, %v5216_v43 }
 0x2d3   : > { %v2878_v54 = vmul.f32 %v2869_v27, %v5220_v44  ;;  %v2879_v12 = vmul.f32 %v2870_v31, %v5224_v45  ;;  %v2880_v5 = vmul.f32 %v2871_v2, %v5228_v46  ;;  %v2881_v9 = vmul.f32 %v2872_v34, %v5232_v47 }
 0x2d4   : > { %v2882_v24 = vmul.f32 %v2873_v51, %v5236_v48  ;;  %v2883_v28 = vmul.f32 %v2874_v52, %v5240_v49  ;;  %v2884_v17 = vmul.f32 %v2875_v53, %v5244_v50  ;;  %v2886_v13 = vadd.f32 %v2885_v11, %v2877_v0 }
 0x2d5   : > { %v2887_v19 = vadd.f32 %v2885_v11, %v2878_v54  ;;  %v2888_v8 = vadd.f32 %v2885_v11, %v2879_v12  ;;  %v2889_v1 = vadd.f32 %v2885_v11, %v2880_v5  ;;  %v2890_v6 = vadd.f32 %v2885_v11, %v2881_v9 }
 0x2d6   : > { %v2891_v7 = vadd.f32 %v2885_v11, %v2882_v24  ;;  %v2892_v63 = vadd.f32 %v2885_v11, %v2883_v28  ;;  %v2893_v4 = vadd.f32 %v2885_v11, %v2884_v17  ;;  %v2894_v57 = vsub.f32 %v2886_v13, %v2842_v14 }
 0x2d7   : > { %v2895_v33 = vsub.f32 %v2887_v19, %v2843_v55  ;;  %v2896_v30 = vsub.f32 %v2888_v8, %v2844_v61  ;;  %v2897_v23 = vsub.f32 %v2889_v1, %v2845_v56  ;;  %v2898_v59 = vsub.f32 %v2890_v6, %v2846_v15 }
 0x2d8   : > { %v2899_v21 = vsub.f32 %v2891_v7, %v2847_v18  ;;  %v2900_v62 = vsub.f32 %v2892_v63, %v2848_v22  ;;  %v2901_v20 = vsub.f32 %v2893_v4, %v2849_v29  ;;  %v2903_v25 = vmul.f32 %v2894_v57, %v5216_v43 }
 0x2d9   : > { %v2904_v10 = vmul.f32 %v2895_v33, %v5220_v44  ;;  %v2905_v60 = vmul.f32 %v2896_v30, %v5224_v45  ;;  %v2906_v32 = vmul.f32 %v2897_v23, %v5228_v46  ;;  %v2907_v58 = vmul.f32 %v2898_v59, %v5232_v47 }
 0x2da   : > { %v2908_v11 = vmul.f32 %v2899_v21, %v5236_v48  ;;  %v2909_v14 = vmul.f32 %v2900_v62, %v5240_v49  ;;  %v2910_v55 = vmul.f32 %v2901_v20, %v5244_v50  ;;  %v2912_v61 = vadd.f32 %v2911_v16, %v2903_v25 }
 0x2db   : > { %v2913_v56 = vadd.f32 %v2911_v16, %v2904_v10  ;;  %v2914_v15 = vadd.f32 %v2911_v16, %v2905_v60  ;;  %v2915_v18 = vadd.f32 %v2911_v16, %v2906_v32  ;;  %v2916_v22 = vadd.f32 %v2911_v16, %v2907_v58 }
 0x2dc   : > { %v2917_v29 = vadd.f32 %v2911_v16, %v2908_v11  ;;  %v2918_v0 = vadd.f32 %v2911_v16, %v2909_v14  ;;  %v2919_v54 = vadd.f32 %v2911_v16, %v2910_v55  ;;  %v2920_v12 = vsub.f32 %v2912_v61, %v2868_v3 }
 0x2dd   : > { %v2921_v5 = vsub.f32 %v2913_v56, %v2869_v27  ;;  %v2922_v9 = vsub.f32 %v2914_v15, %v2870_v31  ;;  %v2923_v24 = vsub.f32 %v2915_v18, %v2871_v2  ;;  %v2924_v28 = vsub.f32 %v2916_v22, %v2872_v34 }
 0x2de   : > { %v2925_v17 = vsub.f32 %v2917_v29, %v2873_v51  ;;  %v2926_v13 = vsub.f32 %v2918_v0, %v2874_v52  ;;  %v2927_v19 = vsub.f32 %v2919_v54, %v2875_v53  ;;  %v2929_v8 = vmul.f32 %v2920_v12, %v5216_v43 }
 0x2df   : > { %v2930_v1 = vmul.f32 %v2921_v5, %v5220_v44  ;;  %v2931_v16 = vmul.f32 %v2922_v9, %v5224_v45  ;;  %v2932_v6 = vmul.f32 %v2923_v24, %v5228_v46  ;;  %v2933_v3 = vmul.f32 %v2924_v28, %v5232_v47 }
 0x2e0   : > { %v2934_v27 = vmul.f32 %v2925_v17, %v5236_v48  ;;  %v2935_v31 = vmul.f32 %v2926_v13, %v5240_v49  ;;  %v2936_v2 = vmul.f32 %v2927_v19, %v5244_v50  ;;  %v2938_v34 = vadd.f32 %v6693_v26, %v2929_v8 }
 0x2e1   : > { %v2939_v51 = vadd.f32 %v6693_v26, %v2930_v1  ;;  %v2940_v52 = vadd.f32 %v6693_v26, %v2931_v16  ;;  %v2941_v53 = vadd.f32 %v6693_v26, %v2932_v6  ;;  %v2942_v7 = vadd.f32 %v6693_v26, %v2933_v3 }
 0x2e2   : > { %v2943_v63 = vadd.f32 %v6693_v26, %v2934_v27  ;;  %v2944_v4 = vadd.f32 %v6693_v26, %v2935_v31  ;;  %v2945_v25 = vadd.f32 %v6693_v26, %v2936_v2  ;;  %v2946_v10 = vsub.f32 %v2938_v34, %v2894_v57 }
 0x2e3   : > { %v2947_v60 = vsub.f32 %v2939_v51, %v2895_v33  ;;  %v2948_v32 = vsub.f32 %v2940_v52, %v2896_v30  ;;  %v2949_v58 = vsub.f32 %v2941_v53, %v2897_v23  ;;  %v2950_v11 = vsub.f32 %v2942_v7, %v2898_v59 }
 0x2e4   : > { %v2951_v14 = vsub.f32 %v2943_v63, %v2899_v21  ;;  %v2952_v55 = vsub.f32 %v2944_v4, %v2900_v62  ;;  %v2953_v61 = vsub.f32 %v2945_v25, %v2901_v20  ;;  %v2955_v56 = vmul.f32 %v2946_v10, %v5216_v43 }
 0x2e5   : > { %v2956_v15 = vmul.f32 %v2947_v60, %v5220_v44  ;;  %v2957_v18 = vmul.f32 %v2948_v32, %v5224_v45  ;;  %v2958_v26 = vmul.f32 %v2949_v58, %v5228_v46  ;;  %v2959_v57 = vmul.f32 %v2950_v11, %v5232_v47 }
 0x2e6   : > { %v2960_v33 = vmul.f32 %v2951_v14, %v5236_v48  ;;  %v2961_v30 = vmul.f32 %v2952_v55, %v5240_v49  ;;  %v2962_v23 = vmul.f32 %v2953_v61, %v5244_v50  ;;  %v2963_v59 = vstv %s6711_s21  ;;  %s6969_s21 = sld [smem:[#allocation5 + $0x9b]] }
 0x2e7   : > { %v2989_v21 = vstv %s6713_s22  ;;  %v3015_v62 = vstv %s6715_s23  ;;  %v6747_v20 = vstv %s6721_s25  ;;  %v2964_v22 = vadd.f32 %v2963_v59, %v2955_v56  ;;  %s6971_s22 = sld [smem:[#allocation5 + $0x9a]] }
 0x2e8   : > { %v2965_v29 = vadd.f32 %v2963_v59, %v2956_v15  ;;  %v2966_v0 = vadd.f32 %v2963_v59, %v2957_v18  ;;  %v2967_v54 = vadd.f32 %v2963_v59, %v2958_v26  ;;  %v2968_v8 = vadd.f32 %v2963_v59, %v2959_v57  ;;  %s6977_s23 = sld [smem:[#allocation5 + $0x99]] }
 0x2e9   : > { %v2969_v1 = vadd.f32 %v2963_v59, %v2960_v33  ;;  %v2970_v16 = vadd.f32 %v2963_v59, %v2961_v30  ;;  %v2971_v6 = vadd.f32 %v2963_v59, %v2962_v23  ;;  %v2972_v3 = vsub.f32 %v2964_v22, %v2920_v12  ;;  %s7021_s25 = sld [smem:[#allocation5 + $0x98]] }
 0x2ea   : > { %v2973_v27 = vsub.f32 %v2965_v29, %v2921_v5  ;;  %v2974_v31 = vsub.f32 %v2966_v0, %v2922_v9  ;;  %v2975_v2 = vsub.f32 %v2967_v54, %v2923_v24  ;;  %v2976_v34 = vsub.f32 %v2968_v8, %v2924_v28 }
 0x2eb   : > { %v2977_v51 = vsub.f32 %v2969_v1, %v2925_v17  ;;  %v2978_v52 = vsub.f32 %v2970_v16, %v2926_v13  ;;  %v2979_v53 = vsub.f32 %v2971_v6, %v2927_v19  ;;  %v2981_v7 = vmul.f32 %v2972_v3, %v5216_v43 }
 0x2ec   : > { %v2982_v63 = vmul.f32 %v2973_v27, %v5220_v44  ;;  %v2983_v4 = vmul.f32 %v2974_v31, %v5224_v45  ;;  %v2984_v25 = vmul.f32 %v2975_v2, %v5228_v46  ;;  %v2985_v56 = vmul.f32 %v2976_v34, %v5232_v47 }
 0x2ed   : > { %v2986_v15 = vmul.f32 %v2977_v51, %v5236_v48  ;;  %v2987_v12 = vmul.f32 %v2978_v52, %v5240_v49  ;;  %v2988_v5 = vmul.f32 %v2979_v53, %v5244_v50  ;;  %v2990_v9 = vadd.f32 %v2989_v21, %v2981_v7 }
 0x2ee   : > { %v2991_v24 = vadd.f32 %v2989_v21, %v2982_v63  ;;  %v2992_v28 = vadd.f32 %v2989_v21, %v2983_v4  ;;  %v2993_v17 = vadd.f32 %v2989_v21, %v2984_v25  ;;  %v2994_v13 = vadd.f32 %v2989_v21, %v2985_v56 }
 0x2ef   : > { %v2995_v19 = vadd.f32 %v2989_v21, %v2986_v15  ;;  %v2996_v18 = vadd.f32 %v2989_v21, %v2987_v12  ;;  %v2997_v26 = vadd.f32 %v2989_v21, %v2988_v5  ;;  %v2998_v57 = vsub.f32 %v2990_v9, %v2946_v10 }
 0x2f0   : > { %v2999_v33 = vsub.f32 %v2991_v24, %v2947_v60  ;;  %v3000_v30 = vsub.f32 %v2992_v28, %v2948_v32  ;;  %v3001_v23 = vsub.f32 %v2993_v17, %v2949_v58  ;;  %v3002_v59 = vsub.f32 %v2994_v13, %v2950_v11 }
 0x2f1   : > { %v3003_v22 = vsub.f32 %v2995_v19, %v2951_v14  ;;  %v3004_v29 = vsub.f32 %v2996_v18, %v2952_v55  ;;  %v3005_v0 = vsub.f32 %v2997_v26, %v2953_v61  ;;  %v3007_v54 = vmul.f32 %v2998_v57, %v5216_v43 }
 0x2f2   : > { %v3008_v8 = vmul.f32 %v2999_v33, %v5220_v44  ;;  %v3009_v1 = vmul.f32 %v3000_v30, %v5224_v45  ;;  %v3010_v16 = vmul.f32 %v3001_v23, %v5228_v46  ;;  %v3011_v6 = vmul.f32 %v3002_v59, %v5232_v47 }
 0x2f3   : > { %v3012_v21 = vmul.f32 %v3003_v22, %v5236_v48  ;;  %v3013_v10 = vmul.f32 %v3004_v29, %v5240_v49  ;;  %v3014_v60 = vmul.f32 %v3005_v0, %v5244_v50  ;;  %v3016_v32 = vadd.f32 %v3015_v62, %v3007_v54 }
 0x2f4   : > { %v3017_v58 = vadd.f32 %v3015_v62, %v3008_v8  ;;  %v3018_v11 = vadd.f32 %v3015_v62, %v3009_v1  ;;  %v3019_v14 = vadd.f32 %v3015_v62, %v3010_v16  ;;  %v3020_v55 = vadd.f32 %v3015_v62, %v3011_v6 }
 0x2f5   : > { %v3021_v61 = vadd.f32 %v3015_v62, %v3012_v21  ;;  %v3022_v7 = vadd.f32 %v3015_v62, %v3013_v10  ;;  %v3023_v63 = vadd.f32 %v3015_v62, %v3014_v60  ;;  %v6767_v4 = vsub.f32 %v3016_v32, %v2972_v3 }
 0x2f6   : > { %v6769_v25 = vsub.f32 %v3017_v58, %v2973_v27  ;;  %v6771_v56 = vsub.f32 %v3018_v11, %v2974_v31  ;;  %v6773_v15 = vsub.f32 %v3019_v14, %v2975_v2  ;;  %v6777_v12 = vsub.f32 %v3020_v55, %v2976_v34 }
 0x2f7   : > { %v6779_v5 = vsub.f32 %v3021_v61, %v2977_v51  ;;  %v6781_v9 = vsub.f32 %v3022_v7, %v2978_v52  ;;  %v6783_v24 = vsub.f32 %v3023_v63, %v2979_v53  ;;  %v3033_v62 = vmul.f32 %v6767_v4, %v5216_v43 }
 0x2f8   : > { %v3034_v3 = vmul.f32 %v6769_v25, %v5220_v44  ;;  %v3035_v27 = vmul.f32 %v6771_v56, %v5224_v45  ;;  %v3036_v31 = vmul.f32 %v6773_v15, %v5228_v46  ;;  %v3037_v2 = vmul.f32 %v6777_v12, %v5232_v47 }
 0x2f9   : > { %v3038_v34 = vmul.f32 %v6779_v5, %v5236_v48  ;;  %v3039_v51 = vmul.f32 %v6781_v9, %v5240_v49  ;;  %v3040_v52 = vmul.f32 %v6783_v24, %v5244_v50  ;;  %v3042_v53 = vadd.f32 %v6747_v20, %v3033_v62 }
 0x2fa   : > { %v3043_v28 = vadd.f32 %v6747_v20, %v3034_v3  ;;  %v3044_v17 = vadd.f32 %v6747_v20, %v3035_v27  ;;  %v3045_v13 = vadd.f32 %v6747_v20, %v3036_v31  ;;  %v3046_v19 = vadd.f32 %v6747_v20, %v3037_v2 }
 0x2fb   : > { %v3047_v18 = vadd.f32 %v6747_v20, %v3038_v34  ;;  %v3048_v26 = vadd.f32 %v6747_v20, %v3039_v51  ;;  %v3049_v54 = vadd.f32 %v6747_v20, %v3040_v52  ;;  %v3050_v8 = vsub.f32 %v3042_v53, %v2998_v57 }
 0x2fc   : > { %v3051_v1 = vsub.f32 %v3043_v28, %v2999_v33  ;;  %v3052_v16 = vsub.f32 %v3044_v17, %v3000_v30  ;;  %v3053_v6 = vsub.f32 %v3045_v13, %v3001_v23  ;;  %v3054_v21 = vsub.f32 %v3046_v19, %v3002_v59 }
 0x2fd   : > { %v3055_v10 = vsub.f32 %v3047_v18, %v3003_v22  ;;  %v3056_v60 = vsub.f32 %v3048_v26, %v3004_v29  ;;  %v3057_v32 = vsub.f32 %v3049_v54, %v3005_v0  ;;  %v3059_v58 = vmul.f32 %v5198_v35, %v3050_v8 }
 0x2fe   : > { %v3060_v11 = vmul.f32 %v5200_v36, %v3051_v1  ;;  %v3061_v14 = vmul.f32 %v5202_v37, %v3052_v16  ;;  %v3062_v20 = vmul.f32 %v5204_v38, %v3053_v6  ;;  %v3063_v57 = vmul.f32 %v5206_v39, %v3054_v21 }
 0x2ff   : > { %v3064_v33 = vmul.f32 %v5208_v40, %v3055_v10  ;;  %v3065_v30 = vmul.f32 %v5210_v41, %v3056_v60  ;;  %v3066_v23 = vmul.f32 %v5212_v42, %v3057_v32  ;;  %v3067_v59 = vstv %s6775_s1  ;;  %s7025_s1 = sld [smem:[#allocation5 + $0x96]] }
 0x300   : > { %v6823_v22 = vstv %s6765_s0  ;;  %v3106_v29 = vstv %s6785_s5  ;;  %v3124_v0 = vstv %s6795_s6  ;;  %v3068_v55 = vadd.f32 %v3067_v59, %v3059_v58  ;;  %s7023_s0 = sld [smem:[#allocation5 + $0x97]] }
 0x301   : > { %v3069_v61 = vadd.f32 %v3067_v59, %v3060_v11  ;;  %v3070_v7 = vadd.f32 %v3067_v59, %v3061_v14  ;;  %v3071_v63 = vadd.f32 %v3067_v59, %v3062_v20  ;;  %v3072_v62 = vadd.f32 %v3067_v59, %v3063_v57  ;;  %s7031_s5 = sld [smem:[#allocation5 + $0x95]] }
 0x302   : > { %v3073_v3 = vadd.f32 %v3067_v59, %v3064_v33  ;;  %v3074_v27 = vadd.f32 %v3067_v59, %v3065_v30  ;;  %v3075_v31 = vadd.f32 %v3067_v59, %v3066_v23  ;;  %v3076_v2 = vsub.f32 %v3068_v55, %v6767_v4  ;;  %s7075_s6 = sld [smem:[#allocation5 + $0x94]] }
 0x303   : > { %v3077_v34 = vsub.f32 %v3069_v61, %v6769_v25  ;;  %v3078_v51 = vsub.f32 %v3070_v7, %v6771_v56  ;;  %v3079_v52 = vsub.f32 %v3071_v63, %v6773_v15  ;;  %v3080_v53 = vsub.f32 %v3072_v62, %v6777_v12 }
 0x304   : > { %v3081_v28 = vsub.f32 %v3073_v3, %v6779_v5  ;;  %v3082_v17 = vsub.f32 %v3074_v27, %v6781_v9  ;;  %v3083_v13 = vsub.f32 %v3075_v31, %v6783_v24  ;;  %4764 = vst [vmem:[%s6037_s24 + $0x40] sm:$0xff] %v3076_v2  ;;  %v3098_v4 = vmul.f32 %v6823_v22, %v5216_v43 }
 0x305   : > { %4765 = vst [vmem:[%s6037_s24 + $0x48] sm:$0xff] %v3077_v34  ;;  %4766 = vst [vmem:[%s6037_s24 + $0x50] sm:$0xff] %v3078_v51  ;;  %v3099_v25 = vmul.f32 %v6823_v22, %v5220_v44  ;;  %v3100_v56 = vmul.f32 %v6823_v22, %v5224_v45  ;;  %v3101_v15 = vmul.f32 %v6823_v22, %v5228_v46 }
 0x306   : > { %4767 = vst [vmem:[%s6037_s24 + $0x58] sm:$0xff] %v3079_v52  ;;  %4768 = vst [vmem:[%s6037_s24 + $0x60] sm:$0xff] %v3080_v53  ;;  %v3102_v12 = vmul.f32 %v6823_v22, %v5232_v47  ;;  %v3103_v5 = vmul.f32 %v6823_v22, %v5236_v48  ;;  %v3104_v9 = vmul.f32 %v6823_v22, %v5240_v49 }
 0x307   : > { %4769 = vst [vmem:[%s6037_s24 + $0x68] sm:$0xff] %v3081_v28  ;;  %4770 = vst [vmem:[%s6037_s24 + $0x70] sm:$0xff] %v3082_v17  ;;  %v3105_v24 = vmul.f32 %v6823_v22, %v5244_v50  ;;  %v3107_v19 = vadd.f32 %v3106_v29, %v3098_v4  ;;  %v3108_v18 = vadd.f32 %v3106_v29, %v3099_v25  ;;  %v3150_v25 = vstv %s6859_s8  ;;  %s7077_s8 = sld [smem:[#allocation5 + $0x93]] }
 0x308   : > { %4771 = vst [vmem:[%s6037_s24 + $0x78] sm:$0xff] %v3083_v13  ;;  %v3109_v26 = vadd.f32 %v3106_v29, %v3100_v56  ;;  %v3110_v54 = vadd.f32 %v3106_v29, %v3101_v15  ;;  %v3111_v8 = vadd.f32 %v3106_v29, %v3102_v12  ;;  %v3112_v1 = vadd.f32 %v3106_v29, %v3103_v5 }
 0x309   : > { %v3113_v16 = vadd.f32 %v3106_v29, %v3104_v9  ;;  %v3114_v6 = vadd.f32 %v3106_v29, %v3105_v24  ;;  %v3116_v21 = vmul.f32 %v3107_v19, %v5216_v43  ;;  %v3117_v10 = vmul.f32 %v3108_v18, %v5220_v44 }
 0x30a   : > { %v3118_v60 = vmul.f32 %v3109_v26, %v5224_v45  ;;  %v3119_v32 = vmul.f32 %v3110_v54, %v5228_v46  ;;  %v3120_v58 = vmul.f32 %v3111_v8, %v5232_v47  ;;  %v3121_v11 = vmul.f32 %v3112_v1, %v5236_v48 }
 0x30b   : > { %v3122_v14 = vmul.f32 %v3113_v16, %v5240_v49  ;;  %v3123_v20 = vmul.f32 %v3114_v6, %v5244_v50  ;;  %v3125_v57 = vadd.f32 %v3124_v0, %v3116_v21  ;;  %v3126_v33 = vadd.f32 %v3124_v0, %v3117_v10 }
 0x30c   : > { %v3127_v30 = vadd.f32 %v3124_v0, %v3118_v60  ;;  %v3128_v23 = vadd.f32 %v3124_v0, %v3119_v32  ;;  %v3129_v59 = vadd.f32 %v3124_v0, %v3120_v58  ;;  %v3130_v29 = vadd.f32 %v3124_v0, %v3121_v11 }
 0x30d   : > { %v3131_v55 = vadd.f32 %v3124_v0, %v3122_v14  ;;  %v3132_v61 = vadd.f32 %v3124_v0, %v3123_v20  ;;  %v3133_v7 = vsub.f32 %v3125_v57, %v6823_v22  ;;  %v3134_v63 = vsub.f32 %v3126_v33, %v6823_v22 }
 0x30e   : > { %v3135_v62 = vsub.f32 %v3127_v30, %v6823_v22  ;;  %v3136_v3 = vsub.f32 %v3128_v23, %v6823_v22  ;;  %v3137_v27 = vsub.f32 %v3129_v59, %v6823_v22  ;;  %v3138_v31 = vsub.f32 %v3130_v29, %v6823_v22 }
 0x30f   : > { %v3139_v2 = vsub.f32 %v3131_v55, %v6823_v22  ;;  %v3140_v0 = vsub.f32 %v3132_v61, %v6823_v22  ;;  %v3142_v34 = vmul.f32 %v3133_v7, %v5216_v43  ;;  %v3143_v51 = vmul.f32 %v3134_v63, %v5220_v44 }
 0x310   : > { %v3144_v52 = vmul.f32 %v3135_v62, %v5224_v45  ;;  %v3145_v53 = vmul.f32 %v3136_v3, %v5228_v46  ;;  %v3146_v28 = vmul.f32 %v3137_v27, %v5232_v47  ;;  %v3147_v17 = vmul.f32 %v3138_v31, %v5236_v48 }
 0x311   : > { %v3148_v13 = vmul.f32 %v3139_v2, %v5240_v49  ;;  %v3149_v4 = vmul.f32 %v3140_v0, %v5244_v50  ;;  %v3176_v56 = vstv %s6861_s10  ;;  %v3202_v15 = vstv %s6863_s15  ;;  %s7079_s10 = sld [smem:[#allocation5 + $0x92]] }
 0x312   : > { %v6895_v22 = vstv %s6869_s16  ;;  %v3151_v12 = vadd.f32 %v3150_v25, %v3142_v34  ;;  %v3152_v5 = vadd.f32 %v3150_v25, %v3143_v51  ;;  %v3153_v9 = vadd.f32 %v3150_v25, %v3144_v52  ;;  %s7085_s15 = sld [smem:[#allocation5 + $0x91]] }
 0x313   : > { %v3154_v24 = vadd.f32 %v3150_v25, %v3145_v53  ;;  %v3155_v21 = vadd.f32 %v3150_v25, %v3146_v28  ;;  %v3156_v10 = vadd.f32 %v3150_v25, %v3147_v17  ;;  %v3157_v60 = vadd.f32 %v3150_v25, %v3148_v13  ;;  %s7129_s16 = sld [smem:[#allocation5 + $0x90]] }
 0x314   : > { %v3158_v32 = vadd.f32 %v3150_v25, %v3149_v4  ;;  %v3159_v58 = vsub.f32 %v3151_v12, %v3107_v19  ;;  %v3160_v11 = vsub.f32 %v3152_v5, %v3108_v18  ;;  %v3161_v14 = vsub.f32 %v3153_v9, %v3109_v26 }
 0x315   : > { %v3162_v20 = vsub.f32 %v3154_v24, %v3110_v54  ;;  %v3163_v57 = vsub.f32 %v3155_v21, %v3111_v8  ;;  %v3164_v33 = vsub.f32 %v3156_v10, %v3112_v1  ;;  %v3165_v30 = vsub.f32 %v3157_v60, %v3113_v16 }
 0x316   : > { %v3166_v23 = vsub.f32 %v3158_v32, %v3114_v6  ;;  %v3168_v59 = vmul.f32 %v3159_v58, %v5216_v43  ;;  %v3169_v29 = vmul.f32 %v3160_v11, %v5220_v44  ;;  %v3170_v55 = vmul.f32 %v3161_v14, %v5224_v45 }
 0x317   : > { %v3171_v61 = vmul.f32 %v3162_v20, %v5228_v46  ;;  %v3172_v34 = vmul.f32 %v3163_v57, %v5232_v47  ;;  %v3173_v51 = vmul.f32 %v3164_v33, %v5236_v48  ;;  %v3174_v19 = vmul.f32 %v3165_v30, %v5240_v49 }
 0x318   : > { %v3175_v18 = vmul.f32 %v3166_v23, %v5244_v50  ;;  %v3177_v26 = vadd.f32 %v3176_v56, %v3168_v59  ;;  %v3178_v54 = vadd.f32 %v3176_v56, %v3169_v29  ;;  %v3179_v8 = vadd.f32 %v3176_v56, %v3170_v55 }
 0x319   : > { %v3180_v1 = vadd.f32 %v3176_v56, %v3171_v61  ;;  %v3181_v16 = vadd.f32 %v3176_v56, %v3172_v34  ;;  %v3182_v6 = vadd.f32 %v3176_v56, %v3173_v51  ;;  %v3183_v52 = vadd.f32 %v3176_v56, %v3174_v19 }
 0x31a   : > { %v3184_v53 = vadd.f32 %v3176_v56, %v3175_v18  ;;  %v3185_v28 = vsub.f32 %v3177_v26, %v3133_v7  ;;  %v3186_v17 = vsub.f32 %v3178_v54, %v3134_v63  ;;  %v3187_v13 = vsub.f32 %v3179_v8, %v3135_v62 }
 0x31b   : > { %v3188_v4 = vsub.f32 %v3180_v1, %v3136_v3  ;;  %v3189_v25 = vsub.f32 %v3181_v16, %v3137_v27  ;;  %v3190_v12 = vsub.f32 %v3182_v6, %v3138_v31  ;;  %v3191_v5 = vsub.f32 %v3183_v52, %v3139_v2 }
 0x31c   : > { %v3192_v9 = vsub.f32 %v3184_v53, %v3140_v0  ;;  %v3194_v24 = vmul.f32 %v3185_v28, %v5216_v43  ;;  %v3195_v21 = vmul.f32 %v3186_v17, %v5220_v44  ;;  %v3196_v10 = vmul.f32 %v3187_v13, %v5224_v45 }
 0x31d   : > { %v3197_v60 = vmul.f32 %v3188_v4, %v5228_v46  ;;  %v3198_v32 = vmul.f32 %v3189_v25, %v5232_v47  ;;  %v3199_v56 = vmul.f32 %v3190_v12, %v5236_v48  ;;  %v3200_v7 = vmul.f32 %v3191_v5, %v5240_v49 }
 0x31e   : > { %v3201_v63 = vmul.f32 %v3192_v9, %v5244_v50  ;;  %v3203_v62 = vadd.f32 %v3202_v15, %v3194_v24  ;;  %v3204_v3 = vadd.f32 %v3202_v15, %v3195_v21  ;;  %v3205_v27 = vadd.f32 %v3202_v15, %v3196_v10 }
 0x31f   : > { %v3206_v31 = vadd.f32 %v3202_v15, %v3197_v60  ;;  %v3207_v2 = vadd.f32 %v3202_v15, %v3198_v32  ;;  %v3208_v0 = vadd.f32 %v3202_v15, %v3199_v56  ;;  %v3209_v59 = vadd.f32 %v3202_v15, %v3200_v7 }
 0x320   : > { %v3210_v29 = vadd.f32 %v3202_v15, %v3201_v63  ;;  %v3211_v55 = vsub.f32 %v3203_v62, %v3159_v58  ;;  %v3212_v61 = vsub.f32 %v3204_v3, %v3160_v11  ;;  %v3213_v34 = vsub.f32 %v3205_v27, %v3161_v14 }
 0x321   : > { %v3214_v51 = vsub.f32 %v3206_v31, %v3162_v20  ;;  %v3215_v19 = vsub.f32 %v3207_v2, %v3163_v57  ;;  %v3216_v18 = vsub.f32 %v3208_v0, %v3164_v33  ;;  %v3217_v26 = vsub.f32 %v3209_v59, %v3165_v30 }
 0x322   : > { %v3218_v54 = vsub.f32 %v3210_v29, %v3166_v23  ;;  %v3220_v8 = vmul.f32 %v3211_v55, %v5216_v43  ;;  %v3221_v1 = vmul.f32 %v3212_v61, %v5220_v44  ;;  %v3222_v15 = vmul.f32 %v3213_v34, %v5224_v45 }
 0x323   : > { %v3223_v16 = vmul.f32 %v3214_v51, %v5228_v46  ;;  %v3224_v58 = vmul.f32 %v3215_v19, %v5232_v47  ;;  %v3225_v11 = vmul.f32 %v3216_v18, %v5236_v48  ;;  %v3226_v14 = vmul.f32 %v3217_v26, %v5240_v49 }
 0x324   : > { %v3227_v20 = vmul.f32 %v3218_v54, %v5244_v50  ;;  %v3229_v57 = vadd.f32 %v6895_v22, %v3220_v8  ;;  %v3230_v33 = vadd.f32 %v6895_v22, %v3221_v1  ;;  %v3231_v30 = vadd.f32 %v6895_v22, %v3222_v15 }
 0x325   : > { %v3232_v23 = vadd.f32 %v6895_v22, %v3223_v16  ;;  %v3233_v6 = vadd.f32 %v6895_v22, %v3224_v58  ;;  %v3234_v52 = vadd.f32 %v6895_v22, %v3225_v11  ;;  %v3235_v53 = vadd.f32 %v6895_v22, %v3226_v14 }
 0x326   : > { %v3236_v24 = vadd.f32 %v6895_v22, %v3227_v20  ;;  %v3237_v21 = vsub.f32 %v3229_v57, %v3185_v28  ;;  %v3238_v10 = vsub.f32 %v3230_v33, %v3186_v17  ;;  %v3239_v60 = vsub.f32 %v3231_v30, %v3187_v13 }
 0x327   : > { %v3240_v32 = vsub.f32 %v3232_v23, %v3188_v4  ;;  %v3241_v56 = vsub.f32 %v3233_v6, %v3189_v25  ;;  %v3242_v7 = vsub.f32 %v3234_v52, %v3190_v12  ;;  %v3243_v63 = vsub.f32 %v3235_v53, %v3191_v5 }
 0x328   : > { %v3244_v62 = vsub.f32 %v3236_v24, %v3192_v9  ;;  %v3246_v3 = vmul.f32 %v3237_v21, %v5216_v43  ;;  %v3247_v27 = vmul.f32 %v3238_v10, %v5220_v44  ;;  %v3248_v31 = vmul.f32 %v3239_v60, %v5224_v45 }
 0x329   : > { %v3249_v22 = vmul.f32 %v3240_v32, %v5228_v46  ;;  %v3250_v28 = vmul.f32 %v3241_v56, %v5232_v47  ;;  %v3251_v17 = vmul.f32 %v3242_v7, %v5236_v48  ;;  %v3252_v13 = vmul.f32 %v3243_v63, %v5240_v49 }
 0x32a   : > { %v3253_v4 = vmul.f32 %v3244_v62, %v5244_v50  ;;  %v3254_v25 = vstv %s6913_s17  ;;  %v3280_v12 = vstv %s6915_s18  ;;  %v3306_v5 = vstv %s6917_s19  ;;  %s7131_s17 = sld [smem:[#allocation5 + $0x8f]] }
 0x32b   : > { %v6949_v9 = vstv %s6923_s11  ;;  %v3255_v2 = vadd.f32 %v3254_v25, %v3246_v3  ;;  %v3256_v0 = vadd.f32 %v3254_v25, %v3247_v27  ;;  %v3257_v59 = vadd.f32 %v3254_v25, %v3248_v31  ;;  %s7133_s18 = sld [smem:[#allocation5 + $0x8e]] }
 0x32c   : > { %v3258_v29 = vadd.f32 %v3254_v25, %v3249_v22  ;;  %v3259_v8 = vadd.f32 %v3254_v25, %v3250_v28  ;;  %v3260_v1 = vadd.f32 %v3254_v25, %v3251_v17  ;;  %v3261_v15 = vadd.f32 %v3254_v25, %v3252_v13  ;;  %s7139_s19 = sld [smem:[#allocation5 + $0x8d]] }
 0x32d   : > { %v3262_v16 = vadd.f32 %v3254_v25, %v3253_v4  ;;  %v3263_v58 = vsub.f32 %v3255_v2, %v3211_v55  ;;  %v3264_v11 = vsub.f32 %v3256_v0, %v3212_v61  ;;  %v3265_v14 = vsub.f32 %v3257_v59, %v3213_v34  ;;  %s7183_s11 = sld [smem:[#allocation5 + $0x8c]] }
 0x32e   : > { %v3266_v20 = vsub.f32 %v3258_v29, %v3214_v51  ;;  %v3267_v57 = vsub.f32 %v3259_v8, %v3215_v19  ;;  %v3268_v33 = vsub.f32 %v3260_v1, %v3216_v18  ;;  %v3269_v30 = vsub.f32 %v3261_v15, %v3217_v26 }
 0x32f   : > { %v3270_v23 = vsub.f32 %v3262_v16, %v3218_v54  ;;  %v3272_v6 = vmul.f32 %v3263_v58, %v5216_v43  ;;  %v3273_v52 = vmul.f32 %v3264_v11, %v5220_v44  ;;  %v3274_v53 = vmul.f32 %v3265_v14, %v5224_v45 }
 0x330   : > { %v3275_v24 = vmul.f32 %v3266_v20, %v5228_v46  ;;  %v3276_v3 = vmul.f32 %v3267_v57, %v5232_v47  ;;  %v3277_v27 = vmul.f32 %v3268_v33, %v5236_v48  ;;  %v3278_v55 = vmul.f32 %v3269_v30, %v5240_v49 }
 0x331   : > { %v3279_v61 = vmul.f32 %v3270_v23, %v5244_v50  ;;  %v3281_v34 = vadd.f32 %v3280_v12, %v3272_v6  ;;  %v3282_v51 = vadd.f32 %v3280_v12, %v3273_v52  ;;  %v3283_v19 = vadd.f32 %v3280_v12, %v3274_v53 }
 0x332   : > { %v3284_v18 = vadd.f32 %v3280_v12, %v3275_v24  ;;  %v3285_v26 = vadd.f32 %v3280_v12, %v3276_v3  ;;  %v3286_v54 = vadd.f32 %v3280_v12, %v3277_v27  ;;  %v3287_v31 = vadd.f32 %v3280_v12, %v3278_v55 }
 0x333   : > { %v3288_v22 = vadd.f32 %v3280_v12, %v3279_v61  ;;  %v3289_v28 = vsub.f32 %v3281_v34, %v3237_v21  ;;  %v3290_v17 = vsub.f32 %v3282_v51, %v3238_v10  ;;  %v3291_v13 = vsub.f32 %v3283_v19, %v3239_v60 }
 0x334   : > { %v3292_v4 = vsub.f32 %v3284_v18, %v3240_v32  ;;  %v3293_v25 = vsub.f32 %v3285_v26, %v3241_v56  ;;  %v3294_v2 = vsub.f32 %v3286_v54, %v3242_v7  ;;  %v3295_v0 = vsub.f32 %v3287_v31, %v3243_v63 }
 0x335   : > { %v3296_v59 = vsub.f32 %v3288_v22, %v3244_v62  ;;  %v3298_v29 = vmul.f32 %v3289_v28, %v5216_v43  ;;  %v3299_v8 = vmul.f32 %v3290_v17, %v5220_v44  ;;  %v3300_v1 = vmul.f32 %v3291_v13, %v5224_v45 }
 0x336   : > { %v3301_v15 = vmul.f32 %v3292_v4, %v5228_v46  ;;  %v3302_v16 = vmul.f32 %v3293_v25, %v5232_v47  ;;  %v3303_v12 = vmul.f32 %v3294_v2, %v5236_v48  ;;  %v3304_v21 = vmul.f32 %v3295_v0, %v5240_v49 }
 0x337   : > { %v3305_v10 = vmul.f32 %v3296_v59, %v5244_v50  ;;  %v3307_v60 = vadd.f32 %v3306_v5, %v3298_v29  ;;  %v3308_v32 = vadd.f32 %v3306_v5, %v3299_v8  ;;  %v3309_v56 = vadd.f32 %v3306_v5, %v3300_v1 }
 0x338   : > { %v3310_v7 = vadd.f32 %v3306_v5, %v3301_v15  ;;  %v3311_v63 = vadd.f32 %v3306_v5, %v3302_v16  ;;  %v3312_v62 = vadd.f32 %v3306_v5, %v3303_v12  ;;  %v3313_v6 = vadd.f32 %v3306_v5, %v3304_v21 }
 0x339   : > { %v3314_v52 = vadd.f32 %v3306_v5, %v3305_v10  ;;  %v3315_v53 = vsub.f32 %v3307_v60, %v3263_v58  ;;  %v3316_v24 = vsub.f32 %v3308_v32, %v3264_v11  ;;  %v3317_v3 = vsub.f32 %v3309_v56, %v3265_v14 }
 0x33a   : > { %v3318_v27 = vsub.f32 %v3310_v7, %v3266_v20  ;;  %v3319_v55 = vsub.f32 %v3311_v63, %v3267_v57  ;;  %v3320_v61 = vsub.f32 %v3312_v62, %v3268_v33  ;;  %v3321_v34 = vsub.f32 %v3313_v6, %v3269_v30 }
 0x33b   : > { %v3322_v51 = vsub.f32 %v3314_v52, %v3270_v23  ;;  %v3324_v19 = vmul.f32 %v3315_v53, %v5216_v43  ;;  %v3325_v18 = vmul.f32 %v3316_v24, %v5220_v44  ;;  %v3326_v5 = vmul.f32 %v3317_v3, %v5224_v45 }
 0x33c   : > { %v3327_v26 = vmul.f32 %v3318_v27, %v5228_v46  ;;  %v3328_v58 = vmul.f32 %v3319_v55, %v5232_v47  ;;  %v3329_v11 = vmul.f32 %v3320_v61, %v5236_v48  ;;  %v3330_v14 = vmul.f32 %v3321_v34, %v5240_v49 }
 0x33d   : > { %v3331_v20 = vmul.f32 %v3322_v51, %v5244_v50  ;;  %v3333_v57 = vadd.f32 %v6949_v9, %v3324_v19  ;;  %v3334_v33 = vadd.f32 %v6949_v9, %v3325_v18  ;;  %v3335_v30 = vadd.f32 %v6949_v9, %v3326_v5 }
 0x33e   : > { %v3336_v23 = vadd.f32 %v6949_v9, %v3327_v26  ;;  %v3337_v54 = vadd.f32 %v6949_v9, %v3328_v58  ;;  %v3338_v31 = vadd.f32 %v6949_v9, %v3329_v11  ;;  %v3339_v22 = vadd.f32 %v6949_v9, %v3330_v14 }
 0x33f   : > { %v3340_v29 = vadd.f32 %v6949_v9, %v3331_v20  ;;  %v3341_v8 = vsub.f32 %v3333_v57, %v3289_v28  ;;  %v3342_v1 = vsub.f32 %v3334_v33, %v3290_v17  ;;  %v3343_v15 = vsub.f32 %v3335_v30, %v3291_v13 }
 0x340   : > { %v3344_v16 = vsub.f32 %v3336_v23, %v3292_v4  ;;  %v3345_v12 = vsub.f32 %v3337_v54, %v3293_v25  ;;  %v3346_v21 = vsub.f32 %v3338_v31, %v3294_v2  ;;  %v3347_v10 = vsub.f32 %v3339_v22, %v3295_v0 }
 0x341   : > { %v3348_v60 = vsub.f32 %v3340_v29, %v3296_v59  ;;  %v3350_v32 = vmul.f32 %v3341_v8, %v5216_v43  ;;  %v3351_v56 = vmul.f32 %v3342_v1, %v5220_v44  ;;  %v3352_v7 = vmul.f32 %v3343_v15, %v5224_v45 }
 0x342   : > { %v3353_v9 = vmul.f32 %v3344_v16, %v5228_v46  ;;  %v3354_v28 = vmul.f32 %v3345_v12, %v5232_v47  ;;  %v3355_v17 = vmul.f32 %v3346_v21, %v5236_v48  ;;  %v3356_v13 = vmul.f32 %v3347_v10, %v5240_v49 }
 0x343   : > { %v3357_v4 = vmul.f32 %v3348_v60, %v5244_v50  ;;  %v3358_v25 = vstv %s6967_s20  ;;  %v3384_v2 = vstv %s6969_s21  ;;  %v3410_v0 = vstv %s6971_s22  ;;  %s7185_s20 = sld [smem:[#allocation5 + $0x8b]] }
 0x344   : > { %v7003_v59 = vstv %s6977_s23  ;;  %v3359_v63 = vadd.f32 %v3358_v25, %v3350_v32  ;;  %v3360_v62 = vadd.f32 %v3358_v25, %v3351_v56  ;;  %v3361_v6 = vadd.f32 %v3358_v25, %v3352_v7  ;;  %s7187_s21 = sld [smem:[#allocation5 + $0x8a]] }
 0x345   : > { %v3362_v52 = vadd.f32 %v3358_v25, %v3353_v9  ;;  %v3363_v19 = vadd.f32 %v3358_v25, %v3354_v28  ;;  %v3364_v18 = vadd.f32 %v3358_v25, %v3355_v17  ;;  %v3365_v5 = vadd.f32 %v3358_v25, %v3356_v13  ;;  %s7193_s22 = sld [smem:[#allocation5 + $0x89]] }
 0x346   : > { %v3366_v26 = vadd.f32 %v3358_v25, %v3357_v4  ;;  %v3367_v58 = vsub.f32 %v3359_v63, %v3315_v53  ;;  %v3368_v11 = vsub.f32 %v3360_v62, %v3316_v24  ;;  %v3369_v14 = vsub.f32 %v3361_v6, %v3317_v3  ;;  %s7237_s23 = sld [smem:[#allocation5 + $0x88]] }
 0x347   : > { %v3370_v20 = vsub.f32 %v3362_v52, %v3318_v27  ;;  %v3371_v57 = vsub.f32 %v3363_v19, %v3319_v55  ;;  %v3372_v33 = vsub.f32 %v3364_v18, %v3320_v61  ;;  %v3373_v30 = vsub.f32 %v3365_v5, %v3321_v34 }
 0x348   : > { %v3374_v23 = vsub.f32 %v3366_v26, %v3322_v51  ;;  %v3376_v54 = vmul.f32 %v3367_v58, %v5216_v43  ;;  %v3377_v31 = vmul.f32 %v3368_v11, %v5220_v44  ;;  %v3378_v22 = vmul.f32 %v3369_v14, %v5224_v45 }
 0x349   : > { %v3379_v29 = vmul.f32 %v3370_v20, %v5228_v46  ;;  %v3380_v32 = vmul.f32 %v3371_v57, %v5232_v47  ;;  %v3381_v56 = vmul.f32 %v3372_v33, %v5236_v48  ;;  %v3382_v53 = vmul.f32 %v3373_v30, %v5240_v49 }
 0x34a   : > { %v3383_v24 = vmul.f32 %v3374_v23, %v5244_v50  ;;  %v3385_v3 = vadd.f32 %v3384_v2, %v3376_v54  ;;  %v3386_v27 = vadd.f32 %v3384_v2, %v3377_v31  ;;  %v3387_v55 = vadd.f32 %v3384_v2, %v3378_v22 }
 0x34b   : > { %v3388_v61 = vadd.f32 %v3384_v2, %v3379_v29  ;;  %v3389_v34 = vadd.f32 %v3384_v2, %v3380_v32  ;;  %v3390_v51 = vadd.f32 %v3384_v2, %v3381_v56  ;;  %v3391_v7 = vadd.f32 %v3384_v2, %v3382_v53 }
 0x34c   : > { %v3392_v9 = vadd.f32 %v3384_v2, %v3383_v24  ;;  %v3393_v28 = vsub.f32 %v3385_v3, %v3341_v8  ;;  %v3394_v17 = vsub.f32 %v3386_v27, %v3342_v1  ;;  %v3395_v13 = vsub.f32 %v3387_v55, %v3343_v15 }
 0x34d   : > { %v3396_v4 = vsub.f32 %v3388_v61, %v3344_v16  ;;  %v3397_v25 = vsub.f32 %v3389_v34, %v3345_v12  ;;  %v3398_v63 = vsub.f32 %v3390_v51, %v3346_v21  ;;  %v3399_v62 = vsub.f32 %v3391_v7, %v3347_v10 }
 0x34e   : > { %v3400_v6 = vsub.f32 %v3392_v9, %v3348_v60  ;;  %v3402_v52 = vmul.f32 %v3393_v28, %v5216_v43  ;;  %v3403_v19 = vmul.f32 %v3394_v17, %v5220_v44  ;;  %v3404_v18 = vmul.f32 %v3395_v13, %v5224_v45 }
 0x34f   : > { %v3405_v5 = vmul.f32 %v3396_v4, %v5228_v46  ;;  %v3406_v26 = vmul.f32 %v3397_v25, %v5232_v47  ;;  %v3407_v2 = vmul.f32 %v3398_v63, %v5236_v48  ;;  %v3408_v8 = vmul.f32 %v3399_v62, %v5240_v49 }
 0x350   : > { %v3409_v1 = vmul.f32 %v3400_v6, %v5244_v50  ;;  %v3411_v15 = vadd.f32 %v3410_v0, %v3402_v52  ;;  %v3412_v16 = vadd.f32 %v3410_v0, %v3403_v19  ;;  %v3413_v12 = vadd.f32 %v3410_v0, %v3404_v18 }
 0x351   : > { %v3414_v21 = vadd.f32 %v3410_v0, %v3405_v5  ;;  %v3415_v10 = vadd.f32 %v3410_v0, %v3406_v26  ;;  %v3416_v60 = vadd.f32 %v3410_v0, %v3407_v2  ;;  %v3417_v54 = vadd.f32 %v3410_v0, %v3408_v8 }
 0x352   : > { %v3418_v31 = vadd.f32 %v3410_v0, %v3409_v1  ;;  %v3419_v22 = vsub.f32 %v3411_v15, %v3367_v58  ;;  %v3420_v29 = vsub.f32 %v3412_v16, %v3368_v11  ;;  %v3421_v32 = vsub.f32 %v3413_v12, %v3369_v14 }
 0x353   : > { %v3422_v56 = vsub.f32 %v3414_v21, %v3370_v20  ;;  %v3423_v53 = vsub.f32 %v3415_v10, %v3371_v57  ;;  %v3424_v24 = vsub.f32 %v3416_v60, %v3372_v33  ;;  %v3425_v3 = vsub.f32 %v3417_v54, %v3373_v30 }
 0x354   : > { %v3426_v27 = vsub.f32 %v3418_v31, %v3374_v23  ;;  %v3428_v55 = vmul.f32 %v3419_v22, %v5216_v43  ;;  %v3429_v61 = vmul.f32 %v3420_v29, %v5220_v44  ;;  %v3430_v0 = vmul.f32 %v3421_v32, %v5224_v45 }
 0x355   : > { %v3431_v34 = vmul.f32 %v3422_v56, %v5228_v46  ;;  %v3432_v58 = vmul.f32 %v3423_v53, %v5232_v47  ;;  %v3433_v11 = vmul.f32 %v3424_v24, %v5236_v48  ;;  %v3434_v14 = vmul.f32 %v3425_v3, %v5240_v49 }
 0x356   : > { %v3435_v20 = vmul.f32 %v3426_v27, %v5244_v50  ;;  %v3437_v57 = vadd.f32 %v7003_v59, %v3428_v55  ;;  %v3438_v33 = vadd.f32 %v7003_v59, %v3429_v61  ;;  %v3439_v30 = vadd.f32 %v7003_v59, %v3430_v0 }
 0x357   : > { %v3440_v23 = vadd.f32 %v7003_v59, %v3431_v34  ;;  %v3441_v51 = vadd.f32 %v7003_v59, %v3432_v58  ;;  %v3442_v7 = vadd.f32 %v7003_v59, %v3433_v11  ;;  %v3443_v9 = vadd.f32 %v7003_v59, %v3434_v14 }
 0x358   : > { %v3444_v52 = vadd.f32 %v7003_v59, %v3435_v20  ;;  %v3445_v19 = vsub.f32 %v3437_v57, %v3393_v28  ;;  %v3446_v18 = vsub.f32 %v3438_v33, %v3394_v17  ;;  %v3447_v5 = vsub.f32 %v3439_v30, %v3395_v13 }
 0x359   : > { %v3448_v26 = vsub.f32 %v3440_v23, %v3396_v4  ;;  %v3449_v2 = vsub.f32 %v3441_v51, %v3397_v25  ;;  %v3450_v8 = vsub.f32 %v3442_v7, %v3398_v63  ;;  %v3451_v1 = vsub.f32 %v3443_v9, %v3399_v62 }
 0x35a   : > { %v3452_v15 = vsub.f32 %v3444_v52, %v3400_v6  ;;  %v3454_v16 = vmul.f32 %v3445_v19, %v5216_v43  ;;  %v3455_v12 = vmul.f32 %v3446_v18, %v5220_v44  ;;  %v3456_v21 = vmul.f32 %v3447_v5, %v5224_v45 }
 0x35b   : > { %v3457_v59 = vmul.f32 %v3448_v26, %v5228_v46  ;;  %v3458_v28 = vmul.f32 %v3449_v2, %v5232_v47  ;;  %v3459_v17 = vmul.f32 %v3450_v8, %v5236_v48  ;;  %v3460_v13 = vmul.f32 %v3451_v1, %v5240_v49 }
 0x35c   : > { %v3461_v4 = vmul.f32 %v3452_v15, %v5244_v50  ;;  %v3462_v25 = vstv %s7021_s25  ;;  %v3488_v63 = vstv %s7023_s0  ;;  %v3514_v62 = vstv %s7025_s1  ;;  %s7239_s25 = sld [smem:[#allocation5 + $0x87]] }
 0x35d   : > { %v7057_v6 = vstv %s7031_s5  ;;  %v3463_v10 = vadd.f32 %v3462_v25, %v3454_v16  ;;  %v3464_v60 = vadd.f32 %v3462_v25, %v3455_v12  ;;  %v3465_v54 = vadd.f32 %v3462_v25, %v3456_v21  ;;  %s7241_s0 = sld [smem:[#allocation5 + $0x86]] }
 0x35e   : > { %v3466_v31 = vadd.f32 %v3462_v25, %v3457_v59  ;;  %v3467_v55 = vadd.f32 %v3462_v25, %v3458_v28  ;;  %v3468_v61 = vadd.f32 %v3462_v25, %v3459_v17  ;;  %v3469_v0 = vadd.f32 %v3462_v25, %v3460_v13  ;;  %s7247_s1 = sld [smem:[#allocation5 + $0x85]] }
 0x35f   : > { %v3470_v34 = vadd.f32 %v3462_v25, %v3461_v4  ;;  %v3471_v58 = vsub.f32 %v3463_v10, %v3419_v22  ;;  %v3472_v11 = vsub.f32 %v3464_v60, %v3420_v29  ;;  %v3473_v14 = vsub.f32 %v3465_v54, %v3421_v32  ;;  %s7291_s5 = sld [smem:[#allocation5 + $0x84]] }
 0x360   : > { %v3474_v20 = vsub.f32 %v3466_v31, %v3422_v56  ;;  %v3475_v57 = vsub.f32 %v3467_v55, %v3423_v53  ;;  %v3476_v33 = vsub.f32 %v3468_v61, %v3424_v24  ;;  %v3477_v30 = vsub.f32 %v3469_v0, %v3425_v3 }
 0x361   : > { %v3478_v23 = vsub.f32 %v3470_v34, %v3426_v27  ;;  %v3480_v51 = vmul.f32 %v3471_v58, %v5216_v43  ;;  %v3481_v7 = vmul.f32 %v3472_v11, %v5220_v44  ;;  %v3482_v9 = vmul.f32 %v3473_v14, %v5224_v45 }
 0x362   : > { %v3483_v52 = vmul.f32 %v3474_v20, %v5228_v46  ;;  %v3484_v16 = vmul.f32 %v3475_v57, %v5232_v47  ;;  %v3485_v12 = vmul.f32 %v3476_v33, %v5236_v48  ;;  %v3486_v22 = vmul.f32 %v3477_v30, %v5240_v49 }
 0x363   : > { %v3487_v29 = vmul.f32 %v3478_v23, %v5244_v50  ;;  %v3489_v32 = vadd.f32 %v3488_v63, %v3480_v51  ;;  %v3490_v56 = vadd.f32 %v3488_v63, %v3481_v7  ;;  %v3491_v53 = vadd.f32 %v3488_v63, %v3482_v9 }
 0x364   : > { %v3492_v24 = vadd.f32 %v3488_v63, %v3483_v52  ;;  %v3493_v3 = vadd.f32 %v3488_v63, %v3484_v16  ;;  %v3494_v27 = vadd.f32 %v3488_v63, %v3485_v12  ;;  %v3495_v21 = vadd.f32 %v3488_v63, %v3486_v22 }
 0x365   : > { %v3496_v59 = vadd.f32 %v3488_v63, %v3487_v29  ;;  %v3497_v28 = vsub.f32 %v3489_v32, %v3445_v19  ;;  %v3498_v17 = vsub.f32 %v3490_v56, %v3446_v18  ;;  %v3499_v13 = vsub.f32 %v3491_v53, %v3447_v5 }
 0x366   : > { %v3500_v4 = vsub.f32 %v3492_v24, %v3448_v26  ;;  %v3501_v25 = vsub.f32 %v3493_v3, %v3449_v2  ;;  %v3502_v10 = vsub.f32 %v3494_v27, %v3450_v8  ;;  %v3503_v60 = vsub.f32 %v3495_v21, %v3451_v1 }
 0x367   : > { %v3504_v54 = vsub.f32 %v3496_v59, %v3452_v15  ;;  %v3506_v31 = vmul.f32 %v3497_v28, %v5216_v43  ;;  %v3507_v55 = vmul.f32 %v3498_v17, %v5220_v44  ;;  %v3508_v61 = vmul.f32 %v3499_v13, %v5224_v45 }
 0x368   : > { %v3509_v0 = vmul.f32 %v3500_v4, %v5228_v46  ;;  %v3510_v34 = vmul.f32 %v3501_v25, %v5232_v47  ;;  %v3511_v63 = vmul.f32 %v3502_v10, %v5236_v48  ;;  %v3512_v19 = vmul.f32 %v3503_v60, %v5240_v49 }
 0x369   : > { %v3513_v18 = vmul.f32 %v3504_v54, %v5244_v50  ;;  %v3515_v5 = vadd.f32 %v3514_v62, %v3506_v31  ;;  %v3516_v26 = vadd.f32 %v3514_v62, %v3507_v55  ;;  %v3517_v2 = vadd.f32 %v3514_v62, %v3508_v61 }
 0x36a   : > { %v3518_v8 = vadd.f32 %v3514_v62, %v3509_v0  ;;  %v3519_v1 = vadd.f32 %v3514_v62, %v3510_v34  ;;  %v3520_v15 = vadd.f32 %v3514_v62, %v3511_v63  ;;  %v3521_v51 = vadd.f32 %v3514_v62, %v3512_v19 }
 0x36b   : > { %v3522_v7 = vadd.f32 %v3514_v62, %v3513_v18  ;;  %v3523_v9 = vsub.f32 %v3515_v5, %v3471_v58  ;;  %v3524_v52 = vsub.f32 %v3516_v26, %v3472_v11  ;;  %v3525_v16 = vsub.f32 %v3517_v2, %v3473_v14 }
 0x36c   : > { %v3526_v12 = vsub.f32 %v3518_v8, %v3474_v20  ;;  %v3527_v22 = vsub.f32 %v3519_v1, %v3475_v57  ;;  %v3528_v29 = vsub.f32 %v3520_v15, %v3476_v33  ;;  %v3529_v32 = vsub.f32 %v3521_v51, %v3477_v30 }
 0x36d   : > { %v3530_v56 = vsub.f32 %v3522_v7, %v3478_v23  ;;  %v3532_v53 = vmul.f32 %v3523_v9, %v5216_v43  ;;  %v3533_v24 = vmul.f32 %v3524_v52, %v5220_v44  ;;  %v3534_v62 = vmul.f32 %v3525_v16, %v5224_v45 }
 0x36e   : > { %v3535_v3 = vmul.f32 %v3526_v12, %v5228_v46  ;;  %v3536_v58 = vmul.f32 %v3527_v22, %v5232_v47  ;;  %v3537_v11 = vmul.f32 %v3528_v29, %v5236_v48  ;;  %v3538_v14 = vmul.f32 %v3529_v32, %v5240_v49 }
 0x36f   : > { %v3539_v20 = vmul.f32 %v3530_v56, %v5244_v50  ;;  %v3541_v57 = vadd.f32 %v7057_v6, %v3532_v53  ;;  %v3542_v33 = vadd.f32 %v7057_v6, %v3533_v24  ;;  %v3543_v30 = vadd.f32 %v7057_v6, %v3534_v62 }
 0x370   : > { %v3544_v23 = vadd.f32 %v7057_v6, %v3535_v3  ;;  %v3545_v27 = vadd.f32 %v7057_v6, %v3536_v58  ;;  %v3546_v21 = vadd.f32 %v7057_v6, %v3537_v11  ;;  %v3547_v59 = vadd.f32 %v7057_v6, %v3538_v14 }
 0x371   : > { %v3548_v31 = vadd.f32 %v7057_v6, %v3539_v20  ;;  %v3549_v55 = vsub.f32 %v3541_v57, %v3497_v28  ;;  %v3550_v61 = vsub.f32 %v3542_v33, %v3498_v17  ;;  %v3551_v0 = vsub.f32 %v3543_v30, %v3499_v13 }
 0x372   : > { %v3552_v34 = vsub.f32 %v3544_v23, %v3500_v4  ;;  %v3553_v63 = vsub.f32 %v3545_v27, %v3501_v25  ;;  %v3554_v19 = vsub.f32 %v3546_v21, %v3502_v10  ;;  %v3555_v18 = vsub.f32 %v3547_v59, %v3503_v60 }
 0x373   : > { %v3556_v5 = vsub.f32 %v3548_v31, %v3504_v54  ;;  %v3558_v26 = vmul.f32 %v3549_v55, %v5216_v43  ;;  %v3559_v2 = vmul.f32 %v3550_v61, %v5220_v44  ;;  %v3560_v8 = vmul.f32 %v3551_v0, %v5224_v45 }
 0x374   : > { %v3561_v6 = vmul.f32 %v3552_v34, %v5228_v46  ;;  %v3562_v28 = vmul.f32 %v3553_v63, %v5232_v47  ;;  %v3563_v17 = vmul.f32 %v3554_v19, %v5236_v48  ;;  %v3564_v13 = vmul.f32 %v3555_v18, %v5240_v49 }
 0x375   : > { %v3565_v4 = vmul.f32 %v3556_v5, %v5244_v50  ;;  %v3566_v25 = vstv %s7075_s6  ;;  %v3592_v10 = vstv %s7077_s8  ;;  %v3618_v60 = vstv %s7079_s10  ;;  %s7293_s6 = sld [smem:[#allocation5 + $0x83]] }
 0x376   : > { %v7111_v54 = vstv %s7085_s15  ;;  %v3567_v1 = vadd.f32 %v3566_v25, %v3558_v26  ;;  %v3568_v15 = vadd.f32 %v3566_v25, %v3559_v2  ;;  %v3569_v51 = vadd.f32 %v3566_v25, %v3560_v8  ;;  %s7295_s8 = sld [smem:[#allocation5 + $0x82]] }
 0x377   : > { %v3570_v7 = vadd.f32 %v3566_v25, %v3561_v6  ;;  %v3571_v53 = vadd.f32 %v3566_v25, %v3562_v28  ;;  %v3572_v24 = vadd.f32 %v3566_v25, %v3563_v17  ;;  %v3573_v62 = vadd.f32 %v3566_v25, %v3564_v13  ;;  %s7301_s10 = sld [smem:[#allocation5 + $0x81]] }
 0x378   : > { %v3574_v3 = vadd.f32 %v3566_v25, %v3565_v4  ;;  %v3575_v58 = vsub.f32 %v3567_v1, %v3523_v9  ;;  %v3576_v11 = vsub.f32 %v3568_v15, %v3524_v52  ;;  %v3577_v14 = vsub.f32 %v3569_v51, %v3525_v16  ;;  %s7345_s15 = sld [smem:[#allocation5 + $0x80]] }
 0x379   : > { %v3578_v20 = vsub.f32 %v3570_v7, %v3526_v12  ;;  %v3579_v57 = vsub.f32 %v3571_v53, %v3527_v22  ;;  %v3580_v33 = vsub.f32 %v3572_v24, %v3528_v29  ;;  %v3581_v30 = vsub.f32 %v3573_v62, %v3529_v32 }
 0x37a   : > { %v3582_v23 = vsub.f32 %v3574_v3, %v3530_v56  ;;  %v3584_v27 = vmul.f32 %v3575_v58, %v5216_v43  ;;  %v3585_v21 = vmul.f32 %v3576_v11, %v5220_v44  ;;  %v3586_v59 = vmul.f32 %v3577_v14, %v5224_v45 }
 0x37b   : > { %v3587_v31 = vmul.f32 %v3578_v20, %v5228_v46  ;;  %v3588_v26 = vmul.f32 %v3579_v57, %v5232_v47  ;;  %v3589_v2 = vmul.f32 %v3580_v33, %v5236_v48  ;;  %v3590_v9 = vmul.f32 %v3581_v30, %v5240_v49 }
 0x37c   : > { %v3591_v52 = vmul.f32 %v3582_v23, %v5244_v50  ;;  %v3593_v16 = vadd.f32 %v3592_v10, %v3584_v27  ;;  %v3594_v12 = vadd.f32 %v3592_v10, %v3585_v21  ;;  %v3595_v22 = vadd.f32 %v3592_v10, %v3586_v59 }
 0x37d   : > { %v3596_v29 = vadd.f32 %v3592_v10, %v3587_v31  ;;  %v3597_v32 = vadd.f32 %v3592_v10, %v3588_v26  ;;  %v3598_v56 = vadd.f32 %v3592_v10, %v3589_v2  ;;  %v3599_v8 = vadd.f32 %v3592_v10, %v3590_v9 }
 0x37e   : > { %v3600_v6 = vadd.f32 %v3592_v10, %v3591_v52  ;;  %v3601_v28 = vsub.f32 %v3593_v16, %v3549_v55  ;;  %v3602_v17 = vsub.f32 %v3594_v12, %v3550_v61  ;;  %v3603_v13 = vsub.f32 %v3595_v22, %v3551_v0 }
 0x37f   : > { %v3604_v4 = vsub.f32 %v3596_v29, %v3552_v34  ;;  %v3605_v25 = vsub.f32 %v3597_v32, %v3553_v63  ;;  %v3606_v1 = vsub.f32 %v3598_v56, %v3554_v19  ;;  %v3607_v15 = vsub.f32 %v3599_v8, %v3555_v18 }
 0x380   : > { %v3608_v51 = vsub.f32 %v3600_v6, %v3556_v5  ;;  %v3610_v7 = vmul.f32 %v3601_v28, %v5216_v43  ;;  %v3611_v53 = vmul.f32 %v3602_v17, %v5220_v44  ;;  %v3612_v24 = vmul.f32 %v3603_v13, %v5224_v45 }
 0x381   : > { %v3613_v62 = vmul.f32 %v3604_v4, %v5228_v46  ;;  %v3614_v3 = vmul.f32 %v3605_v25, %v5232_v47  ;;  %v3615_v10 = vmul.f32 %v3606_v1, %v5236_v48  ;;  %v3616_v55 = vmul.f32 %v3607_v15, %v5240_v49 }
 0x382   : > { %v3617_v61 = vmul.f32 %v3608_v51, %v5244_v50  ;;  %v3619_v0 = vadd.f32 %v3618_v60, %v3610_v7  ;;  %v3620_v34 = vadd.f32 %v3618_v60, %v3611_v53  ;;  %v3621_v63 = vadd.f32 %v3618_v60, %v3612_v24 }
 0x383   : > { %v3622_v19 = vadd.f32 %v3618_v60, %v3613_v62  ;;  %v3623_v18 = vadd.f32 %v3618_v60, %v3614_v3  ;;  %v3624_v5 = vadd.f32 %v3618_v60, %v3615_v10  ;;  %v3625_v27 = vadd.f32 %v3618_v60, %v3616_v55 }
 0x384   : > { %v3626_v21 = vadd.f32 %v3618_v60, %v3617_v61  ;;  %v3627_v59 = vsub.f32 %v3619_v0, %v3575_v58  ;;  %v3628_v31 = vsub.f32 %v3620_v34, %v3576_v11  ;;  %v3629_v26 = vsub.f32 %v3621_v63, %v3577_v14 }
 0x385   : > { %v3630_v2 = vsub.f32 %v3622_v19, %v3578_v20  ;;  %v3631_v9 = vsub.f32 %v3623_v18, %v3579_v57  ;;  %v3632_v52 = vsub.f32 %v3624_v5, %v3580_v33  ;;  %v3633_v16 = vsub.f32 %v3625_v27, %v3581_v30 }
 0x386   : > { %v3634_v12 = vsub.f32 %v3626_v21, %v3582_v23  ;;  %v3636_v22 = vmul.f32 %v3627_v59, %v5216_v43  ;;  %v3637_v29 = vmul.f32 %v3628_v31, %v5220_v44  ;;  %v3638_v60 = vmul.f32 %v3629_v26, %v5224_v45 }
 0x387   : > { %v3639_v32 = vmul.f32 %v3630_v2, %v5228_v46  ;;  %v3640_v58 = vmul.f32 %v3631_v9, %v5232_v47  ;;  %v3641_v11 = vmul.f32 %v3632_v52, %v5236_v48  ;;  %v3642_v14 = vmul.f32 %v3633_v16, %v5240_v49 }
 0x388   : > { %v3643_v20 = vmul.f32 %v3634_v12, %v5244_v50  ;;  %v3645_v57 = vadd.f32 %v7111_v54, %v3636_v22  ;;  %v3646_v33 = vadd.f32 %v7111_v54, %v3637_v29  ;;  %v3647_v30 = vadd.f32 %v7111_v54, %v3638_v60 }
 0x389   : > { %v3648_v23 = vadd.f32 %v7111_v54, %v3639_v32  ;;  %v3649_v56 = vadd.f32 %v7111_v54, %v3640_v58  ;;  %v3650_v8 = vadd.f32 %v7111_v54, %v3641_v11  ;;  %v3651_v6 = vadd.f32 %v7111_v54, %v3642_v14 }
 0x38a   : > { %v3652_v7 = vadd.f32 %v7111_v54, %v3643_v20  ;;  %v3653_v53 = vsub.f32 %v3645_v57, %v3601_v28  ;;  %v3654_v24 = vsub.f32 %v3646_v33, %v3602_v17  ;;  %v3655_v62 = vsub.f32 %v3647_v30, %v3603_v13 }
 0x38b   : > { %v3656_v3 = vsub.f32 %v3648_v23, %v3604_v4  ;;  %v3657_v10 = vsub.f32 %v3649_v56, %v3605_v25  ;;  %v3658_v55 = vsub.f32 %v3650_v8, %v3606_v1  ;;  %v3659_v61 = vsub.f32 %v3651_v6, %v3607_v15 }
 0x38c   : > { %v3660_v0 = vsub.f32 %v3652_v7, %v3608_v51  ;;  %v3662_v34 = vmul.f32 %v3653_v53, %v5216_v43  ;;  %v3663_v63 = vmul.f32 %v3654_v24, %v5220_v44  ;;  %v3664_v19 = vmul.f32 %v3655_v62, %v5224_v45 }
 0x38d   : > { %v3665_v54 = vmul.f32 %v3656_v3, %v5228_v46  ;;  %v3666_v28 = vmul.f32 %v3657_v10, %v5232_v47  ;;  %v3667_v17 = vmul.f32 %v3658_v55, %v5236_v48  ;;  %v3668_v13 = vmul.f32 %v3659_v61, %v5240_v49 }
 0x38e   : > { %v3669_v4 = vmul.f32 %v3660_v0, %v5244_v50  ;;  %v3670_v25 = vstv %s7129_s16  ;;  %v3696_v1 = vstv %s7131_s17  ;;  %v3722_v15 = vstv %s7133_s18  ;;  %s7347_s16 = sld [smem:[#allocation5 + $0x7f]] }
 0x38f   : > { %v7165_v51 = vstv %s7139_s19  ;;  %v3671_v18 = vadd.f32 %v3670_v25, %v3662_v34  ;;  %v3672_v5 = vadd.f32 %v3670_v25, %v3663_v63  ;;  %v3673_v27 = vadd.f32 %v3670_v25, %v3664_v19  ;;  %s7349_s17 = sld [smem:[#allocation5 + $0x7e]] }
 0x390   : > { %v3674_v21 = vadd.f32 %v3670_v25, %v3665_v54  ;;  %v3675_v22 = vadd.f32 %v3670_v25, %v3666_v28  ;;  %v3676_v29 = vadd.f32 %v3670_v25, %v3667_v17  ;;  %v3677_v60 = vadd.f32 %v3670_v25, %v3668_v13  ;;  %s7355_s18 = sld [smem:[#allocation5 + $0x7d]] }
 0x391   : > { %v3678_v32 = vadd.f32 %v3670_v25, %v3669_v4  ;;  %v3679_v58 = vsub.f32 %v3671_v18, %v3627_v59  ;;  %v3680_v11 = vsub.f32 %v3672_v5, %v3628_v31  ;;  %v3681_v14 = vsub.f32 %v3673_v27, %v3629_v26  ;;  %s7399_s19 = sld [smem:[#allocation5 + $0x7c]] }
 0x392   : > { %v3682_v20 = vsub.f32 %v3674_v21, %v3630_v2  ;;  %v3683_v57 = vsub.f32 %v3675_v22, %v3631_v9  ;;  %v3684_v33 = vsub.f32 %v3676_v29, %v3632_v52  ;;  %v3685_v30 = vsub.f32 %v3677_v60, %v3633_v16 }
 0x393   : > { %v3686_v23 = vsub.f32 %v3678_v32, %v3634_v12  ;;  %v3688_v56 = vmul.f32 %v3679_v58, %v5216_v43  ;;  %v3689_v8 = vmul.f32 %v3680_v11, %v5220_v44  ;;  %v3690_v6 = vmul.f32 %v3681_v14, %v5224_v45 }
 0x394   : > { %v3691_v7 = vmul.f32 %v3682_v20, %v5228_v46  ;;  %v3692_v34 = vmul.f32 %v3683_v57, %v5232_v47  ;;  %v3693_v63 = vmul.f32 %v3684_v33, %v5236_v48  ;;  %v3694_v59 = vmul.f32 %v3685_v30, %v5240_v49 }
 0x395   : > { %v3695_v31 = vmul.f32 %v3686_v23, %v5244_v50  ;;  %v3697_v26 = vadd.f32 %v3696_v1, %v3688_v56  ;;  %v3698_v2 = vadd.f32 %v3696_v1, %v3689_v8  ;;  %v3699_v9 = vadd.f32 %v3696_v1, %v3690_v6 }
 0x396   : > { %v3700_v52 = vadd.f32 %v3696_v1, %v3691_v7  ;;  %v3701_v16 = vadd.f32 %v3696_v1, %v3692_v34  ;;  %v3702_v12 = vadd.f32 %v3696_v1, %v3693_v63  ;;  %v3703_v19 = vadd.f32 %v3696_v1, %v3694_v59 }
 0x397   : > { %v3704_v54 = vadd.f32 %v3696_v1, %v3695_v31  ;;  %v3705_v28 = vsub.f32 %v3697_v26, %v3653_v53  ;;  %v3706_v17 = vsub.f32 %v3698_v2, %v3654_v24  ;;  %v3707_v13 = vsub.f32 %v3699_v9, %v3655_v62 }
 0x398   : > { %v3708_v4 = vsub.f32 %v3700_v52, %v3656_v3  ;;  %v3709_v25 = vsub.f32 %v3701_v16, %v3657_v10  ;;  %v3710_v18 = vsub.f32 %v3702_v12, %v3658_v55  ;;  %v3711_v5 = vsub.f32 %v3703_v19, %v3659_v61 }
 0x399   : > { %v3712_v27 = vsub.f32 %v3704_v54, %v3660_v0  ;;  %v3714_v21 = vmul.f32 %v3705_v28, %v5216_v43  ;;  %v3715_v22 = vmul.f32 %v3706_v17, %v5220_v44  ;;  %v3716_v29 = vmul.f32 %v3707_v13, %v5224_v45 }
 0x39a   : > { %v3717_v60 = vmul.f32 %v3708_v4, %v5228_v46  ;;  %v3718_v32 = vmul.f32 %v3709_v25, %v5232_v47  ;;  %v3719_v1 = vmul.f32 %v3710_v18, %v5236_v48  ;;  %v3720_v53 = vmul.f32 %v3711_v5, %v5240_v49 }
 0x39b   : > { %v3721_v24 = vmul.f32 %v3712_v27, %v5244_v50  ;;  %v3723_v62 = vadd.f32 %v3722_v15, %v3714_v21  ;;  %v3724_v3 = vadd.f32 %v3722_v15, %v3715_v22  ;;  %v3725_v10 = vadd.f32 %v3722_v15, %v3716_v29 }
 0x39c   : > { %v3726_v55 = vadd.f32 %v3722_v15, %v3717_v60  ;;  %v3727_v61 = vadd.f32 %v3722_v15, %v3718_v32  ;;  %v3728_v0 = vadd.f32 %v3722_v15, %v3719_v1  ;;  %v3729_v56 = vadd.f32 %v3722_v15, %v3720_v53 }
 0x39d   : > { %v3730_v8 = vadd.f32 %v3722_v15, %v3721_v24  ;;  %v3731_v6 = vsub.f32 %v3723_v62, %v3679_v58  ;;  %v3732_v7 = vsub.f32 %v3724_v3, %v3680_v11  ;;  %v3733_v34 = vsub.f32 %v3725_v10, %v3681_v14 }
 0x39e   : > { %v3734_v63 = vsub.f32 %v3726_v55, %v3682_v20  ;;  %v3735_v59 = vsub.f32 %v3727_v61, %v3683_v57  ;;  %v3736_v31 = vsub.f32 %v3728_v0, %v3684_v33  ;;  %v3737_v26 = vsub.f32 %v3729_v56, %v3685_v30 }
 0x39f   : > { %v3738_v2 = vsub.f32 %v3730_v8, %v3686_v23  ;;  %v3740_v9 = vmul.f32 %v3731_v6, %v5216_v43  ;;  %v3741_v52 = vmul.f32 %v3732_v7, %v5220_v44  ;;  %v3742_v15 = vmul.f32 %v3733_v34, %v5224_v45 }
 0x3a0   : > { %v3743_v16 = vmul.f32 %v3734_v63, %v5228_v46  ;;  %v3744_v58 = vmul.f32 %v3735_v59, %v5232_v47  ;;  %v3745_v11 = vmul.f32 %v3736_v31, %v5236_v48  ;;  %v3746_v14 = vmul.f32 %v3737_v26, %v5240_v49 }
 0x3a1   : > { %v3747_v20 = vmul.f32 %v3738_v2, %v5244_v50  ;;  %v3749_v57 = vadd.f32 %v7165_v51, %v3740_v9  ;;  %v3750_v33 = vadd.f32 %v7165_v51, %v3741_v52  ;;  %v3751_v30 = vadd.f32 %v7165_v51, %v3742_v15 }
 0x3a2   : > { %v3752_v23 = vadd.f32 %v7165_v51, %v3743_v16  ;;  %v3753_v12 = vadd.f32 %v7165_v51, %v3744_v58  ;;  %v3754_v19 = vadd.f32 %v7165_v51, %v3745_v11  ;;  %v3755_v54 = vadd.f32 %v7165_v51, %v3746_v14 }
 0x3a3   : > { %v3756_v21 = vadd.f32 %v7165_v51, %v3747_v20  ;;  %v3757_v22 = vsub.f32 %v3749_v57, %v3705_v28  ;;  %v3758_v29 = vsub.f32 %v3750_v33, %v3706_v17  ;;  %v3759_v60 = vsub.f32 %v3751_v30, %v3707_v13 }
 0x3a4   : > { %v3760_v32 = vsub.f32 %v3752_v23, %v3708_v4  ;;  %v3761_v1 = vsub.f32 %v3753_v12, %v3709_v25  ;;  %v3762_v53 = vsub.f32 %v3754_v19, %v3710_v18  ;;  %v3763_v24 = vsub.f32 %v3755_v54, %v3711_v5 }
 0x3a5   : > { %v3764_v62 = vsub.f32 %v3756_v21, %v3712_v27  ;;  %v3766_v3 = vmul.f32 %v3757_v22, %v5216_v43  ;;  %v3767_v10 = vmul.f32 %v3758_v29, %v5220_v44  ;;  %v3768_v55 = vmul.f32 %v3759_v60, %v5224_v45 }
 0x3a6   : > { %v3769_v51 = vmul.f32 %v3760_v32, %v5228_v46  ;;  %v3770_v28 = vmul.f32 %v3761_v1, %v5232_v47  ;;  %v3771_v17 = vmul.f32 %v3762_v53, %v5236_v48  ;;  %v3772_v13 = vmul.f32 %v3763_v24, %v5240_v49 }
 0x3a7   : > { %v3773_v4 = vmul.f32 %v3764_v62, %v5244_v50  ;;  %v3774_v25 = vstv %s7183_s11  ;;  %v3800_v18 = vstv %s7185_s20  ;;  %v3826_v5 = vstv %s7187_s21  ;;  %s7401_s11 = sld [smem:[#allocation5 + $0x7b]] }
 0x3a8   : > { %v7219_v27 = vstv %s7193_s22  ;;  %v3775_v61 = vadd.f32 %v3774_v25, %v3766_v3  ;;  %v3776_v0 = vadd.f32 %v3774_v25, %v3767_v10  ;;  %v3777_v56 = vadd.f32 %v3774_v25, %v3768_v55  ;;  %s7403_s20 = sld [smem:[#allocation5 + $0x7a]] }
 0x3a9   : > { %v3778_v8 = vadd.f32 %v3774_v25, %v3769_v51  ;;  %v3779_v9 = vadd.f32 %v3774_v25, %v3770_v28  ;;  %v3780_v52 = vadd.f32 %v3774_v25, %v3771_v17  ;;  %v3781_v15 = vadd.f32 %v3774_v25, %v3772_v13  ;;  %s7409_s21 = sld [smem:[#allocation5 + $0x79]] }
 0x3aa   : > { %v3782_v16 = vadd.f32 %v3774_v25, %v3773_v4  ;;  %v3783_v58 = vsub.f32 %v3775_v61, %v3731_v6  ;;  %v3784_v11 = vsub.f32 %v3776_v0, %v3732_v7  ;;  %v3785_v14 = vsub.f32 %v3777_v56, %v3733_v34  ;;  %s7453_s22 = sld [smem:[#allocation5 + $0x78]] }
 0x3ab   : > { %v3786_v20 = vsub.f32 %v3778_v8, %v3734_v63  ;;  %v3787_v57 = vsub.f32 %v3779_v9, %v3735_v59  ;;  %v3788_v33 = vsub.f32 %v3780_v52, %v3736_v31  ;;  %v3789_v30 = vsub.f32 %v3781_v15, %v3737_v26 }
 0x3ac   : > { %v3790_v23 = vsub.f32 %v3782_v16, %v3738_v2  ;;  %v3792_v12 = vmul.f32 %v3783_v58, %v5216_v43  ;;  %v3793_v19 = vmul.f32 %v3784_v11, %v5220_v44  ;;  %v3794_v54 = vmul.f32 %v3785_v14, %v5224_v45 }
 0x3ad   : > { %v3795_v21 = vmul.f32 %v3786_v20, %v5228_v46  ;;  %v3796_v3 = vmul.f32 %v3787_v57, %v5232_v47  ;;  %v3797_v10 = vmul.f32 %v3788_v33, %v5236_v48  ;;  %v3798_v6 = vmul.f32 %v3789_v30, %v5240_v49 }
 0x3ae   : > { %v3799_v7 = vmul.f32 %v3790_v23, %v5244_v50  ;;  %v3801_v34 = vadd.f32 %v3800_v18, %v3792_v12  ;;  %v3802_v63 = vadd.f32 %v3800_v18, %v3793_v19  ;;  %v3803_v59 = vadd.f32 %v3800_v18, %v3794_v54 }
 0x3af   : > { %v3804_v31 = vadd.f32 %v3800_v18, %v3795_v21  ;;  %v3805_v26 = vadd.f32 %v3800_v18, %v3796_v3  ;;  %v3806_v2 = vadd.f32 %v3800_v18, %v3797_v10  ;;  %v3807_v55 = vadd.f32 %v3800_v18, %v3798_v6 }
 0x3b0   : > { %v3808_v51 = vadd.f32 %v3800_v18, %v3799_v7  ;;  %v3809_v28 = vsub.f32 %v3801_v34, %v3757_v22  ;;  %v3810_v17 = vsub.f32 %v3802_v63, %v3758_v29  ;;  %v3811_v13 = vsub.f32 %v3803_v59, %v3759_v60 }
 0x3b1   : > { %v3812_v4 = vsub.f32 %v3804_v31, %v3760_v32  ;;  %v3813_v25 = vsub.f32 %v3805_v26, %v3761_v1  ;;  %v3814_v61 = vsub.f32 %v3806_v2, %v3762_v53  ;;  %v3815_v0 = vsub.f32 %v3807_v55, %v3763_v24 }
 0x3b2   : > { %v3816_v56 = vsub.f32 %v3808_v51, %v3764_v62  ;;  %v3818_v8 = vmul.f32 %v3809_v28, %v5216_v43  ;;  %v3819_v9 = vmul.f32 %v3810_v17, %v5220_v44  ;;  %v3820_v52 = vmul.f32 %v3811_v13, %v5224_v45 }
 0x3b3   : > { %v3821_v15 = vmul.f32 %v3812_v4, %v5228_v46  ;;  %v3822_v16 = vmul.f32 %v3813_v25, %v5232_v47  ;;  %v3823_v18 = vmul.f32 %v3814_v61, %v5236_v48  ;;  %v3824_v22 = vmul.f32 %v3815_v0, %v5240_v49 }
 0x3b4   : > { %v3825_v29 = vmul.f32 %v3816_v56, %v5244_v50  ;;  %v3827_v60 = vadd.f32 %v3826_v5, %v3818_v8  ;;  %v3828_v32 = vadd.f32 %v3826_v5, %v3819_v9  ;;  %v3829_v1 = vadd.f32 %v3826_v5, %v3820_v52 }
 0x3b5   : > { %v3830_v53 = vadd.f32 %v3826_v5, %v3821_v15  ;;  %v3831_v24 = vadd.f32 %v3826_v5, %v3822_v16  ;;  %v3832_v62 = vadd.f32 %v3826_v5, %v3823_v18  ;;  %v3833_v12 = vadd.f32 %v3826_v5, %v3824_v22 }
 0x3b6   : > { %v3834_v19 = vadd.f32 %v3826_v5, %v3825_v29  ;;  %v3835_v54 = vsub.f32 %v3827_v60, %v3783_v58  ;;  %v3836_v21 = vsub.f32 %v3828_v32, %v3784_v11  ;;  %v3837_v3 = vsub.f32 %v3829_v1, %v3785_v14 }
 0x3b7   : > { %v3838_v10 = vsub.f32 %v3830_v53, %v3786_v20  ;;  %v3839_v6 = vsub.f32 %v3831_v24, %v3787_v57  ;;  %v3840_v7 = vsub.f32 %v3832_v62, %v3788_v33  ;;  %v3841_v34 = vsub.f32 %v3833_v12, %v3789_v30 }
 0x3b8   : > { %v3842_v63 = vsub.f32 %v3834_v19, %v3790_v23  ;;  %v3844_v59 = vmul.f32 %v3835_v54, %v5216_v43  ;;  %v3845_v31 = vmul.f32 %v3836_v21, %v5220_v44  ;;  %v3846_v5 = vmul.f32 %v3837_v3, %v5224_v45 }
 0x3b9   : > { %v3847_v26 = vmul.f32 %v3838_v10, %v5228_v46  ;;  %v3848_v58 = vmul.f32 %v3839_v6, %v5232_v47  ;;  %v3849_v11 = vmul.f32 %v3840_v7, %v5236_v48  ;;  %v3850_v14 = vmul.f32 %v3841_v34, %v5240_v49 }
 0x3ba   : > { %v3851_v20 = vmul.f32 %v3842_v63, %v5244_v50  ;;  %v3853_v57 = vadd.f32 %v7219_v27, %v3844_v59  ;;  %v3854_v33 = vadd.f32 %v7219_v27, %v3845_v31  ;;  %v3855_v30 = vadd.f32 %v7219_v27, %v3846_v5 }
 0x3bb   : > { %v3856_v23 = vadd.f32 %v7219_v27, %v3847_v26  ;;  %v3857_v2 = vadd.f32 %v7219_v27, %v3848_v58  ;;  %v3858_v55 = vadd.f32 %v7219_v27, %v3849_v11  ;;  %v3859_v51 = vadd.f32 %v7219_v27, %v3850_v14 }
 0x3bc   : > { %v3860_v8 = vadd.f32 %v7219_v27, %v3851_v20  ;;  %v3861_v9 = vsub.f32 %v3853_v57, %v3809_v28  ;;  %v3862_v52 = vsub.f32 %v3854_v33, %v3810_v17  ;;  %v3863_v15 = vsub.f32 %v3855_v30, %v3811_v13 }
 0x3bd   : > { %v3864_v16 = vsub.f32 %v3856_v23, %v3812_v4  ;;  %v3865_v18 = vsub.f32 %v3857_v2, %v3813_v25  ;;  %v3866_v22 = vsub.f32 %v3858_v55, %v3814_v61  ;;  %v3867_v29 = vsub.f32 %v3859_v51, %v3815_v0 }
 0x3be   : > { %v3868_v60 = vsub.f32 %v3860_v8, %v3816_v56  ;;  %v3870_v32 = vmul.f32 %v3861_v9, %v5216_v43  ;;  %v3871_v1 = vmul.f32 %v3862_v52, %v5220_v44  ;;  %v3872_v53 = vmul.f32 %v3863_v15, %v5224_v45 }
 0x3bf   : > { %v3873_v27 = vmul.f32 %v3864_v16, %v5228_v46  ;;  %v3874_v28 = vmul.f32 %v3865_v18, %v5232_v47  ;;  %v3875_v17 = vmul.f32 %v3866_v22, %v5236_v48  ;;  %v3876_v13 = vmul.f32 %v3867_v29, %v5240_v49 }
 0x3c0   : > { %v3877_v4 = vmul.f32 %v3868_v60, %v5244_v50  ;;  %v3878_v25 = vstv %s7237_s23  ;;  %v3904_v61 = vstv %s7239_s25  ;;  %v3930_v0 = vstv %s7241_s0  ;;  %s7455_s23 = sld [smem:[#allocation5 + $0x77]] }
 0x3c1   : > { %v7273_v56 = vstv %s7247_s1  ;;  %v3879_v24 = vadd.f32 %v3878_v25, %v3870_v32  ;;  %v3880_v62 = vadd.f32 %v3878_v25, %v3871_v1  ;;  %v3881_v12 = vadd.f32 %v3878_v25, %v3872_v53  ;;  %s7457_s25 = sld [smem:[#allocation5 + $0x76]] }
 0x3c2   : > { %v3882_v19 = vadd.f32 %v3878_v25, %v3873_v27  ;;  %v3883_v59 = vadd.f32 %v3878_v25, %v3874_v28  ;;  %v3884_v31 = vadd.f32 %v3878_v25, %v3875_v17  ;;  %v3885_v5 = vadd.f32 %v3878_v25, %v3876_v13  ;;  %s7463_s0 = sld [smem:[#allocation5 + $0x75]] }
 0x3c3   : > { %v3886_v26 = vadd.f32 %v3878_v25, %v3877_v4  ;;  %v3887_v58 = vsub.f32 %v3879_v24, %v3835_v54  ;;  %v3888_v11 = vsub.f32 %v3880_v62, %v3836_v21  ;;  %v3889_v14 = vsub.f32 %v3881_v12, %v3837_v3  ;;  %s7507_s1 = sld [smem:[#allocation5 + $0x74]] }
 0x3c4   : > { %v3890_v20 = vsub.f32 %v3882_v19, %v3838_v10  ;;  %v3891_v57 = vsub.f32 %v3883_v59, %v3839_v6  ;;  %v3892_v33 = vsub.f32 %v3884_v31, %v3840_v7  ;;  %v3893_v30 = vsub.f32 %v3885_v5, %v3841_v34 }
 0x3c5   : > { %v3894_v23 = vsub.f32 %v3886_v26, %v3842_v63  ;;  %v3896_v2 = vmul.f32 %v3887_v58, %v5216_v43  ;;  %v3897_v55 = vmul.f32 %v3888_v11, %v5220_v44  ;;  %v3898_v51 = vmul.f32 %v3889_v14, %v5224_v45 }
 0x3c6   : > { %v3899_v8 = vmul.f32 %v3890_v20, %v5228_v46  ;;  %v3900_v32 = vmul.f32 %v3891_v57, %v5232_v47  ;;  %v3901_v1 = vmul.f32 %v3892_v33, %v5236_v48  ;;  %v3902_v54 = vmul.f32 %v3893_v30, %v5240_v49 }
 0x3c7   : > { %v3903_v21 = vmul.f32 %v3894_v23, %v5244_v50  ;;  %v3905_v3 = vadd.f32 %v3904_v61, %v3896_v2  ;;  %v3906_v10 = vadd.f32 %v3904_v61, %v3897_v55  ;;  %v3907_v6 = vadd.f32 %v3904_v61, %v3898_v51 }
 0x3c8   : > { %v3908_v7 = vadd.f32 %v3904_v61, %v3899_v8  ;;  %v3909_v34 = vadd.f32 %v3904_v61, %v3900_v32  ;;  %v3910_v63 = vadd.f32 %v3904_v61, %v3901_v1  ;;  %v3911_v53 = vadd.f32 %v3904_v61, %v3902_v54 }
 0x3c9   : > { %v3912_v27 = vadd.f32 %v3904_v61, %v3903_v21  ;;  %v3913_v28 = vsub.f32 %v3905_v3, %v3861_v9  ;;  %v3914_v17 = vsub.f32 %v3906_v10, %v3862_v52  ;;  %v3915_v13 = vsub.f32 %v3907_v6, %v3863_v15 }
 0x3ca   : > { %v3916_v4 = vsub.f32 %v3908_v7, %v3864_v16  ;;  %v3917_v25 = vsub.f32 %v3909_v34, %v3865_v18  ;;  %v3918_v24 = vsub.f32 %v3910_v63, %v3866_v22  ;;  %v3919_v62 = vsub.f32 %v3911_v53, %v3867_v29 }
 0x3cb   : > { %v3920_v12 = vsub.f32 %v3912_v27, %v3868_v60  ;;  %v3922_v19 = vmul.f32 %v3913_v28, %v5216_v43  ;;  %v3923_v59 = vmul.f32 %v3914_v17, %v5220_v44  ;;  %v3924_v31 = vmul.f32 %v3915_v13, %v5224_v45 }
 0x3cc   : > { %v3925_v5 = vmul.f32 %v3916_v4, %v5228_v46  ;;  %v3926_v26 = vmul.f32 %v3917_v25, %v5232_v47  ;;  %v3927_v61 = vmul.f32 %v3918_v24, %v5236_v48  ;;  %v3928_v9 = vmul.f32 %v3919_v62, %v5240_v49 }
 0x3cd   : > { %v3929_v52 = vmul.f32 %v3920_v12, %v5244_v50  ;;  %v3931_v15 = vadd.f32 %v3930_v0, %v3922_v19  ;;  %v3932_v16 = vadd.f32 %v3930_v0, %v3923_v59  ;;  %v3933_v18 = vadd.f32 %v3930_v0, %v3924_v31 }
 0x3ce   : > { %v3934_v22 = vadd.f32 %v3930_v0, %v3925_v5  ;;  %v3935_v29 = vadd.f32 %v3930_v0, %v3926_v26  ;;  %v3936_v60 = vadd.f32 %v3930_v0, %v3927_v61  ;;  %v3937_v2 = vadd.f32 %v3930_v0, %v3928_v9 }
 0x3cf   : > { %v3938_v55 = vadd.f32 %v3930_v0, %v3929_v52  ;;  %v3939_v51 = vsub.f32 %v3931_v15, %v3887_v58  ;;  %v3940_v8 = vsub.f32 %v3932_v16, %v3888_v11  ;;  %v3941_v32 = vsub.f32 %v3933_v18, %v3889_v14 }
 0x3d0   : > { %v3942_v1 = vsub.f32 %v3934_v22, %v3890_v20  ;;  %v3943_v54 = vsub.f32 %v3935_v29, %v3891_v57  ;;  %v3944_v21 = vsub.f32 %v3936_v60, %v3892_v33  ;;  %v3945_v3 = vsub.f32 %v3937_v2, %v3893_v30 }
 0x3d1   : > { %v3946_v10 = vsub.f32 %v3938_v55, %v3894_v23  ;;  %v3948_v6 = vmul.f32 %v3939_v51, %v5216_v43  ;;  %v3949_v7 = vmul.f32 %v3940_v8, %v5220_v44  ;;  %v3950_v0 = vmul.f32 %v3941_v32, %v5224_v45 }
 0x3d2   : > { %v3951_v34 = vmul.f32 %v3942_v1, %v5228_v46  ;;  %v3952_v58 = vmul.f32 %v3943_v54, %v5232_v47  ;;  %v3953_v11 = vmul.f32 %v3944_v21, %v5236_v48  ;;  %v3954_v14 = vmul.f32 %v3945_v3, %v5240_v49 }
 0x3d3   : > { %v3955_v20 = vmul.f32 %v3946_v10, %v5244_v50  ;;  %v3957_v57 = vadd.f32 %v7273_v56, %v3948_v6  ;;  %v3958_v33 = vadd.f32 %v7273_v56, %v3949_v7  ;;  %v3959_v30 = vadd.f32 %v7273_v56, %v3950_v0 }
 0x3d4   : > { %v3960_v23 = vadd.f32 %v7273_v56, %v3951_v34  ;;  %v3961_v63 = vadd.f32 %v7273_v56, %v3952_v58  ;;  %v3962_v53 = vadd.f32 %v7273_v56, %v3953_v11  ;;  %v3963_v27 = vadd.f32 %v7273_v56, %v3954_v14 }
 0x3d5   : > { %v3964_v19 = vadd.f32 %v7273_v56, %v3955_v20  ;;  %v3965_v59 = vsub.f32 %v3957_v57, %v3913_v28  ;;  %v3966_v31 = vsub.f32 %v3958_v33, %v3914_v17  ;;  %v3967_v5 = vsub.f32 %v3959_v30, %v3915_v13 }
 0x3d6   : > { %v3968_v26 = vsub.f32 %v3960_v23, %v3916_v4  ;;  %v3969_v61 = vsub.f32 %v3961_v63, %v3917_v25  ;;  %v3970_v9 = vsub.f32 %v3962_v53, %v3918_v24  ;;  %v3971_v52 = vsub.f32 %v3963_v27, %v3919_v62 }
 0x3d7   : > { %v3972_v15 = vsub.f32 %v3964_v19, %v3920_v12  ;;  %v3974_v16 = vmul.f32 %v3965_v59, %v5216_v43  ;;  %v3975_v18 = vmul.f32 %v3966_v31, %v5220_v44  ;;  %v3976_v22 = vmul.f32 %v3967_v5, %v5224_v45 }
 0x3d8   : > { %v3977_v56 = vmul.f32 %v3968_v26, %v5228_v46  ;;  %v3978_v28 = vmul.f32 %v3969_v61, %v5232_v47  ;;  %v3979_v17 = vmul.f32 %v3970_v9, %v5236_v48  ;;  %v3980_v13 = vmul.f32 %v3971_v52, %v5240_v49 }
 0x3d9   : > { %v3981_v4 = vmul.f32 %v3972_v15, %v5244_v50  ;;  %v3982_v25 = vstv %s7291_s5  ;;  %v4008_v24 = vstv %s7293_s6  ;;  %v4034_v62 = vstv %s7295_s8  ;;  %s7509_s5 = sld [smem:[#allocation5 + $0x73]] }
 0x3da   : > { %v7327_v12 = vstv %s7301_s10  ;;  %v3983_v29 = vadd.f32 %v3982_v25, %v3974_v16  ;;  %v3984_v60 = vadd.f32 %v3982_v25, %v3975_v18  ;;  %v3985_v2 = vadd.f32 %v3982_v25, %v3976_v22  ;;  %s7511_s6 = sld [smem:[#allocation5 + $0x72]] }
 0x3db   : > { %v3986_v55 = vadd.f32 %v3982_v25, %v3977_v56  ;;  %v3987_v6 = vadd.f32 %v3982_v25, %v3978_v28  ;;  %v3988_v7 = vadd.f32 %v3982_v25, %v3979_v17  ;;  %v3989_v0 = vadd.f32 %v3982_v25, %v3980_v13  ;;  %s7517_s8 = sld [smem:[#allocation5 + $0x71]] }
 0x3dc   : > { %v3990_v34 = vadd.f32 %v3982_v25, %v3981_v4  ;;  %v3991_v58 = vsub.f32 %v3983_v29, %v3939_v51  ;;  %v3992_v11 = vsub.f32 %v3984_v60, %v3940_v8  ;;  %v3993_v14 = vsub.f32 %v3985_v2, %v3941_v32  ;;  %s7565_s10 = sld [smem:[#allocation5 + $0x70]] }
 0x3dd   : > { %v3994_v20 = vsub.f32 %v3986_v55, %v3942_v1  ;;  %v3995_v57 = vsub.f32 %v3987_v6, %v3943_v54  ;;  %v3996_v33 = vsub.f32 %v3988_v7, %v3944_v21  ;;  %v3997_v30 = vsub.f32 %v3989_v0, %v3945_v3 }
 0x3de   : > { %v3998_v23 = vsub.f32 %v3990_v34, %v3946_v10  ;;  %v4000_v63 = vmul.f32 %v3991_v58, %v5216_v43  ;;  %v4001_v53 = vmul.f32 %v3992_v11, %v5220_v44  ;;  %v4002_v27 = vmul.f32 %v3993_v14, %v5224_v45 }
 0x3df   : > { %v4003_v19 = vmul.f32 %v3994_v20, %v5228_v46  ;;  %v4004_v16 = vmul.f32 %v3995_v57, %v5232_v47  ;;  %v4005_v18 = vmul.f32 %v3996_v33, %v5236_v48  ;;  %v4006_v51 = vmul.f32 %v3997_v30, %v5240_v49 }
 0x3e0   : > { %v4007_v8 = vmul.f32 %v3998_v23, %v5244_v50  ;;  %v4009_v32 = vadd.f32 %v4008_v24, %v4000_v63  ;;  %v4010_v1 = vadd.f32 %v4008_v24, %v4001_v53  ;;  %v4011_v54 = vadd.f32 %v4008_v24, %v4002_v27 }
 0x3e1   : > { %v4012_v21 = vadd.f32 %v4008_v24, %v4003_v19  ;;  %v4013_v3 = vadd.f32 %v4008_v24, %v4004_v16  ;;  %v4014_v10 = vadd.f32 %v4008_v24, %v4005_v18  ;;  %v4015_v22 = vadd.f32 %v4008_v24, %v4006_v51 }
 0x3e2   : > { %v4016_v56 = vadd.f32 %v4008_v24, %v4007_v8  ;;  %v4017_v28 = vsub.f32 %v4009_v32, %v3965_v59  ;;  %v4018_v17 = vsub.f32 %v4010_v1, %v3966_v31  ;;  %v4019_v13 = vsub.f32 %v4011_v54, %v3967_v5 }
 0x3e3   : > { %v4020_v4 = vsub.f32 %v4012_v21, %v3968_v26  ;;  %v4021_v25 = vsub.f32 %v4013_v3, %v3969_v61  ;;  %v4022_v29 = vsub.f32 %v4014_v10, %v3970_v9  ;;  %v4023_v60 = vsub.f32 %v4015_v22, %v3971_v52 }
 0x3e4   : > { %v4024_v2 = vsub.f32 %v4016_v56, %v3972_v15  ;;  %v4026_v55 = vmul.f32 %v4017_v28, %v5216_v43  ;;  %v4027_v6 = vmul.f32 %v4018_v17, %v5220_v44  ;;  %v4028_v7 = vmul.f32 %v4019_v13, %v5224_v45 }
 0x3e5   : > { %v4029_v0 = vmul.f32 %v4020_v4, %v5228_v46  ;;  %v4030_v34 = vmul.f32 %v4021_v25, %v5232_v47  ;;  %v4031_v24 = vmul.f32 %v4022_v29, %v5236_v48  ;;  %v4032_v59 = vmul.f32 %v4023_v60, %v5240_v49 }
 0x3e6   : > { %v4033_v31 = vmul.f32 %v4024_v2, %v5244_v50  ;;  %v4035_v5 = vadd.f32 %v4034_v62, %v4026_v55  ;;  %v4036_v26 = vadd.f32 %v4034_v62, %v4027_v6  ;;  %v4037_v61 = vadd.f32 %v4034_v62, %v4028_v7 }
 0x3e7   : > { %v4038_v9 = vadd.f32 %v4034_v62, %v4029_v0  ;;  %v4039_v52 = vadd.f32 %v4034_v62, %v4030_v34  ;;  %v4040_v15 = vadd.f32 %v4034_v62, %v4031_v24  ;;  %v4041_v63 = vadd.f32 %v4034_v62, %v4032_v59 }
 0x3e8   : > { %v4042_v53 = vadd.f32 %v4034_v62, %v4033_v31  ;;  %v4043_v27 = vsub.f32 %v4035_v5, %v3991_v58  ;;  %v4044_v19 = vsub.f32 %v4036_v26, %v3992_v11  ;;  %v4045_v16 = vsub.f32 %v4037_v61, %v3993_v14 }
 0x3e9   : > { %v4046_v18 = vsub.f32 %v4038_v9, %v3994_v20  ;;  %v4047_v51 = vsub.f32 %v4039_v52, %v3995_v57  ;;  %v4048_v8 = vsub.f32 %v4040_v15, %v3996_v33  ;;  %v4049_v32 = vsub.f32 %v4041_v63, %v3997_v30 }
 0x3ea   : > { %v4050_v1 = vsub.f32 %v4042_v53, %v3998_v23  ;;  %v4052_v54 = vmul.f32 %v4043_v27, %v5216_v43  ;;  %v4053_v21 = vmul.f32 %v4044_v19, %v5220_v44  ;;  %v4054_v62 = vmul.f32 %v4045_v16, %v5224_v45 }
 0x3eb   : > { %v4055_v3 = vmul.f32 %v4046_v18, %v5228_v46  ;;  %v4056_v58 = vmul.f32 %v4047_v51, %v5232_v47  ;;  %v4057_v11 = vmul.f32 %v4048_v8, %v5236_v48  ;;  %v4058_v14 = vmul.f32 %v4049_v32, %v5240_v49 }
 0x3ec   : > { %v4059_v20 = vmul.f32 %v4050_v1, %v5244_v50  ;;  %v4061_v57 = vadd.f32 %v7327_v12, %v4052_v54  ;;  %v4062_v33 = vadd.f32 %v7327_v12, %v4053_v21  ;;  %v4063_v30 = vadd.f32 %v7327_v12, %v4054_v62 }
 0x3ed   : > { %v4064_v23 = vadd.f32 %v7327_v12, %v4055_v3  ;;  %v4065_v10 = vadd.f32 %v7327_v12, %v4056_v58  ;;  %v4066_v22 = vadd.f32 %v7327_v12, %v4057_v11  ;;  %v4067_v56 = vadd.f32 %v7327_v12, %v4058_v14 }
 0x3ee   : > { %v4068_v55 = vadd.f32 %v7327_v12, %v4059_v20  ;;  %v4069_v6 = vsub.f32 %v4061_v57, %v4017_v28  ;;  %v4070_v7 = vsub.f32 %v4062_v33, %v4018_v17  ;;  %v4071_v0 = vsub.f32 %v4063_v30, %v4019_v13 }
 0x3ef   : > { %v4072_v34 = vsub.f32 %v4064_v23, %v4020_v4  ;;  %v4073_v24 = vsub.f32 %v4065_v10, %v4021_v25  ;;  %v4074_v59 = vsub.f32 %v4066_v22, %v4022_v29  ;;  %v4075_v31 = vsub.f32 %v4067_v56, %v4023_v60 }
 0x3f0   : > { %v4076_v5 = vsub.f32 %v4068_v55, %v4024_v2  ;;  %v4078_v26 = vmul.f32 %v4069_v6, %v5216_v43  ;;  %v4079_v61 = vmul.f32 %v4070_v7, %v5220_v44  ;;  %v4080_v9 = vmul.f32 %v4071_v0, %v5224_v45 }
 0x3f1   : > { %v4081_v12 = vmul.f32 %v4072_v34, %v5228_v46  ;;  %v4082_v28 = vmul.f32 %v4073_v24, %v5232_v47  ;;  %v4083_v17 = vmul.f32 %v4074_v59, %v5236_v48  ;;  %v4084_v13 = vmul.f32 %v4075_v31, %v5240_v49 }
 0x3f2   : > { %v4085_v4 = vmul.f32 %v4076_v5, %v5244_v50  ;;  %v4086_v25 = vstv %s7345_s15  ;;  %v4112_v29 = vstv %s7347_s16  ;;  %v4138_v60 = vstv %s7349_s17  ;;  %s4841_s15 = smul.u32 3072, %s5045_s28  ;;  %s4547_s16 = sshll.u32 %s6037_s24, 4  ;;  %s7595_s16 = int_to_ptr.vmem [resolvable:$true] %s4547_s16 }
 0x3f3   : > { %v7381_v2 = vstv %s7355_s18  ;;  %v4087_v52 = vadd.f32 %v4086_v25, %v4078_v26  ;;  %v4088_v15 = vadd.f32 %v4086_v25, %v4079_v61  ;;  %v4089_v63 = vadd.f32 %v4086_v25, %v4080_v9 }
 0x3f4   : > { %v4090_v53 = vadd.f32 %v4086_v25, %v4081_v12  ;;  %v4091_v54 = vadd.f32 %v4086_v25, %v4082_v28  ;;  %v4092_v21 = vadd.f32 %v4086_v25, %v4083_v17  ;;  %v4093_v62 = vadd.f32 %v4086_v25, %v4084_v13  ;;  %s7593_s18 = scalar_lea.hbm %s7653_s4, %s4841_s15 }
 0x3f5   : > { %v4094_v3 = vadd.f32 %v4086_v25, %v4085_v4  ;;  %v4095_v58 = vsub.f32 %v4087_v52, %v4043_v27  ;;  %v4096_v11 = vsub.f32 %v4088_v15, %v4044_v19  ;;  %v4097_v14 = vsub.f32 %v4089_v63, %v4045_v16 }
 0x3f6   : > { %v4098_v20 = vsub.f32 %v4090_v53, %v4046_v18  ;;  %v4099_v57 = vsub.f32 %v4091_v54, %v4047_v51  ;;  %v4100_v33 = vsub.f32 %v4092_v21, %v4048_v8  ;;  %v4101_v30 = vsub.f32 %v4093_v62, %v4049_v32 }
 0x3f7   : > { %v4102_v23 = vsub.f32 %v4094_v3, %v4050_v1  ;;  %v4104_v10 = vmul.f32 %v4095_v58, %v5216_v43  ;;  %v4105_v22 = vmul.f32 %v4096_v11, %v5220_v44  ;;  %v4106_v56 = vmul.f32 %v4097_v14, %v5224_v45 }
 0x3f8   : > { %v4107_v55 = vmul.f32 %v4098_v20, %v5228_v46  ;;  %v4108_v26 = vmul.f32 %v4099_v57, %v5232_v47  ;;  %v4109_v61 = vmul.f32 %v4100_v33, %v5236_v48  ;;  %v4110_v27 = vmul.f32 %v4101_v30, %v5240_v49 }
 0x3f9   : > { %v4111_v19 = vmul.f32 %v4102_v23, %v5244_v50  ;;  %v4113_v16 = vadd.f32 %v4112_v29, %v4104_v10  ;;  %v4114_v18 = vadd.f32 %v4112_v29, %v4105_v22  ;;  %v4115_v51 = vadd.f32 %v4112_v29, %v4106_v56 }
 0x3fa   : > { %v4116_v8 = vadd.f32 %v4112_v29, %v4107_v55  ;;  %v4117_v32 = vadd.f32 %v4112_v29, %v4108_v26  ;;  %v4118_v1 = vadd.f32 %v4112_v29, %v4109_v61  ;;  %v4119_v9 = vadd.f32 %v4112_v29, %v4110_v27 }
 0x3fb   : > { %v4120_v12 = vadd.f32 %v4112_v29, %v4111_v19  ;;  %v4121_v28 = vsub.f32 %v4113_v16, %v4069_v6  ;;  %v4122_v17 = vsub.f32 %v4114_v18, %v4070_v7  ;;  %v4123_v13 = vsub.f32 %v4115_v51, %v4071_v0 }
 0x3fc   : > { %v4124_v4 = vsub.f32 %v4116_v8, %v4072_v34  ;;  %v4125_v25 = vsub.f32 %v4117_v32, %v4073_v24  ;;  %v4126_v52 = vsub.f32 %v4118_v1, %v4074_v59  ;;  %v4127_v15 = vsub.f32 %v4119_v9, %v4075_v31 }
 0x3fd   : > { %v4128_v63 = vsub.f32 %v4120_v12, %v4076_v5  ;;  %v4130_v53 = vmul.f32 %v4121_v28, %v5216_v43  ;;  %v4131_v54 = vmul.f32 %v4122_v17, %v5220_v44  ;;  %v4132_v21 = vmul.f32 %v4123_v13, %v5224_v45 }
 0x3fe   : > { %v4133_v62 = vmul.f32 %v4124_v4, %v5228_v46  ;;  %v4134_v3 = vmul.f32 %v4125_v25, %v5232_v47  ;;  %v4135_v29 = vmul.f32 %v4126_v52, %v5236_v48  ;;  %v4136_v6 = vmul.f32 %v4127_v15, %v5240_v49 }
 0x3ff   : > { %v4137_v7 = vmul.f32 %v4128_v63, %v5244_v50  ;;  %v4139_v0 = vadd.f32 %v4138_v60, %v4130_v53  ;;  %v4140_v34 = vadd.f32 %v4138_v60, %v4131_v54  ;;  %v4141_v24 = vadd.f32 %v4138_v60, %v4132_v21 }
 0x400   : > { %v4142_v59 = vadd.f32 %v4138_v60, %v4133_v62  ;;  %v4143_v31 = vadd.f32 %v4138_v60, %v4134_v3  ;;  %v4144_v5 = vadd.f32 %v4138_v60, %v4135_v29  ;;  %v4145_v10 = vadd.f32 %v4138_v60, %v4136_v6 }
 0x401   : > { %v4146_v22 = vadd.f32 %v4138_v60, %v4137_v7  ;;  %v4147_v56 = vsub.f32 %v4139_v0, %v4095_v58  ;;  %v4148_v55 = vsub.f32 %v4140_v34, %v4096_v11  ;;  %v4149_v26 = vsub.f32 %v4141_v24, %v4097_v14 }
 0x402   : > { %v4150_v61 = vsub.f32 %v4142_v59, %v4098_v20  ;;  %v4151_v27 = vsub.f32 %v4143_v31, %v4099_v57  ;;  %v4152_v19 = vsub.f32 %v4144_v5, %v4100_v33  ;;  %v4153_v16 = vsub.f32 %v4145_v10, %v4101_v30 }
 0x403   : > { %v4154_v18 = vsub.f32 %v4146_v22, %v4102_v23  ;;  %v4156_v51 = vmul.f32 %v4147_v56, %v5216_v43  ;;  %v4157_v8 = vmul.f32 %v4148_v55, %v5220_v44  ;;  %v4158_v60 = vmul.f32 %v4149_v26, %v5224_v45 }
 0x404   : > { %v4159_v32 = vmul.f32 %v4150_v61, %v5228_v46  ;;  %v4160_v58 = vmul.f32 %v4151_v27, %v5232_v47  ;;  %v4161_v11 = vmul.f32 %v4152_v19, %v5236_v48  ;;  %v4162_v14 = vmul.f32 %v4153_v16, %v5240_v49 }
 0x405   : > { %v4163_v20 = vmul.f32 %v4154_v18, %v5244_v50  ;;  %v4165_v57 = vadd.f32 %v7381_v2, %v4156_v51  ;;  %v4166_v33 = vadd.f32 %v7381_v2, %v4157_v8  ;;  %v4167_v30 = vadd.f32 %v7381_v2, %v4158_v60 }
 0x406   : > { %v4168_v23 = vadd.f32 %v7381_v2, %v4159_v32  ;;  %v4169_v1 = vadd.f32 %v7381_v2, %v4160_v58  ;;  %v4170_v9 = vadd.f32 %v7381_v2, %v4161_v11  ;;  %v4171_v12 = vadd.f32 %v7381_v2, %v4162_v14 }
 0x407   : > { %v4172_v53 = vadd.f32 %v7381_v2, %v4163_v20  ;;  %v4173_v54 = vsub.f32 %v4165_v57, %v4121_v28  ;;  %v4174_v21 = vsub.f32 %v4166_v33, %v4122_v17  ;;  %v4175_v62 = vsub.f32 %v4167_v30, %v4123_v13 }
 0x408   : > { %v4176_v3 = vsub.f32 %v4168_v23, %v4124_v4  ;;  %v4177_v29 = vsub.f32 %v4169_v1, %v4125_v25  ;;  %v4178_v6 = vsub.f32 %v4170_v9, %v4126_v52  ;;  %v4179_v7 = vsub.f32 %v4171_v12, %v4127_v15 }
 0x409   : > { %v4180_v0 = vsub.f32 %v4172_v53, %v4128_v63  ;;  %v4182_v34 = vmul.f32 %v4173_v54, %v5216_v43  ;;  %v4183_v24 = vmul.f32 %v4174_v21, %v5220_v44  ;;  %v4184_v59 = vmul.f32 %v4175_v62, %v5224_v45 }
 0x40a   : > { %v4185_v2 = vmul.f32 %v4176_v3, %v5228_v46  ;;  %v4186_v28 = vmul.f32 %v4177_v29, %v5232_v47  ;;  %v4187_v17 = vmul.f32 %v4178_v6, %v5236_v48  ;;  %v4188_v13 = vmul.f32 %v4179_v7, %v5240_v49 }
 0x40b   : > { %v4189_v4 = vmul.f32 %v4180_v0, %v5244_v50  ;;  %v4190_v25 = vstv %s7399_s19  ;;  %v4216_v52 = vstv %s7401_s11  ;;  %v4242_v15 = vstv %s7403_s20  ;;  %s4531_s19 = scalar_lea.sflag [#allocation8], %s5182_s9  ;;  %s4971_s11 = scalar_lea.vmem %s7595_s16, 3072 }
 0x40c   : > { %v7435_v63 = vstv %s7409_s21  ;;  %v4191_v31 = vadd.f32 %v4190_v25, %v4182_v34  ;;  %v4192_v5 = vadd.f32 %v4190_v25, %v4183_v24  ;;  %v4193_v10 = vadd.f32 %v4190_v25, %v4184_v59  ;;  %p4972_p4 = scmp.ne.s32.totalorder %s7595_s16, %s4971_s11  ;;  %s5061_s20 = smov [#allocation9]  }
 0x40d   : > { %v4194_v22 = vadd.f32 %v4190_v25, %v4185_v2  ;;  %v4195_v51 = vadd.f32 %v4190_v25, %v4186_v28  ;;  %v4196_v8 = vadd.f32 %v4190_v25, %v4187_v17  ;;  %v4197_v60 = vadd.f32 %v4190_v25, %v4188_v13  ;;  %s4975_s21 = sshll.u32 %s5061_s20, 4  ;;  %s4976_s21 = int_to_ptr.vmem [resolvable:$false] %s4975_s21 }
 0x40e   : > { %v4198_v32 = vadd.f32 %v4190_v25, %v4189_v4  ;;  %v4199_v58 = vsub.f32 %v4191_v31, %v4147_v56  ;;  %v4200_v11 = vsub.f32 %v4192_v5, %v4148_v55  ;;  %v4201_v14 = vsub.f32 %v4193_v10, %v4149_v26  ;;  %p4973_p8 = pnand %p4972_p4, %p5149_p5  ;;  %p4978_p11 = scmp.lt.s32.totalorder %s7595_s16, %s4976_s21 }
 0x40f   : > { %v4202_v20 = vsub.f32 %v4194_v22, %v4150_v61  ;;  %v4203_v57 = vsub.f32 %v4195_v51, %v4151_v27  ;;  %v4204_v33 = vsub.f32 %v4196_v8, %v4152_v19  ;;  %v4205_v30 = vsub.f32 %v4197_v60, %v4153_v16 }
 0x410   : > { %v4206_v23 = vsub.f32 %v4198_v32, %v4154_v18  ;;  %v4208_v1 = vmul.f32 %v4199_v58, %v5216_v43  ;;  %v4209_v9 = vmul.f32 %v4200_v11, %v5220_v44  ;;  %v4210_v12 = vmul.f32 %v4201_v14, %v5224_v45  ;;  %p4974_p10 = pneg %p4973_p8 }
 0x411   : > { %v4211_v53 = vmul.f32 %v4202_v20, %v5228_v46  ;;  %v4212_v34 = vmul.f32 %v4203_v57, %v5232_v47  ;;  %v4213_v24 = vmul.f32 %v4204_v33, %v5236_v48  ;;  %v4214_v56 = vmul.f32 %v4205_v30, %v5240_v49 }
 0x412   : > { %v4215_v55 = vmul.f32 %v4206_v23, %v5244_v50  ;;  %v4217_v26 = vadd.f32 %v4216_v52, %v4208_v1  ;;  %v4218_v61 = vadd.f32 %v4216_v52, %v4209_v9  ;;  %v4219_v27 = vadd.f32 %v4216_v52, %v4210_v12 }
 0x413   : > { %v4220_v19 = vadd.f32 %v4216_v52, %v4211_v53  ;;  %v4221_v16 = vadd.f32 %v4216_v52, %v4212_v34  ;;  %v4222_v18 = vadd.f32 %v4216_v52, %v4213_v24  ;;  %v4223_v59 = vadd.f32 %v4216_v52, %v4214_v56 }
 0x414   : > { %v4224_v2 = vadd.f32 %v4216_v52, %v4215_v55  ;;  %v4225_v28 = vsub.f32 %v4217_v26, %v4173_v54  ;;  %v4226_v17 = vsub.f32 %v4218_v61, %v4174_v21  ;;  %v4227_v13 = vsub.f32 %v4219_v27, %v4175_v62 }
 0x415   : > { %v4228_v4 = vsub.f32 %v4220_v19, %v4176_v3  ;;  %v4229_v25 = vsub.f32 %v4221_v16, %v4177_v29  ;;  %v4230_v31 = vsub.f32 %v4222_v18, %v4178_v6  ;;  %v4231_v5 = vsub.f32 %v4223_v59, %v4179_v7 }
 0x416   : > { %v4232_v10 = vsub.f32 %v4224_v2, %v4180_v0  ;;  %v4234_v22 = vmul.f32 %v4225_v28, %v5216_v43  ;;  %v4235_v51 = vmul.f32 %v4226_v17, %v5220_v44  ;;  %v4236_v8 = vmul.f32 %v4227_v13, %v5224_v45 }
 0x417   : > { %v4237_v60 = vmul.f32 %v4228_v4, %v5228_v46  ;;  %v4238_v32 = vmul.f32 %v4229_v25, %v5232_v47  ;;  %v4239_v52 = vmul.f32 %v4230_v31, %v5236_v48  ;;  %v4240_v54 = vmul.f32 %v4231_v5, %v5240_v49 }
 0x418   : > { %v4241_v21 = vmul.f32 %v4232_v10, %v5244_v50  ;;  %v4243_v62 = vadd.f32 %v4242_v15, %v4234_v22  ;;  %v4244_v3 = vadd.f32 %v4242_v15, %v4235_v51  ;;  %v4245_v29 = vadd.f32 %v4242_v15, %v4236_v8 }
 0x419   : > { %v4246_v6 = vadd.f32 %v4242_v15, %v4237_v60  ;;  %v4247_v7 = vadd.f32 %v4242_v15, %v4238_v32  ;;  %v4248_v0 = vadd.f32 %v4242_v15, %v4239_v52  ;;  %v4249_v1 = vadd.f32 %v4242_v15, %v4240_v54 }
 0x41a   : > { %v4250_v9 = vadd.f32 %v4242_v15, %v4241_v21  ;;  %v4251_v12 = vsub.f32 %v4243_v62, %v4199_v58  ;;  %v4252_v53 = vsub.f32 %v4244_v3, %v4200_v11  ;;  %v4253_v34 = vsub.f32 %v4245_v29, %v4201_v14 }
 0x41b   : > { %v4254_v24 = vsub.f32 %v4246_v6, %v4202_v20  ;;  %v4255_v56 = vsub.f32 %v4247_v7, %v4203_v57  ;;  %v4256_v55 = vsub.f32 %v4248_v0, %v4204_v33  ;;  %v4257_v26 = vsub.f32 %v4249_v1, %v4205_v30 }
 0x41c   : > { %v4258_v61 = vsub.f32 %v4250_v9, %v4206_v23  ;;  %v4260_v27 = vmul.f32 %v4251_v12, %v5216_v43  ;;  %v4261_v19 = vmul.f32 %v4252_v53, %v5220_v44  ;;  %v4262_v15 = vmul.f32 %v4253_v34, %v5224_v45 }
 0x41d   : > { %v4263_v16 = vmul.f32 %v4254_v24, %v5228_v46  ;;  %v4264_v58 = vmul.f32 %v4255_v56, %v5232_v47  ;;  %v4265_v11 = vmul.f32 %v4256_v55, %v5236_v48  ;;  %v4266_v14 = vmul.f32 %v4257_v26, %v5240_v49 }
 0x41e   : > { %v4267_v20 = vmul.f32 %v4258_v61, %v5244_v50  ;;  %v4269_v57 = vadd.f32 %v7435_v63, %v4260_v27  ;;  %v4270_v33 = vadd.f32 %v7435_v63, %v4261_v19  ;;  %v4271_v30 = vadd.f32 %v7435_v63, %v4262_v15 }
 0x41f   : > { %v4272_v23 = vadd.f32 %v7435_v63, %v4263_v16  ;;  %v4273_v18 = vadd.f32 %v7435_v63, %v4264_v58  ;;  %v4274_v59 = vadd.f32 %v7435_v63, %v4265_v11  ;;  %v4275_v2 = vadd.f32 %v7435_v63, %v4266_v14 }
 0x420   : > { %v4276_v22 = vadd.f32 %v7435_v63, %v4267_v20  ;;  %v4277_v51 = vsub.f32 %v4269_v57, %v4225_v28  ;;  %v4278_v8 = vsub.f32 %v4270_v33, %v4226_v17  ;;  %v4279_v60 = vsub.f32 %v4271_v30, %v4227_v13 }
 0x421   : > { %v4280_v32 = vsub.f32 %v4272_v23, %v4228_v4  ;;  %v4281_v52 = vsub.f32 %v4273_v18, %v4229_v25  ;;  %v4282_v54 = vsub.f32 %v4274_v59, %v4230_v31  ;;  %v4283_v21 = vsub.f32 %v4275_v2, %v4231_v5 }
 0x422   : > { %v4284_v62 = vsub.f32 %v4276_v22, %v4232_v10  ;;  %v4286_v3 = vmul.f32 %v4277_v51, %v5216_v43  ;;  %v4287_v29 = vmul.f32 %v4278_v8, %v5220_v44  ;;  %v4288_v6 = vmul.f32 %v4279_v60, %v5224_v45 }
 0x423   : > { %v4289_v63 = vmul.f32 %v4280_v32, %v5228_v46  ;;  %v4290_v28 = vmul.f32 %v4281_v52, %v5232_v47  ;;  %v4291_v17 = vmul.f32 %v4282_v54, %v5236_v48  ;;  %v4292_v13 = vmul.f32 %v4283_v21, %v5240_v49 }
 0x424   : > { %v4293_v4 = vmul.f32 %v4284_v62, %v5244_v50  ;;  %v4294_v25 = vstv %s7453_s22  ;;  %v4320_v31 = vstv %s7455_s23  ;;  %v4346_v5 = vstv %s7457_s25  ;;  %s4977_s22 = scalar_lea.vmem %s4976_s21, 6144 }
 0x425   : > { %v7489_v10 = vstv %s7463_s0  ;;  %v4295_v7 = vadd.f32 %v4294_v25, %v4286_v3  ;;  %v4296_v0 = vadd.f32 %v4294_v25, %v4287_v29  ;;  %v4297_v1 = vadd.f32 %v4294_v25, %v4288_v6  ;;  %p4979_p13 = scmp.lt.s32.totalorder %s4977_s22, %s4971_s11 }
 0x426   : > { %v4298_v9 = vadd.f32 %v4294_v25, %v4289_v63  ;;  %v4299_v27 = vadd.f32 %v4294_v25, %v4290_v28  ;;  %v4300_v19 = vadd.f32 %v4294_v25, %v4291_v17  ;;  %v4301_v15 = vadd.f32 %v4294_v25, %v4292_v13 }
 0x427   : > { %v4302_v16 = vadd.f32 %v4294_v25, %v4293_v4  ;;  %v4303_v58 = vsub.f32 %v4295_v7, %v4251_v12  ;;  %v4304_v11 = vsub.f32 %v4296_v0, %v4252_v53  ;;  %v4305_v14 = vsub.f32 %v4297_v1, %v4253_v34  ;;  %p4980_p1 = por %p4979_p13, %p4978_p11 }
 0x428   : > { %v4306_v20 = vsub.f32 %v4298_v9, %v4254_v24  ;;  %v4307_v57 = vsub.f32 %v4299_v27, %v4255_v56  ;;  %v4308_v33 = vsub.f32 %v4300_v19, %v4256_v55  ;;  %v4309_v30 = vsub.f32 %v4301_v15, %v4257_v26 }
 0x429   : > { %v4310_v23 = vsub.f32 %v4302_v16, %v4258_v61  ;;  %v4312_v18 = vmul.f32 %v4303_v58, %v5216_v43  ;;  %v4313_v59 = vmul.f32 %v4304_v11, %v5220_v44  ;;  %v4314_v2 = vmul.f32 %v4305_v14, %v5224_v45  ;;  %p4981_p2 = pnand %p4980_p1, %p4974_p10 }
 0x42a   : > { %v4315_v22 = vmul.f32 %v4306_v20, %v5228_v46  ;;  %v4316_v3 = vmul.f32 %v4307_v57, %v5232_v47  ;;  %v4317_v29 = vmul.f32 %v4308_v33, %v5236_v48  ;;  %v4318_v12 = vmul.f32 %v4309_v30, %v5240_v49 }
 0x42b   : > { %v4319_v53 = vmul.f32 %v4310_v23, %v5244_v50  ;;  %v4321_v34 = vadd.f32 %v4320_v31, %v4312_v18  ;;  %v4322_v24 = vadd.f32 %v4320_v31, %v4313_v59  ;;  %v4323_v56 = vadd.f32 %v4320_v31, %v4314_v2 }
 0x42c   : > { %v4324_v55 = vadd.f32 %v4320_v31, %v4315_v22  ;;  %v4325_v26 = vadd.f32 %v4320_v31, %v4316_v3  ;;  %v4326_v61 = vadd.f32 %v4320_v31, %v4317_v29  ;;  %v4327_v6 = vadd.f32 %v4320_v31, %v4318_v12 }
 0x42d   : > { %v4328_v63 = vadd.f32 %v4320_v31, %v4319_v53  ;;  %v4329_v28 = vsub.f32 %v4321_v34, %v4277_v51  ;;  %v4330_v17 = vsub.f32 %v4322_v24, %v4278_v8  ;;  %v4331_v13 = vsub.f32 %v4323_v56, %v4279_v60 }
 0x42e   : > { %v4332_v4 = vsub.f32 %v4324_v55, %v4280_v32  ;;  %v4333_v25 = vsub.f32 %v4325_v26, %v4281_v52  ;;  %v4334_v7 = vsub.f32 %v4326_v61, %v4282_v54  ;;  %v4335_v0 = vsub.f32 %v4327_v6, %v4283_v21 }
 0x42f   : > { %v4336_v1 = vsub.f32 %v4328_v63, %v4284_v62  ;;  %v4338_v9 = vmul.f32 %v4329_v28, %v5216_v43  ;;  %v4339_v27 = vmul.f32 %v4330_v17, %v5220_v44  ;;  %v4340_v19 = vmul.f32 %v4331_v13, %v5224_v45 }
 0x430   : > { %v4341_v15 = vmul.f32 %v4332_v4, %v5228_v46  ;;  %v4342_v16 = vmul.f32 %v4333_v25, %v5232_v47  ;;  %v4343_v31 = vmul.f32 %v4334_v7, %v5236_v48  ;;  %v4344_v51 = vmul.f32 %v4335_v0, %v5240_v49 }
 0x431   : > { %v4345_v8 = vmul.f32 %v4336_v1, %v5244_v50  ;;  %v4347_v60 = vadd.f32 %v4346_v5, %v4338_v9  ;;  %v4348_v32 = vadd.f32 %v4346_v5, %v4339_v27  ;;  %v4349_v52 = vadd.f32 %v4346_v5, %v4340_v19 }
 0x432   : > { %v4350_v54 = vadd.f32 %v4346_v5, %v4341_v15  ;;  %v4351_v21 = vadd.f32 %v4346_v5, %v4342_v16  ;;  %v4352_v62 = vadd.f32 %v4346_v5, %v4343_v31  ;;  %v4353_v18 = vadd.f32 %v4346_v5, %v4344_v51 }
 0x433   : > { %v4354_v59 = vadd.f32 %v4346_v5, %v4345_v8  ;;  %v4355_v2 = vsub.f32 %v4347_v60, %v4303_v58  ;;  %v4356_v22 = vsub.f32 %v4348_v32, %v4304_v11  ;;  %v4357_v3 = vsub.f32 %v4349_v52, %v4305_v14 }
 0x434   : > { %v4358_v29 = vsub.f32 %v4350_v54, %v4306_v20  ;;  %v4359_v12 = vsub.f32 %v4351_v21, %v4307_v57  ;;  %v4360_v53 = vsub.f32 %v4352_v62, %v4308_v33  ;;  %v4361_v34 = vsub.f32 %v4353_v18, %v4309_v30 }
 0x435   : > { %v4362_v24 = vsub.f32 %v4354_v59, %v4310_v23  ;;  %v4364_v56 = vmul.f32 %v4355_v2, %v5216_v43  ;;  %v4365_v55 = vmul.f32 %v4356_v22, %v5220_v44  ;;  %v4366_v5 = vmul.f32 %v4357_v3, %v5224_v45 }
 0x436   : > { %v4367_v26 = vmul.f32 %v4358_v29, %v5228_v46  ;;  %v4368_v58 = vmul.f32 %v4359_v12, %v5232_v47  ;;  %v4369_v11 = vmul.f32 %v4360_v53, %v5236_v48  ;;  %v4370_v14 = vmul.f32 %v4361_v34, %v5240_v49 }
 0x437   : > { %v4371_v20 = vmul.f32 %v4362_v24, %v5244_v50  ;;  %v4373_v57 = vadd.f32 %v7489_v10, %v4364_v56  ;;  %v4374_v33 = vadd.f32 %v7489_v10, %v4365_v55  ;;  %v4375_v30 = vadd.f32 %v7489_v10, %v4366_v5 }
 0x438   : > { %v4376_v23 = vadd.f32 %v7489_v10, %v4367_v26  ;;  %v4377_v61 = vadd.f32 %v7489_v10, %v4368_v58  ;;  %v4378_v6 = vadd.f32 %v7489_v10, %v4369_v11  ;;  %v4379_v63 = vadd.f32 %v7489_v10, %v4370_v14 }
 0x439   : > { %v4380_v9 = vadd.f32 %v7489_v10, %v4371_v20  ;;  %v4381_v27 = vsub.f32 %v4373_v57, %v4329_v28  ;;  %v4382_v19 = vsub.f32 %v4374_v33, %v4330_v17  ;;  %v4383_v15 = vsub.f32 %v4375_v30, %v4331_v13 }
 0x43a   : > { %v4384_v16 = vsub.f32 %v4376_v23, %v4332_v4  ;;  %v4385_v31 = vsub.f32 %v4377_v61, %v4333_v25  ;;  %v4386_v51 = vsub.f32 %v4378_v6, %v4334_v7  ;;  %v4387_v8 = vsub.f32 %v4379_v63, %v4335_v0 }
 0x43b   : > { %v4388_v60 = vsub.f32 %v4380_v9, %v4336_v1  ;;  %v4390_v32 = vmul.f32 %v4381_v27, %v5216_v43  ;;  %v4391_v52 = vmul.f32 %v4382_v19, %v5220_v44  ;;  %v4392_v54 = vmul.f32 %v4383_v15, %v5224_v45 }
 0x43c   : > { %v4393_v10 = vmul.f32 %v4384_v16, %v5228_v46  ;;  %v4394_v28 = vmul.f32 %v4385_v31, %v5232_v47  ;;  %v4395_v17 = vmul.f32 %v4386_v51, %v5236_v48  ;;  %v4396_v13 = vmul.f32 %v4387_v8, %v5240_v49 }
 0x43d   : > { %v4397_v4 = vmul.f32 %v4388_v60, %v5244_v50  ;;  %v4398_v25 = vstv %s7507_s1  ;;  %v4424_v7 = vstv %s7509_s5  ;;  %v4450_v0 = vstv %s7511_s6 }
 0x43e   : > { %v7543_v1 = vstv %s7517_s8  ;;  %v4399_v21 = vadd.f32 %v4398_v25, %v4390_v32  ;;  %v4400_v62 = vadd.f32 %v4398_v25, %v4391_v52  ;;  %v4401_v18 = vadd.f32 %v4398_v25, %v4392_v54 }
 0x43f   : > { %v4402_v59 = vadd.f32 %v4398_v25, %v4393_v10  ;;  %v4403_v56 = vadd.f32 %v4398_v25, %v4394_v28  ;;  %v4404_v55 = vadd.f32 %v4398_v25, %v4395_v17  ;;  %v4405_v5 = vadd.f32 %v4398_v25, %v4396_v13 }
 0x440   : > { %v4406_v26 = vadd.f32 %v4398_v25, %v4397_v4  ;;  %v4407_v58 = vsub.f32 %v4399_v21, %v4355_v2  ;;  %v4408_v11 = vsub.f32 %v4400_v62, %v4356_v22  ;;  %v4409_v14 = vsub.f32 %v4401_v18, %v4357_v3 }
 0x441   : > { %v4410_v20 = vsub.f32 %v4402_v59, %v4358_v29  ;;  %v4411_v57 = vsub.f32 %v4403_v56, %v4359_v12  ;;  %v4412_v33 = vsub.f32 %v4404_v55, %v4360_v53  ;;  %v4413_v30 = vsub.f32 %v4405_v5, %v4361_v34 }
 0x442   : > { %v4414_v23 = vsub.f32 %v4406_v26, %v4362_v24  ;;  %v4416_v61 = vmul.f32 %v4407_v58, %v5216_v43  ;;  %v4417_v6 = vmul.f32 %v4408_v11, %v5220_v44  ;;  %v4418_v63 = vmul.f32 %v4409_v14, %v5224_v45 }
 0x443   : > { %v4419_v9 = vmul.f32 %v4410_v20, %v5228_v46  ;;  %v4420_v32 = vmul.f32 %v4411_v57, %v5232_v47  ;;  %v4421_v52 = vmul.f32 %v4412_v33, %v5236_v48  ;;  %v4422_v2 = vmul.f32 %v4413_v30, %v5240_v49 }
 0x444   : > { %v4423_v22 = vmul.f32 %v4414_v23, %v5244_v50  ;;  %v4425_v3 = vadd.f32 %v4424_v7, %v4416_v61  ;;  %v4426_v29 = vadd.f32 %v4424_v7, %v4417_v6  ;;  %v4427_v12 = vadd.f32 %v4424_v7, %v4418_v63 }
 0x445   : > { %v4428_v53 = vadd.f32 %v4424_v7, %v4419_v9  ;;  %v4429_v34 = vadd.f32 %v4424_v7, %v4420_v32  ;;  %v4430_v24 = vadd.f32 %v4424_v7, %v4421_v52  ;;  %v4431_v54 = vadd.f32 %v4424_v7, %v4422_v2 }
 0x446   : > { %v4432_v10 = vadd.f32 %v4424_v7, %v4423_v22  ;;  %v4433_v28 = vsub.f32 %v4425_v3, %v4381_v27  ;;  %v4434_v17 = vsub.f32 %v4426_v29, %v4382_v19  ;;  %v4435_v13 = vsub.f32 %v4427_v12, %v4383_v15 }
 0x447   : > { %v4436_v4 = vsub.f32 %v4428_v53, %v4384_v16  ;;  %v4437_v25 = vsub.f32 %v4429_v34, %v4385_v31  ;;  %v4438_v21 = vsub.f32 %v4430_v24, %v4386_v51  ;;  %v4439_v62 = vsub.f32 %v4431_v54, %v4387_v8 }
 0x448   : > { %v4440_v18 = vsub.f32 %v4432_v10, %v4388_v60  ;;  %v4442_v59 = vmul.f32 %v4433_v28, %v5216_v43  ;;  %v4443_v56 = vmul.f32 %v4434_v17, %v5220_v44  ;;  %v4444_v55 = vmul.f32 %v4435_v13, %v5224_v45 }
 0x449   : > { %v4445_v5 = vmul.f32 %v4436_v4, %v5228_v46  ;;  %v4446_v26 = vmul.f32 %v4437_v25, %v5232_v47  ;;  %v4447_v7 = vmul.f32 %v4438_v21, %v5236_v48  ;;  %v4448_v27 = vmul.f32 %v4439_v62, %v5240_v49 }
 0x44a   : > { %v4449_v19 = vmul.f32 %v4440_v18, %v5244_v50  ;;  %v4451_v15 = vadd.f32 %v4450_v0, %v4442_v59  ;;  %v4452_v16 = vadd.f32 %v4450_v0, %v4443_v56  ;;  %v4453_v31 = vadd.f32 %v4450_v0, %v4444_v55 }
 0x44b   : > { %v4454_v51 = vadd.f32 %v4450_v0, %v4445_v5  ;;  %v4455_v8 = vadd.f32 %v4450_v0, %v4446_v26  ;;  %v4456_v60 = vadd.f32 %v4450_v0, %v4447_v7  ;;  %v4457_v61 = vadd.f32 %v4450_v0, %v4448_v27 }
 0x44c   : > { %v4458_v6 = vadd.f32 %v4450_v0, %v4449_v19  ;;  %v4459_v63 = vsub.f32 %v4451_v15, %v4407_v58  ;;  %v4460_v9 = vsub.f32 %v4452_v16, %v4408_v11  ;;  %v4461_v32 = vsub.f32 %v4453_v31, %v4409_v14 }
 0x44d   : > { %v4462_v52 = vsub.f32 %v4454_v51, %v4410_v20  ;;  %v4463_v2 = vsub.f32 %v4455_v8, %v4411_v57  ;;  %v4464_v22 = vsub.f32 %v4456_v60, %v4412_v33  ;;  %v4465_v3 = vsub.f32 %v4457_v61, %v4413_v30 }
 0x44e   : > { %v4466_v29 = vsub.f32 %v4458_v6, %v4414_v23  ;;  %v4468_v12 = vmul.f32 %v4459_v63, %v5216_v43  ;;  %v4469_v53 = vmul.f32 %v4460_v9, %v5220_v44  ;;  %v4470_v34 = vmul.f32 %v4461_v32, %v5224_v45 }
 0x44f   : > { %v4471_v24 = vmul.f32 %v4462_v52, %v5228_v46  ;;  %v4472_v0 = vmul.f32 %v4463_v2, %v5232_v47  ;;  %v4473_v58 = vmul.f32 %v4464_v22, %v5236_v48  ;;  %v4474_v11 = vmul.f32 %v4465_v3, %v5240_v49 }
 0x450   : > { %v4475_v14 = vmul.f32 %v4466_v29, %v5244_v50  ;;  %v4477_v20 = vadd.f32 %v7543_v1, %v4468_v12  ;;  %v4478_v43 = vadd.f32 %v7543_v1, %v4469_v53  ;;  %v4479_v44 = vadd.f32 %v7543_v1, %v4470_v34 }
 0x451   : > { %v4480_v45 = vadd.f32 %v7543_v1, %v4471_v24  ;;  %v4481_v46 = vadd.f32 %v7543_v1, %v4472_v0  ;;  %v4482_v57 = vadd.f32 %v7543_v1, %v4473_v58  ;;  %v4483_v47 = vadd.f32 %v7543_v1, %v4474_v11 }
 0x452   : > { %v4484_v48 = vadd.f32 %v7543_v1, %v4475_v14  ;;  %v4485_v33 = vsub.f32 %v4477_v20, %v4433_v28  ;;  %v4486_v49 = vsub.f32 %v4478_v43, %v4434_v17  ;;  %v4487_v50 = vsub.f32 %v4479_v44, %v4435_v13 }
 0x453   : > { %v4488_v30 = vsub.f32 %v4480_v45, %v4436_v4  ;;  %v4489_v23 = vsub.f32 %v4481_v46, %v4437_v25  ;;  %v4490_v54 = vsub.f32 %v4482_v57, %v4438_v21  ;;  %v4491_v10 = vsub.f32 %v4483_v47, %v4439_v62 }
 0x454   : > { %v4492_v59 = vsub.f32 %v4484_v48, %v4440_v18  ;;  %v4494_v56 = vmul.f32 %v5198_v35, %v4485_v33  ;;  %v4495_v55 = vmul.f32 %v5200_v36, %v4486_v49  ;;  %v4496_v5 = vmul.f32 %v5202_v37, %v4487_v50 }
 0x455   : > { %v4497_v26 = vmul.f32 %v5204_v38, %v4488_v30  ;;  %v4498_v1 = vmul.f32 %v5206_v39, %v4489_v23  ;;  %v4499_v28 = vmul.f32 %v5208_v40, %v4490_v54  ;;  %v4500_v17 = vmul.f32 %v5210_v41, %v4491_v10 }
 0x456   : > { %v4501_v13 = vmul.f32 %v5212_v42, %v4492_v59  ;;  %v4502_v4 = vstv %s7565_s10 }
 0x457   : > { %v4503_v25 = vadd.f32 %v4502_v4, %v4494_v56  ;;  %v4504_v21 = vadd.f32 %v4502_v4, %v4495_v55  ;;  %v4505_v35 = vadd.f32 %v4502_v4, %v4496_v5  ;;  %v4506_v36 = vadd.f32 %v4502_v4, %v4497_v26 }
 0x458   : > { %v4507_v37 = vadd.f32 %v4502_v4, %v4498_v1  ;;  %v4508_v38 = vadd.f32 %v4502_v4, %v4499_v28  ;;  %v4509_v39 = vadd.f32 %v4502_v4, %v4500_v17  ;;  %v4510_v40 = vadd.f32 %v4502_v4, %v4501_v13 }
 0x459   : > { %v4511_v41 = vsub.f32 %v4503_v25, %v4459_v63  ;;  %v4512_v42 = vsub.f32 %v4504_v21, %v4460_v9  ;;  %v4513_v62 = vsub.f32 %v4505_v35, %v4461_v32  ;;  %v4514_v18 = vsub.f32 %v4506_v36, %v4462_v52 }
 0x45a   : > { %v4515_v7 = vsub.f32 %v4507_v37, %v4463_v2  ;;  %v4516_v27 = vsub.f32 %v4508_v38, %v4464_v22  ;;  %v4517_v19 = vsub.f32 %v4509_v39, %v4465_v3  ;;  %v4518_v15 = vsub.f32 %v4510_v40, %v4466_v29 }
 0x45b   : > { %4828 = vst [vmem:[%s6037_s24 + $0x80] sm:$0xff] %v4511_v41  ;;  %4829 = vst [vmem:[%s6037_s24 + $0x88] sm:$0xff] %v4512_v42 }
 0x45c   : > { %4830 = vst [vmem:[%s6037_s24 + $0x90] sm:$0xff] %v4513_v62  ;;  %4831 = vst [vmem:[%s6037_s24 + $0x98] sm:$0xff] %v4514_v18 }
 0x45d   : > { %4832 = vst [vmem:[%s6037_s24 + $0xa0] sm:$0xff] %v4515_v7  ;;  %4833 = vst [vmem:[%s6037_s24 + $0xa8] sm:$0xff] %v4516_v27 }
 0x45e   : > { %4834 = vst [vmem:[%s6037_s24 + $0xb0] sm:$0xff] %v4517_v19  ;;  %4835 = vst [vmem:[%s6037_s24 + $0xb8] sm:$0xff] %v4518_v15 }
 0x45f   : > { %4984 = shalt.err (!%p4981_p2)
}
 0x460   : > { %s4985_s24 = scalar_lea.hbm %s7593_s18, 3072  ;;  %s4989_s0 = scalar_lea.hbm %s7653_s4, 6144 }
 0x461   : > { %p4986_p3 = scmp.ne.s32.totalorder %s7593_s18, %s4985_s24  ;;  %p4990_p9 = scmp.lt.s32.totalorder %s7593_s18, %s7653_s4 }
 0x462   : > { %p4991_p12 = scmp.lt.s32.totalorder %s4989_s0, %s4985_s24 }
 0x463   : > { %p4987_p6 = pnand %p4986_p3, %p5149_p5 }
 0x464   : > { %p4992_p4 = por %p4991_p12, %p4990_p9 }
 0x465   : > { %p4988_p0 = pneg %p4987_p6 }
 0x467   : > { %p4993_p8 = pnand %p4992_p4, %p4988_p0 }
 0x469   : > { %4996 = shalt.err (!%p4993_p8)
}
 0x46a   : > { %s5062_s6 = smov 512   ;;  %s5063_s8 = smov 32  }
 0x46b   : > { %4844 = dma.vmem_to_hbm [thread:$0]  (%p5149_p5), %s7595_s16, 3072, %s7593_s18, %s4531_s19, %s5062_s6, %s5062_s6, %s5063_s8  }
 0x46c PF: > { %s4562_s10 = sand.u32 1, %s5033_s2   ;;  %p7661_p10 = scmp.ge.s32.totalorder %s5053_s30, 2 }
 0x46d   : > { %s4563_s15 = scalar_lea.sflag [#allocation8], %s4562_s10 }
 0x46e   : > { %p4851_p11 = pnand %p7661_p10, %p5156_p7 }
 0x470   : > { %p4852_p13 = pneg %p4851_p11 }
 0x472   : > { %5028 = dma.done.wait (%p4852_p13), %s4563_s15, 3072  }
 0x473   : > { %5030 = vsyncadd (%p4852_p13), %s4563_s15, 4294964224  ;;  %s32_s30 = sadd.s32 1, %s5053_s30   ;;  %s7662_s2 = smov %s5037_s26 }
 0x474   : > { %p29_p1 = scmp.ge.s32.totalorder %s32_s30, 4   ;;  %s7663_s26 = smov %s5041_s27 }
 0x475   : > { %s7664_s27 = smov %s5154_s13  ;;  %s7665_s28 = smov %s5049_s29 }
 0x476   : > { %s7666_s29 = smov %s7668_s7  ;;  %31 = sbr.rel (!%p29_p1) target bundleno = 32 (0x20), region = 73 }
 0x47b   :  { %4568 = vsyncpa [#allocation7], 1 }
 0x47c   :  { %4570 = vsyncpa [#allocation7 + $0x1], 1 }
 0x47d   :  { %4571 = vsyncpa [#allocation8], 1 }
 0x47e   :  { %4573 = vsyncpa [#allocation8 + $0x1], 1 }

</bundles_post_ra>
